<compile_context>
chip_gen: v5e
topology: v5e:2x2
jax: 0.10.0
libtpu: 0.0.40
codegen_flags: <defaults>
</compile_context>

<pallas_src>
import jax
import jax.numpy as jnp
from jax.experimental import pallas as pl
from jax.experimental.pallas import tpu as pltpu

# Small synthetic sizes (real model: vocab=27597, hidden=100, layers=2).
# TODO(synk): for the real model pad V 27597->27648 and H 100->128 in the
# wrapper.  H padding must be done PER GATE (the [4H,H] weights pack gates in
# chunks of the original H) with zero bias in padded lanes; padded vocab columns
# must get a large-negative fc1_b so they drop out of the log_softmax normalizer.
VOCAB = 512        # stand-in for 27597
HIDDEN = 128       # stand-in for 100 (lane-aligned)
LAYERS = 2
SEQ = 8            # T
BATCH = 16         # B  (N = T*B = 128 packed rows)


# --------------------------------------------------------------------------
# Generation-dependent tuning knobs (review: shards only help on v7x; v6e gets
# a bigger head row tile + higher VMEM limit; v5e must keep f32 exp).
# --------------------------------------------------------------------------
def _device_kind():
    try:
        d = jax.devices()[0]
        if d.platform != "tpu":
            return ""
        return d.device_kind.lower()
    except Exception:
        return ""


_KIND = _device_kind()
_IS_V7 = "7" in _KIND
_IS_V6 = "v6" in _KIND
_IS_V5 = "v5" in _KIND

# v7x has 2 TensorCores per chip -> one batch shard per TC; v5e/v6e have 1 TC,
# where sharding just halves MXU LHS rows and adds a grid step.
LSTM_BATCH_SHARDS = 2 if _IS_V7 else 1
# 128 MiB physical VMEM on v5e/v6e (raise limit for the big head tiles); 64 MiB
# physical on v7x (keep the limit conservative there).
HEAD_VMEM_LIMIT = (96 if (_IS_V5 or _IS_V6) else 48) * 1024 * 1024
# v6e MXU is 256 rows -> tm=256 fills the LHS at real N; 128 elsewhere.
HEAD_ROW_TILE = 256 if _IS_V6 else 128
# bf16 EUP exp only where the EUP supports bf16 (v6e/v7x), never on v5e.
HEAD_BF16_EXP = _IS_V6 or _IS_V7


def _const_block_spec(block_shape):
    """BlockSpec for a grid-invariant block: single-buffered when supported."""
    index_map = lambda i, _bs=block_shape: (0,) * len(_bs)
    try:
        return pl.BlockSpec(block_shape, index_map, pipeline_mode=pl.Buffered(1))
    except Exception:  # older jax: no pipeline_mode / pl.Buffered
        return pl.BlockSpec(block_shape, index_map)


# --------------------------------------------------------------------------
# Kernel 1: fused multi-layer LSTM over the whole sequence.
#   x_ref    [T, BS, H]        input sequence shard (time-major, f32)
#   wih_ref  [L, H, 4H] bf16   stacked W_ih^T   (PyTorch gate order i, f, g, o)
#   whh_ref  [L, H, 4H] bf16   stacked W_hh^T
#   b_ref    [L, 1, 4H] f32    stacked (b_ih + b_hh)
#   out_ref  [T, BS, H]        last-layer hidden sequence (f32)
#   xproj_sc [T, BS, 4H]       hoisted input-projection scratch (f32)
#   hseq_sc  [T, BS, H]        inter-layer hidden-sequence scratch (f32)
# --------------------------------------------------------------------------
def _lstm_stack_kernel(x_ref, wih_ref, whh_ref, b_ref, out_ref, xproj_sc, hseq_sc):
    T, BS, H = x_ref.shape
    L = wih_ref.shape[0]

    for l in range(L):                      # static layer loop (weights stay in VMEM)
        src = x_ref if l == 0 else hseq_sc
        dst = out_ref if l == L - 1 else hseq_sc

        # Hoisted input projection (off the serial path): one well-shaped
        # [T*BS, H] x [H, 4H] bf16 MXU matmul with f32 accumulation, plus a
        # single bias broadcast, instead of T tiny matmuls in the loop.
        x2d = src[...].reshape(T * BS, H).astype(jnp.bfloat16)
        xp = (jnp.dot(x2d, wih_ref[l], preferred_element_type=jnp.float32)
              + b_ref[l])                                          # [T*BS, 4H] f32
        xproj_sc[...] = xp.reshape(T, BS, 4 * H)

        # Recurrence: only h @ W_hh remains on the serial path.  T is a small
        # static constant, so fully unroll with h/c carried as values (vregs).
        # bf16 operands into the MXU; gate math and c/h state stay f32.
        h = jnp.zeros((BS, H), jnp.float32)
        c = jnp.zeros((BS, H), jnp.float32)
        for t in range(T):
            gates = xproj_sc[t] + jnp.dot(h.astype(jnp.bfloat16), whh_ref[l],
                                          preferred_element_type=jnp.float32)
            i_g = jax.nn.sigmoid(gates[:, 0 * H:1 * H])
            f_g = jax.nn.sigmoid(gates[:, 1 * H:2 * H])
            g_g = jnp.tanh(gates[:, 2 * H:3 * H])
            o_g = jax.nn.sigmoid(gates[:, 3 * H:4 * H])
            c = f_g * c + i_g * g_g
            h = o_g * jnp.tanh(c)
            dst[t] = h


def lstm_stack(x, wih_all, whh_all, b_all, *, batch_shards=None):
    if batch_shards is None:
        batch_shards = LSTM_BATCH_SHARDS
    T, B, H = x.shape
    L = wih_all.shape[0]
    assert B % batch_shards == 0 and (B // batch_shards) % 8 == 0
    BS = B // batch_shards
    if batch_shards > 1:
        # v7x only: one shard per TensorCore.  CORE_PARALLEL is the semantics
        # documented to change codegen; fall back to "parallel" if unavailable.
        dim_sem = (getattr(pltpu, "CORE_PARALLEL", "parallel"),)
    else:
        dim_sem = ("arbitrary",)
    return pl.pallas_call(
        _lstm_stack_kernel,
        out_shape=jax.ShapeDtypeStruct((T, B, H), jnp.float32),
        grid=(batch_shards,),
        in_specs=[
            pl.BlockSpec((T, BS, H), lambda i: (0, i, 0)),
            _const_block_spec((L, H, 4 * H)),
            _const_block_spec((L, H, 4 * H)),
            _const_block_spec((L, 1, 4 * H)),
        ],
        out_specs=pl.BlockSpec((T, BS, H), lambda i: (0, i, 0)),
        scratch_shapes=[
            pltpu.VMEM((T, BS, 4 * H), jnp.float32),   # hoisted x-projection
            pltpu.VMEM((T, BS, H), jnp.float32),       # inter-layer h sequence
        ],
        compiler_params=pltpu.CompilerParams(dimension_semantics=dim_sem),
    )(x, wih_all, whh_all, b_all)


# --------------------------------------------------------------------------
# Kernel 2: head = hl Linear + tanh x3 + fc1 Linear (bf16 weights, f32 acc)
#           + log_softmax(dim=1), tiled over packed rows N.
# --------------------------------------------------------------------------
def _make_head_kernel(use_bf16_exp):
    def _head_kernel(h_ref, whl_ref, bhl_ref, wfc_ref, bfc_ref, out_ref):
        y = jnp.dot(h_ref[...], whl_ref[...],
                    preferred_element_type=jnp.float32) + bhl_ref[...]
        y = jnp.tanh(jnp.tanh(jnp.tanh(y)))
        logits = jnp.dot(y.astype(jnp.bfloat16), wfc_ref[...],
                         preferred_element_type=jnp.float32) + bfc_ref[...]
        m = jnp.max(logits, axis=1, keepdims=True)
        shifted = logits - m
        if use_bf16_exp:
            # v6e/v7x: bf16 EUP exp is ~2x; max/subtract, sum and log stay f32.
            e = jnp.exp(shifted.astype(jnp.bfloat16)).astype(jnp.float32)
        else:
            e = jnp.exp(shifted)
        lse = m + jnp.log(jnp.sum(e, axis=1, keepdims=True))
        out_ref[...] = logits - lse
        # TODO(synk): at real vocab the f32 [tm, V] writeback dominates; emit
        # bf16 log-probs or fuse the NLL gather/loss here, and on v7x add a
        # vocab grid axis with an online (two-pass) log_softmax so the output
        # tile stays small and lane-dense.
    return _head_kernel


def head(hdata, whl_t, bhl2d, wfc_t_bf16, bfc2d, *, tm=None):
    if tm is None:
        tm = HEAD_ROW_TILE
    N, H = hdata.shape
    V = wfc_t_bf16.shape[1]
    tm = min(tm, max(128, -(-N // 128) * 128))   # don't over-tile tiny packed N
    n_tiles = pl.cdiv(N, tm)
    n_pad = n_tiles * tm
    if n_pad != N:
        # TODO(synk): replace this wrapper-side pad (extra HBM copy of [N,H] plus
        # one wasted tile of head work) with an in-kernel tail mask / clamped
        # index_map once N is large and ragged.
        hdata = jnp.pad(hdata, ((0, n_pad - N), (0, 0)))
    out = pl.pallas_call(
        _make_head_kernel(HEAD_BF16_EXP),
        out_shape=jax.ShapeDtypeStruct((n_pad, V), jnp.float32),
        grid=(n_tiles,),
        in_specs=[
            pl.BlockSpec((tm, H), lambda i: (i, 0)),
            _const_block_spec((H, H)),
            _const_block_spec((1, H)),
            _const_block_spec((H, V)),
            _const_block_spec((1, V)),
        ],
        out_specs=pl.BlockSpec((tm, V), lambda i: (i, 0)),
        compiler_params=pltpu.CompilerParams(
            dimension_semantics=("parallel",),
            vmem_limit_bytes=HEAD_VMEM_LIMIT),
    )(hdata, whl_t, bhl2d, wfc_t_bf16, bfc2d)
    return out[:N] if n_pad != N else out


# --------------------------------------------------------------------------
# One-time weight layout prep (outside jit: transposes / stacking / bias sums /
# bf16 casts are NOT redone per forward call).
# --------------------------------------------------------------------------
def prepare_params(params):
    H = params["hl_w"].shape[0]
    V = params["fc1_w"].shape[0]
    # LSTM matmul weights in bf16 (MXU-native); biases and state stay f32.
    wih_all = jnp.stack([params[f"w_ih_{l}"].T for l in range(LAYERS)]
                        ).astype(jnp.bfloat16)                               # [L, H, 4H]
    whh_all = jnp.stack([params[f"w_hh_{l}"].T for l in range(LAYERS)]
                        ).astype(jnp.bfloat16)                               # [L, H, 4H]
    b_all = jnp.stack([(params[f"b_ih_{l}"] + params[f"b_hh_{l}"]).reshape(1, 4 * H)
                       for l in range(LAYERS)])                              # [L, 1, 4H]
    return {
        "emb": params["fc1_w"],                                  # tied embedding table [V, H]
        "wih_all": wih_all,
        "whh_all": whh_all,
        "b_all": b_all,
        "hl_wT": params["hl_w"].T,
        "hl_b": params["hl_b"].reshape(1, H),
        "fc1_wT_bf16": params["fc1_w"].T.astype(jnp.bfloat16),   # [H, V] bf16 (f32 acc in-kernel)
        "fc1_b": params["fc1_b"].reshape(1, V),
    }


# --------------------------------------------------------------------------
# Full forward (glue in plain JAX: embedding gather + reshapes).
# --------------------------------------------------------------------------
def forward(indices, prep):
    T, B, H = SEQ, BATCH, HIDDEN
    # embedd(): fc1.weight.index_select(0, word_indexes)  (gather kept as glue)
    emb = jnp.take(prep["emb"], indices, axis=0)                 # [N, H]
    x = emb.reshape(T, B, H)
    # TODO(synk): nn.LSTM inter-layer dropout (p=0.2) is training-only; eval
    # (deterministic) semantics implemented here.
    hseq = lstm_stack(x, prep["wih_all"], prep["whh_all"], prep["b_all"])
    hdata = hseq.reshape(T * B, H)                               # result.data (packed)
    return head(hdata, prep["hl_wT"], prep["hl_b"],
                prep["fc1_wT_bf16"], prep["fc1_b"])


# --------------------------------------------------------------------------
# Pure-JAX reference (same math, all-f32) for a sanity check.
# --------------------------------------------------------------------------
def ref_forward(indices, params):
    T, B, H = SEQ, BATCH, HIDDEN
    x = params["fc1_w"][indices].reshape(T, B, H)
    for l in range(LAYERS):
        wih, whh = params[f"w_ih_{l}"], params[f"w_hh_{l}"]
        b = params[f"b_ih_{l}"] + params[f"b_hh_{l}"]

        def step(carry, xt, wih=wih, whh=whh, b=b):
            h, c = carry
            gates = xt @ wih.T + h @ whh.T + b
            i, f, g, o = jnp.split(gates, 4, axis=1)
            c = jax.nn.sigmoid(f) * c + jax.nn.sigmoid(i) * jnp.tanh(g)
            h = jax.nn.sigmoid(o) * jnp.tanh(c)
            return (h, c), h

        zero = jnp.zeros((B, H), jnp.float32)
        (_, _), x = jax.lax.scan(step, (zero, zero), x)
    hdata = x.reshape(T * B, H)
    y = jnp.tanh(jnp.tanh(jnp.tanh(hdata @ params["hl_w"].T + params["hl_b"])))
    logits = y @ params["fc1_w"].T + params["fc1_b"]
    return jax.nn.log_softmax(logits, axis=1)


# --------------------------------------------------------------------------
# Deterministic synthetic parameters (shapes mirror the nn.Module __init__).
# --------------------------------------------------------------------------
def init_params(key):
    H, V = HIDDEN, VOCAB
    scale = 0.1
    keys = iter(jax.random.split(key, 4 * LAYERS + 4))
    p = {}
    for l in range(LAYERS):
        p[f"w_ih_{l}"] = jax.random.uniform(next(keys), (4 * H, H), jnp.float32, -scale, scale)
        p[f"w_hh_{l}"] = jax.random.uniform(next(keys), (4 * H, H), jnp.float32, -scale, scale)
        p[f"b_ih_{l}"] = jax.random.uniform(next(keys), (4 * H,), jnp.float32, -scale, scale)
        p[f"b_hh_{l}"] = jax.random.uniform(next(keys), (4 * H,), jnp.float32, -scale, scale)
    p["fc1_w"] = jax.random.uniform(next(keys), (V, H), jnp.float32, -scale, scale)  # embedding + output proj (tied)
    p["fc1_b"] = jax.random.uniform(next(keys), (V,), jnp.float32, -scale, scale)
    p["hl_w"] = jax.random.uniform(next(keys), (H, H), jnp.float32, -scale, scale)
    p["hl_b"] = jax.random.uniform(next(keys), (H,), jnp.float32, -scale, scale)
    return p


if __name__ == "__main__":
    key = jax.random.PRNGKey(0)
    k_idx, k_par = jax.random.split(key)
    params = init_params(k_par)
    prep = prepare_params(params)   # one-time layout conversion, outside jit

    # packed_sents.data for BATCH equal-length sequences of length SEQ:
    # row t*BATCH + b is token t of sequence b (batch_sizes == [BATCH]*SEQ).
    indices = jax.random.randint(k_idx, (SEQ * BATCH,), 0, VOCAB, dtype=jnp.int32)

    out = jax.jit(forward)(indices, prep)
    out = jax.block_until_ready(out)

    assert out.shape == (SEQ * BATCH, VOCAB)
    ref = ref_forward(indices, params)
    max_err = float(jnp.max(jnp.abs(out - ref)))
    assert jnp.allclose(out, ref, atol=5e-2, rtol=5e-2), max_err
    print("KERNEL_OK")
</pallas_src>

<mosaic_0001>
module attributes {stable_mosaic.version = 11 : i64} {
  func.func @_head_kernel(%arg0: i32, %arg1: memref<128x128xf32, #tpu.memory_space<vmem>>, %arg2: memref<128x128xf32, #tpu.memory_space<vmem>>, %arg3: memref<1x128xf32, #tpu.memory_space<vmem>>, %arg4: memref<128x512xbf16, #tpu.memory_space<vmem>>, %arg5: memref<1x512xf32, #tpu.memory_space<vmem>>, %arg6: memref<128x512xf32, #tpu.memory_space<vmem>>) attributes {dimension_semantics = [#tpu.dimension_semantics<parallel>], iteration_bounds = array<i64: 1>, scalar_prefetch = 0 : i64, scratch_operands = 0 : i64, tpu.core_type = #tpu.core_type<tc>, window_params = [{transform_indices = @transform_0, window_bounds = array<i64: 128, 128>}, {pipeline_mode = #tpu.pipeline_mode<synchronous>, transform_indices = @transform_1, window_bounds = array<i64: 128, 128>}, {pipeline_mode = #tpu.pipeline_mode<synchronous>, transform_indices = @transform_2, window_bounds = array<i64: 1, 128>}, {pipeline_mode = #tpu.pipeline_mode<synchronous>, transform_indices = @transform_3, window_bounds = array<i64: 128, 512>}, {pipeline_mode = #tpu.pipeline_mode<synchronous>, transform_indices = @transform_4, window_bounds = array<i64: 1, 512>}, {transform_indices = @transform_5, window_bounds = array<i64: 128, 512>}]} {
    %c0 = arith.constant 0 : index
    %c0_0 = arith.constant 0 : index
    %0 = vector.load %arg1[%c0, %c0_0] : memref<128x128xf32, #tpu.memory_space<vmem>>, vector<128x128xf32>
    %c0_1 = arith.constant 0 : index
    %c0_2 = arith.constant 0 : index
    %1 = vector.load %arg2[%c0_1, %c0_2] : memref<128x128xf32, #tpu.memory_space<vmem>>, vector<128x128xf32>
    %cst = arith.constant dense<0.000000e+00> : vector<128x128xf32>
    %2 = tpu.matmul %0, %1, %cst {dimension_numbers = #tpu.dot_dimension_numbers<[1], [0], [0], [1], [0, 0, 1, 1], [], []>} : vector<128x128xf32>, vector<128x128xf32>, vector<128x128xf32> -> vector<128x128xf32>
    %c0_3 = arith.constant 0 : index
    %c0_4 = arith.constant 0 : index
    %3 = vector.load %arg3[%c0_3, %c0_4] : memref<1x128xf32, #tpu.memory_space<vmem>>, vector<1x128xf32>
    %4 = vector.broadcast %3 : vector<1x128xf32> to vector<128x128xf32>
    %5 = arith.addf %2, %4 : vector<128x128xf32>
    %6 = math.tanh %5 : vector<128x128xf32>
    %7 = math.tanh %6 : vector<128x128xf32>
    %8 = math.tanh %7 : vector<128x128xf32>
    %9 = arith.truncf %8 : vector<128x128xf32> to vector<128x128xbf16>
    %c0_5 = arith.constant 0 : index
    %c0_6 = arith.constant 0 : index
    %10 = vector.load %arg4[%c0_5, %c0_6] : memref<128x512xbf16, #tpu.memory_space<vmem>>, vector<128x512xbf16>
    %cst_7 = arith.constant dense<0.000000e+00> : vector<128x512xf32>
    %11 = tpu.matmul %9, %10, %cst_7 {dimension_numbers = #tpu.dot_dimension_numbers<[1], [0], [0], [1], [0, 0, 1, 1], [], []>} : vector<128x128xbf16>, vector<128x512xbf16>, vector<128x512xf32> -> vector<128x512xf32>
    %c0_8 = arith.constant 0 : index
    %c0_9 = arith.constant 0 : index
    %12 = vector.load %arg5[%c0_8, %c0_9] : memref<1x512xf32, #tpu.memory_space<vmem>>, vector<1x512xf32>
    %13 = vector.broadcast %12 : vector<1x512xf32> to vector<128x512xf32>
    %14 = arith.addf %11, %13 : vector<128x512xf32>
    %cst_10 = arith.constant dense<0xFF800000> : vector<128xf32>
    %15 = vector.multi_reduction <maximumf>, %14, %cst_10 [1] : vector<128x512xf32> to vector<128xf32>
    %16 = vector.shape_cast %15 : vector<128xf32> to vector<128x1xf32>
    %17 = vector.broadcast %16 : vector<128x1xf32> to vector<128x512xf32>
    %18 = arith.subf %14, %17 : vector<128x512xf32>
    %19 = math.exp %18 : vector<128x512xf32>
    %cst_11 = arith.constant dense<0.000000e+00> : vector<128xf32>
    %20 = vector.multi_reduction <add>, %19, %cst_11 [1] : vector<128x512xf32> to vector<128xf32>
    %21 = vector.shape_cast %20 : vector<128xf32> to vector<128x1xf32>
    %22 = math.log %21 : vector<128x1xf32>
    %23 = arith.addf %16, %22 : vector<128x1xf32>
    %24 = vector.broadcast %23 : vector<128x1xf32> to vector<128x512xf32>
    %25 = arith.subf %14, %24 : vector<128x512xf32>
    %c0_12 = arith.constant 0 : index
    %c0_13 = arith.constant 0 : index
    %26 = vector.load %arg6[%c0_12, %c0_13] : memref<128x512xf32, #tpu.memory_space<vmem>>, vector<128x512xf32>
    tpu.vector_store %arg6[%c0_12, %c0_13], %25 {strides = array<i32>} : memref<128x512xf32, #tpu.memory_space<vmem>>, vector<128x512xf32>,
    return
  }
  func.func @transform_0(%arg0: i32) -> (i32, i32) {
    %c0_i32 = arith.constant 0 : i32
    %c0_i32_0 = arith.constant 0 : i32
    return %arg0, %c0_i32 : i32, i32
  }
  func.func @transform_1(%arg0: i32) -> (i32, i32) {
    %c0_i32 = arith.constant 0 : i32
    %c0_i32_0 = arith.constant 0 : i32
    %c0_i32_1 = arith.constant 0 : i32
    return %c0_i32, %c0_i32_0 : i32, i32
  }
  func.func @transform_2(%arg0: i32) -> (i32, i32) {
    %c0_i32 = arith.constant 0 : i32
    %c0_i32_0 = arith.constant 0 : i32
    %c0_i32_1 = arith.constant 0 : i32
    return %c0_i32, %c0_i32_0 : i32, i32
  }
  func.func @transform_3(%arg0: i32) -> (i32, i32) {
    %c0_i32 = arith.constant 0 : i32
    %c0_i32_0 = arith.constant 0 : i32
    %c0_i32_1 = arith.constant 0 : i32
    return %c0_i32, %c0_i32_0 : i32, i32
  }
  func.func @transform_4(%arg0: i32) -> (i32, i32) {
    %c0_i32 = arith.constant 0 : i32
    %c0_i32_0 = arith.constant 0 : i32
    %c0_i32_1 = arith.constant 0 : i32
    return %c0_i32, %c0_i32_0 : i32, i32
  }
  func.func @transform_5(%arg0: i32) -> (i32, i32) {
    %c0_i32 = arith.constant 0 : i32
    %c0_i32_0 = arith.constant 0 : i32
    return %arg0, %c0_i32 : i32, i32
  }
}

module attributes {stable_mosaic.version = 11 : i64} {
  func.func @_lstm_stack_kernel(%arg0: i32, %arg1: memref<8x16x128xf32, #tpu.memory_space<vmem>>, %arg2: memref<2x128x512xbf16, #tpu.memory_space<vmem>>, %arg3: memref<2x128x512xbf16, #tpu.memory_space<vmem>>, %arg4: memref<2x1x512xf32, #tpu.memory_space<vmem>>, %arg5: memref<8x16x128xf32, #tpu.memory_space<vmem>>, %arg6: memref<8x16x512xf32, #tpu.memory_space<vmem>>, %arg7: memref<8x16x128xf32, #tpu.memory_space<vmem>>) attributes {dimension_semantics = [#tpu.dimension_semantics<arbitrary>], iteration_bounds = array<i64: 1>, scalar_prefetch = 0 : i64, scratch_operands = 2 : i64, tpu.core_type = #tpu.core_type<tc>, window_params = [{transform_indices = @transform_0, window_bounds = array<i64: 8, 16, 128>}, {pipeline_mode = #tpu.pipeline_mode<synchronous>, transform_indices = @transform_1, window_bounds = array<i64: 2, 128, 512>}, {pipeline_mode = #tpu.pipeline_mode<synchronous>, transform_indices = @transform_2, window_bounds = array<i64: 2, 128, 512>}, {pipeline_mode = #tpu.pipeline_mode<synchronous>, transform_indices = @transform_3, window_bounds = array<i64: 2, 1, 512>}, {transform_indices = @transform_4, window_bounds = array<i64: 8, 16, 128>}]} {
    %c0 = arith.constant 0 : index
    %c0_0 = arith.constant 0 : index
    %c0_1 = arith.constant 0 : index
    %0 = vector.load %arg1[%c0, %c0_0, %c0_1] : memref<8x16x128xf32, #tpu.memory_space<vmem>>, vector<8x16x128xf32>
    %1 = vector.shape_cast %0 : vector<8x16x128xf32> to vector<128x128xf32>
    %2 = arith.truncf %1 : vector<128x128xf32> to vector<128x128xbf16>
    %c0_2 = arith.constant 0 : index
    %c0_3 = arith.constant 0 : index
    %c0_4 = arith.constant 0 : index
    %3 = vector.load %arg2[%c0_2, %c0_3, %c0_4] : memref<2x128x512xbf16, #tpu.memory_space<vmem>>, vector<1x128x512xbf16>
    %4 = vector.shape_cast %3 : vector<1x128x512xbf16> to vector<128x512xbf16>
    %cst = arith.constant dense<0.000000e+00> : vector<128x512xf32>
    %5 = tpu.matmul %2, %4, %cst {dimension_numbers = #tpu.dot_dimension_numbers<[1], [0], [0], [1], [0, 0, 1, 1], [], []>} : vector<128x128xbf16>, vector<128x512xbf16>, vector<128x512xf32> -> vector<128x512xf32>
    %c0_5 = arith.constant 0 : index
    %c0_6 = arith.constant 0 : index
    %c0_7 = arith.constant 0 : index
    %6 = vector.load %arg4[%c0_5, %c0_6, %c0_7] : memref<2x1x512xf32, #tpu.memory_space<vmem>>, vector<1x1x512xf32>
    %7 = vector.shape_cast %6 : vector<1x1x512xf32> to vector<1x512xf32>
    %8 = vector.broadcast %7 : vector<1x512xf32> to vector<128x512xf32>
    %9 = arith.addf %5, %8 : vector<128x512xf32>
    %10 = vector.shape_cast %9 : vector<128x512xf32> to vector<8x16x512xf32>
    %c0_8 = arith.constant 0 : index
    %c0_9 = arith.constant 0 : index
    %c0_10 = arith.constant 0 : index
    %11 = vector.load %arg6[%c0_8, %c0_9, %c0_10] : memref<8x16x512xf32, #tpu.memory_space<vmem>>, vector<8x16x512xf32>
    tpu.vector_store %arg6[%c0_8, %c0_9, %c0_10], %10 {strides = array<i32>} : memref<8x16x512xf32, #tpu.memory_space<vmem>>, vector<8x16x512xf32>,
    %cst_11 = arith.constant 0.000000e+00 : f32
    %12 = vector.broadcast %cst_11 : f32 to vector<16x128xf32>
    %cst_12 = arith.constant 0.000000e+00 : f32
    %13 = vector.broadcast %cst_12 : f32 to vector<16x128xf32>
    %c0_13 = arith.constant 0 : index
    %c0_14 = arith.constant 0 : index
    %c0_15 = arith.constant 0 : index
    %14 = vector.load %arg6[%c0_13, %c0_14, %c0_15] : memref<8x16x512xf32, #tpu.memory_space<vmem>>, vector<1x16x512xf32>
    %15 = vector.shape_cast %14 : vector<1x16x512xf32> to vector<16x512xf32>
    %16 = arith.truncf %12 : vector<16x128xf32> to vector<16x128xbf16>
    %c0_16 = arith.constant 0 : index
    %c0_17 = arith.constant 0 : index
    %c0_18 = arith.constant 0 : index
    %17 = vector.load %arg3[%c0_16, %c0_17, %c0_18] : memref<2x128x512xbf16, #tpu.memory_space<vmem>>, vector<1x128x512xbf16>
    %18 = vector.shape_cast %17 : vector<1x128x512xbf16> to vector<128x512xbf16>
    %cst_19 = arith.constant dense<0.000000e+00> : vector<16x512xf32>
    %19 = tpu.matmul %16, %18, %cst_19 {dimension_numbers = #tpu.dot_dimension_numbers<[1], [0], [0], [1], [0, 0, 1, 1], [], []>} : vector<16x128xbf16>, vector<128x512xbf16>, vector<16x512xf32> -> vector<16x512xf32>
    %20 = arith.addf %15, %19 : vector<16x512xf32>
    %21 = vector.extract_strided_slice %20 {offsets = [0, 0], sizes = [16, 128], strides = [1, 1]} : vector<16x512xf32> to vector<16x128xf32>
    %22 = arith.negf %21 : vector<16x128xf32>
    %23 = math.exp %22 : vector<16x128xf32>
    %cst_20 = arith.constant 1.000000e+00 : f32
    %24 = vector.broadcast %cst_20 : f32 to vector<16x128xf32>
    %25 = arith.addf %24, %23 : vector<16x128xf32>
    %26 = arith.divf %24, %25 : vector<16x128xf32>
    %27 = vector.extract_strided_slice %20 {offsets = [0, 128], sizes = [16, 128], strides = [1, 1]} : vector<16x512xf32> to vector<16x128xf32>
    %28 = arith.negf %27 : vector<16x128xf32>
    %29 = math.exp %28 : vector<16x128xf32>
    %cst_21 = arith.constant 1.000000e+00 : f32
    %30 = vector.broadcast %cst_21 : f32 to vector<16x128xf32>
    %31 = arith.addf %30, %29 : vector<16x128xf32>
    %32 = arith.divf %30, %31 : vector<16x128xf32>
    %33 = vector.extract_strided_slice %20 {offsets = [0, 256], sizes = [16, 128], strides = [1, 1]} : vector<16x512xf32> to vector<16x128xf32>
    %34 = math.tanh %33 : vector<16x128xf32>
    %35 = vector.extract_strided_slice %20 {offsets = [0, 384], sizes = [16, 128], strides = [1, 1]} : vector<16x512xf32> to vector<16x128xf32>
    %36 = arith.negf %35 : vector<16x128xf32>
    %37 = math.exp %36 : vector<16x128xf32>
    %cst_22 = arith.constant 1.000000e+00 : f32
    %38 = vector.broadcast %cst_22 : f32 to vector<16x128xf32>
    %39 = arith.addf %38, %37 : vector<16x128xf32>
    %40 = arith.divf %38, %39 : vector<16x128xf32>
    %41 = arith.mulf %32, %13 : vector<16x128xf32>
    %42 = arith.mulf %26, %34 : vector<16x128xf32>
    %43 = arith.addf %41, %42 : vector<16x128xf32>
    %44 = math.tanh %43 : vector<16x128xf32>
    %45 = arith.mulf %40, %44 : vector<16x128xf32>
    %c0_23 = arith.constant 0 : index
    %c0_24 = arith.constant 0 : index
    %c0_25 = arith.constant 0 : index
    %46 = vector.load %arg7[%c0_23, %c0_24, %c0_25] : memref<8x16x128xf32, #tpu.memory_space<vmem>>, vector<1x16x128xf32>
    %47 = vector.shape_cast %46 : vector<1x16x128xf32> to vector<16x128xf32>
    %48 = vector.shape_cast %45 : vector<16x128xf32> to vector<1x16x128xf32>
    tpu.vector_store %arg7[%c0_23, %c0_24, %c0_25], %48 {strides = array<i32>} : memref<8x16x128xf32, #tpu.memory_space<vmem>>, vector<1x16x128xf32>,
    %c1 = arith.constant 1 : index
    %c0_26 = arith.constant 0 : index
    %c0_27 = arith.constant 0 : index
    %49 = vector.load %arg6[%c1, %c0_26, %c0_27] : memref<8x16x512xf32, #tpu.memory_space<vmem>>, vector<1x16x512xf32>
    %50 = vector.shape_cast %49 : vector<1x16x512xf32> to vector<16x512xf32>
    %51 = arith.truncf %45 : vector<16x128xf32> to vector<16x128xbf16>
    %c0_28 = arith.constant 0 : index
    %c0_29 = arith.constant 0 : index
    %c0_30 = arith.constant 0 : index
    %52 = vector.load %arg3[%c0_28, %c0_29, %c0_30] : memref<2x128x512xbf16, #tpu.memory_space<vmem>>, vector<1x128x512xbf16>
    %53 = vector.shape_cast %52 : vector<1x128x512xbf16> to vector<128x512xbf16>
    %cst_31 = arith.constant dense<0.000000e+00> : vector<16x512xf32>
    %54 = tpu.matmul %51, %53, %cst_31 {dimension_numbers = #tpu.dot_dimension_numbers<[1], [0], [0], [1], [0, 0, 1, 1], [], []>} : vector<16x128xbf16>, vector<128x512xbf16>, vector<16x512xf32> -> vector<16x512xf32>
    %55 = arith.addf %50, %54 : vector<16x512xf32>
    %56 = vector.extract_strided_slice %55 {offsets = [0, 0], sizes = [16, 128], strides = [1, 1]} : vector<16x512xf32> to vector<16x128xf32>
    %57 = arith.negf %56 : vector<16x128xf32>
    %58 = math.exp %57 : vector<16x128xf32>
    %cst_32 = arith.constant 1.000000e+00 : f32
    %59 = vector.broadcast %cst_32 : f32 to vector<16x128xf32>
    %60 = arith.addf %59, %58 : vector<16x128xf32>
    %61 = arith.divf %59, %60 : vector<16x128xf32>
    %62 = vector.extract_strided_slice %55 {offsets = [0, 128], sizes = [16, 128], strides = [1, 1]} : vector<16x512xf32> to vector<16x128xf32>
    %63 = arith.negf %62 : vector<16x128xf32>
    %64 = math.exp %63 : vector<16x128xf32>
    %cst_33 = arith.constant 1.000000e+00 : f32
    %65 = vector.broadcast %cst_33 : f32 to vector<16x128xf32>
    %66 = arith.addf %65, %64 : vector<16x128xf32>
    %67 = arith.divf %65, %66 : vector<16x128xf32>
    %68 = vector.extract_strided_slice %55 {offsets = [0, 256], sizes = [16, 128], strides = [1, 1]} : vector<16x512xf32> to vector<16x128xf32>
    %69 = math.tanh %68 : vector<16x128xf32>
    %70 = vector.extract_strided_slice %55 {offsets = [0, 384], sizes = [16, 128], strides = [1, 1]} : vector<16x512xf32> to vector<16x128xf32>
    %71 = arith.negf %70 : vector<16x128xf32>
    %72 = math.exp %71 : vector<16x128xf32>
    %cst_34 = arith.constant 1.000000e+00 : f32
    %73 = vector.broadcast %cst_34 : f32 to vector<16x128xf32>
    %74 = arith.addf %73, %72 : vector<16x128xf32>
    %75 = arith.divf %73, %74 : vector<16x128xf32>
    %76 = arith.mulf %67, %43 : vector<16x128xf32>
    %77 = arith.mulf %61, %69 : vector<16x128xf32>
    %78 = arith.addf %76, %77 : vector<16x128xf32>
    %79 = math.tanh %78 : vector<16x128xf32>
    %80 = arith.mulf %75, %79 : vector<16x128xf32>
    %c1_35 = arith.constant 1 : index
    %c0_36 = arith.constant 0 : index
    %c0_37 = arith.constant 0 : index
    %81 = vector.load %arg7[%c1_35, %c0_36, %c0_37] : memref<8x16x128xf32, #tpu.memory_space<vmem>>, vector<1x16x128xf32>
    %82 = vector.shape_cast %81 : vector<1x16x128xf32> to vector<16x128xf32>
    %83 = vector.shape_cast %80 : vector<16x128xf32> to vector<1x16x128xf32>
    tpu.vector_store %arg7[%c1_35, %c0_36, %c0_37], %83 {strides = array<i32>} : memref<8x16x128xf32, #tpu.memory_space<vmem>>, vector<1x16x128xf32>,
    %c2 = arith.constant 2 : index
    %c0_38 = arith.constant 0 : index
    %c0_39 = arith.constant 0 : index
    %84 = vector.load %arg6[%c2, %c0_38, %c0_39] : memref<8x16x512xf32, #tpu.memory_space<vmem>>, vector<1x16x512xf32>
    %85 = vector.shape_cast %84 : vector<1x16x512xf32> to vector<16x512xf32>
    %86 = arith.truncf %80 : vector<16x128xf32> to vector<16x128xbf16>
    %c0_40 = arith.constant 0 : index
    %c0_41 = arith.constant 0 : index
    %c0_42 = arith.constant 0 : index
    %87 = vector.load %arg3[%c0_40, %c0_41, %c0_42] : memref<2x128x512xbf16, #tpu.memory_space<vmem>>, vector<1x128x512xbf16>
    %88 = vector.shape_cast %87 : vector<1x128x512xbf16> to vector<128x512xbf16>
    %cst_43 = arith.constant dense<0.000000e+00> : vector<16x512xf32>
    %89 = tpu.matmul %86, %88, %cst_43 {dimension_numbers = #tpu.dot_dimension_numbers<[1], [0], [0], [1], [0, 0, 1, 1], [], []>} : vector<16x128xbf16>, vector<128x512xbf16>, vector<16x512xf32> -> vector<16x512xf32>
    %90 = arith.addf %85, %89 : vector<16x512xf32>
    %91 = vector.extract_strided_slice %90 {offsets = [0, 0], sizes = [16, 128], strides = [1, 1]} : vector<16x512xf32> to vector<16x128xf32>
    %92 = arith.negf %91 : vector<16x128xf32>
    %93 = math.exp %92 : vector<16x128xf32>
    %cst_44 = arith.constant 1.000000e+00 : f32
    %94 = vector.broadcast %cst_44 : f32 to vector<16x128xf32>
    %95 = arith.addf %94, %93 : vector<16x128xf32>
    %96 = arith.divf %94, %95 : vector<16x128xf32>
    %97 = vector.extract_strided_slice %90 {offsets = [0, 128], sizes = [16, 128], strides = [1, 1]} : vector<16x512xf32> to vector<16x128xf32>
    %98 = arith.negf %97 : vector<16x128xf32>
    %99 = math.exp %98 : vector<16x128xf32>
    %cst_45 = arith.constant 1.000000e+00 : f32
    %100 = vector.broadcast %cst_45 : f32 to vector<16x128xf32>
    %101 = arith.addf %100, %99 : vector<16x128xf32>
    %102 = arith.divf %100, %101 : vector<16x128xf32>
    %103 = vector.extract_strided_slice %90 {offsets = [0, 256], sizes = [16, 128], strides = [1, 1]} : vector<16x512xf32> to vector<16x128xf32>
    %104 = math.tanh %103 : vector<16x128xf32>
    %105 = vector.extract_strided_slice %90 {offsets = [0, 384], sizes = [16, 128], strides = [1, 1]} : vector<16x512xf32> to vector<16x128xf32>
    %106 = arith.negf %105 : vector<16x128xf32>
    %107 = math.exp %106 : vector<16x128xf32>
    %cst_46 = arith.constant 1.000000e+00 : f32
    %108 = vector.broadcast %cst_46 : f32 to vector<16x128xf32>
    %109 = arith.addf %108, %107 : vector<16x128xf32>
    %110 = arith.divf %108, %109 : vector<16x128xf32>
    %111 = arith.mulf %102, %78 : vector<16x128xf32>
    %112 = arith.mulf %96, %104 : vector<16x128xf32>
    %113 = arith.addf %111, %112 : vector<16x128xf32>
    %114 = math.tanh %113 : vector<16x128xf32>
    %115 = arith.mulf %110, %114 : vector<16x128xf32>
    %c2_47 = arith.constant 2 : index
    %c0_48 = arith.constant 0 : index
    %c0_49 = arith.constant 0 : index
    %116 = vector.load %arg7[%c2_47, %c0_48, %c0_49] : memref<8x16x128xf32, #tpu.memory_space<vmem>>, vector<1x16x128xf32>
    %117 = vector.shape_cast %116 : vector<1x16x128xf32> to vector<16x128xf32>
    %118 = vector.shape_cast %115 : vector<16x128xf32> to vector<1x16x128xf32>
    tpu.vector_store %arg7[%c2_47, %c0_48, %c0_49], %118 {strides = array<i32>} : memref<8x16x128xf32, #tpu.memory_space<vmem>>, vector<1x16x128xf32>,
    %c3 = arith.constant 3 : index
    %c0_50 = arith.constant 0 : index
    %c0_51 = arith.constant 0 : index
    %119 = vector.load %arg6[%c3, %c0_50, %c0_51] : memref<8x16x512xf32, #tpu.memory_space<vmem>>, vector<1x16x512xf32>
    %120 = vector.shape_cast %119 : vector<1x16x512xf32> to vector<16x512xf32>
    %121 = arith.truncf %115 : vector<16x128xf32> to vector<16x128xbf16>
    %c0_52 = arith.constant 0 : index
    %c0_53 = arith.constant 0 : index
    %c0_54 = arith.constant 0 : index
    %122 = vector.load %arg3[%c0_52, %c0_53, %c0_54] : memref<2x128x512xbf16, #tpu.memory_space<vmem>>, vector<1x128x512xbf16>
    %123 = vector.shape_cast %122 : vector<1x128x512xbf16> to vector<128x512xbf16>
    %cst_55 = arith.constant dense<0.000000e+00> : vector<16x512xf32>
    %124 = tpu.matmul %121, %123, %cst_55 {dimension_numbers = #tpu.dot_dimension_numbers<[1], [0], [0], [1], [0, 0, 1, 1], [], []>} : vector<16x128xbf16>, vector<128x512xbf16>, vector<16x512xf32> -> vector<16x512xf32>
    %125 = arith.addf %120, %124 : vector<16x512xf32>
    %126 = vector.extract_strided_slice %125 {offsets = [0, 0], sizes = [16, 128], strides = [1, 1]} : vector<16x512xf32> to vector<16x128xf32>
    %127 = arith.negf %126 : vector<16x128xf32>
    %128 = math.exp %127 : vector<16x128xf32>
    %cst_56 = arith.constant 1.000000e+00 : f32
    %129 = vector.broadcast %cst_56 : f32 to vector<16x128xf32>
    %130 = arith.addf %129, %128 : vector<16x128xf32>
    %131 = arith.divf %129, %130 : vector<16x128xf32>
    %132 = vector.extract_strided_slice %125 {offsets = [0, 128], sizes = [16, 128], strides = [1, 1]} : vector<16x512xf32> to vector<16x128xf32>
    %133 = arith.negf %132 : vector<16x128xf32>
    %134 = math.exp %133 : vector<16x128xf32>
    %cst_57 = arith.constant 1.000000e+00 : f32
    %135 = vector.broadcast %cst_57 : f32 to vector<16x128xf32>
    %136 = arith.addf %135, %134 : vector<16x128xf32>
    %137 = arith.divf %135, %136 : vector<16x128xf32>
    %138 = vector.extract_strided_slice %125 {offsets = [0, 256], sizes = [16, 128], strides = [1, 1]} : vector<16x512xf32> to vector<16x128xf32>
    %139 = math.tanh %138 : vector<16x128xf32>
    %140 = vector.extract_strided_slice %125 {offsets = [0, 384], sizes = [16, 128], strides = [1, 1]} : vector<16x512xf32> to vector<16x128xf32>
    %141 = arith.negf %140 : vector<16x128xf32>
    %142 = math.exp %141 : vector<16x128xf32>
    %cst_58 = arith.constant 1.000000e+00 : f32
    %143 = vector.broadcast %cst_58 : f32 to vector<16x128xf32>
    %144 = arith.addf %143, %142 : vector<16x128xf32>
    %145 = arith.divf %143, %144 : vector<16x128xf32>
    %146 = arith.mulf %137, %113 : vector<16x128xf32>
    %147 = arith.mulf %131, %139 : vector<16x128xf32>
    %148 = arith.addf %146, %147 : vector<16x128xf32>
    %149 = math.tanh %148 : vector<16x128xf32>
    %150 = arith.mulf %145, %149 : vector<16x128xf32>
    %c3_59 = arith.constant 3 : index
    %c0_60 = arith.constant 0 : index
    %c0_61 = arith.constant 0 : index
    %151 = vector.load %arg7[%c3_59, %c0_60, %c0_61] : memref<8x16x128xf32, #tpu.memory_space<vmem>>, vector<1x16x128xf32>
    %152 = vector.shape_cast %151 : vector<1x16x128xf32> to vector<16x128xf32>
    %153 = vector.shape_cast %150 : vector<16x128xf32> to vector<1x16x128xf32>
    tpu.vector_store %arg7[%c3_59, %c0_60, %c0_61], %153 {strides = array<i32>} : memref<8x16x128xf32, #tpu.memory_space<vmem>>, vector<1x16x128xf32>,
    %c4 = arith.constant 4 : index
    %c0_62 = arith.constant 0 : index
    %c0_63 = arith.constant 0 : index
    %154 = vector.load %arg6[%c4, %c0_62, %c0_63] : memref<8x16x512xf32, #tpu.memory_space<vmem>>, vector<1x16x512xf32>
    %155 = vector.shape_cast %154 : vector<1x16x512xf32> to vector<16x512xf32>
    %156 = arith.truncf %150 : vector<16x128xf32> to vector<16x128xbf16>
    %c0_64 = arith.constant 0 : index
    %c0_65 = arith.constant 0 : index
    %c0_66 = arith.constant 0 : index
    %157 = vector.load %arg3[%c0_64, %c0_65, %c0_66] : memref<2x128x512xbf16, #tpu.memory_space<vmem>>, vector<1x128x512xbf16>
    %158 = vector.shape_cast %157 : vector<1x128x512xbf16> to vector<128x512xbf16>
    %cst_67 = arith.constant dense<0.000000e+00> : vector<16x512xf32>
    %159 = tpu.matmul %156, %158, %cst_67 {dimension_numbers = #tpu.dot_dimension_numbers<[1], [0], [0], [1], [0, 0, 1, 1], [], []>} : vector<16x128xbf16>, vector<128x512xbf16>, vector<16x512xf32> -> vector<16x512xf32>
    %160 = arith.addf %155, %159 : vector<16x512xf32>
    %161 = vector.extract_strided_slice %160 {offsets = [0, 0], sizes = [16, 128], strides = [1, 1]} : vector<16x512xf32> to vector<16x128xf32>
    %162 = arith.negf %161 : vector<16x128xf32>
    %163 = math.exp %162 : vector<16x128xf32>
    %cst_68 = arith.constant 1.000000e+00 : f32
    %164 = vector.broadcast %cst_68 : f32 to vector<16x128xf32>
    %165 = arith.addf %164, %163 : vector<16x128xf32>
    %166 = arith.divf %164, %165 : vector<16x128xf32>
    %167 = vector.extract_strided_slice %160 {offsets = [0, 128], sizes = [16, 128], strides = [1, 1]} : vector<16x512xf32> to vector<16x128xf32>
    %168 = arith.negf %167 : vector<16x128xf32>
    %169 = math.exp %168 : vector<16x128xf32>
    %cst_69 = arith.constant 1.000000e+00 : f32
    %170 = vector.broadcast %cst_69 : f32 to vector<16x128xf32>
    %171 = arith.addf %170, %169 : vector<16x128xf32>
    %172 = arith.divf %170, %171 : vector<16x128xf32>
    %173 = vector.extract_strided_slice %160 {offsets = [0, 256], sizes = [16, 128], strides = [1, 1]} : vector<16x512xf32> to vector<16x128xf32>
    %174 = math.tanh %173 : vector<16x128xf32>
    %175 = vector.extract_strided_slice %160 {offsets = [0, 384], sizes = [16, 128], strides = [1, 1]} : vector<16x512xf32> to vector<16x128xf32>
    %176 = arith.negf %175 : vector<16x128xf32>
    %177 = math.exp %176 : vector<16x128xf32>
    %cst_70 = arith.constant 1.000000e+00 : f32
    %178 = vector.broadcast %cst_70 : f32 to vector<16x128xf32>
    %179 = arith.addf %178, %177 : vector<16x128xf32>
    %180 = arith.divf %178, %179 : vector<16x128xf32>
    %181 = arith.mulf %172, %148 : vector<16x128xf32>
    %182 = arith.mulf %166, %174 : vector<16x128xf32>
    %183 = arith.addf %181, %182 : vector<16x128xf32>
    %184 = math.tanh %183 : vector<16x128xf32>
    %185 = arith.mulf %180, %184 : vector<16x128xf32>
    %c4_71 = arith.constant 4 : index
    %c0_72 = arith.constant 0 : index
    %c0_73 = arith.constant 0 : index
    %186 = vector.load %arg7[%c4_71, %c0_72, %c0_73] : memref<8x16x128xf32, #tpu.memory_space<vmem>>, vector<1x16x128xf32>
    %187 = vector.shape_cast %186 : vector<1x16x128xf32> to vector<16x128xf32>
    %188 = vector.shape_cast %185 : vector<16x128xf32> to vector<1x16x128xf32>
    tpu.vector_store %arg7[%c4_71, %c0_72, %c0_73], %188 {strides = array<i32>} : memref<8x16x128xf32, #tpu.memory_space<vmem>>, vector<1x16x128xf32>,
    %c5 = arith.constant 5 : index
    %c0_74 = arith.constant 0 : index
    %c0_75 = arith.constant 0 : index
    %189 = vector.load %arg6[%c5, %c0_74, %c0_75] : memref<8x16x512xf32, #tpu.memory_space<vmem>>, vector<1x16x512xf32>
    %190 = vector.shape_cast %189 : vector<1x16x512xf32> to vector<16x512xf32>
    %191 = arith.truncf %185 : vector<16x128xf32> to vector<16x128xbf16>
    %c0_76 = arith.constant 0 : index
    %c0_77 = arith.constant 0 : index
    %c0_78 = arith.constant 0 : index
    %192 = vector.load %arg3[%c0_76, %c0_77, %c0_78] : memref<2x128x512xbf16, #tpu.memory_space<vmem>>, vector<1x128x512xbf16>
    %193 = vector.shape_cast %192 : vector<1x128x512xbf16> to vector<128x512xbf16>
    %cst_79 = arith.constant dense<0.000000e+00> : vector<16x512xf32>
    %194 = tpu.matmul %191, %193, %cst_79 {dimension_numbers = #tpu.dot_dimension_numbers<[1], [0], [0], [1], [0, 0, 1, 1], [], []>} : vector<16x128xbf16>, vector<128x512xbf16>, vector<16x512xf32> -> vector<16x512xf32>
    %195 = arith.addf %190, %194 : vector<16x512xf32>
    %196 = vector.extract_strided_slice %195 {offsets = [0, 0], sizes = [16, 128], strides = [1, 1]} : vector<16x512xf32> to vector<16x128xf32>
    %197 = arith.negf %196 : vector<16x128xf32>
    %198 = math.exp %197 : vector<16x128xf32>
    %cst_80 = arith.constant 1.000000e+00 : f32
    %199 = vector.broadcast %cst_80 : f32 to vector<16x128xf32>
    %200 = arith.addf %199, %198 : vector<16x128xf32>
    %201 = arith.divf %199, %200 : vector<16x128xf32>
    %202 = vector.extract_strided_slice %195 {offsets = [0, 128], sizes = [16, 128], strides = [1, 1]} : vector<16x512xf32> to vector<16x128xf32>
    %203 = arith.negf %202 : vector<16x128xf32>
    %204 = math.exp %203 : vector<16x128xf32>
    %cst_81 = arith.constant 1.000000e+00 : f32
    %205 = vector.broadcast %cst_81 : f32 to vector<16x128xf32>
    %206 = arith.addf %205, %204 : vector<16x128xf32>
    %207 = arith.divf %205, %206 : vector<16x128xf32>
    %208 = vector.extract_strided_slice %195 {offsets = [0, 256], sizes = [16, 128], strides = [1, 1]} : vector<16x512xf32> to vector<16x128xf32>
    %209 = math.tanh %208 : vector<16x128xf32>
    %210 = vector.extract_strided_slice %195 {offsets = [0, 384], sizes = [16, 128], strides = [1, 1]} : vector<16x512xf32> to vector<16x128xf32>
    %211 = arith.negf %210 : vector<16x128xf32>
    %212 = math.exp %211 : vector<16x128xf32>
    %cst_82 = arith.constant 1.000000e+00 : f32
    %213 = vector.broadcast %cst_82 : f32 to vector<16x128xf32>
    %214 = arith.addf %213, %212 : vector<16x128xf32>
    %215 = arith.divf %213, %214 : vector<16x128xf32>
    %216 = arith.mulf %207, %183 : vector<16x128xf32>
    %217 = arith.mulf %201, %209 : vector<16x128xf32>
    %218 = arith.addf %216, %217 : vector<16x128xf32>
    %219 = math.tanh %218 : vector<16x128xf32>
    %220 = arith.mulf %215, %219 : vector<16x128xf32>
    %c5_83 = arith.constant 5 : index
    %c0_84 = arith.constant 0 : index
    %c0_85 = arith.constant 0 : index
    %221 = vector.load %arg7[%c5_83, %c0_84, %c0_85] : memref<8x16x128xf32, #tpu.memory_space<vmem>>, vector<1x16x128xf32>
    %222 = vector.shape_cast %221 : vector<1x16x128xf32> to vector<16x128xf32>
    %223 = vector.shape_cast %220 : vector<16x128xf32> to vector<1x16x128xf32>
    tpu.vector_store %arg7[%c5_83, %c0_84, %c0_85], %223 {strides = array<i32>} : memref<8x16x128xf32, #tpu.memory_space<vmem>>, vector<1x16x128xf32>,
    %c6 = arith.constant 6 : index
    %c0_86 = arith.constant 0 : index
    %c0_87 = arith.constant 0 : index
    %224 = vector.load %arg6[%c6, %c0_86, %c0_87] : memref<8x16x512xf32, #tpu.memory_space<vmem>>, vector<1x16x512xf32>
    %225 = vector.shape_cast %224 : vector<1x16x512xf32> to vector<16x512xf32>
    %226 = arith.truncf %220 : vector<16x128xf32> to vector<16x128xbf16>
    %c0_88 = arith.constant 0 : index
    %c0_89 = arith.constant 0 : index
    %c0_90 = arith.constant 0 : index
    %227 = vector.load %arg3[%c0_88, %c0_89, %c0_90] : memref<2x128x512xbf16, #tpu.memory_space<vmem>>, vector<1x128x512xbf16>
    %228 = vector.shape_cast %227 : vector<1x128x512xbf16> to vector<128x512xbf16>
    %cst_91 = arith.constant dense<0.000000e+00> : vector<16x512xf32>
    %229 = tpu.matmul %226, %228, %cst_91 {dimension_numbers = #tpu.dot_dimension_numbers<[1], [0], [0], [1], [0, 0, 1, 1], [], []>} : vector<16x128xbf16>, vector<128x512xbf16>, vector<16x512xf32> -> vector<16x512xf32>
    %230 = arith.addf %225, %229 : vector<16x512xf32>
    %231 = vector.extract_strided_slice %230 {offsets = [0, 0], sizes = [16, 128], strides = [1, 1]} : vector<16x512xf32> to vector<16x128xf32>
    %232 = arith.negf %231 : vector<16x128xf32>
    %233 = math.exp %232 : vector<16x128xf32>
    %cst_92 = arith.constant 1.000000e+00 : f32
    %234 = vector.broadcast %cst_92 : f32 to vector<16x128xf32>
    %235 = arith.addf %234, %233 : vector<16x128xf32>
    %236 = arith.divf %234, %235 : vector<16x128xf32>
    %237 = vector.extract_strided_slice %230 {offsets = [0, 128], sizes = [16, 128], strides = [1, 1]} : vector<16x512xf32> to vector<16x128xf32>
    %238 = arith.negf %237 : vector<16x128xf32>
    %239 = math.exp %238 : vector<16x128xf32>
    %cst_93 = arith.constant 1.000000e+00 : f32
    %240 = vector.broadcast %cst_93 : f32 to vector<16x128xf32>
    %241 = arith.addf %240, %239 : vector<16x128xf32>
    %242 = arith.divf %240, %241 : vector<16x128xf32>
    %243 = vector.extract_strided_slice %230 {offsets = [0, 256], sizes = [16, 128], strides = [1, 1]} : vector<16x512xf32> to vector<16x128xf32>
    %244 = math.tanh %243 : vector<16x128xf32>
    %245 = vector.extract_strided_slice %230 {offsets = [0, 384], sizes = [16, 128], strides = [1, 1]} : vector<16x512xf32> to vector<16x128xf32>
    %246 = arith.negf %245 : vector<16x128xf32>
    %247 = math.exp %246 : vector<16x128xf32>
    %cst_94 = arith.constant 1.000000e+00 : f32
    %248 = vector.broadcast %cst_94 : f32 to vector<16x128xf32>
    %249 = arith.addf %248, %247 : vector<16x128xf32>
    %250 = arith.divf %248, %249 : vector<16x128xf32>
    %251 = arith.mulf %242, %218 : vector<16x128xf32>
    %252 = arith.mulf %236, %244 : vector<16x128xf32>
    %253 = arith.addf %251, %252 : vector<16x128xf32>
    %254 = math.tanh %253 : vector<16x128xf32>
    %255 = arith.mulf %250, %254 : vector<16x128xf32>
    %c6_95 = arith.constant 6 : index
    %c0_96 = arith.constant 0 : index
    %c0_97 = arith.constant 0 : index
    %256 = vector.load %arg7[%c6_95, %c0_96, %c0_97] : memref<8x16x128xf32, #tpu.memory_space<vmem>>, vector<1x16x128xf32>
    %257 = vector.shape_cast %256 : vector<1x16x128xf32> to vector<16x128xf32>
    %258 = vector.shape_cast %255 : vector<16x128xf32> to vector<1x16x128xf32>
    tpu.vector_store %arg7[%c6_95, %c0_96, %c0_97], %258 {strides = array<i32>} : memref<8x16x128xf32, #tpu.memory_space<vmem>>, vector<1x16x128xf32>,
    %c7 = arith.constant 7 : index
    %c0_98 = arith.constant 0 : index
    %c0_99 = arith.constant 0 : index
    %259 = vector.load %arg6[%c7, %c0_98, %c0_99] : memref<8x16x512xf32, #tpu.memory_space<vmem>>, vector<1x16x512xf32>
    %260 = vector.shape_cast %259 : vector<1x16x512xf32> to vector<16x512xf32>
    %261 = arith.truncf %255 : vector<16x128xf32> to vector<16x128xbf16>
    %c0_100 = arith.constant 0 : index
    %c0_101 = arith.constant 0 : index
    %c0_102 = arith.constant 0 : index
    %262 = vector.load %arg3[%c0_100, %c0_101, %c0_102] : memref<2x128x512xbf16, #tpu.memory_space<vmem>>, vector<1x128x512xbf16>
    %263 = vector.shape_cast %262 : vector<1x128x512xbf16> to vector<128x512xbf16>
    %cst_103 = arith.constant dense<0.000000e+00> : vector<16x512xf32>
    %264 = tpu.matmul %261, %263, %cst_103 {dimension_numbers = #tpu.dot_dimension_numbers<[1], [0], [0], [1], [0, 0, 1, 1], [], []>} : vector<16x128xbf16>, vector<128x512xbf16>, vector<16x512xf32> -> vector<16x512xf32>
    %265 = arith.addf %260, %264 : vector<16x512xf32>
    %266 = vector.extract_strided_slice %265 {offsets = [0, 0], sizes = [16, 128], strides = [1, 1]} : vector<16x512xf32> to vector<16x128xf32>
    %267 = arith.negf %266 : vector<16x128xf32>
    %268 = math.exp %267 : vector<16x128xf32>
    %cst_104 = arith.constant 1.000000e+00 : f32
    %269 = vector.broadcast %cst_104 : f32 to vector<16x128xf32>
    %270 = arith.addf %269, %268 : vector<16x128xf32>
    %271 = arith.divf %269, %270 : vector<16x128xf32>
    %272 = vector.extract_strided_slice %265 {offsets = [0, 128], sizes = [16, 128], strides = [1, 1]} : vector<16x512xf32> to vector<16x128xf32>
    %273 = arith.negf %272 : vector<16x128xf32>
    %274 = math.exp %273 : vector<16x128xf32>
    %cst_105 = arith.constant 1.000000e+00 : f32
    %275 = vector.broadcast %cst_105 : f32 to vector<16x128xf32>
    %276 = arith.addf %275, %274 : vector<16x128xf32>
    %277 = arith.divf %275, %276 : vector<16x128xf32>
    %278 = vector.extract_strided_slice %265 {offsets = [0, 256], sizes = [16, 128], strides = [1, 1]} : vector<16x512xf32> to vector<16x128xf32>
    %279 = math.tanh %278 : vector<16x128xf32>
    %280 = vector.extract_strided_slice %265 {offsets = [0, 384], sizes = [16, 128], strides = [1, 1]} : vector<16x512xf32> to vector<16x128xf32>
    %281 = arith.negf %280 : vector<16x128xf32>
    %282 = math.exp %281 : vector<16x128xf32>
    %cst_106 = arith.constant 1.000000e+00 : f32
    %283 = vector.broadcast %cst_106 : f32 to vector<16x128xf32>
    %284 = arith.addf %283, %282 : vector<16x128xf32>
    %285 = arith.divf %283, %284 : vector<16x128xf32>
    %286 = arith.mulf %277, %253 : vector<16x128xf32>
    %287 = arith.mulf %271, %279 : vector<16x128xf32>
    %288 = arith.addf %286, %287 : vector<16x128xf32>
    %289 = math.tanh %288 : vector<16x128xf32>
    %290 = arith.mulf %285, %289 : vector<16x128xf32>
    %c7_107 = arith.constant 7 : index
    %c0_108 = arith.constant 0 : index
    %c0_109 = arith.constant 0 : index
    %291 = vector.load %arg7[%c7_107, %c0_108, %c0_109] : memref<8x16x128xf32, #tpu.memory_space<vmem>>, vector<1x16x128xf32>
    %292 = vector.shape_cast %291 : vector<1x16x128xf32> to vector<16x128xf32>
    %293 = vector.shape_cast %290 : vector<16x128xf32> to vector<1x16x128xf32>
    tpu.vector_store %arg7[%c7_107, %c0_108, %c0_109], %293 {strides = array<i32>} : memref<8x16x128xf32, #tpu.memory_space<vmem>>, vector<1x16x128xf32>,
    %c0_110 = arith.constant 0 : index
    %c0_111 = arith.constant 0 : index
    %c0_112 = arith.constant 0 : index
    %294 = vector.load %arg7[%c0_110, %c0_111, %c0_112] : memref<8x16x128xf32, #tpu.memory_space<vmem>>, vector<8x16x128xf32>
    %295 = vector.shape_cast %294 : vector<8x16x128xf32> to vector<128x128xf32>
    %296 = arith.truncf %295 : vector<128x128xf32> to vector<128x128xbf16>
    %c1_113 = arith.constant 1 : index
    %c0_114 = arith.constant 0 : index
    %c0_115 = arith.constant 0 : index
    %297 = vector.load %arg2[%c1_113, %c0_114, %c0_115] : memref<2x128x512xbf16, #tpu.memory_space<vmem>>, vector<1x128x512xbf16>
    %298 = vector.shape_cast %297 : vector<1x128x512xbf16> to vector<128x512xbf16>
    %cst_116 = arith.constant dense<0.000000e+00> : vector<128x512xf32>
    %299 = tpu.matmul %296, %298, %cst_116 {dimension_numbers = #tpu.dot_dimension_numbers<[1], [0], [0], [1], [0, 0, 1, 1], [], []>} : vector<128x128xbf16>, vector<128x512xbf16>, vector<128x512xf32> -> vector<128x512xf32>
    %c1_117 = arith.constant 1 : index
    %c0_118 = arith.constant 0 : index
    %c0_119 = arith.constant 0 : index
    %300 = vector.load %arg4[%c1_117, %c0_118, %c0_119] : memref<2x1x512xf32, #tpu.memory_space<vmem>>, vector<1x1x512xf32>
    %301 = vector.shape_cast %300 : vector<1x1x512xf32> to vector<1x512xf32>
    %302 = vector.broadcast %301 : vector<1x512xf32> to vector<128x512xf32>
    %303 = arith.addf %299, %302 : vector<128x512xf32>
    %304 = vector.shape_cast %303 : vector<128x512xf32> to vector<8x16x512xf32>
    %c0_120 = arith.constant 0 : index
    %c0_121 = arith.constant 0 : index
    %c0_122 = arith.constant 0 : index
    %305 = vector.load %arg6[%c0_120, %c0_121, %c0_122] : memref<8x16x512xf32, #tpu.memory_space<vmem>>, vector<8x16x512xf32>
    tpu.vector_store %arg6[%c0_120, %c0_121, %c0_122], %304 {strides = array<i32>} : memref<8x16x512xf32, #tpu.memory_space<vmem>>, vector<8x16x512xf32>,
    %cst_123 = arith.constant 0.000000e+00 : f32
    %306 = vector.broadcast %cst_123 : f32 to vector<16x128xf32>
    %cst_124 = arith.constant 0.000000e+00 : f32
    %307 = vector.broadcast %cst_124 : f32 to vector<16x128xf32>
    %c0_125 = arith.constant 0 : index
    %c0_126 = arith.constant 0 : index
    %c0_127 = arith.constant 0 : index
    %308 = vector.load %arg6[%c0_125, %c0_126, %c0_127] : memref<8x16x512xf32, #tpu.memory_space<vmem>>, vector<1x16x512xf32>
    %309 = vector.shape_cast %308 : vector<1x16x512xf32> to vector<16x512xf32>
    %310 = arith.truncf %306 : vector<16x128xf32> to vector<16x128xbf16>
    %c1_128 = arith.constant 1 : index
    %c0_129 = arith.constant 0 : index
    %c0_130 = arith.constant 0 : index
    %311 = vector.load %arg3[%c1_128, %c0_129, %c0_130] : memref<2x128x512xbf16, #tpu.memory_space<vmem>>, vector<1x128x512xbf16>
    %312 = vector.shape_cast %311 : vector<1x128x512xbf16> to vector<128x512xbf16>
    %cst_131 = arith.constant dense<0.000000e+00> : vector<16x512xf32>
    %313 = tpu.matmul %310, %312, %cst_131 {dimension_numbers = #tpu.dot_dimension_numbers<[1], [0], [0], [1], [0, 0, 1, 1], [], []>} : vector<16x128xbf16>, vector<128x512xbf16>, vector<16x512xf32> -> vector<16x512xf32>
    %314 = arith.addf %309, %313 : vector<16x512xf32>
    %315 = vector.extract_strided_slice %314 {offsets = [0, 0], sizes = [16, 128], strides = [1, 1]} : vector<16x512xf32> to vector<16x128xf32>
    %316 = arith.negf %315 : vector<16x128xf32>
    %317 = math.exp %316 : vector<16x128xf32>
    %cst_132 = arith.constant 1.000000e+00 : f32
    %318 = vector.broadcast %cst_132 : f32 to vector<16x128xf32>
    %319 = arith.addf %318, %317 : vector<16x128xf32>
    %320 = arith.divf %318, %319 : vector<16x128xf32>
    %321 = vector.extract_strided_slice %314 {offsets = [0, 128], sizes = [16, 128], strides = [1, 1]} : vector<16x512xf32> to vector<16x128xf32>
    %322 = arith.negf %321 : vector<16x128xf32>
    %323 = math.exp %322 : vector<16x128xf32>
    %cst_133 = arith.constant 1.000000e+00 : f32
    %324 = vector.broadcast %cst_133 : f32 to vector<16x128xf32>
    %325 = arith.addf %324, %323 : vector<16x128xf32>
    %326 = arith.divf %324, %325 : vector<16x128xf32>
    %327 = vector.extract_strided_slice %314 {offsets = [0, 256], sizes = [16, 128], strides = [1, 1]} : vector<16x512xf32> to vector<16x128xf32>
    %328 = math.tanh %327 : vector<16x128xf32>
    %329 = vector.extract_strided_slice %314 {offsets = [0, 384], sizes = [16, 128], strides = [1, 1]} : vector<16x512xf32> to vector<16x128xf32>
    %330 = arith.negf %329 : vector<16x128xf32>
    %331 = math.exp %330 : vector<16x128xf32>
    %cst_134 = arith.constant 1.000000e+00 : f32
    %332 = vector.broadcast %cst_134 : f32 to vector<16x128xf32>
    %333 = arith.addf %332, %331 : vector<16x128xf32>
    %334 = arith.divf %332, %333 : vector<16x128xf32>
    %335 = arith.mulf %326, %307 : vector<16x128xf32>
    %336 = arith.mulf %320, %328 : vector<16x128xf32>
    %337 = arith.addf %335, %336 : vector<16x128xf32>
    %338 = math.tanh %337 : vector<16x128xf32>
    %339 = arith.mulf %334, %338 : vector<16x128xf32>
    %c0_135 = arith.constant 0 : index
    %c0_136 = arith.constant 0 : index
    %c0_137 = arith.constant 0 : index
    %340 = vector.load %arg5[%c0_135, %c0_136, %c0_137] : memref<8x16x128xf32, #tpu.memory_space<vmem>>, vector<1x16x128xf32>
    %341 = vector.shape_cast %340 : vector<1x16x128xf32> to vector<16x128xf32>
    %342 = vector.shape_cast %339 : vector<16x128xf32> to vector<1x16x128xf32>
    tpu.vector_store %arg5[%c0_135, %c0_136, %c0_137], %342 {strides = array<i32>} : memref<8x16x128xf32, #tpu.memory_space<vmem>>, vector<1x16x128xf32>,
    %c1_138 = arith.constant 1 : index
    %c0_139 = arith.constant 0 : index
    %c0_140 = arith.constant 0 : index
    %343 = vector.load %arg6[%c1_138, %c0_139, %c0_140] : memref<8x16x512xf32, #tpu.memory_space<vmem>>, vector<1x16x512xf32>
    %344 = vector.shape_cast %343 : vector<1x16x512xf32> to vector<16x512xf32>
    %345 = arith.truncf %339 : vector<16x128xf32> to vector<16x128xbf16>
    %c1_141 = arith.constant 1 : index
    %c0_142 = arith.constant 0 : index
    %c0_143 = arith.constant 0 : index
    %346 = vector.load %arg3[%c1_141, %c0_142, %c0_143] : memref<2x128x512xbf16, #tpu.memory_space<vmem>>, vector<1x128x512xbf16>
    %347 = vector.shape_cast %346 : vector<1x128x512xbf16> to vector<128x512xbf16>
    %cst_144 = arith.constant dense<0.000000e+00> : vector<16x512xf32>
    %348 = tpu.matmul %345, %347, %cst_144 {dimension_numbers = #tpu.dot_dimension_numbers<[1], [0], [0], [1], [0, 0, 1, 1], [], []>} : vector<16x128xbf16>, vector<128x512xbf16>, vector<16x512xf32> -> vector<16x512xf32>
    %349 = arith.addf %344, %348 : vector<16x512xf32>
    %350 = vector.extract_strided_slice %349 {offsets = [0, 0], sizes = [16, 128], strides = [1, 1]} : vector<16x512xf32> to vector<16x128xf32>
    %351 = arith.negf %350 : vector<16x128xf32>
    %352 = math.exp %351 : vector<16x128xf32>
    %cst_145 = arith.constant 1.000000e+00 : f32
    %353 = vector.broadcast %cst_145 : f32 to vector<16x128xf32>
    %354 = arith.addf %353, %352 : vector<16x128xf32>
    %355 = arith.divf %353, %354 : vector<16x128xf32>
    %356 = vector.extract_strided_slice %349 {offsets = [0, 128], sizes = [16, 128], strides = [1, 1]} : vector<16x512xf32> to vector<16x128xf32>
    %357 = arith.negf %356 : vector<16x128xf32>
    %358 = math.exp %357 : vector<16x128xf32>
    %cst_146 = arith.constant 1.000000e+00 : f32
    %359 = vector.broadcast %cst_146 : f32 to vector<16x128xf32>
    %360 = arith.addf %359, %358 : vector<16x128xf32>
    %361 = arith.divf %359, %360 : vector<16x128xf32>
    %362 = vector.extract_strided_slice %349 {offsets = [0, 256], sizes = [16, 128], strides = [1, 1]} : vector<16x512xf32> to vector<16x128xf32>
    %363 = math.tanh %362 : vector<16x128xf32>
    %364 = vector.extract_strided_slice %349 {offsets = [0, 384], sizes = [16, 128], strides = [1, 1]} : vector<16x512xf32> to vector<16x128xf32>
    %365 = arith.negf %364 : vector<16x128xf32>
    %366 = math.exp %365 : vector<16x128xf32>
    %cst_147 = arith.constant 1.000000e+00 : f32
    %367 = vector.broadcast %cst_147 : f32 to vector<16x128xf32>
    %368 = arith.addf %367, %366 : vector<16x128xf32>
    %369 = arith.divf %367, %368 : vector<16x128xf32>
    %370 = arith.mulf %361, %337 : vector<16x128xf32>
    %371 = arith.mulf %355, %363 : vector<16x128xf32>
    %372 = arith.addf %370, %371 : vector<16x128xf32>
    %373 = math.tanh %372 : vector<16x128xf32>
    %374 = arith.mulf %369, %373 : vector<16x128xf32>
    %c1_148 = arith.constant 1 : index
    %c0_149 = arith.constant 0 : index
    %c0_150 = arith.constant 0 : index
    %375 = vector.load %arg5[%c1_148, %c0_149, %c0_150] : memref<8x16x128xf32, #tpu.memory_space<vmem>>, vector<1x16x128xf32>
    %376 = vector.shape_cast %375 : vector<1x16x128xf32> to vector<16x128xf32>
    %377 = vector.shape_cast %374 : vector<16x128xf32> to vector<1x16x128xf32>
    tpu.vector_store %arg5[%c1_148, %c0_149, %c0_150], %377 {strides = array<i32>} : memref<8x16x128xf32, #tpu.memory_space<vmem>>, vector<1x16x128xf32>,
    %c2_151 = arith.constant 2 : index
    %c0_152 = arith.constant 0 : index
    %c0_153 = arith.constant 0 : index
    %378 = vector.load %arg6[%c2_151, %c0_152, %c0_153] : memref<8x16x512xf32, #tpu.memory_space<vmem>>, vector<1x16x512xf32>
    %379 = vector.shape_cast %378 : vector<1x16x512xf32> to vector<16x512xf32>
    %380 = arith.truncf %374 : vector<16x128xf32> to vector<16x128xbf16>
    %c1_154 = arith.constant 1 : index
    %c0_155 = arith.constant 0 : index
    %c0_156 = arith.constant 0 : index
    %381 = vector.load %arg3[%c1_154, %c0_155, %c0_156] : memref<2x128x512xbf16, #tpu.memory_space<vmem>>, vector<1x128x512xbf16>
    %382 = vector.shape_cast %381 : vector<1x128x512xbf16> to vector<128x512xbf16>
    %cst_157 = arith.constant dense<0.000000e+00> : vector<16x512xf32>
    %383 = tpu.matmul %380, %382, %cst_157 {dimension_numbers = #tpu.dot_dimension_numbers<[1], [0], [0], [1], [0, 0, 1, 1], [], []>} : vector<16x128xbf16>, vector<128x512xbf16>, vector<16x512xf32> -> vector<16x512xf32>
    %384 = arith.addf %379, %383 : vector<16x512xf32>
    %385 = vector.extract_strided_slice %384 {offsets = [0, 0], sizes = [16, 128], strides = [1, 1]} : vector<16x512xf32> to vector<16x128xf32>
    %386 = arith.negf %385 : vector<16x128xf32>
    %387 = math.exp %386 : vector<16x128xf32>
    %cst_158 = arith.constant 1.000000e+00 : f32
    %388 = vector.broadcast %cst_158 : f32 to vector<16x128xf32>
    %389 = arith.addf %388, %387 : vector<16x128xf32>
    %390 = arith.divf %388, %389 : vector<16x128xf32>
    %391 = vector.extract_strided_slice %384 {offsets = [0, 128], sizes = [16, 128], strides = [1, 1]} : vector<16x512xf32> to vector<16x128xf32>
    %392 = arith.negf %391 : vector<16x128xf32>
    %393 = math.exp %392 : vector<16x128xf32>
    %cst_159 = arith.constant 1.000000e+00 : f32
    %394 = vector.broadcast %cst_159 : f32 to vector<16x128xf32>
    %395 = arith.addf %394, %393 : vector<16x128xf32>
    %396 = arith.divf %394, %395 : vector<16x128xf32>
    %397 = vector.extract_strided_slice %384 {offsets = [0, 256], sizes = [16, 128], strides = [1, 1]} : vector<16x512xf32> to vector<16x128xf32>
    %398 = math.tanh %397 : vector<16x128xf32>
    %399 = vector.extract_strided_slice %384 {offsets = [0, 384], sizes = [16, 128], strides = [1, 1]} : vector<16x512xf32> to vector<16x128xf32>
    %400 = arith.negf %399 : vector<16x128xf32>
    %401 = math.exp %400 : vector<16x128xf32>
    %cst_160 = arith.constant 1.000000e+00 : f32
    %402 = vector.broadcast %cst_160 : f32 to vector<16x128xf32>
    %403 = arith.addf %402, %401 : vector<16x128xf32>
    %404 = arith.divf %402, %403 : vector<16x128xf32>
    %405 = arith.mulf %396, %372 : vector<16x128xf32>
    %406 = arith.mulf %390, %398 : vector<16x128xf32>
    %407 = arith.addf %405, %406 : vector<16x128xf32>
    %408 = math.tanh %407 : vector<16x128xf32>
    %409 = arith.mulf %404, %408 : vector<16x128xf32>
    %c2_161 = arith.constant 2 : index
    %c0_162 = arith.constant 0 : index
    %c0_163 = arith.constant 0 : index
    %410 = vector.load %arg5[%c2_161, %c0_162, %c0_163] : memref<8x16x128xf32, #tpu.memory_space<vmem>>, vector<1x16x128xf32>
    %411 = vector.shape_cast %410 : vector<1x16x128xf32> to vector<16x128xf32>
    %412 = vector.shape_cast %409 : vector<16x128xf32> to vector<1x16x128xf32>
    tpu.vector_store %arg5[%c2_161, %c0_162, %c0_163], %412 {strides = array<i32>} : memref<8x16x128xf32, #tpu.memory_space<vmem>>, vector<1x16x128xf32>,
    %c3_164 = arith.constant 3 : index
    %c0_165 = arith.constant 0 : index
    %c0_166 = arith.constant 0 : index
    %413 = vector.load %arg6[%c3_164, %c0_165, %c0_166] : memref<8x16x512xf32, #tpu.memory_space<vmem>>, vector<1x16x512xf32>
    %414 = vector.shape_cast %413 : vector<1x16x512xf32> to vector<16x512xf32>
    %415 = arith.truncf %409 : vector<16x128xf32> to vector<16x128xbf16>
    %c1_167 = arith.constant 1 : index
    %c0_168 = arith.constant 0 : index
    %c0_169 = arith.constant 0 : index
    %416 = vector.load %arg3[%c1_167, %c0_168, %c0_169] : memref<2x128x512xbf16, #tpu.memory_space<vmem>>, vector<1x128x512xbf16>
    %417 = vector.shape_cast %416 : vector<1x128x512xbf16> to vector<128x512xbf16>
    %cst_170 = arith.constant dense<0.000000e+00> : vector<16x512xf32>
    %418 = tpu.matmul %415, %417, %cst_170 {dimension_numbers = #tpu.dot_dimension_numbers<[1], [0], [0], [1], [0, 0, 1, 1], [], []>} : vector<16x128xbf16>, vector<128x512xbf16>, vector<16x512xf32> -> vector<16x512xf32>
    %419 = arith.addf %414, %418 : vector<16x512xf32>
    %420 = vector.extract_strided_slice %419 {offsets = [0, 0], sizes = [16, 128], strides = [1, 1]} : vector<16x512xf32> to vector<16x128xf32>
    %421 = arith.negf %420 : vector<16x128xf32>
    %422 = math.exp %421 : vector<16x128xf32>
    %cst_171 = arith.constant 1.000000e+00 : f32
    %423 = vector.broadcast %cst_171 : f32 to vector<16x128xf32>
    %424 = arith.addf %423, %422 : vector<16x128xf32>
    %425 = arith.divf %423, %424 : vector<16x128xf32>
    %426 = vector.extract_strided_slice %419 {offsets = [0, 128], sizes = [16, 128], strides = [1, 1]} : vector<16x512xf32> to vector<16x128xf32>
    %427 = arith.negf %426 : vector<16x128xf32>
    %428 = math.exp %427 : vector<16x128xf32>
    %cst_172 = arith.constant 1.000000e+00 : f32
    %429 = vector.broadcast %cst_172 : f32 to vector<16x128xf32>
    %430 = arith.addf %429, %428 : vector<16x128xf32>
    %431 = arith.divf %429, %430 : vector<16x128xf32>
    %432 = vector.extract_strided_slice %419 {offsets = [0, 256], sizes = [16, 128], strides = [1, 1]} : vector<16x512xf32> to vector<16x128xf32>
    %433 = math.tanh %432 : vector<16x128xf32>
    %434 = vector.extract_strided_slice %419 {offsets = [0, 384], sizes = [16, 128], strides = [1, 1]} : vector<16x512xf32> to vector<16x128xf32>
    %435 = arith.negf %434 : vector<16x128xf32>
    %436 = math.exp %435 : vector<16x128xf32>
    %cst_173 = arith.constant 1.000000e+00 : f32
    %437 = vector.broadcast %cst_173 : f32 to vector<16x128xf32>
    %438 = arith.addf %437, %436 : vector<16x128xf32>
    %439 = arith.divf %437, %438 : vector<16x128xf32>
    %440 = arith.mulf %431, %407 : vector<16x128xf32>
    %441 = arith.mulf %425, %433 : vector<16x128xf32>
    %442 = arith.addf %440, %441 : vector<16x128xf32>
    %443 = math.tanh %442 : vector<16x128xf32>
    %444 = arith.mulf %439, %443 : vector<16x128xf32>
    %c3_174 = arith.constant 3 : index
    %c0_175 = arith.constant 0 : index
    %c0_176 = arith.constant 0 : index
    %445 = vector.load %arg5[%c3_174, %c0_175, %c0_176] : memref<8x16x128xf32, #tpu.memory_space<vmem>>, vector<1x16x128xf32>
    %446 = vector.shape_cast %445 : vector<1x16x128xf32> to vector<16x128xf32>
    %447 = vector.shape_cast %444 : vector<16x128xf32> to vector<1x16x128xf32>
    tpu.vector_store %arg5[%c3_174, %c0_175, %c0_176], %447 {strides = array<i32>} : memref<8x16x128xf32, #tpu.memory_space<vmem>>, vector<1x16x128xf32>,
    %c4_177 = arith.constant 4 : index
    %c0_178 = arith.constant 0 : index
    %c0_179 = arith.constant 0 : index
    %448 = vector.load %arg6[%c4_177, %c0_178, %c0_179] : memref<8x16x512xf32, #tpu.memory_space<vmem>>, vector<1x16x512xf32>
    %449 = vector.shape_cast %448 : vector<1x16x512xf32> to vector<16x512xf32>
    %450 = arith.truncf %444 : vector<16x128xf32> to vector<16x128xbf16>
    %c1_180 = arith.constant 1 : index
    %c0_181 = arith.constant 0 : index
    %c0_182 = arith.constant 0 : index
    %451 = vector.load %arg3[%c1_180, %c0_181, %c0_182] : memref<2x128x512xbf16, #tpu.memory_space<vmem>>, vector<1x128x512xbf16>
    %452 = vector.shape_cast %451 : vector<1x128x512xbf16> to vector<128x512xbf16>
    %cst_183 = arith.constant dense<0.000000e+00> : vector<16x512xf32>
    %453 = tpu.matmul %450, %452, %cst_183 {dimension_numbers = #tpu.dot_dimension_numbers<[1], [0], [0], [1], [0, 0, 1, 1], [], []>} : vector<16x128xbf16>, vector<128x512xbf16>, vector<16x512xf32> -> vector<16x512xf32>
    %454 = arith.addf %449, %453 : vector<16x512xf32>
    %455 = vector.extract_strided_slice %454 {offsets = [0, 0], sizes = [16, 128], strides = [1, 1]} : vector<16x512xf32> to vector<16x128xf32>
    %456 = arith.negf %455 : vector<16x128xf32>
    %457 = math.exp %456 : vector<16x128xf32>
    %cst_184 = arith.constant 1.000000e+00 : f32
    %458 = vector.broadcast %cst_184 : f32 to vector<16x128xf32>
    %459 = arith.addf %458, %457 : vector<16x128xf32>
    %460 = arith.divf %458, %459 : vector<16x128xf32>
    %461 = vector.extract_strided_slice %454 {offsets = [0, 128], sizes = [16, 128], strides = [1, 1]} : vector<16x512xf32> to vector<16x128xf32>
    %462 = arith.negf %461 : vector<16x128xf32>
    %463 = math.exp %462 : vector<16x128xf32>
    %cst_185 = arith.constant 1.000000e+00 : f32
    %464 = vector.broadcast %cst_185 : f32 to vector<16x128xf32>
    %465 = arith.addf %464, %463 : vector<16x128xf32>
    %466 = arith.divf %464, %465 : vector<16x128xf32>
    %467 = vector.extract_strided_slice %454 {offsets = [0, 256], sizes = [16, 128], strides = [1, 1]} : vector<16x512xf32> to vector<16x128xf32>
    %468 = math.tanh %467 : vector<16x128xf32>
    %469 = vector.extract_strided_slice %454 {offsets = [0, 384], sizes = [16, 128], strides = [1, 1]} : vector<16x512xf32> to vector<16x128xf32>
    %470 = arith.negf %469 : vector<16x128xf32>
    %471 = math.exp %470 : vector<16x128xf32>
    %cst_186 = arith.constant 1.000000e+00 : f32
    %472 = vector.broadcast %cst_186 : f32 to vector<16x128xf32>
    %473 = arith.addf %472, %471 : vector<16x128xf32>
    %474 = arith.divf %472, %473 : vector<16x128xf32>
    %475 = arith.mulf %466, %442 : vector<16x128xf32>
    %476 = arith.mulf %460, %468 : vector<16x128xf32>
    %477 = arith.addf %475, %476 : vector<16x128xf32>
    %478 = math.tanh %477 : vector<16x128xf32>
    %479 = arith.mulf %474, %478 : vector<16x128xf32>
    %c4_187 = arith.constant 4 : index
    %c0_188 = arith.constant 0 : index
    %c0_189 = arith.constant 0 : index
    %480 = vector.load %arg5[%c4_187, %c0_188, %c0_189] : memref<8x16x128xf32, #tpu.memory_space<vmem>>, vector<1x16x128xf32>
    %481 = vector.shape_cast %480 : vector<1x16x128xf32> to vector<16x128xf32>
    %482 = vector.shape_cast %479 : vector<16x128xf32> to vector<1x16x128xf32>
    tpu.vector_store %arg5[%c4_187, %c0_188, %c0_189], %482 {strides = array<i32>} : memref<8x16x128xf32, #tpu.memory_space<vmem>>, vector<1x16x128xf32>,
    %c5_190 = arith.constant 5 : index
    %c0_191 = arith.constant 0 : index
    %c0_192 = arith.constant 0 : index
    %483 = vector.load %arg6[%c5_190, %c0_191, %c0_192] : memref<8x16x512xf32, #tpu.memory_space<vmem>>, vector<1x16x512xf32>
    %484 = vector.shape_cast %483 : vector<1x16x512xf32> to vector<16x512xf32>
    %485 = arith.truncf %479 : vector<16x128xf32> to vector<16x128xbf16>
    %c1_193 = arith.constant 1 : index
    %c0_194 = arith.constant 0 : index
    %c0_195 = arith.constant 0 : index
    %486 = vector.load %arg3[%c1_193, %c0_194, %c0_195] : memref<2x128x512xbf16, #tpu.memory_space<vmem>>, vector<1x128x512xbf16>
    %487 = vector.shape_cast %486 : vector<1x128x512xbf16> to vector<128x512xbf16>
    %cst_196 = arith.constant dense<0.000000e+00> : vector<16x512xf32>
    %488 = tpu.matmul %485, %487, %cst_196 {dimension_numbers = #tpu.dot_dimension_numbers<[1], [0], [0], [1], [0, 0, 1, 1], [], []>} : vector<16x128xbf16>, vector<128x512xbf16>, vector<16x512xf32> -> vector<16x512xf32>
    %489 = arith.addf %484, %488 : vector<16x512xf32>
    %490 = vector.extract_strided_slice %489 {offsets = [0, 0], sizes = [16, 128], strides = [1, 1]} : vector<16x512xf32> to vector<16x128xf32>
    %491 = arith.negf %490 : vector<16x128xf32>
    %492 = math.exp %491 : vector<16x128xf32>
    %cst_197 = arith.constant 1.000000e+00 : f32
    %493 = vector.broadcast %cst_197 : f32 to vector<16x128xf32>
    %494 = arith.addf %493, %492 : vector<16x128xf32>
    %495 = arith.divf %493, %494 : vector<16x128xf32>
    %496 = vector.extract_strided_slice %489 {offsets = [0, 128], sizes = [16, 128], strides = [1, 1]} : vector<16x512xf32> to vector<16x128xf32>
    %497 = arith.negf %496 : vector<16x128xf32>
    %498 = math.exp %497 : vector<16x128xf32>
    %cst_198 = arith.constant 1.000000e+00 : f32
    %499 = vector.broadcast %cst_198 : f32 to vector<16x128xf32>
    %500 = arith.addf %499, %498 : vector<16x128xf32>
    %501 = arith.divf %499, %500 : vector<16x128xf32>
    %502 = vector.extract_strided_slice %489 {offsets = [0, 256], sizes = [16, 128], strides = [1, 1]} : vector<16x512xf32> to vector<16x128xf32>
    %503 = math.tanh %502 : vector<16x128xf32>
    %504 = vector.extract_strided_slice %489 {offsets = [0, 384], sizes = [16, 128], strides = [1, 1]} : vector<16x512xf32> to vector<16x128xf32>
    %505 = arith.negf %504 : vector<16x128xf32>
    %506 = math.exp %505 : vector<16x128xf32>
    %cst_199 = arith.constant 1.000000e+00 : f32
    %507 = vector.broadcast %cst_199 : f32 to vector<16x128xf32>
    %508 = arith.addf %507, %506 : vector<16x128xf32>
    %509 = arith.divf %507, %508 : vector<16x128xf32>
    %510 = arith.mulf %501, %477 : vector<16x128xf32>
    %511 = arith.mulf %495, %503 : vector<16x128xf32>
    %512 = arith.addf %510, %511 : vector<16x128xf32>
    %513 = math.tanh %512 : vector<16x128xf32>
    %514 = arith.mulf %509, %513 : vector<16x128xf32>
    %c5_200 = arith.constant 5 : index
    %c0_201 = arith.constant 0 : index
    %c0_202 = arith.constant 0 : index
    %515 = vector.load %arg5[%c5_200, %c0_201, %c0_202] : memref<8x16x128xf32, #tpu.memory_space<vmem>>, vector<1x16x128xf32>
    %516 = vector.shape_cast %515 : vector<1x16x128xf32> to vector<16x128xf32>
    %517 = vector.shape_cast %514 : vector<16x128xf32> to vector<1x16x128xf32>
    tpu.vector_store %arg5[%c5_200, %c0_201, %c0_202], %517 {strides = array<i32>} : memref<8x16x128xf32, #tpu.memory_space<vmem>>, vector<1x16x128xf32>,
    %c6_203 = arith.constant 6 : index
    %c0_204 = arith.constant 0 : index
    %c0_205 = arith.constant 0 : index
    %518 = vector.load %arg6[%c6_203, %c0_204, %c0_205] : memref<8x16x512xf32, #tpu.memory_space<vmem>>, vector<1x16x512xf32>
    %519 = vector.shape_cast %518 : vector<1x16x512xf32> to vector<16x512xf32>
    %520 = arith.truncf %514 : vector<16x128xf32> to vector<16x128xbf16>
    %c1_206 = arith.constant 1 : index
    %c0_207 = arith.constant 0 : index
    %c0_208 = arith.constant 0 : index
    %521 = vector.load %arg3[%c1_206, %c0_207, %c0_208] : memref<2x128x512xbf16, #tpu.memory_space<vmem>>, vector<1x128x512xbf16>
    %522 = vector.shape_cast %521 : vector<1x128x512xbf16> to vector<128x512xbf16>
    %cst_209 = arith.constant dense<0.000000e+00> : vector<16x512xf32>
    %523 = tpu.matmul %520, %522, %cst_209 {dimension_numbers = #tpu.dot_dimension_numbers<[1], [0], [0], [1], [0, 0, 1, 1], [], []>} : vector<16x128xbf16>, vector<128x512xbf16>, vector<16x512xf32> -> vector<16x512xf32>
    %524 = arith.addf %519, %523 : vector<16x512xf32>
    %525 = vector.extract_strided_slice %524 {offsets = [0, 0], sizes = [16, 128], strides = [1, 1]} : vector<16x512xf32> to vector<16x128xf32>
    %526 = arith.negf %525 : vector<16x128xf32>
    %527 = math.exp %526 : vector<16x128xf32>
    %cst_210 = arith.constant 1.000000e+00 : f32
    %528 = vector.broadcast %cst_210 : f32 to vector<16x128xf32>
    %529 = arith.addf %528, %527 : vector<16x128xf32>
    %530 = arith.divf %528, %529 : vector<16x128xf32>
    %531 = vector.extract_strided_slice %524 {offsets = [0, 128], sizes = [16, 128], strides = [1, 1]} : vector<16x512xf32> to vector<16x128xf32>
    %532 = arith.negf %531 : vector<16x128xf32>
    %533 = math.exp %532 : vector<16x128xf32>
    %cst_211 = arith.constant 1.000000e+00 : f32
    %534 = vector.broadcast %cst_211 : f32 to vector<16x128xf32>
    %535 = arith.addf %534, %533 : vector<16x128xf32>
    %536 = arith.divf %534, %535 : vector<16x128xf32>
    %537 = vector.extract_strided_slice %524 {offsets = [0, 256], sizes = [16, 128], strides = [1, 1]} : vector<16x512xf32> to vector<16x128xf32>
    %538 = math.tanh %537 : vector<16x128xf32>
    %539 = vector.extract_strided_slice %524 {offsets = [0, 384], sizes = [16, 128], strides = [1, 1]} : vector<16x512xf32> to vector<16x128xf32>
    %540 = arith.negf %539 : vector<16x128xf32>
    %541 = math.exp %540 : vector<16x128xf32>
    %cst_212 = arith.constant 1.000000e+00 : f32
    %542 = vector.broadcast %cst_212 : f32 to vector<16x128xf32>
    %543 = arith.addf %542, %541 : vector<16x128xf32>
    %544 = arith.divf %542, %543 : vector<16x128xf32>
    %545 = arith.mulf %536, %512 : vector<16x128xf32>
    %546 = arith.mulf %530, %538 : vector<16x128xf32>
    %547 = arith.addf %545, %546 : vector<16x128xf32>
    %548 = math.tanh %547 : vector<16x128xf32>
    %549 = arith.mulf %544, %548 : vector<16x128xf32>
    %c6_213 = arith.constant 6 : index
    %c0_214 = arith.constant 0 : index
    %c0_215 = arith.constant 0 : index
    %550 = vector.load %arg5[%c6_213, %c0_214, %c0_215] : memref<8x16x128xf32, #tpu.memory_space<vmem>>, vector<1x16x128xf32>
    %551 = vector.shape_cast %550 : vector<1x16x128xf32> to vector<16x128xf32>
    %552 = vector.shape_cast %549 : vector<16x128xf32> to vector<1x16x128xf32>
    tpu.vector_store %arg5[%c6_213, %c0_214, %c0_215], %552 {strides = array<i32>} : memref<8x16x128xf32, #tpu.memory_space<vmem>>, vector<1x16x128xf32>,
    %c7_216 = arith.constant 7 : index
    %c0_217 = arith.constant 0 : index
    %c0_218 = arith.constant 0 : index
    %553 = vector.load %arg6[%c7_216, %c0_217, %c0_218] : memref<8x16x512xf32, #tpu.memory_space<vmem>>, vector<1x16x512xf32>
    %554 = vector.shape_cast %553 : vector<1x16x512xf32> to vector<16x512xf32>
    %555 = arith.truncf %549 : vector<16x128xf32> to vector<16x128xbf16>
    %c1_219 = arith.constant 1 : index
    %c0_220 = arith.constant 0 : index
    %c0_221 = arith.constant 0 : index
    %556 = vector.load %arg3[%c1_219, %c0_220, %c0_221] : memref<2x128x512xbf16, #tpu.memory_space<vmem>>, vector<1x128x512xbf16>
    %557 = vector.shape_cast %556 : vector<1x128x512xbf16> to vector<128x512xbf16>
    %cst_222 = arith.constant dense<0.000000e+00> : vector<16x512xf32>
    %558 = tpu.matmul %555, %557, %cst_222 {dimension_numbers = #tpu.dot_dimension_numbers<[1], [0], [0], [1], [0, 0, 1, 1], [], []>} : vector<16x128xbf16>, vector<128x512xbf16>, vector<16x512xf32> -> vector<16x512xf32>
    %559 = arith.addf %554, %558 : vector<16x512xf32>
    %560 = vector.extract_strided_slice %559 {offsets = [0, 0], sizes = [16, 128], strides = [1, 1]} : vector<16x512xf32> to vector<16x128xf32>
    %561 = arith.negf %560 : vector<16x128xf32>
    %562 = math.exp %561 : vector<16x128xf32>
    %cst_223 = arith.constant 1.000000e+00 : f32
    %563 = vector.broadcast %cst_223 : f32 to vector<16x128xf32>
    %564 = arith.addf %563, %562 : vector<16x128xf32>
    %565 = arith.divf %563, %564 : vector<16x128xf32>
    %566 = vector.extract_strided_slice %559 {offsets = [0, 128], sizes = [16, 128], strides = [1, 1]} : vector<16x512xf32> to vector<16x128xf32>
    %567 = arith.negf %566 : vector<16x128xf32>
    %568 = math.exp %567 : vector<16x128xf32>
    %cst_224 = arith.constant 1.000000e+00 : f32
    %569 = vector.broadcast %cst_224 : f32 to vector<16x128xf32>
    %570 = arith.addf %569, %568 : vector<16x128xf32>
    %571 = arith.divf %569, %570 : vector<16x128xf32>
    %572 = vector.extract_strided_slice %559 {offsets = [0, 256], sizes = [16, 128], strides = [1, 1]} : vector<16x512xf32> to vector<16x128xf32>
    %573 = math.tanh %572 : vector<16x128xf32>
    %574 = vector.extract_strided_slice %559 {offsets = [0, 384], sizes = [16, 128], strides = [1, 1]} : vector<16x512xf32> to vector<16x128xf32>
    %575 = arith.negf %574 : vector<16x128xf32>
    %576 = math.exp %575 : vector<16x128xf32>
    %cst_225 = arith.constant 1.000000e+00 : f32
    %577 = vector.broadcast %cst_225 : f32 to vector<16x128xf32>
    %578 = arith.addf %577, %576 : vector<16x128xf32>
    %579 = arith.divf %577, %578 : vector<16x128xf32>
    %580 = arith.mulf %571, %547 : vector<16x128xf32>
    %581 = arith.mulf %565, %573 : vector<16x128xf32>
    %582 = arith.addf %580, %581 : vector<16x128xf32>
    %583 = math.tanh %582 : vector<16x128xf32>
    %584 = arith.mulf %579, %583 : vector<16x128xf32>
    %c7_226 = arith.constant 7 : index
    %c0_227 = arith.constant 0 : index
    %c0_228 = arith.constant 0 : index
    %585 = vector.load %arg5[%c7_226, %c0_227, %c0_228] : memref<8x16x128xf32, #tpu.memory_space<vmem>>, vector<1x16x128xf32>
    %586 = vector.shape_cast %585 : vector<1x16x128xf32> to vector<16x128xf32>
    %587 = vector.shape_cast %584 : vector<16x128xf32> to vector<1x16x128xf32>
    tpu.vector_store %arg5[%c7_226, %c0_227, %c0_228], %587 {strides = array<i32>} : memref<8x16x128xf32, #tpu.memory_space<vmem>>, vector<1x16x128xf32>,
    return
  }
  func.func @transform_0(%arg0: i32) -> (i32, i32, i32) {
    %c0_i32 = arith.constant 0 : i32
    %c0_i32_0 = arith.constant 0 : i32
    %c0_i32_1 = arith.constant 0 : i32
    return %c0_i32, %arg0, %c0_i32_0 : i32, i32, i32
  }
  func.func @transform_1(%arg0: i32) -> (i32, i32, i32) {
    %c0_i32 = arith.constant 0 : i32
    %c0_i32_0 = arith.constant 0 : i32
    %c0_i32_1 = arith.constant 0 : i32
    %c0_i32_2 = arith.constant 0 : i32
    return %c0_i32, %c0_i32_0, %c0_i32_1 : i32, i32, i32
  }
  func.func @transform_2(%arg0: i32) -> (i32, i32, i32) {
    %c0_i32 = arith.constant 0 : i32
    %c0_i32_0 = arith.constant 0 : i32
    %c0_i32_1 = arith.constant 0 : i32
    %c0_i32_2 = arith.constant 0 : i32
    return %c0_i32, %c0_i32_0, %c0_i32_1 : i32, i32, i32
  }
  func.func @transform_3(%arg0: i32) -> (i32, i32, i32) {
    %c0_i32 = arith.constant 0 : i32
    %c0_i32_0 = arith.constant 0 : i32
    %c0_i32_1 = arith.constant 0 : i32
    %c0_i32_2 = arith.constant 0 : i32
    return %c0_i32, %c0_i32_0, %c0_i32_1 : i32, i32, i32
  }
  func.func @transform_4(%arg0: i32) -> (i32, i32, i32) {
    %c0_i32 = arith.constant 0 : i32
    %c0_i32_0 = arith.constant 0 : i32
    %c0_i32_1 = arith.constant 0 : i32
    return %c0_i32, %arg0, %c0_i32_0 : i32, i32, i32
  }
}

</mosaic_0001>

<bundles_post_ra>
// kernel: forward.3
= control target key start
LH: loop header
LB: loop body
LE: loop exit
PB: predicated region body
PF: predicated region fallthrough
CT: control target
= control target key end

     0   :  { %s2468_s0 = inlined_call_operand.vmem [shape: f32[128,128], index: 0, kind: input, shape index: {}]   ;;  %s2469_s1 = inlined_call_operand.vmem [shape: f32[128,128], index: 1, kind: input, shape index: {}]   ;;  %s2470_s2 = inlined_call_operand.vmem [shape: f32[1,128], index: 2, kind: input, shape index: {}]   ;;  %s2471_s3 = inlined_call_operand.vmem [shape: bf16[128,512], index: 3, kind: input, shape index: {}]   ;;  %s2472_s4 = inlined_call_operand.vmem [shape: f32[1,512], index: 4, kind: input, shape index: {}]   ;;  %s2473_s5 = inlined_call_operand.hbm [shape: f32[128,512], index: 5, kind: output, shape index: {}]  }
   0x1   :  { %v52_v0 = vld [vmem:[%s2469_s1 + $0x78] sm:$0xff]  ;;  %v51_v1 = vld [vmem:[%s2469_s1 + $0x70] sm:$0xff]  ;;  %v50_v2 = vld [vmem:[%s2469_s1 + $0x68] sm:$0xff] }
   0x2   :  { %57 = vmatpush.msra.mxu0 %v52_v0  ;;  %1282 = vmatpush.msra.mxu1 %v52_v0  ;;  %v49_v3 = vld [vmem:[%s2469_s1 + $0x60] sm:$0xff]  ;;  %v48_v4 = vld [vmem:[%s2469_s1 + $0x58] sm:$0xff] }
   0x3   :  { %1283 = vmatpush.msra.mxu2 %v52_v0  ;;  %1284 = vmatpush.msra.mxu3 %v52_v0 }
   0x4   :  { %58 = vmatpush.msra.mxu0 %v51_v1  ;;  %1285 = vmatpush.msra.mxu1 %v51_v1 }
   0x5   :  { %1286 = vmatpush.msra.mxu2 %v51_v1  ;;  %1287 = vmatpush.msra.mxu3 %v51_v1 }
   0x6   :  { %59 = vmatpush.msra.mxu0 %v50_v2  ;;  %1288 = vmatpush.msra.mxu1 %v50_v2 }
   0x7   :  { %1289 = vmatpush.msra.mxu2 %v50_v2  ;;  %1290 = vmatpush.msra.mxu3 %v50_v2 }
   0x8   :  { %10 = vsyncpa [#allocation3], 0  ;;  %60 = vmatpush.msra.mxu0 %v49_v3  ;;  %1291 = vmatpush.msra.mxu1 %v49_v3  ;;  %v47_v5 = vld [vmem:[%s2469_s1 + $0x50] sm:$0xff]  ;;  %v46_v6 = vld [vmem:[%s2469_s1 + $0x48] sm:$0xff]  ;;  %s1110_s29 = sshll.u32 %s2473_s5, 4  ;;  %s1617_s30 = smov 512   ;;  %s1111_s29 = int_to_ptr.hbm [resolvable:$true] %s1110_s29 }
   0x9   :  { %1292 = vmatpush.msra.mxu2 %v49_v3  ;;  %1293 = vmatpush.msra.mxu3 %v49_v3  ;;  %v45_v7 = vld [vmem:[%s2469_s1 + $0x40] sm:$0xff]  ;;  %v44_v8 = vld [vmem:[%s2469_s1 + $0x38] sm:$0xff]  ;;  %v43_v9 = vld [vmem:[%s2469_s1 + $0x30] sm:$0xff] }
   0xa   :  { %61 = vmatpush.msra.mxu0 %v48_v4  ;;  %1294 = vmatpush.msra.mxu1 %v48_v4  ;;  %v42_v10 = vld [vmem:[%s2469_s1 + $0x28] sm:$0xff]  ;;  %v41_v11 = vld [vmem:[%s2469_s1 + $0x20] sm:$0xff]  ;;  %v40_v12 = vld [vmem:[%s2469_s1 + $0x18] sm:$0xff] }
   0xb   :  { %1295 = vmatpush.msra.mxu2 %v48_v4  ;;  %1296 = vmatpush.msra.mxu3 %v48_v4  ;;  %v39_v13 = vld [vmem:[%s2469_s1 + $0x10] sm:$0xff]  ;;  %v38_v14 = vld [vmem:[%s2469_s1 + $0x8] sm:$0xff]  ;;  %v37_v15 = vld [vmem:[%s2469_s1] sm:$0xff]  ;;  %s1618_s1 = smov 32  }
   0xc   :  { %62 = vmatpush.msra.mxu0 %v47_v5  ;;  %1297 = vmatpush.msra.mxu1 %v47_v5  ;;  %v21_v16 = vld [vmem:[%s2468_s0] sm:$0xff]  ;;  %v22_v20 = vld [vmem:[%s2468_s0 + $0x8] sm:$0xff]  ;;  %v23_v24 = vld [vmem:[%s2468_s0 + $0x10] sm:$0xff] }
   0xd   :  { %1298 = vmatpush.msra.mxu2 %v47_v5  ;;  %1299 = vmatpush.msra.mxu3 %v47_v5  ;;  %v25_v17 = vld [vmem:[%s2468_s0 + $0x20] sm:$0xff]  ;;  %v26_v21 = vld [vmem:[%s2468_s0 + $0x28] sm:$0xff]  ;;  %v27_v25 = vld [vmem:[%s2468_s0 + $0x30] sm:$0xff] }
   0xe   :  { %63 = vmatpush.msra.mxu0 %v46_v6  ;;  %1300 = vmatpush.msra.mxu1 %v46_v6  ;;  %v29_v18 = vld [vmem:[%s2468_s0 + $0x40] sm:$0xff]  ;;  %v30_v22 = vld [vmem:[%s2468_s0 + $0x48] sm:$0xff]  ;;  %v31_v26 = vld [vmem:[%s2468_s0 + $0x50] sm:$0xff] }
   0xf   :  { %1301 = vmatpush.msra.mxu2 %v46_v6  ;;  %1302 = vmatpush.msra.mxu3 %v46_v6  ;;  %v33_v19 = vld [vmem:[%s2468_s0 + $0x60] sm:$0xff]  ;;  %v34_v23 = vld [vmem:[%s2468_s0 + $0x68] sm:$0xff]  ;;  %v35_v27 = vld [vmem:[%s2468_s0 + $0x70] sm:$0xff] }
  0x10   :  { %64 = vmatpush.msra.mxu0 %v45_v7  ;;  %1303 = vmatpush.msra.mxu1 %v45_v7  ;;  %v24_v28 = vld [vmem:[%s2468_s0 + $0x18] sm:$0xff]  ;;  %v1278_v32 = vld [vmem:[%s2471_s3 + $0xe4] sm:$0xf]  ;;  %v1238_v33 = vld [vmem:[%s2471_s3 + $0xf0] sm:$0xf0] }
  0x11   :  { %1304 = vmatpush.msra.mxu2 %v45_v7  ;;  %1305 = vmatpush.msra.mxu3 %v45_v7  ;;  %v28_v29 = vld [vmem:[%s2468_s0 + $0x38] sm:$0xff]  ;;  %v1236_v34 = vld [vmem:[%s2471_s3 + $0xe0] sm:$0xf]  ;;  %v1241_v35 = vor.u32 %v1278_v32, %v1238_v33  ;;  %v1280_v36 = vld [vmem:[%s2471_s3 + $0xec] sm:$0xf0] }
  0x12   :  { %65 = vmatpush.msra.mxu0 %v44_v8  ;;  %1306 = vmatpush.msra.mxu1 %v44_v8  ;;  %v32_v30 = vld [vmem:[%s2468_s0 + $0x58] sm:$0xff]  ;;  %v1244_v37 = vld [vmem:[%s2471_s3 + $0xe8] sm:$0xf]  ;;  %v1237_v39 = vor.u32 %v1280_v36, %v1236_v34  ;;  %v1279_v41 = vld [vmem:[%s2471_s3 + $0xec] sm:$0xf] }
  0x13   :  { %1307 = vmatpush.msra.mxu2 %v44_v8  ;;  %1308 = vmatpush.msra.mxu3 %v44_v8  ;;  %v36_v31 = vld [vmem:[%s2468_s0 + $0x78] sm:$0xff]  ;;  %v1274_v44 = vld [vmem:[%s2471_s3 + $0xc4] sm:$0xf]  ;;  %v1222_v45 = vld [vmem:[%s2471_s3 + $0xd0] sm:$0xf0] }
  0x14   :  { %66 = vmatpush.msra.mxu0 %v43_v9  ;;  %1309 = vmatpush.msra.mxu1 %v43_v9  ;;  %v1281_v38 = vld [vmem:[%s2471_s3 + $0xf4] sm:$0xf0]  ;;  %v1246_v42 = vld [vmem:[%s2471_s3 + $0xf8] sm:$0xf0]  ;;  %v1220_v46 = vld [vmem:[%s2471_s3 + $0xc0] sm:$0xf]  ;;  %v1225_v47 = vor.u32 %v1274_v44, %v1222_v45 }
  0x15   :  { %1310 = vmatpush.msra.mxu2 %v43_v9  ;;  %1311 = vmatpush.msra.mxu3 %v43_v9  ;;  %v1245_v40 = vor.u32 %v1281_v38, %v1244_v37  ;;  %v1249_v43 = vor.u32 %v1279_v41, %v1246_v42  ;;  %v1276_v48 = vld [vmem:[%s2471_s3 + $0xcc] sm:$0xf0]  ;;  %v1228_v49 = vld [vmem:[%s2471_s3 + $0xc8] sm:$0xf]  ;;  %v1277_v50 = vld [vmem:[%s2471_s3 + $0xd4] sm:$0xf0] }
  0x16   :  { %67 = vmatpush.msra.mxu0 %v42_v10  ;;  %1312 = vmatpush.msra.mxu1 %v42_v10  ;;  %v1221_v51 = vor.u32 %v1276_v48, %v1220_v46  ;;  %v1229_v52 = vor.u32 %v1277_v50, %v1228_v49  ;;  %v1275_v53 = vld [vmem:[%s2471_s3 + $0xcc] sm:$0xf]  ;;  %v1230_v54 = vld [vmem:[%s2471_s3 + $0xd8] sm:$0xf0]  ;;  %v1270_v56 = vld [vmem:[%s2471_s3 + $0xa4] sm:$0xf] }
  0x17   :  { %1313 = vmatpush.msra.mxu2 %v42_v10  ;;  %1314 = vmatpush.msra.mxu3 %v42_v10  ;;  %v1233_v55 = vor.u32 %v1275_v53, %v1230_v54  ;;  %v1206_v57 = vld [vmem:[%s2471_s3 + $0xb0] sm:$0xf0]  ;;  %v1204_v58 = vld [vmem:[%s2471_s3 + $0xa0] sm:$0xf]  ;;  %v1272_v60 = vld [vmem:[%s2471_s3 + $0xac] sm:$0xf0] }
  0x18   :  { %68 = vmatpush.msra.mxu0 %v41_v11  ;;  %1315 = vmatpush.msra.mxu1 %v41_v11  ;;  %v1209_v59 = vor.u32 %v1270_v56, %v1206_v57  ;;  %v1212_v61 = vld [vmem:[%s2471_s3 + $0xa8] sm:$0xf]  ;;  %v1273_v62 = vld [vmem:[%s2471_s3 + $0xb4] sm:$0xf0]  ;;  %v1205_v63 = vor.u32 %v1272_v60, %v1204_v58  ;;  %v1271_v1 = vld [vmem:[%s2471_s3 + $0xac] sm:$0xf] }
  0x19   :  { %1316 = vmatpush.msra.mxu2 %v41_v11  ;;  %1317 = vmatpush.msra.mxu3 %v41_v11  ;;  %v1213_v0 = vor.u32 %v1273_v62, %v1212_v61  ;;  %v1214_v2 = vld [vmem:[%s2471_s3 + $0xb8] sm:$0xf0]  ;;  %v1266_v4 = vld [vmem:[%s2471_s3 + $0x84] sm:$0xf]  ;;  %v1190_v5 = vld [vmem:[%s2471_s3 + $0x90] sm:$0xf0] }
  0x1a   :  { %69 = vmatpush.msra.mxu0 %v40_v12  ;;  %1318 = vmatpush.msra.mxu1 %v40_v12  ;;  %v1217_v3 = vor.u32 %v1271_v1, %v1214_v2  ;;  %v1188_v6 = vld [vmem:[%s2471_s3 + $0x80] sm:$0xf]  ;;  %v1193_v7 = vor.u32 %v1266_v4, %v1190_v5  ;;  %v1268_v8 = vld [vmem:[%s2471_s3 + $0x8c] sm:$0xf0]  ;;  %v1196_v9 = vld [vmem:[%s2471_s3 + $0x88] sm:$0xf] }
  0x1b   :  { %1319 = vmatpush.msra.mxu2 %v40_v12  ;;  %1320 = vmatpush.msra.mxu3 %v40_v12  ;;  %v1269_v10 = vld [vmem:[%s2471_s3 + $0x94] sm:$0xf0]  ;;  %v1189_v11 = vor.u32 %v1268_v8, %v1188_v6  ;;  %v1260_v32 = vld [vmem:[%s2471_s3 + $0x4c] sm:$0xf0]  ;;  %v1164_v33 = vld [vmem:[%s2471_s3 + $0x48] sm:$0xf] }
  0x1c   :  { %70 = vmatpush.msra.mxu0 %v39_v13  ;;  %1321 = vmatpush.msra.mxu1 %v39_v13  ;;  %v1197_v12 = vor.u32 %v1269_v10, %v1196_v9  ;;  %v1261_v34 = vld [vmem:[%s2471_s3 + $0x54] sm:$0xf0]  ;;  %v1259_v37 = vld [vmem:[%s2471_s3 + $0x4c] sm:$0xf]  ;;  %v1166_v38 = vld [vmem:[%s2471_s3 + $0x58] sm:$0xf0] }
  0x1d   :  { %1322 = vmatpush.msra.mxu2 %v39_v13  ;;  %1323 = vmatpush.msra.mxu3 %v39_v13  ;;  %v1267_v13 = vld [vmem:[%s2471_s3 + $0x8c] sm:$0xf]  ;;  %v1165_v36 = vor.u32 %v1261_v34, %v1164_v33  ;;  %v1142_v41 = vld [vmem:[%s2471_s3 + $0x30] sm:$0xf0]  ;;  %v1140_v42 = vld [vmem:[%s2471_s3 + $0x20] sm:$0xf] }
  0x1e   :  { %71 = vmatpush.msra.mxu0 %v38_v14  ;;  %1324 = vmatpush.msra.mxu1 %v38_v14  ;;  %v1256_v44 = vld [vmem:[%s2471_s3 + $0x2c] sm:$0xf0]  ;;  %v1148_v45 = vld [vmem:[%s2471_s3 + $0x28] sm:$0xf]  ;;  %v1257_v46 = vld [vmem:[%s2471_s3 + $0x34] sm:$0xf0] }
  0x1f   :  { %1325 = vmatpush.msra.mxu2 %v38_v14  ;;  %1326 = vmatpush.msra.mxu3 %v38_v14  ;;  %v1198_v14 = vld [vmem:[%s2471_s3 + $0x98] sm:$0xf0]  ;;  %v1149_v48 = vor.u32 %v1257_v46, %v1148_v45  ;;  %v1255_v49 = vld [vmem:[%s2471_s3 + $0x2c] sm:$0xf]  ;;  %v1126_v53 = vld [vmem:[%s2471_s3 + $0x10] sm:$0xf0] }
  0x20   :  { %72 = vmatpush.msra.mxu0 %v37_v15  ;;  %1327 = vmatpush.msra.mxu1 %v37_v15  ;;  %v1150_v50 = vld [vmem:[%s2471_s3 + $0x38] sm:$0xf0]  ;;  %v1124_v54 = vld [vmem:[%s2471_s3] sm:$0xf]  ;;  %v1252_v56 = vld [vmem:[%s2471_s3 + $0xc] sm:$0xf0] }
  0x21   :  { %73 = vmatmul.f32.vlgmr.msra.gmra.mxu0 %v21_v16  ;;  %85 = vmatmul.f32.vlgmr.msra.gmra.mxu1 %v25_v17  ;;  %v1262_v16 = vld [vmem:[%s2471_s3 + $0x64] sm:$0xf]  ;;  %v1174_v17 = vld [vmem:[%s2471_s3 + $0x70] sm:$0xf0]  ;;  %v1132_v57 = vld [vmem:[%s2471_s3 + $0x8] sm:$0xf]  ;;  %v1125_v60 = vor.u32 %v1252_v56, %v1124_v54 }
  0x22   :  { %1328 = vmatpush.msra.mxu2 %v37_v15  ;;  %1329 = vmatpush.msra.mxu3 %v37_v15  ;;  %v1201_v15 = vor.u32 %v1267_v13, %v1198_v14  ;;  %v1253_v58 = vld [vmem:[%s2471_s3 + $0x14] sm:$0xf0]  ;;  %v1251_v62 = vld [vmem:[%s2471_s3 + $0xc] sm:$0xf] }
  0x23   :  { %97 = vmatmul.f32.vlgmr.msra.gmra.mxu2 %v29_v18  ;;  %109 = vmatmul.f32.vlgmr.msra.gmra.mxu3 %v33_v19  ;;  %v1172_v18 = vld [vmem:[%s2471_s3 + $0x60] sm:$0xf]  ;;  %v1177_v19 = vor.u32 %v1262_v16, %v1174_v17  ;;  %v1133_v61 = vor.u32 %v1253_v58, %v1132_v57 }
  0x24   :  { %429 = vmatpush.bf16.msrb.mxu2 %v1241_v35  ;;  %380 = vmatpush.bf16.msrb.mxu1 %v1237_v39  ;;  %v1169_v39 = vor.u32 %v1259_v37, %v1166_v38 }
  0x25   :  { %478 = vmatpush.bf16.msrb.mxu3 %v1245_v40  ;;  %527 = vmatpush.bf16.msrb.mxu0 %v1249_v43  ;;  %v1254_v40 = vld [vmem:[%s2471_s3 + $0x24] sm:$0xf] }
  0x26   :  { %v1145_v43 = vor.u32 %v1254_v40, %v1142_v41 }
  0x28   :  { %430 = vmatpush.bf16.msrb.mxu2 %v1225_v47  ;;  %381 = vmatpush.bf16.msrb.mxu1 %v1221_v51  ;;  %v1141_v47 = vor.u32 %v1256_v44, %v1140_v42  ;;  %v1153_v51 = vor.u32 %v1255_v49, %v1150_v50 }
  0x29   :  { %76 = vmatmul.f32.gmra.mxu0 %v22_v20  ;;  %88 = vmatmul.f32.gmra.mxu1 %v26_v21  ;;  %v1264_v20 = vld [vmem:[%s2471_s3 + $0x6c] sm:$0xf0]  ;;  %v1180_v21 = vld [vmem:[%s2471_s3 + $0x68] sm:$0xf] }
  0x2a   :  { %479 = vmatpush.bf16.msrb.mxu3 %v1229_v52  ;;  %528 = vmatpush.bf16.msrb.mxu0 %v1233_v55  ;;  %v1250_v52 = vld [vmem:[%s2471_s3 + $0x4] sm:$0xf] }
  0x2b   :  { %100 = vmatmul.f32.gmra.mxu2 %v30_v22  ;;  %112 = vmatmul.f32.gmra.mxu3 %v34_v23  ;;  %v1265_v22 = vld [vmem:[%s2471_s3 + $0x74] sm:$0xf0]  ;;  %v1173_v23 = vor.u32 %v1264_v20, %v1172_v18  ;;  %v1129_v55 = vor.u32 %v1250_v52, %v1126_v53 }
  0x2c   :  { %431 = vmatpush.bf16.msrb.mxu2 %v1209_v59  ;;  %382 = vmatpush.bf16.msrb.mxu1 %v1205_v63  ;;  %v1934_v59 = vld [vmem:[%s2470_s2] ss:$0 sm:$0xff]  ;;  %v1134_v63 = vld [vmem:[%s2471_s3 + $0x18] sm:$0xf0] }
  0x2e   :  { %480 = vmatpush.bf16.msrb.mxu3 %v1213_v0  ;;  %529 = vmatpush.bf16.msrb.mxu0 %v1217_v3  ;;  %v1137_v0 = vor.u32 %v1251_v62, %v1134_v63 }
  0x30   :  { %432 = vmatpush.bf16.msrb.mxu2 %v1193_v7  ;;  %383 = vmatpush.bf16.msrb.mxu1 %v1189_v11 }
  0x31   :  { %79 = vmatmul.f32.gmra.mxu0 %v23_v24  ;;  %91 = vmatmul.f32.gmra.mxu1 %v27_v25  ;;  %v1181_v24 = vor.u32 %v1265_v22, %v1180_v21  ;;  %v1263_v25 = vld [vmem:[%s2471_s3 + $0x6c] sm:$0xf] }
  0x32   :  { %481 = vmatpush.bf16.msrb.mxu3 %v1197_v12  ;;  %530 = vmatpush.bf16.msrb.mxu0 %v1201_v15 }
  0x33   :  { %103 = vmatmul.f32.gmra.mxu2 %v31_v26  ;;  %115 = vmatmul.f32.gmra.mxu3 %v35_v27  ;;  %v1182_v26 = vld [vmem:[%s2471_s3 + $0x78] sm:$0xf0] }
  0x34   :  { %433 = vmatpush.bf16.msrb.mxu2 %v1177_v19  ;;  %v1185_v27 = vor.u32 %v1263_v25, %v1182_v26  ;;  %384 = vmatpush.bf16.msrb.mxu1 %v1173_v23 }
  0x36   :  { %482 = vmatpush.bf16.msrb.mxu3 %v1181_v24  ;;  %531 = vmatpush.bf16.msrb.mxu0 %v1185_v27 }
  0x39   :  { %82 = vmatmul.f32.gmra.mxu0 %v24_v28  ;;  %94 = vmatmul.f32.gmra.mxu1 %v28_v29  ;;  %v1258_v28 = vld [vmem:[%s2471_s3 + $0x44] sm:$0xf]  ;;  %v1158_v29 = vld [vmem:[%s2471_s3 + $0x50] sm:$0xf0] }
  0x3a   :  { %483 = vmatpush.bf16.msrb.mxu3 %v1165_v36  ;;  %532 = vmatpush.bf16.msrb.mxu0 %v1169_v39 }
  0x3b   :  { %106 = vmatmul.f32.gmra.mxu2 %v32_v30  ;;  %118 = vmatmul.f32.gmra.mxu3 %v36_v31  ;;  %v1156_v30 = vld [vmem:[%s2471_s3 + $0x40] sm:$0xf]  ;;  %v1161_v31 = vor.u32 %v1258_v28, %v1158_v29 }
  0x3c   :  { %v1157_v35 = vor.u32 %v1260_v32, %v1156_v30 }
  0x3d   :  { %434 = vmatpush.bf16.msrb.mxu2 %v1161_v31 }
  0x3e   :  { %385 = vmatpush.bf16.msrb.mxu1 %v1157_v35  ;;  %484 = vmatpush.bf16.msrb.mxu3 %v1149_v48 }
  0x3f   :  { %533 = vmatpush.bf16.msrb.mxu0 %v1153_v51 }
  0x41   :  { %435 = vmatpush.bf16.msrb.mxu2 %v1145_v43 }
  0x42   :  { %386 = vmatpush.bf16.msrb.mxu1 %v1141_v47  ;;  %485 = vmatpush.bf16.msrb.mxu3 %v1133_v61 }
  0x43   :  { %534 = vmatpush.bf16.msrb.mxu0 %v1137_v0 }
  0x45   :  { %436 = vmatpush.bf16.msrb.mxu2 %v1129_v55 }
  0x46   :  { %387 = vmatpush.bf16.msrb.mxu1 %v1125_v60 }
  0x9e   :  { %v74_v1 = vpop.f32.mrf.mxu0  ;;  %v86_v7 = vpop.f32.mrf.mxu1 }
  0x9f   :  { %v75_v2 = vadd.f32 %v1934_v59, %v74_v1  ;;  %v87_v18 = vadd.f32 %v1934_v59, %v86_v7 }
  0xa1   :  { %1334 = vtanh.f32 %v75_v2 }
  0xa6   :  { %v77_v3 = vpop.f32.mrf.mxu0  ;;  %v89_v14 = vpop.f32.mrf.mxu1 }
  0xa7   :  { %v78_v4 = vadd.f32 %v1934_v59, %v77_v3  ;;  %v1335_v5 = vpop.eup %1334  ;;  %v90_v21 = vadd.f32 %v1934_v59, %v89_v14  ;;  %v98_v32 = vpop.f32.mrf.mxu2 }
  0xa8   :  { %v99_v41 = vadd.f32 %v1934_v59, %v98_v32  ;;  %v110_v54 = vpop.f32.mrf.mxu3 }
  0xa9   :  { %1336 = vtanh.f32 %v78_v4  ;;  %v111_v0 = vadd.f32 %v1934_v59, %v110_v54 }
  0xaa   :  { %1338 = vtanh.f32 %v1335_v5 }
  0xae   :  { %v80_v6 = vpop.f32.mrf.mxu0  ;;  %v92_v22 = vpop.f32.mrf.mxu1 }
  0xaf   :  { %v1337_v8 = vpop.eup %1336  ;;  %v81_v9 = vadd.f32 %v1934_v59, %v80_v6  ;;  %v93_v30 = vadd.f32 %v1934_v59, %v92_v22  ;;  %v101_v37 = vpop.f32.mrf.mxu2 }
  0xb0   :  { %1340 = vtanh.f32 %v1337_v8  ;;  %v1339_v10 = vpop.eup %1338  ;;  %v102_v43 = vadd.f32 %v1934_v59, %v101_v37  ;;  %v113_v60 = vpop.f32.mrf.mxu3 }
  0xb1   :  { %1342 = vtanh.f32 %v81_v9  ;;  %v114_v2 = vadd.f32 %v1934_v59, %v113_v60 }
  0xb2   :  { %1344 = vtanh.f32 %v1339_v10 }
  0xb6   :  { %v1341_v11 = vpop.eup %1340  ;;  %v83_v12 = vpop.f32.mrf.mxu0 }
  0xb7   :  { %1346 = vtanh.f32 %v1341_v11  ;;  %v84_v13 = vadd.f32 %v1934_v59, %v83_v12  ;;  %v1343_v15 = vpop.eup %1342  ;;  %v95_v28 = vpop.f32.mrf.mxu1 }
  0xb8   :  { %v1345_v16 = vpop.eup %1344  ;;  %v96_v33 = vadd.f32 %v1934_v59, %v95_v28  ;;  %v104_v46 = vpop.f32.mrf.mxu2 }
  0xb9   :  { %1348 = vtanh.f32 %v84_v13  ;;  %v105_v52 = vadd.f32 %v1934_v59, %v104_v46  ;;  %v116_v5 = vpop.f32.mrf.mxu3 }
  0xba   :  { %1350 = vtanh.f32 %v1343_v15  ;;  %v117_v11 = vadd.f32 %v1934_v59, %v116_v5 }
  0xbd   :  { %v1347_v17 = vpop.eup %1346 }
  0xbe   :  { %v170_v19 = vpack.c.bf16 %v1347_v17, %v1345_v16 }
  0xbf   :  { %v1349_v20 = vpop.eup %1348 }
  0xc0   :  { %1352 = vtanh.f32 %v1349_v20  ;;  %388 = vmatmul.bf16.vlgmr.msrb.gmra.mxu1 %v170_v19  ;;  %437 = vmatmul.bf16.vlgmr.msrb.gmra.mxu2 %v170_v19  ;;  %v1351_v23 = vpop.eup %1350  ;;  %v107_v51 = vpop.f32.mrf.mxu2 }
  0xc1   :  { %486 = vmatmul.bf16.vlgmr.msrb.gmra.mxu3 %v170_v19  ;;  %535 = vmatmul.bf16.vlgmr.msrb.gmra.mxu0 %v170_v19  ;;  %1354 = vtanh.f32 %v87_v18  ;;  %v108_v55 = vadd.f32 %v1934_v59, %v107_v51  ;;  %v119_v10 = vpop.f32.mrf.mxu3 }
  0xc2   :  { %1356 = vtanh.f32 %v90_v21  ;;  %v120_v13 = vadd.f32 %v1934_v59, %v119_v10 }
  0xc3   :  { %1358 = vtanh.f32 %v1351_v23 }
  0xc6   :  { %v1353_v24 = vpop.eup %1352 }
  0xc7   :  { %1360 = vtanh.f32 %v1353_v24  ;;  %v1355_v25 = vpop.eup %1354 }
  0xc8   :  { %v1357_v26 = vpop.eup %1356  ;;  %1362 = vtanh.f32 %v1355_v25  ;;  %v210_v25 = vld [vmem:[%s2472_s4] sm:$0xf]  ;;  %s1616_s4 = smov [#allocation2]  }
  0xc9   :  { %v1359_v27 = vpop.eup %1358  ;;  %1364 = vtanh.f32 %v1357_v26  ;;  %v1961_v28 = vperm.slane %v210_v25, 0  ;;  %s1108_s26 = sshll.u32 %s1616_s4, 4  ;;  %s1109_s26 = int_to_ptr.vmem [resolvable:$true] %s1108_s26 }
  0xca   :  { %1366 = vtanh.f32 %v93_v30  ;;  %v1965_v30 = vperm.slane %v210_v25, 2 }
  0xcb   :  { %1368 = vtanh.f32 %v96_v33  ;;  %v1970_v33 = vperm.slane %v210_v25, 3 }
  0xcd   :  { %v1361_v29 = vpop.eup %1360 }
  0xce   :  { %v171_v31 = vpack.c.bf16 %v1361_v29, %v1359_v27  ;;  %v1363_v34 = vpop.eup %1362  ;;  %v1963_v29 = vperm.slane %v210_v25, 1 }
  0xcf   :  { %v1365_v35 = vpop.eup %1364  ;;  %1370 = vtanh.f32 %v1363_v34 }
  0xd0   :  { %393 = vmatmul.bf16.gmra.mxu1 %v171_v31  ;;  %442 = vmatmul.bf16.gmra.mxu2 %v171_v31  ;;  %1372 = vtanh.f32 %v1365_v35  ;;  %v1367_v36 = vpop.eup %1366 }
  0xd1   :  { %491 = vmatmul.bf16.gmra.mxu3 %v171_v31  ;;  %540 = vmatmul.bf16.gmra.mxu0 %v171_v31  ;;  %v1369_v38 = vpop.eup %1368  ;;  %1374 = vtanh.f32 %v1367_v36 }
  0xd2   :  { %1376 = vtanh.f32 %v1369_v38 }
  0xd3   :  { %1378 = vtanh.f32 %v99_v41 }
  0xd4   :  { %1380 = vtanh.f32 %v102_v43 }
  0xd5   :  { %v1371_v39 = vpop.eup %1370 }
  0xd6   :  { %v1373_v40 = vpop.eup %1372 }
  0xd7   :  { %v172_v42 = vpack.c.bf16 %v1373_v40, %v1371_v39  ;;  %v1375_v44 = vpop.eup %1374 }
  0xd8   :  { %v1377_v45 = vpop.eup %1376  ;;  %1382 = vtanh.f32 %v1375_v44 }
  0xd9   :  { %1384 = vtanh.f32 %v1377_v45  ;;  %v1379_v47 = vpop.eup %1378 }
  0xda   :  { %v1381_v48 = vpop.eup %1380  ;;  %1386 = vtanh.f32 %v1379_v47 }
  0xdb   :  { %1388 = vtanh.f32 %v1381_v48 }
  0xdc   :  { %1390 = vtanh.f32 %v105_v52 }
  0xdd   :  { %1392 = vtanh.f32 %v108_v55 }
  0xde   :  { %v1383_v49 = vpop.eup %1382 }
  0xdf   :  { %v1385_v50 = vpop.eup %1384 }
  0xe0   :  { %398 = vmatmul.bf16.gmra.mxu1 %v172_v42  ;;  %447 = vmatmul.bf16.gmra.mxu2 %v172_v42  ;;  %v173_v53 = vpack.c.bf16 %v1385_v50, %v1383_v49  ;;  %v1387_v56 = vpop.eup %1386 }
  0xe1   :  { %496 = vmatmul.bf16.gmra.mxu3 %v172_v42  ;;  %545 = vmatmul.bf16.gmra.mxu0 %v172_v42  ;;  %v1389_v57 = vpop.eup %1388  ;;  %1394 = vtanh.f32 %v1387_v56 }
  0xe2   :  { %1396 = vtanh.f32 %v1389_v57  ;;  %v1391_v58 = vpop.eup %1390 }
  0xe3   :  { %v1393_v61 = vpop.eup %1392  ;;  %1398 = vtanh.f32 %v1391_v58 }
  0xe4   :  { %1400 = vtanh.f32 %v1393_v61 }
  0xe5   :  { %1402 = vtanh.f32 %v111_v0 }
  0xe6   :  { %1404 = vtanh.f32 %v114_v2 }
  0xe7   :  { %v1395_v62 = vpop.eup %1394 }
  0xe8   :  { %v1397_v63 = vpop.eup %1396 }
  0xe9   :  { %v174_v1 = vpack.c.bf16 %v1397_v63, %v1395_v62  ;;  %v1399_v3 = vpop.eup %1398 }
  0xea   :  { %v1401_v4 = vpop.eup %1400  ;;  %1406 = vtanh.f32 %v1399_v3 }
  0xeb   :  { %1408 = vtanh.f32 %v1401_v4  ;;  %v1403_v6 = vpop.eup %1402 }
  0xec   :  { %v1405_v7 = vpop.eup %1404  ;;  %1410 = vtanh.f32 %v1403_v6 }
  0xed   :  { %1412 = vtanh.f32 %v1405_v7 }
  0xee   :  { %1414 = vtanh.f32 %v117_v11 }
  0xef   :  { %1416 = vtanh.f32 %v120_v13 }
  0xf0   :  { %403 = vmatmul.bf16.gmra.mxu1 %v173_v53  ;;  %452 = vmatmul.bf16.gmra.mxu2 %v173_v53  ;;  %v1407_v8 = vpop.eup %1406 }
  0xf1   :  { %501 = vmatmul.bf16.gmra.mxu3 %v173_v53  ;;  %550 = vmatmul.bf16.gmra.mxu0 %v173_v53  ;;  %v1409_v9 = vpop.eup %1408 }
  0xf2   :  { %v175_v12 = vpack.c.bf16 %v1409_v9, %v1407_v8  ;;  %v1411_v14 = vpop.eup %1410 }
  0xf3   :  { %v1413_v15 = vpop.eup %1412  ;;  %1418 = vtanh.f32 %v1411_v14 }
  0xf4   :  { %1420 = vtanh.f32 %v1413_v15  ;;  %v1415_v16 = vpop.eup %1414 }
  0xf5   :  { %v1417_v17 = vpop.eup %1416  ;;  %1422 = vtanh.f32 %v1415_v16 }
  0xf6   :  { %1424 = vtanh.f32 %v1417_v17 }
  0xf9   :  { %v1419_v18 = vpop.eup %1418 }
  0xfa   :  { %v1421_v19 = vpop.eup %1420 }
  0xfb   :  { %v176_v20 = vpack.c.bf16 %v1421_v19, %v1419_v18  ;;  %v1423_v59 = vpop.eup %1422 }
  0xfc   :  { %v1425_v21 = vpop.eup %1424  ;;  %1426 = vtanh.f32 %v1423_v59 }
  0xfd   :  { %1428 = vtanh.f32 %v1425_v21 }
 0x100   :  { %408 = vmatmul.bf16.gmra.mxu1 %v174_v1  ;;  %457 = vmatmul.bf16.gmra.mxu2 %v174_v1 }
 0x101   :  { %506 = vmatmul.bf16.gmra.mxu3 %v174_v1  ;;  %555 = vmatmul.bf16.gmra.mxu0 %v174_v1 }
 0x102   :  { %v1427_v22 = vpop.eup %1426 }
 0x103   :  { %v1429_v23 = vpop.eup %1428 }
 0x104   :  { %v177_v24 = vpack.c.bf16 %v1429_v23, %v1427_v22 }
 0x110   :  { %413 = vmatmul.bf16.gmra.mxu1 %v175_v12  ;;  %462 = vmatmul.bf16.gmra.mxu2 %v175_v12 }
 0x111   :  { %511 = vmatmul.bf16.gmra.mxu3 %v175_v12  ;;  %560 = vmatmul.bf16.gmra.mxu0 %v175_v12 }
 0x120   :  { %418 = vmatmul.bf16.gmra.mxu1 %v176_v20  ;;  %467 = vmatmul.bf16.gmra.mxu2 %v176_v20 }
 0x121   :  { %516 = vmatmul.bf16.gmra.mxu3 %v176_v20  ;;  %565 = vmatmul.bf16.gmra.mxu0 %v176_v20 }
 0x130   :  { %423 = vmatmul.bf16.gmra.mxu1 %v177_v24  ;;  %472 = vmatmul.bf16.gmra.mxu2 %v177_v24 }
 0x131   :  { %521 = vmatmul.bf16.gmra.mxu3 %v177_v24  ;;  %570 = vmatmul.bf16.gmra.mxu0 %v177_v24 }
 0x13d   :  { %v389_v26 = vpop.f32.mrf.mxu1 }
 0x13e   :  { %v536_v27 = vpop.f32.mrf.mxu0  ;;  %v1968_v32 = vadd.f32 %v389_v26, %v1961_v28 }
 0x13f   :  { %v1981_v40 = vadd.f32 %v536_v27, %v1970_v33 }
 0x140   :  { %2525 = vst [vmem:[#allocation5_spill] sm:$0xff] %v1968_v32 }
 0x141   :  { %2527 = vst [vmem:[#allocation7_spill] sm:$0xff] %v1981_v40 }
 0x143   :  { %v438_v31 = vpop.f32.mrf.mxu2 }
 0x144   :  { %v1973_v34 = vadd.f32 %v438_v31, %v1963_v29  ;;  %v487_v35 = vpop.f32.mrf.mxu3 }
 0x145   :  { %v391_v36 = vpop.f32.mrf.mxu1  ;;  %v1976_v37 = vadd.f32 %v487_v35, %v1965_v30 }
 0x146   :  { %2526 = vst [vmem:[#allocation6_spill] sm:$0xff] %v1973_v34  ;;  %v538_v38 = vpop.f32.mrf.mxu0  ;;  %v576_v39 = vmax.f32 %v1968_v32, %v1973_v34  ;;  %v1986_v44 = vadd.f32 %v391_v36, %v1961_v28 }
 0x147   :  { %v1997_v51 = vadd.f32 %v538_v38, %v1970_v33 }
 0x148   :  { %v577_v41 = vmax.f32 %v576_v39, %v1976_v37  ;;  %2528 = vst [vmem:[#allocation8_spill] sm:$0xff] %v1986_v44 }
 0x14a   :  { %v578_v42 = vmax.f32 %v577_v41, %v1981_v40 }
 0x14b   :  { %v440_v43 = vpop.f32.mrf.mxu2 }
 0x14c   :  { %v1989_v45 = vadd.f32 %v440_v43, %v1963_v29  ;;  %v489_v46 = vpop.f32.mrf.mxu3  ;;  %579 = vmax.xlane.f32.xlu0 %v578_v42 }
 0x14d   :  { %v394_v47 = vpop.f32.mrf.mxu1  ;;  %v1994_v49 = vadd.f32 %v489_v46, %v1965_v30 }
 0x14e   :  { %2529 = vst [vmem:[#allocation9_spill] sm:$0xff] %v1989_v45  ;;  %v581_v48 = vmax.f32 %v1986_v44, %v1989_v45  ;;  %v541_v50 = vpop.f32.mrf.mxu0  ;;  %v2002_v55 = vadd.f32 %v394_v47, %v1961_v28 }
 0x14f   :  { %2530 = vst [vmem:[#allocation10_spill] sm:$0xff] %v1994_v49  ;;  %v2013_v63 = vadd.f32 %v541_v50, %v1970_v33 }
 0x150   :  { %v582_v52 = vmax.f32 %v581_v48, %v1994_v49  ;;  %2531 = vst [vmem:[#allocation11_spill] sm:$0xff] %v2002_v55 }
 0x152   :  { %v583_v53 = vmax.f32 %v582_v52, %v1997_v51 }
 0x153   :  { %v443_v54 = vpop.f32.mrf.mxu2 }
 0x154   :  { %v2005_v56 = vadd.f32 %v443_v54, %v1963_v29  ;;  %v492_v57 = vpop.f32.mrf.mxu3  ;;  %584 = vmax.xlane.f32.xlu0 %v583_v53 }
 0x155   :  { %v396_v58 = vpop.f32.mrf.mxu1  ;;  %v2008_v60 = vadd.f32 %v492_v57, %v1965_v30 }
 0x156   :  { %2532 = vst [vmem:[#allocation12_spill] sm:$0xff] %v2005_v56  ;;  %v543_v61 = vpop.f32.mrf.mxu0  ;;  %v586_v62 = vmax.f32 %v2002_v55, %v2005_v56  ;;  %v2018_v3 = vadd.f32 %v396_v58, %v1961_v28 }
 0x157   :  { %v2029_v10 = vadd.f32 %v543_v61, %v1970_v33 }
 0x158   :  { %v587_v0 = vmax.f32 %v586_v62, %v2008_v60 }
 0x15a   :  { %v588_v1 = vmax.f32 %v587_v0, %v2013_v63 }
 0x15b   :  { %v445_v2 = vpop.f32.mrf.mxu2 }
 0x15c   :  { %v2021_v4 = vadd.f32 %v445_v2, %v1963_v29  ;;  %v494_v5 = vpop.f32.mrf.mxu3  ;;  %589 = vmax.xlane.f32.xlu1 %v588_v1 }
 0x15d   :  { %v399_v6 = vpop.f32.mrf.mxu1  ;;  %v2026_v8 = vadd.f32 %v494_v5, %v1965_v30 }
 0x15e   :  { %2533 = vst [vmem:[#allocation13_spill] sm:$0xff] %v2021_v4  ;;  %v591_v7 = vmax.f32 %v2018_v3, %v2021_v4  ;;  %v546_v9 = vpop.f32.mrf.mxu0  ;;  %v2034_v14 = vadd.f32 %v399_v6, %v1961_v28 }
 0x15f   :  { %v2045_v59 = vadd.f32 %v546_v9, %v1970_v33 }
 0x160   :  { %v592_v11 = vmax.f32 %v591_v7, %v2026_v8 }
 0x162   :  { %v593_v12 = vmax.f32 %v592_v11, %v2029_v10 }
 0x163   :  { %v448_v13 = vpop.f32.mrf.mxu2 }
 0x164   :  { %v2037_v15 = vadd.f32 %v448_v13, %v1963_v29  ;;  %v497_v16 = vpop.f32.mrf.mxu3  ;;  %594 = vmax.xlane.f32.xlu1 %v593_v12 }
 0x165   :  { %v401_v17 = vpop.f32.mrf.mxu1  ;;  %v2040_v18 = vadd.f32 %v497_v16, %v1965_v30 }
 0x166   :  { %2534 = vst [vmem:[#allocation14_spill] sm:$0xff] %v2037_v15  ;;  %v548_v19 = vpop.f32.mrf.mxu0  ;;  %v596_v20 = vmax.f32 %v2034_v14, %v2037_v15  ;;  %v2050_v24 = vadd.f32 %v401_v17, %v1961_v28 }
 0x167   :  { %v2061_v38 = vadd.f32 %v548_v19, %v1970_v33 }
 0x168   :  { %v597_v21 = vmax.f32 %v596_v20, %v2040_v18 }
 0x16a   :  { %v598_v22 = vmax.f32 %v597_v21, %v2045_v59 }
 0x16b   :  { %v450_v23 = vpop.f32.mrf.mxu2 }
 0x16c   :  { %v2053_v25 = vadd.f32 %v450_v23, %v1963_v29  ;;  %v499_v26 = vpop.f32.mrf.mxu3  ;;  %599 = vmax.xlane.f32.xlu2 %v598_v22 }
 0x16d   :  { %v404_v27 = vpop.f32.mrf.mxu1  ;;  %v2058_v35 = vadd.f32 %v499_v26, %v1965_v30 }
 0x16e   :  { %2535 = vst [vmem:[#allocation15_spill] sm:$0xff] %v2053_v25  ;;  %v601_v31 = vmax.f32 %v2050_v24, %v2053_v25  ;;  %v551_v36 = vpop.f32.mrf.mxu0  ;;  %v2066_v43 = vadd.f32 %v404_v27, %v1961_v28 }
 0x16f   :  { %v2077_v54 = vadd.f32 %v551_v36, %v1970_v33 }
 0x170   :  { %v602_v39 = vmax.f32 %v601_v31, %v2058_v35 }
 0x172   :  { %v603_v41 = vmax.f32 %v602_v39, %v2061_v38 }
 0x173   :  { %v453_v42 = vpop.f32.mrf.mxu2 }
 0x174   :  { %v2069_v46 = vadd.f32 %v453_v42, %v1963_v29  ;;  %v502_v47 = vpop.f32.mrf.mxu3  ;;  %604 = vmax.xlane.f32.xlu2 %v603_v41 }
 0x175   :  { %v406_v48 = vpop.f32.mrf.mxu1  ;;  %v2074_v52 = vadd.f32 %v502_v47, %v1965_v30 }
 0x176   :  { %2536 = vst [vmem:[#allocation16_spill] sm:$0xff] %v2069_v46  ;;  %v606_v50 = vmax.f32 %v2066_v43, %v2069_v46  ;;  %v553_v53 = vpop.f32.mrf.mxu0  ;;  %v2082_v62 = vadd.f32 %v406_v48, %v1961_v28 }
 0x177   :  { %v2093_v9 = vadd.f32 %v553_v53, %v1970_v33 }
 0x178   :  { %v607_v57 = vmax.f32 %v606_v50, %v2074_v52 }
 0x17a   :  { %v608_v58 = vmax.f32 %v607_v57, %v2077_v54 }
 0x17b   :  { %v455_v61 = vpop.f32.mrf.mxu2 }
 0x17c   :  { %v2085_v0 = vadd.f32 %v455_v61, %v1963_v29  ;;  %v504_v1 = vpop.f32.mrf.mxu3  ;;  %609 = vmax.xlane.f32.xlu0 %v608_v58 }
 0x17d   :  { %v409_v2 = vpop.f32.mrf.mxu1  ;;  %v2090_v6 = vadd.f32 %v504_v1, %v1965_v30 }
 0x17e   :  { %2537 = vst [vmem:[#allocation17_spill] sm:$0xff] %v2085_v0  ;;  %v611_v5 = vmax.f32 %v2082_v62, %v2085_v0  ;;  %v556_v7 = vpop.f32.mrf.mxu0  ;;  %v2098_v16 = vadd.f32 %v409_v2, %v1961_v28 }
 0x17f   :  { %v2109_v26 = vadd.f32 %v556_v7, %v1970_v33 }
 0x180   :  { %v612_v11 = vmax.f32 %v611_v5, %v2090_v6 }
 0x182   :  { %v613_v12 = vmax.f32 %v612_v11, %v2093_v9 }
 0x183   :  { %v458_v13 = vpop.f32.mrf.mxu2 }
 0x184   :  { %v2101_v17 = vadd.f32 %v458_v13, %v1963_v29  ;;  %v507_v19 = vpop.f32.mrf.mxu3  ;;  %614 = vmax.xlane.f32.xlu1 %v613_v12 }
 0x185   :  { %v411_v20 = vpop.f32.mrf.mxu1  ;;  %v2106_v22 = vadd.f32 %v507_v19, %v1965_v30 }
 0x186   :  { %2538 = vst [vmem:[#allocation18_spill] sm:$0xff] %v2101_v17  ;;  %v616_v21 = vmax.f32 %v2098_v16, %v2101_v17  ;;  %v558_v23 = vpop.f32.mrf.mxu0  ;;  %v2114_v39 = vadd.f32 %v411_v20, %v1961_v28 }
 0x187   :  { %v2125_v57 = vadd.f32 %v558_v23, %v1970_v33 }
 0x188   :  { %v617_v27 = vmax.f32 %v616_v21, %v2106_v22 }
 0x18a   :  { %v618_v31 = vmax.f32 %v617_v27, %v2109_v26 }
 0x18b   :  { %v460_v36 = vpop.f32.mrf.mxu2 }
 0x18c   :  { %v2117_v41 = vadd.f32 %v460_v36, %v1963_v29  ;;  %v509_v42 = vpop.f32.mrf.mxu3  ;;  %619 = vmax.xlane.f32.xlu2 %v618_v31 }
 0x18d   :  { %v414_v47 = vpop.f32.mrf.mxu1  ;;  %v2122_v50 = vadd.f32 %v509_v42, %v1965_v30 }
 0x18e   :  { %2539 = vst [vmem:[#allocation19_spill] sm:$0xff] %v2117_v41  ;;  %v621_v48 = vmax.f32 %v2114_v39, %v2117_v41  ;;  %v561_v53 = vpop.f32.mrf.mxu0  ;;  %v2130_v2 = vadd.f32 %v414_v47, %v1961_v28 }
 0x18f   :  { %v2141_v20 = vadd.f32 %v561_v53, %v1970_v33 }
 0x190   :  { %v622_v58 = vmax.f32 %v621_v48, %v2122_v50 }
 0x191   :  { %2542 = vst [vmem:[#allocation22_spill] sm:$0xff] %v2141_v20 }
 0x192   :  { %v623_v61 = vmax.f32 %v622_v58, %v2125_v57 }
 0x193   :  { %v463_v1 = vpop.f32.mrf.mxu2 }
 0x194   :  { %v2133_v5 = vadd.f32 %v463_v1, %v1963_v29  ;;  %v512_v7 = vpop.f32.mrf.mxu3  ;;  %624 = vmax.xlane.f32.xlu0 %v623_v61 }
 0x195   :  { %v416_v11 = vpop.f32.mrf.mxu1  ;;  %v2138_v13 = vadd.f32 %v512_v7, %v1965_v30 }
 0x196   :  { %2540 = vst [vmem:[#allocation20_spill] sm:$0xff] %v2133_v5  ;;  %v626_v12 = vmax.f32 %v2130_v2, %v2133_v5  ;;  %v563_v19 = vpop.f32.mrf.mxu0  ;;  %v2146_v31 = vadd.f32 %v416_v11, %v1961_v28 }
 0x197   :  { %2541 = vst [vmem:[#allocation21_spill] sm:$0xff] %v2138_v13  ;;  %v2157_v58 = vadd.f32 %v563_v19, %v1970_v33 }
 0x198   :  { %v627_v21 = vmax.f32 %v626_v12, %v2138_v13  ;;  %2543 = vst [vmem:[#allocation23_spill] sm:$0xff] %v2146_v31 }
 0x199   :  { %2546 = vst [vmem:[#allocation26_spill] sm:$0xff] %v2157_v58 }
 0x19a   :  { %v628_v23 = vmax.f32 %v627_v21, %v2141_v20 }
 0x19b   :  { %v465_v27 = vpop.f32.mrf.mxu2 }
 0x19c   :  { %v2149_v36 = vadd.f32 %v465_v27, %v1963_v29  ;;  %v514_v42 = vpop.f32.mrf.mxu3  ;;  %629 = vmax.xlane.f32.xlu1 %v628_v23 }
 0x19d   :  { %v419_v47 = vpop.f32.mrf.mxu1  ;;  %v2154_v53 = vadd.f32 %v514_v42, %v1965_v30 }
 0x19e   :  { %2544 = vst [vmem:[#allocation24_spill] sm:$0xff] %v2149_v36  ;;  %v631_v48 = vmax.f32 %v2146_v31, %v2149_v36  ;;  %v566_v61 = vpop.f32.mrf.mxu0  ;;  %v2162_v12 = vadd.f32 %v419_v47, %v1961_v28 }
 0x19f   :  { %2545 = vst [vmem:[#allocation25_spill] sm:$0xff] %v2154_v53 }
 0x1a0   :  { %v632_v1 = vmax.f32 %v631_v48, %v2154_v53  ;;  %2547 = vst [vmem:[#allocation27_spill] sm:$0xff] %v2162_v12  ;;  %v2173_v48 = vadd.f32 %v566_v61, %v1970_v33 }
 0x1a2   :  { %v633_v7 = vmax.f32 %v632_v1, %v2157_v58  ;;  %2550 = vst [vmem:[#allocation30_spill] sm:$0xff] %v2173_v48 }
 0x1a3   :  { %v468_v11 = vpop.f32.mrf.mxu2 }
 0x1a4   :  { %v2165_v21 = vadd.f32 %v468_v11, %v1963_v29  ;;  %v517_v23 = vpop.f32.mrf.mxu3  ;;  %634 = vmax.xlane.f32.xlu2 %v633_v7 }
 0x1a5   :  { %v421_v27 = vpop.f32.mrf.mxu1  ;;  %v2170_v19 = vadd.f32 %v517_v23, %v1965_v30 }
 0x1a6   :  { %2548 = vst [vmem:[#allocation28_spill] sm:$0xff] %v2165_v21  ;;  %v636_v42 = vmax.f32 %v2162_v12, %v2165_v21  ;;  %v568_v58 = vpop.f32.mrf.mxu0  ;;  %v2178_v11 = vadd.f32 %v421_v27, %v1961_v28 }
 0x1a7   :  { %2549 = vst [vmem:[#allocation29_spill] sm:$0xff] %v2170_v19 }
 0x1a8   :  { %v637_v1 = vmax.f32 %v636_v42, %v2170_v19  ;;  %2551 = vst [vmem:[#allocation31_spill] sm:$0xff] %v2178_v11  ;;  %v2189_v42 = vadd.f32 %v568_v58, %v1970_v33 }
 0x1aa   :  { %v638_v47 = vmax.f32 %v637_v1, %v2173_v48  ;;  %2554 = vst [vmem:[#allocation34_spill] sm:$0xff] %v2189_v42 }
 0x1ab   :  { %v470_v53 = vpop.f32.mrf.mxu2 }
 0x1ac   :  { %v2181_v7 = vadd.f32 %v470_v53, %v1963_v29  ;;  %v519_v36 = vpop.f32.mrf.mxu3  ;;  %639 = vmax.xlane.f32.xlu0 %v638_v47 }
 0x1ad   :  { %v2186_v61 = vadd.f32 %v519_v36, %v1965_v30  ;;  %v424_v21 = vpop.f32.mrf.mxu1 }
 0x1ae   :  { %2552 = vst [vmem:[#allocation32_spill] sm:$0xff] %v2181_v7  ;;  %v641_v23 = vmax.f32 %v2178_v11, %v2181_v7  ;;  %v2194_v53 = vadd.f32 %v424_v21, %v1961_v28  ;;  %v571_v19 = vpop.f32.mrf.mxu0 }
 0x1af   :  { %2553 = vst [vmem:[#allocation33_spill] sm:$0xff] %v2186_v61 }
 0x1b0   :  { %v642_v1 = vmax.f32 %v641_v23, %v2186_v61  ;;  %2555 = vst [vmem:[#allocation35_spill] sm:$0xff] %v2194_v53  ;;  %v2205_v23 = vadd.f32 %v571_v19, %v1970_v33 }
 0x1b2   :  { %v643_v27 = vmax.f32 %v642_v1, %v2189_v42 }
 0x1b3   :  { %v473_v48 = vpop.f32.mrf.mxu2 }
 0x1b4   :  { %v2197_v47 = vadd.f32 %v473_v48, %v1963_v29  ;;  %v522_v7 = vpop.f32.mrf.mxu3  ;;  %644 = vmax.xlane.f32.xlu1 %v643_v27 }
 0x1b5   :  { %v2202_v58 = vadd.f32 %v522_v7, %v1965_v30  ;;  %v426_v42 = vpop.f32.mrf.mxu1 }
 0x1b6   :  { %2556 = vst [vmem:[#allocation36_spill] sm:$0xff] %v2197_v47  ;;  %v646_v36 = vmax.f32 %v2194_v53, %v2197_v47  ;;  %v2210_v48 = vadd.f32 %v426_v42, %v1961_v28  ;;  %v573_v47 = vpop.f32.mrf.mxu0 }
 0x1b7   :  { %2557 = vst [vmem:[#allocation37_spill] sm:$0xff] %v2202_v58 }
 0x1b8   :  { %v647_v1 = vmax.f32 %v646_v36, %v2202_v58  ;;  %2558 = vst [vmem:[#allocation38_spill] sm:$0xff] %v2210_v48 }
 0x1ba   :  { %v648_v21 = vmax.f32 %v647_v1, %v2205_v23 }
 0x1bb   :  { %v475_v61 = vpop.f32.mrf.mxu2 }
 0x1bc   :  { %v2213_v27 = vadd.f32 %v475_v61, %v1963_v29  ;;  %v524_v11 = vpop.f32.mrf.mxu3  ;;  %649 = vmax.xlane.f32.xlu2 %v648_v21  ;;  %v2229_v61 = vadd.f32 %v573_v47, %v1970_v33 }
 0x1bd   :  { %v2218_v19 = vadd.f32 %v524_v11, %v1965_v30 }
 0x1be   :  { %2559 = vst [vmem:[#allocation39_spill] sm:$0xff] %v2213_v27  ;;  %v651_v7 = vmax.f32 %v2210_v48, %v2213_v27 }
 0x1bf   :  { %2560 = vst [vmem:[#allocation40_spill] sm:$0xff] %v2218_v19  ;;  %v2220_v36 = vpop.xlane.xlu0 %579 }
 0x1c0   :  { %v656_v1 = vsub.f32 %v1968_v32, %v2220_v36  ;;  %v657_v28 = vsub.f32 %v1973_v34, %v2220_v36  ;;  %v658_v29 = vsub.f32 %v1976_v37, %v2220_v36  ;;  %2561 = vst [vmem:[#allocation41_spill] sm:$0xff] %v2229_v61  ;;  %v652_v42 = vmax.f32 %v651_v7, %v2218_v19 }
 0x1c1   :  { %v659_v30 = vsub.f32 %v1981_v40, %v2220_v36 }
 0x1c2   :  { %v720_v11 = vmul.f32 1.442695, %v656_v1  ;;  %v722_v21 = vmul.f32 1.442695, %v657_v28  ;;  %v724_v27 = vmul.f32 1.442695, %v658_v29  ;;  %v653_v48 = vmax.f32 %v652_v42, %v2229_v61 }
 0x1c3   :  { %v726_v34 = vmul.f32 1.442695, %v659_v30 }
 0x1c4   :  { %1430 = vpow2.f32 %v720_v11  ;;  %654 = vmax.xlane.f32.xlu0 %v653_v48 }
 0x1c5   :  { %1432 = vpow2.f32 %v722_v21 }
 0x1c6   :  { %1434 = vpow2.f32 %v724_v27 }
 0x1c7   :  { %v2235_v32 = vpop.xlane.xlu0 %584  ;;  %1436 = vpow2.f32 %v726_v34 }
 0x1c8   :  { %v660_v33 = vsub.f32 %v1986_v44, %v2235_v32  ;;  %v661_v47 = vsub.f32 %v1989_v45, %v2235_v32  ;;  %v662_v7 = vsub.f32 %v1994_v49, %v2235_v32  ;;  %v663_v28 = vsub.f32 %v1997_v51, %v2235_v32 }
 0x1ca   :  { %v1431_v1 = vpop.eup %1430  ;;  %v728_v29 = vmul.f32 1.442695, %v660_v33  ;;  %v730_v42 = vmul.f32 1.442695, %v661_v47  ;;  %v732_v27 = vmul.f32 1.442695, %v662_v7 }
 0x1cb   :  { %v1433_v48 = vpop.eup %1432  ;;  %v734_v44 = vmul.f32 1.442695, %v663_v28 }
 0x1cc   :  { %1438 = vpow2.f32 %v728_v29  ;;  %v848_v30 = vadd.f32 %v1433_v48, %v1431_v1  ;;  %v1435_v11 = vpop.eup %1434 }
 0x1cd   :  { %1440 = vpow2.f32 %v730_v42  ;;  %v1437_v40 = vpop.eup %1436 }
 0x1ce   :  { %v849_v21 = vadd.f32 %v1435_v11, %v848_v30  ;;  %1442 = vpow2.f32 %v732_v27 }
 0x1cf   :  { %v2245_v45 = vpop.xlane.xlu1 %589  ;;  %1444 = vpow2.f32 %v734_v44 }
 0x1d0   :  { %v664_v49 = vsub.f32 %v2002_v55, %v2245_v45  ;;  %v665_v33 = vsub.f32 %v2005_v56, %v2245_v45  ;;  %v666_v34 = vsub.f32 %v2008_v60, %v2245_v45  ;;  %v850_v47 = vadd.f32 %v1437_v40, %v849_v21 }
 0x1d1   :  { %v667_v1 = vsub.f32 %v2013_v63, %v2245_v45 }
 0x1d2   :  { %v1439_v7 = vpop.eup %1438  ;;  %v736_v29 = vmul.f32 1.442695, %v664_v49  ;;  %v738_v28 = vmul.f32 1.442695, %v665_v33  ;;  %v740_v48 = vmul.f32 1.442695, %v666_v34  ;;  %851 = vadd.xlane.f32.xlu1 %v850_v47 }
 0x1d3   :  { %v1441_v42 = vpop.eup %1440  ;;  %v742_v56 = vmul.f32 1.442695, %v667_v1 }
 0x1d4   :  { %1446 = vpow2.f32 %v736_v29  ;;  %v853_v27 = vadd.f32 %v1441_v42, %v1439_v7  ;;  %v1443_v30 = vpop.eup %1442 }
 0x1d5   :  { %1448 = vpow2.f32 %v738_v28  ;;  %v1445_v40 = vpop.eup %1444 }
 0x1d6   :  { %v854_v11 = vadd.f32 %v1443_v30, %v853_v27  ;;  %1450 = vpow2.f32 %v740_v48 }
 0x1d7   :  { %v2255_v55 = vpop.xlane.xlu1 %594  ;;  %1452 = vpow2.f32 %v742_v56 }
 0x1d8   :  { %v668_v21 = vsub.f32 %v2018_v3, %v2255_v55  ;;  %v669_v49 = vsub.f32 %v2021_v4, %v2255_v55  ;;  %v670_v44 = vsub.f32 %v2026_v8, %v2255_v55  ;;  %v855_v33 = vadd.f32 %v1445_v40, %v854_v11 }
 0x1d9   :  { %v671_v47 = vsub.f32 %v2029_v10, %v2255_v55 }
 0x1da   :  { %v1447_v34 = vpop.eup %1446  ;;  %v744_v7 = vmul.f32 1.442695, %v668_v21  ;;  %v746_v1 = vmul.f32 1.442695, %v669_v49  ;;  %v748_v28 = vmul.f32 1.442695, %v670_v44  ;;  %856 = vadd.xlane.f32.xlu2 %v855_v33 }
 0x1db   :  { %v1449_v29 = vpop.eup %1448  ;;  %v750_v30 = vmul.f32 1.442695, %v671_v47 }
 0x1dc   :  { %1454 = vpow2.f32 %v744_v7  ;;  %v858_v42 = vadd.f32 %v1449_v29, %v1447_v34  ;;  %v1451_v48 = vpop.eup %1450 }
 0x1dd   :  { %1456 = vpow2.f32 %v746_v1  ;;  %v1453_v11 = vpop.eup %1452 }
 0x1de   :  { %v859_v27 = vadd.f32 %v1451_v48, %v858_v42  ;;  %1458 = vpow2.f32 %v748_v28 }
 0x1df   :  { %v2265_v4 = vpop.xlane.xlu2 %599  ;;  %1460 = vpow2.f32 %v750_v30 }
 0x1e0   :  { %v672_v40 = vsub.f32 %v2034_v14, %v2265_v4  ;;  %v673_v21 = vsub.f32 %v2037_v15, %v2265_v4  ;;  %v674_v56 = vsub.f32 %v2040_v18, %v2265_v4  ;;  %v860_v49 = vadd.f32 %v1453_v11, %v859_v27 }
 0x1e1   :  { %v675_v33 = vsub.f32 %v2045_v59, %v2265_v4 }
 0x1e2   :  { %v1455_v44 = vpop.eup %1454  ;;  %v752_v34 = vmul.f32 1.442695, %v672_v40  ;;  %v754_v47 = vmul.f32 1.442695, %v673_v21  ;;  %v756_v1 = vmul.f32 1.442695, %v674_v56  ;;  %861 = vadd.xlane.f32.xlu0 %v860_v49 }
 0x1e3   :  { %v1457_v7 = vpop.eup %1456  ;;  %v758_v48 = vmul.f32 1.442695, %v675_v33 }
 0x1e4   :  { %1462 = vpow2.f32 %v752_v34  ;;  %v863_v29 = vadd.f32 %v1457_v7, %v1455_v44  ;;  %v1459_v28 = vpop.eup %1458 }
 0x1e5   :  { %1464 = vpow2.f32 %v754_v47  ;;  %v1461_v27 = vpop.eup %1460 }
 0x1e6   :  { %v864_v42 = vadd.f32 %v1459_v28, %v863_v29  ;;  %1466 = vpow2.f32 %v756_v1 }
 0x1e7   :  { %v2275_v15 = vpop.xlane.xlu2 %604  ;;  %1468 = vpow2.f32 %v758_v48 }
 0x1e8   :  { %v676_v11 = vsub.f32 %v2050_v24, %v2275_v15  ;;  %v677_v40 = vsub.f32 %v2053_v25, %v2275_v15  ;;  %v678_v30 = vsub.f32 %v2058_v35, %v2275_v15  ;;  %v865_v21 = vadd.f32 %v1461_v27, %v864_v42 }
 0x1e9   :  { %v679_v49 = vsub.f32 %v2061_v38, %v2275_v15 }
 0x1ea   :  { %v1463_v56 = vpop.eup %1462  ;;  %v760_v44 = vmul.f32 1.442695, %v676_v11  ;;  %v762_v33 = vmul.f32 1.442695, %v677_v40  ;;  %v764_v47 = vmul.f32 1.442695, %v678_v30  ;;  %866 = vadd.xlane.f32.xlu1 %v865_v21 }
 0x1eb   :  { %v1465_v34 = vpop.eup %1464  ;;  %v766_v28 = vmul.f32 1.442695, %v679_v49 }
 0x1ec   :  { %1470 = vpow2.f32 %v760_v44  ;;  %v868_v7 = vadd.f32 %v1465_v34, %v1463_v56  ;;  %v1467_v1 = vpop.eup %1466 }
 0x1ed   :  { %1472 = vpow2.f32 %v762_v33  ;;  %v1469_v42 = vpop.eup %1468 }
 0x1ee   :  { %v869_v29 = vadd.f32 %v1467_v1, %v868_v7  ;;  %1474 = vpow2.f32 %v764_v47 }
 0x1ef   :  { %v2285_v25 = vpop.xlane.xlu0 %609  ;;  %1476 = vpow2.f32 %v766_v28 }
 0x1f0   :  { %v680_v27 = vsub.f32 %v2066_v43, %v2285_v25  ;;  %v681_v11 = vsub.f32 %v2069_v46, %v2285_v25  ;;  %v682_v48 = vsub.f32 %v2074_v52, %v2285_v25  ;;  %v870_v40 = vadd.f32 %v1469_v42, %v869_v29 }
 0x1f1   :  { %v683_v21 = vsub.f32 %v2077_v54, %v2285_v25 }
 0x1f2   :  { %v1471_v30 = vpop.eup %1470  ;;  %v768_v56 = vmul.f32 1.442695, %v680_v27  ;;  %v770_v49 = vmul.f32 1.442695, %v681_v11  ;;  %v772_v33 = vmul.f32 1.442695, %v682_v48  ;;  %871 = vadd.xlane.f32.xlu2 %v870_v40 }
 0x1f3   :  { %v1473_v44 = vpop.eup %1472  ;;  %v774_v1 = vmul.f32 1.442695, %v683_v21 }
 0x1f4   :  { %1478 = vpow2.f32 %v768_v56  ;;  %v873_v34 = vadd.f32 %v1473_v44, %v1471_v30  ;;  %v1475_v47 = vpop.eup %1474 }
 0x1f5   :  { %1480 = vpow2.f32 %v770_v49  ;;  %v1477_v29 = vpop.eup %1476 }
 0x1f6   :  { %v874_v7 = vadd.f32 %v1475_v47, %v873_v34  ;;  %1482 = vpow2.f32 %v772_v33 }
 0x1f7   :  { %v2295_v46 = vpop.xlane.xlu1 %614  ;;  %1484 = vpow2.f32 %v774_v1 }
 0x1f8   :  { %v684_v42 = vsub.f32 %v2082_v62, %v2295_v46  ;;  %v685_v27 = vsub.f32 %v2085_v0, %v2295_v46  ;;  %v686_v28 = vsub.f32 %v2090_v6, %v2295_v46  ;;  %v875_v11 = vadd.f32 %v1477_v29, %v874_v7 }
 0x1f9   :  { %v687_v40 = vsub.f32 %v2093_v9, %v2295_v46 }
 0x1fa   :  { %v1479_v48 = vpop.eup %1478  ;;  %v776_v30 = vmul.f32 1.442695, %v684_v42  ;;  %v778_v21 = vmul.f32 1.442695, %v685_v27  ;;  %v780_v49 = vmul.f32 1.442695, %v686_v28  ;;  %876 = vadd.xlane.f32.xlu0 %v875_v11 }
 0x1fb   :  { %v1481_v56 = vpop.eup %1480  ;;  %v782_v47 = vmul.f32 1.442695, %v687_v40 }
 0x1fc   :  { %1486 = vpow2.f32 %v776_v30  ;;  %v878_v44 = vadd.f32 %v1481_v56, %v1479_v48  ;;  %v1483_v33 = vpop.eup %1482 }
 0x1fd   :  { %1488 = vpow2.f32 %v778_v21  ;;  %v1485_v7 = vpop.eup %1484 }
 0x1fe   :  { %v879_v34 = vadd.f32 %v1483_v33, %v878_v44  ;;  %1490 = vpow2.f32 %v780_v49 }
 0x1ff   :  { %v2305_v0 = vpop.xlane.xlu2 %619  ;;  %1492 = vpow2.f32 %v782_v47 }
 0x200   :  { %v688_v29 = vsub.f32 %v2098_v16, %v2305_v0  ;;  %v689_v42 = vsub.f32 %v2101_v17, %v2305_v0  ;;  %v690_v1 = vsub.f32 %v2106_v22, %v2305_v0  ;;  %v880_v27 = vadd.f32 %v1485_v7, %v879_v34 }
 0x201   :  { %v691_v11 = vsub.f32 %v2109_v26, %v2305_v0 }
 0x202   :  { %v1487_v28 = vpop.eup %1486  ;;  %v784_v48 = vmul.f32 1.442695, %v688_v29  ;;  %v786_v40 = vmul.f32 1.442695, %v689_v42  ;;  %v788_v21 = vmul.f32 1.442695, %v690_v1  ;;  %881 = vadd.xlane.f32.xlu1 %v880_v27 }
 0x203   :  { %v1489_v30 = vpop.eup %1488  ;;  %v790_v33 = vmul.f32 1.442695, %v691_v11 }
 0x204   :  { %1494 = vpow2.f32 %v784_v48  ;;  %v883_v56 = vadd.f32 %v1489_v30, %v1487_v28  ;;  %v1491_v49 = vpop.eup %1490 }
 0x205   :  { %1496 = vpow2.f32 %v786_v40  ;;  %v1493_v34 = vpop.eup %1492 }
 0x206   :  { %v884_v44 = vadd.f32 %v1491_v49, %v883_v56  ;;  %1498 = vpow2.f32 %v788_v21 }
 0x207   :  { %v2315_v17 = vpop.xlane.xlu0 %624  ;;  %1500 = vpow2.f32 %v790_v33 }
 0x208   :  { %v692_v7 = vsub.f32 %v2114_v39, %v2315_v17  ;;  %v693_v29 = vsub.f32 %v2117_v41, %v2315_v17  ;;  %v694_v47 = vsub.f32 %v2122_v50, %v2315_v17  ;;  %v885_v42 = vadd.f32 %v1493_v34, %v884_v44 }
 0x209   :  { %v695_v27 = vsub.f32 %v2125_v57, %v2315_v17 }
 0x20a   :  { %v1495_v1 = vpop.eup %1494  ;;  %v792_v28 = vmul.f32 1.442695, %v692_v7  ;;  %v794_v11 = vmul.f32 1.442695, %v693_v29  ;;  %v796_v40 = vmul.f32 1.442695, %v694_v47  ;;  %886 = vadd.xlane.f32.xlu2 %v885_v42 }
 0x20b   :  { %v1497_v48 = vpop.eup %1496  ;;  %v798_v49 = vmul.f32 1.442695, %v695_v27 }
 0x20c   :  { %1502 = vpow2.f32 %v792_v28  ;;  %v888_v30 = vadd.f32 %v1497_v48, %v1495_v1  ;;  %v1499_v21 = vpop.eup %1498 }
 0x20d   :  { %1504 = vpow2.f32 %v794_v11  ;;  %v1501_v44 = vpop.eup %1500 }
 0x20e   :  { %v889_v56 = vadd.f32 %v1499_v21, %v888_v30  ;;  %1506 = vpow2.f32 %v796_v40 }
 0x20f   :  { %v2325_v41 = vpop.xlane.xlu1 %629  ;;  %1508 = vpow2.f32 %v798_v49  ;;  %v2563_v49 = vld [vmem:[#allocation25_spill] sm:$0xff] }
 0x210   :  { %v696_v34 = vsub.f32 %v2130_v2, %v2325_v41  ;;  %v697_v7 = vsub.f32 %v2133_v5, %v2325_v41  ;;  %v698_v33 = vsub.f32 %v2138_v13, %v2325_v41  ;;  %v890_v29 = vadd.f32 %v1501_v44, %v889_v56 }
 0x211   :  { %v699_v42 = vsub.f32 %v2141_v20, %v2325_v41 }
 0x212   :  { %v1503_v47 = vpop.eup %1502  ;;  %v800_v1 = vmul.f32 1.442695, %v696_v34  ;;  %v802_v27 = vmul.f32 1.442695, %v697_v7  ;;  %v804_v11 = vmul.f32 1.442695, %v698_v33  ;;  %891 = vadd.xlane.f32.xlu0 %v890_v29 }
 0x213   :  { %v1505_v28 = vpop.eup %1504  ;;  %v806_v21 = vmul.f32 1.442695, %v699_v42  ;;  %v2562_v34 = vld [vmem:[#allocation24_spill] sm:$0xff] }
 0x214   :  { %1510 = vpow2.f32 %v800_v1  ;;  %v893_v48 = vadd.f32 %v1505_v28, %v1503_v47  ;;  %v1507_v40 = vpop.eup %1506  ;;  %v2564_v47 = vld [vmem:[#allocation26_spill] sm:$0xff] }
 0x215   :  { %1512 = vpow2.f32 %v802_v27  ;;  %v1509_v56 = vpop.eup %1508 }
 0x216   :  { %v894_v30 = vadd.f32 %v1507_v40, %v893_v48  ;;  %1514 = vpow2.f32 %v804_v11 }
 0x217   :  { %v2335_v5 = vpop.xlane.xlu2 %634  ;;  %1516 = vpow2.f32 %v806_v21  ;;  %v2567_v21 = vld [vmem:[#allocation29_spill] sm:$0xff] }
 0x218   :  { %v700_v44 = vsub.f32 %v2146_v31, %v2335_v5  ;;  %v701_v7 = vsub.f32 %v2562_v34, %v2335_v5  ;;  %v702_v33 = vsub.f32 %v2563_v49, %v2335_v5  ;;  %v895_v29 = vadd.f32 %v1509_v56, %v894_v30 }
 0x219   :  { %v703_v27 = vsub.f32 %v2564_v47, %v2335_v5 }
 0x21a   :  { %v1511_v1 = vpop.eup %1510  ;;  %v808_v28 = vmul.f32 1.442695, %v700_v44  ;;  %v810_v42 = vmul.f32 1.442695, %v701_v7  ;;  %v812_v48 = vmul.f32 1.442695, %v702_v33  ;;  %896 = vadd.xlane.f32.xlu1 %v895_v29 }
 0x21b   :  { %v1513_v11 = vpop.eup %1512  ;;  %v814_v34 = vmul.f32 1.442695, %v703_v27  ;;  %v2566_v44 = vld [vmem:[#allocation28_spill] sm:$0xff] }
 0x21c   :  { %1518 = vpow2.f32 %v808_v28  ;;  %v898_v40 = vadd.f32 %v1513_v11, %v1511_v1  ;;  %v1515_v31 = vpop.eup %1514  ;;  %v2568_v1 = vld [vmem:[#allocation30_spill] sm:$0xff] }
 0x21d   :  { %1520 = vpow2.f32 %v810_v42  ;;  %v1517_v30 = vpop.eup %1516 }
 0x21e   :  { %v899_v20 = vadd.f32 %v1515_v31, %v898_v40  ;;  %1522 = vpow2.f32 %v812_v48 }
 0x21f   :  { %v2345_v13 = vpop.xlane.xlu0 %639  ;;  %1524 = vpow2.f32 %v814_v34  ;;  %v2571_v34 = vld [vmem:[#allocation33_spill] sm:$0xff] }
 0x220   :  { %2565 = vst [vmem:[#allocation42_spill] sm:$0xff] %v2345_v13  ;;  %v704_v56 = vsub.f32 %v2162_v12, %v2345_v13  ;;  %v705_v7 = vsub.f32 %v2566_v44, %v2345_v13  ;;  %v706_v33 = vsub.f32 %v2567_v21, %v2345_v13  ;;  %v900_v29 = vadd.f32 %v1517_v30, %v899_v20  ;;  %v2569_v30 = vld [vmem:[#allocation31_spill] sm:$0xff] }
 0x221   :  { %v707_v42 = vsub.f32 %v2568_v1, %v2345_v13 }
 0x222   :  { %v1519_v28 = vpop.eup %1518  ;;  %v816_v31 = vmul.f32 1.442695, %v704_v56  ;;  %v818_v27 = vmul.f32 1.442695, %v705_v7  ;;  %v820_v48 = vmul.f32 1.442695, %v706_v33  ;;  %901 = vadd.xlane.f32.xlu2 %v900_v29 }
 0x223   :  { %v1521_v11 = vpop.eup %1520  ;;  %v822_v44 = vmul.f32 1.442695, %v707_v42  ;;  %v2570_v56 = vld [vmem:[#allocation32_spill] sm:$0xff]  ;;  %v2572_v29 = vld [vmem:[#allocation34_spill] sm:$0xff] }
 0x224   :  { %1526 = vpow2.f32 %v816_v31  ;;  %v903_v40 = vadd.f32 %v1521_v11, %v1519_v28  ;;  %v1523_v12 = vpop.eup %1522 }
 0x225   :  { %1528 = vpow2.f32 %v818_v27  ;;  %v1525_v20 = vpop.eup %1524 }
 0x226   :  { %v904_v47 = vadd.f32 %v1523_v12, %v903_v40  ;;  %1530 = vpow2.f32 %v820_v48 }
 0x227   :  { %v2355_v49 = vpop.xlane.xlu1 %644  ;;  %1532 = vpow2.f32 %v822_v44 }
 0x228   :  { %v708_v21 = vsub.f32 %v2569_v30, %v2355_v49  ;;  %v709_v7 = vsub.f32 %v2570_v56, %v2355_v49  ;;  %v710_v33 = vsub.f32 %v2571_v34, %v2355_v49  ;;  %v711_v28 = vsub.f32 %v2572_v29, %v2355_v49 }
 0x229   :  { %v905_v31 = vadd.f32 %v1525_v20, %v904_v47 }
 0x22a   :  { %v1527_v27 = vpop.eup %1526  ;;  %v824_v12 = vmul.f32 1.442695, %v708_v21  ;;  %v826_v42 = vmul.f32 1.442695, %v709_v7  ;;  %v828_v48 = vmul.f32 1.442695, %v710_v33 }
 0x22b   :  { %v1529_v11 = vpop.eup %1528  ;;  %906 = vadd.xlane.f32.xlu0 %v905_v31  ;;  %v830_v1 = vmul.f32 1.442695, %v711_v28  ;;  %v2573_v21 = vld [vmem:[#allocation36_spill] sm:$0xff] }
 0x22c   :  { %1534 = vpow2.f32 %v824_v12  ;;  %v908_v40 = vadd.f32 %v1529_v11, %v1527_v27  ;;  %v1531_v30 = vpop.eup %1530 }
 0x22d   :  { %1536 = vpow2.f32 %v826_v42  ;;  %v1533_v34 = vpop.eup %1532 }
 0x22e   :  { %v909_v56 = vadd.f32 %v1531_v30, %v908_v40  ;;  %1538 = vpow2.f32 %v828_v48 }
 0x22f   :  { %v2365_v13 = vpop.xlane.xlu2 %649  ;;  %1540 = vpow2.f32 %v830_v1 }
 0x230   :  { %v712_v47 = vsub.f32 %v2194_v53, %v2365_v13  ;;  %v713_v20 = vsub.f32 %v2573_v21, %v2365_v13  ;;  %v714_v44 = vsub.f32 %v2202_v58, %v2365_v13  ;;  %v715_v7 = vsub.f32 %v2205_v23, %v2365_v13 }
 0x231   :  { %v910_v33 = vadd.f32 %v1533_v34, %v909_v56  ;;  %v2574_v56 = vld [vmem:[#allocation38_spill] sm:$0xff]  ;;  %v2575_v34 = vld [vmem:[#allocation39_spill] sm:$0xff] }
 0x232   :  { %v1535_v28 = vpop.eup %1534  ;;  %v832_v30 = vmul.f32 1.442695, %v712_v47  ;;  %v834_v31 = vmul.f32 1.442695, %v713_v20  ;;  %v836_v12 = vmul.f32 1.442695, %v714_v44 }
 0x233   :  { %v1537_v27 = vpop.eup %1536  ;;  %911 = vadd.xlane.f32.xlu1 %v910_v33  ;;  %v838_v48 = vmul.f32 1.442695, %v715_v7 }
 0x234   :  { %1542 = vpow2.f32 %v832_v30  ;;  %v913_v42 = vadd.f32 %v1537_v27, %v1535_v28  ;;  %v1539_v11 = vpop.eup %1538 }
 0x235   :  { %1544 = vpow2.f32 %v834_v31  ;;  %v1541_v21 = vpop.eup %1540 }
 0x236   :  { %v914_v40 = vadd.f32 %v1539_v11, %v913_v42  ;;  %1546 = vpow2.f32 %v836_v12 }
 0x237   :  { %v2375_v58 = vpop.xlane.xlu0 %654  ;;  %1548 = vpow2.f32 %v838_v48 }
 0x238   :  { %v915_v53 = vadd.f32 %v1541_v21, %v914_v40  ;;  %v716_v1 = vsub.f32 %v2574_v56, %v2375_v58  ;;  %v717_v47 = vsub.f32 %v2575_v34, %v2375_v58  ;;  %v718_v20 = vsub.f32 %v2218_v19, %v2375_v58 }
 0x239   :  { %v719_v7 = vsub.f32 %v2229_v61, %v2375_v58 }
 0x23a   :  { %v1543_v44 = vpop.eup %1542  ;;  %916 = vadd.xlane.f32.xlu2 %v915_v53  ;;  %v840_v28 = vmul.f32 1.442695, %v716_v1  ;;  %v842_v30 = vmul.f32 1.442695, %v717_v47  ;;  %v844_v31 = vmul.f32 1.442695, %v718_v20 }
 0x23b   :  { %v1545_v33 = vpop.eup %1544  ;;  %v846_v42 = vmul.f32 1.442695, %v719_v7 }
 0x23c   :  { %v918_v21 = vadd.f32 %v1545_v33, %v1543_v44  ;;  %v1547_v27 = vpop.eup %1546  ;;  %1550 = vpow2.f32 %v840_v28 }
 0x23d   :  { %1552 = vpow2.f32 %v842_v30  ;;  %v1549_v11 = vpop.eup %1548  ;;  %v2576_v30 = vld [vmem:[#allocation5_spill] sm:$0xff] }
 0x23e   :  { %v919_v12 = vadd.f32 %v1547_v27, %v918_v21  ;;  %1554 = vpow2.f32 %v844_v31  ;;  %v2577_v21 = vld [vmem:[#allocation6_spill] sm:$0xff] }
 0x23f   :  { %1556 = vpow2.f32 %v846_v42 }
 0x240   :  { %v920_v40 = vadd.f32 %v1549_v11, %v919_v12 }
 0x242   :  { %921 = vadd.xlane.f32.xlu0 %v920_v40  ;;  %v1551_v48 = vpop.eup %1550 }
 0x243   :  { %v1553_v19 = vpop.eup %1552 }
 0x244   :  { %v923_v34 = vadd.f32 %v1553_v19, %v1551_v48  ;;  %v1555_v61 = vpop.eup %1554  ;;  %v2578_v19 = vld [vmem:[#allocation7_spill] sm:$0xff]  ;;  %v2579_v48 = vld [vmem:[#allocation8_spill] sm:$0xff] }
 0x245   :  { %v852_v53 = vpop.xlane.xlu1 %851  ;;  %v1557_v47 = vpop.eup %1556 }
 0x246   :  { %1558 = vlog2.f32 %v852_v53  ;;  %v924_v1 = vadd.f32 %v1555_v61, %v923_v34  ;;  %v2580_v53 = vld [vmem:[#allocation9_spill] sm:$0xff] }
 0x248   :  { %v925_v20 = vadd.f32 %v1557_v47, %v924_v1  ;;  %v2581_v47 = vld [vmem:[#allocation10_spill] sm:$0xff] }
 0x24a   :  { %926 = vadd.xlane.f32.xlu1 %v925_v20 }
 0x24c   :  { %v1559_v44 = vpop.eup %1558 }
 0x24d   :  { %v929_v33 = vmul.f32 0.6931472, %v1559_v44  ;;  %v857_v28 = vpop.xlane.xlu2 %856 }
 0x24e   :  { %1560 = vlog2.f32 %v857_v28 }
 0x24f   :  { %v960_v7 = vadd.f32 %v929_v33, %v2220_v36 }
 0x251   :  { %v976_v31 = vsub.f32 %v2576_v30, %v960_v7  ;;  %v977_v27 = vsub.f32 %v2577_v21, %v960_v7  ;;  %v978_v12 = vsub.f32 %v1976_v37, %v960_v7  ;;  %v979_v42 = vsub.f32 %v2578_v19, %v960_v7  ;;  %v2582_v30 = vld [vmem:[#allocation11_spill] sm:$0xff] }
 0x253   :  { %1040 = vst [vmem:[#allocation2] sm:$0xff] %v976_v31  ;;  %v2583_v31 = vld [vmem:[#allocation12_spill] sm:$0xff] }
 0x254   :  { %v1561_v11 = vpop.eup %1560  ;;  %1041 = vst [vmem:[#allocation2 + $0x8] sm:$0xff] %v977_v27 }
 0x255   :  { %1042 = vst [vmem:[#allocation2 + $0x10] sm:$0xff] %v978_v12  ;;  %v931_v61 = vmul.f32 0.6931472, %v1561_v11  ;;  %v862_v34 = vpop.xlane.xlu0 %861 }
 0x256   :  { %1043 = vst [vmem:[#allocation2 + $0x18] sm:$0xff] %v979_v42  ;;  %1562 = vlog2.f32 %v862_v34 }
 0x257   :  { %v961_v40 = vadd.f32 %v931_v61, %v2235_v32  ;;  %v2584_v61 = vld [vmem:[#allocation13_spill] sm:$0xff] }
 0x259   :  { %v980_v36 = vsub.f32 %v2579_v48, %v961_v40  ;;  %v981_v1 = vsub.f32 %v2580_v53, %v961_v40  ;;  %v982_v20 = vsub.f32 %v2581_v47, %v961_v40  ;;  %v983_v37 = vsub.f32 %v1997_v51, %v961_v40 }
 0x25b   :  { %1044 = vst [vmem:[#allocation2 + $0x20] sm:$0xff] %v980_v36 }
 0x25c   :  { %v1563_v44 = vpop.eup %1562  ;;  %1045 = vst [vmem:[#allocation2 + $0x28] sm:$0xff] %v981_v1  ;;  %v2585_v1 = vld [vmem:[#allocation14_spill] sm:$0xff] }
 0x25d   :  { %1046 = vst [vmem:[#allocation2 + $0x30] sm:$0xff] %v982_v20  ;;  %v933_v33 = vmul.f32 0.6931472, %v1563_v44  ;;  %v867_v28 = vpop.xlane.xlu1 %866 }
 0x25e   :  { %1047 = vst [vmem:[#allocation2 + $0x38] sm:$0xff] %v983_v37  ;;  %1564 = vlog2.f32 %v867_v28 }
 0x25f   :  { %v962_v7 = vadd.f32 %v933_v33, %v2245_v45  ;;  %v2586_v33 = vld [vmem:[#allocation15_spill] sm:$0xff] }
 0x261   :  { %v984_v32 = vsub.f32 %v2582_v30, %v962_v7  ;;  %v985_v21 = vsub.f32 %v2583_v31, %v962_v7  ;;  %v986_v27 = vsub.f32 %v2008_v60, %v962_v7  ;;  %v987_v12 = vsub.f32 %v2013_v63, %v962_v7  ;;  %v2587_v31 = vld [vmem:[#allocation16_spill] sm:$0xff] }
 0x263   :  { %1048 = vst [vmem:[#allocation2 + $0x40] sm:$0xff] %v984_v32 }
 0x264   :  { %v1565_v51 = vpop.eup %1564  ;;  %1049 = vst [vmem:[#allocation2 + $0x48] sm:$0xff] %v985_v21 }
 0x265   :  { %1050 = vst [vmem:[#allocation2 + $0x50] sm:$0xff] %v986_v27  ;;  %v935_v19 = vmul.f32 0.6931472, %v1565_v51  ;;  %v872_v42 = vpop.xlane.xlu2 %871 }
 0x266   :  { %1051 = vst [vmem:[#allocation2 + $0x58] sm:$0xff] %v987_v12  ;;  %1566 = vlog2.f32 %v872_v42 }
 0x267   :  { %v963_v11 = vadd.f32 %v935_v19, %v2255_v55  ;;  %v2588_v19 = vld [vmem:[#allocation17_spill] sm:$0xff] }
 0x269   :  { %v988_v45 = vsub.f32 %v2018_v3, %v963_v11  ;;  %v989_v34 = vsub.f32 %v2584_v61, %v963_v11  ;;  %v990_v40 = vsub.f32 %v2026_v8, %v963_v11  ;;  %v991_v60 = vsub.f32 %v2029_v10, %v963_v11 }
 0x26b   :  { %1052 = vst [vmem:[#allocation2 + $0x60] sm:$0xff] %v988_v45 }
 0x26c   :  { %v1567_v63 = vpop.eup %1566  ;;  %1053 = vst [vmem:[#allocation2 + $0x68] sm:$0xff] %v989_v34  ;;  %v2589_v34 = vld [vmem:[#allocation18_spill] sm:$0xff] }
 0x26d   :  { %1054 = vst [vmem:[#allocation2 + $0x70] sm:$0xff] %v990_v40  ;;  %v937_v48 = vmul.f32 0.6931472, %v1567_v63  ;;  %v877_v36 = vpop.xlane.xlu0 %876 }
 0x26e   :  { %1055 = vst [vmem:[#allocation2 + $0x78] sm:$0xff] %v991_v60  ;;  %1568 = vlog2.f32 %v877_v36  ;;  %v2590_v36 = vld [vmem:[#allocation19_spill] sm:$0xff] }
 0x26f   :  { %v964_v53 = vadd.f32 %v937_v48, %v2265_v4 }
 0x271   :  { %v992_v55 = vsub.f32 %v2034_v14, %v964_v53  ;;  %v993_v3 = vsub.f32 %v2585_v1, %v964_v53  ;;  %v994_v47 = vsub.f32 %v2040_v18, %v964_v53  ;;  %v995_v8 = vsub.f32 %v2045_v59, %v964_v53 }
 0x273   :  { %1056 = vst [vmem:[#allocation2 + $0x80] sm:$0xff] %v992_v55 }
 0x274   :  { %v1569_v10 = vpop.eup %1568  ;;  %1057 = vst [vmem:[#allocation2 + $0x88] sm:$0xff] %v993_v3 }
 0x275   :  { %1058 = vst [vmem:[#allocation2 + $0x90] sm:$0xff] %v994_v47  ;;  %v939_v20 = vmul.f32 0.6931472, %v1569_v10  ;;  %v882_v37 = vpop.xlane.xlu1 %881  ;;  %v2591_v47 = vld [vmem:[#allocation20_spill] sm:$0xff] }
 0x276   :  { %1059 = vst [vmem:[#allocation2 + $0x98] sm:$0xff] %v995_v8  ;;  %1570 = vlog2.f32 %v882_v37  ;;  %v2592_v8 = vld [vmem:[#allocation21_spill] sm:$0xff] }
 0x277   :  { %v965_v44 = vadd.f32 %v939_v20, %v2275_v15  ;;  %v2593_v20 = vld [vmem:[#allocation22_spill] sm:$0xff] }
 0x279   :  { %v996_v4 = vsub.f32 %v2050_v24, %v965_v44  ;;  %v997_v14 = vsub.f32 %v2586_v33, %v965_v44  ;;  %v998_v28 = vsub.f32 %v2058_v35, %v965_v44  ;;  %v999_v18 = vsub.f32 %v2061_v38, %v965_v44  ;;  %v2594_v33 = vld [vmem:[#allocation23_spill] sm:$0xff] }
 0x27b   :  { %1060 = vst [vmem:[#allocation2 + $0xa0] sm:$0xff] %v996_v4 }
 0x27c   :  { %v1571_v59 = vpop.eup %1570  ;;  %1061 = vst [vmem:[#allocation2 + $0xa8] sm:$0xff] %v997_v14  ;;  %v2595_v14 = vld [vmem:[#allocation24_spill] sm:$0xff] }
 0x27d   :  { %1062 = vst [vmem:[#allocation2 + $0xb0] sm:$0xff] %v998_v28  ;;  %v941_v7 = vmul.f32 0.6931472, %v1571_v59  ;;  %v887_v30 = vpop.xlane.xlu2 %886  ;;  %v2596_v28 = vld [vmem:[#allocation25_spill] sm:$0xff]  ;;  %v2597_v59 = vld [vmem:[#allocation26_spill] sm:$0xff] }
 0x27e   :  { %1063 = vst [vmem:[#allocation2 + $0xb8] sm:$0xff] %v999_v18  ;;  %1572 = vlog2.f32 %v887_v30 }
 0x27f   :  { %v966_v32 = vadd.f32 %v941_v7, %v2285_v25 }
 0x281   :  { %v1000_v15 = vsub.f32 %v2066_v43, %v966_v32  ;;  %v1001_v24 = vsub.f32 %v2587_v31, %v966_v32  ;;  %v1002_v21 = vsub.f32 %v2074_v52, %v966_v32  ;;  %v1003_v35 = vsub.f32 %v2077_v54, %v966_v32  ;;  %v2598_v31 = vld [vmem:[#allocation42_spill] sm:$0xff] }
 0x283   :  { %1064 = vst [vmem:[#allocation2 + $0xc0] sm:$0xff] %v1000_v15 }
 0x284   :  { %v1573_v38 = vpop.eup %1572  ;;  %1065 = vst [vmem:[#allocation2 + $0xc8] sm:$0xff] %v1001_v24 }
 0x285   :  { %1066 = vst [vmem:[#allocation2 + $0xd0] sm:$0xff] %v1002_v21  ;;  %v943_v27 = vmul.f32 0.6931472, %v1573_v38  ;;  %v892_v12 = vpop.xlane.xlu0 %891  ;;  %v2599_v21 = vld [vmem:[#allocation27_spill] sm:$0xff] }
 0x286   :  { %1067 = vst [vmem:[#allocation2 + $0xd8] sm:$0xff] %v1003_v35  ;;  %1574 = vlog2.f32 %v892_v12  ;;  %v2600_v35 = vld [vmem:[#allocation28_spill] sm:$0xff] }
 0x287   :  { %v967_v51 = vadd.f32 %v943_v27, %v2295_v46  ;;  %v2601_v27 = vld [vmem:[#allocation29_spill] sm:$0xff] }
 0x289   :  { %v1004_v25 = vsub.f32 %v2082_v62, %v967_v51  ;;  %v1005_v43 = vsub.f32 %v2588_v19, %v967_v51  ;;  %v1006_v42 = vsub.f32 %v2090_v6, %v967_v51  ;;  %v1007_v52 = vsub.f32 %v2093_v9, %v967_v51  ;;  %v2602_v51 = vld [vmem:[#allocation30_spill] sm:$0xff] }
 0x28b   :  { %1068 = vst [vmem:[#allocation2 + $0xe0] sm:$0xff] %v1004_v25 }
 0x28c   :  { %v1575_v54 = vpop.eup %1574  ;;  %1069 = vst [vmem:[#allocation2 + $0xe8] sm:$0xff] %v1005_v43 }
 0x28d   :  { %1070 = vst [vmem:[#allocation2 + $0xf0] sm:$0xff] %v1006_v42  ;;  %v945_v11 = vmul.f32 0.6931472, %v1575_v54  ;;  %v897_v45 = vpop.xlane.xlu1 %896  ;;  %v2603_v54 = vld [vmem:[#allocation31_spill] sm:$0xff] }
 0x28e   :  { %1071 = vst [vmem:[#allocation2 + $0xf8] sm:$0xff] %v1007_v52  ;;  %1576 = vlog2.f32 %v897_v45  ;;  %v2604_v45 = vld [vmem:[#allocation32_spill] sm:$0xff] }
 0x28f   :  { %v968_v61 = vadd.f32 %v945_v11, %v2305_v0 }
 0x291   :  { %v1008_v46 = vsub.f32 %v2098_v16, %v968_v61  ;;  %v1009_v62 = vsub.f32 %v2589_v34, %v968_v61  ;;  %v1010_v40 = vsub.f32 %v2106_v22, %v968_v61  ;;  %v1011_v6 = vsub.f32 %v2109_v26, %v968_v61 }
 0x293   :  { %1072 = vst [vmem:[#allocation2 + $0x100] sm:$0xff] %v1008_v46  ;;  %v2605_v46 = vld [vmem:[#allocation33_spill] sm:$0xff] }
 0x294   :  { %v1577_v9 = vpop.eup %1576  ;;  %1073 = vst [vmem:[#allocation2 + $0x108] sm:$0xff] %v1009_v62 }
 0x295   :  { %1074 = vst [vmem:[#allocation2 + $0x110] sm:$0xff] %v1010_v40  ;;  %v947_v60 = vmul.f32 0.6931472, %v1577_v9  ;;  %v902_v63 = vpop.xlane.xlu2 %901 }
 0x296   :  { %1075 = vst [vmem:[#allocation2 + $0x118] sm:$0xff] %v1011_v6  ;;  %1578 = vlog2.f32 %v902_v63  ;;  %v2606_v63 = vld [vmem:[#allocation35_spill] sm:$0xff] }
 0x297   :  { %v969_v48 = vadd.f32 %v947_v60, %v2315_v17 }
 0x299   :  { %v1012_v0 = vsub.f32 %v2114_v39, %v969_v48  ;;  %v1013_v16 = vsub.f32 %v2590_v36, %v969_v48  ;;  %v1014_v53 = vsub.f32 %v2122_v50, %v969_v48  ;;  %v1015_v22 = vsub.f32 %v2125_v57, %v969_v48  ;;  %v2607_v48 = vld [vmem:[#allocation36_spill] sm:$0xff]  ;;  %v2608_v36 = vld [vmem:[#allocation37_spill] sm:$0xff] }
 0x29b   :  { %1076 = vst [vmem:[#allocation2 + $0x120] sm:$0xff] %v1012_v0 }
 0x29c   :  { %v1579_v26 = vpop.eup %1578  ;;  %1077 = vst [vmem:[#allocation2 + $0x128] sm:$0xff] %v1013_v16 }
 0x29d   :  { %1078 = vst [vmem:[#allocation2 + $0x130] sm:$0xff] %v1014_v53  ;;  %v949_v55 = vmul.f32 0.6931472, %v1579_v26 }
 0x29e   :  { %v907_v1 = vpop.xlane.xlu0 %906  ;;  %1079 = vst [vmem:[#allocation2 + $0x138] sm:$0xff] %v1015_v22 }
 0x29f   :  { %1580 = vlog2.f32 %v907_v1  ;;  %v970_v3 = vadd.f32 %v949_v55, %v2325_v41  ;;  %v2609_v55 = vld [vmem:[#allocation39_spill] sm:$0xff] }
 0x2a1   :  { %v1016_v17 = vsub.f32 %v2130_v2, %v970_v3  ;;  %v1017_v39 = vsub.f32 %v2591_v47, %v970_v3  ;;  %v1018_v10 = vsub.f32 %v2592_v8, %v970_v3  ;;  %v1019_v50 = vsub.f32 %v2593_v20, %v970_v3  ;;  %v2610_v3 = vld [vmem:[#allocation40_spill] sm:$0xff] }
 0x2a3   :  { %1080 = vst [vmem:[#allocation2 + $0x140] sm:$0xff] %v1016_v17  ;;  %v2611_v17 = vld [vmem:[#allocation41_spill] sm:$0xff] }
 0x2a4   :  { %1081 = vst [vmem:[#allocation2 + $0x148] sm:$0xff] %v1017_v39 }
 0x2a5   :  { %v1581_v57 = vpop.eup %1580  ;;  %1082 = vst [vmem:[#allocation2 + $0x150] sm:$0xff] %v1018_v10 }
 0x2a6   :  { %v951_v37 = vmul.f32 0.6931472, %v1581_v57  ;;  %v912_v44 = vpop.xlane.xlu1 %911  ;;  %1083 = vst [vmem:[#allocation2 + $0x158] sm:$0xff] %v1019_v50 }
 0x2a7   :  { %1582 = vlog2.f32 %v912_v44 }
 0x2a8   :  { %v971_v4 = vadd.f32 %v951_v37, %v2335_v5 }
 0x2aa   :  { %v1020_v41 = vsub.f32 %v2594_v33, %v971_v4  ;;  %v1021_v2 = vsub.f32 %v2595_v14, %v971_v4  ;;  %v1022_v18 = vsub.f32 %v2596_v28, %v971_v4  ;;  %v1023_v7 = vsub.f32 %v2597_v59, %v971_v4 }
 0x2ac   :  { %1084 = vst [vmem:[#allocation2 + $0x160] sm:$0xff] %v1020_v41 }
 0x2ad   :  { %v1583_v30 = vpop.eup %1582  ;;  %1085 = vst [vmem:[#allocation2 + $0x168] sm:$0xff] %v1021_v2  ;;  %v917_v32 = vpop.xlane.xlu2 %916 }
 0x2ae   :  { %1086 = vst [vmem:[#allocation2 + $0x170] sm:$0xff] %v1022_v18  ;;  %v953_v15 = vmul.f32 0.6931472, %v1583_v30  ;;  %1584 = vlog2.f32 %v917_v32 }
 0x2af   :  { %1087 = vst [vmem:[#allocation2 + $0x178] sm:$0xff] %v1023_v7 }
 0x2b0   :  { %v972_v24 = vadd.f32 %v953_v15, %v2598_v31 }
 0x2b2   :  { %v1024_v5 = vsub.f32 %v2599_v21, %v972_v24  ;;  %v1025_v38 = vsub.f32 %v2600_v35, %v972_v24  ;;  %v1026_v12 = vsub.f32 %v2601_v27, %v972_v24  ;;  %v1027_v25 = vsub.f32 %v2602_v51, %v972_v24 }
 0x2b4   :  { %v1585_v19 = vpop.eup %1584  ;;  %1088 = vst [vmem:[#allocation2 + $0x180] sm:$0xff] %v1024_v5 }
 0x2b5   :  { %1089 = vst [vmem:[#allocation2 + $0x188] sm:$0xff] %v1025_v38  ;;  %v955_v43 = vmul.f32 0.6931472, %v1585_v19  ;;  %v922_v42 = vpop.xlane.xlu0 %921 }
 0x2b6   :  { %1090 = vst [vmem:[#allocation2 + $0x190] sm:$0xff] %v1026_v12  ;;  %1586 = vlog2.f32 %v922_v42 }
 0x2b7   :  { %1091 = vst [vmem:[#allocation2 + $0x198] sm:$0xff] %v1027_v25  ;;  %v973_v52 = vadd.f32 %v955_v43, %v2355_v49 }
 0x2b9   :  { %v1028_v11 = vsub.f32 %v2603_v54, %v973_v52  ;;  %v1029_v61 = vsub.f32 %v2604_v45, %v973_v52  ;;  %v1030_v34 = vsub.f32 %v2605_v46, %v973_v52  ;;  %v1031_v62 = vsub.f32 %v2572_v29, %v973_v52 }
 0x2bb   :  { %1092 = vst [vmem:[#allocation2 + $0x1a0] sm:$0xff] %v1028_v11 }
 0x2bc   :  { %v1587_v40 = vpop.eup %1586  ;;  %1093 = vst [vmem:[#allocation2 + $0x1a8] sm:$0xff] %v1029_v61 }
 0x2bd   :  { %1094 = vst [vmem:[#allocation2 + $0x1b0] sm:$0xff] %v1030_v34  ;;  %v957_v6 = vmul.f32 0.6931472, %v1587_v40  ;;  %v927_v9 = vpop.xlane.xlu1 %926 }
 0x2be   :  { %1095 = vst [vmem:[#allocation2 + $0x1b8] sm:$0xff] %v1031_v62  ;;  %1588 = vlog2.f32 %v927_v9 }
 0x2bf   :  { %v974_v60 = vadd.f32 %v957_v6, %v2365_v13 }
 0x2c1   :  { %v1032_v49 = vsub.f32 %v2606_v63, %v974_v60  ;;  %v1033_v0 = vsub.f32 %v2607_v48, %v974_v60  ;;  %v1034_v16 = vsub.f32 %v2608_v36, %v974_v60  ;;  %v1035_v53 = vsub.f32 %v2205_v23, %v974_v60 }
 0x2c3   :  { %1096 = vst [vmem:[#allocation2 + $0x1c0] sm:$0xff] %v1032_v49 }
 0x2c4   :  { %1097 = vst [vmem:[#allocation2 + $0x1c8] sm:$0xff] %v1033_v0  ;;  %v1589_v29 = vpop.eup %1588 }
 0x2c5   :  { %1098 = vst [vmem:[#allocation2 + $0x1d0] sm:$0xff] %v1034_v16  ;;  %v959_v22 = vmul.f32 0.6931472, %v1589_v29 }
 0x2c6   :  { %1099 = vst [vmem:[#allocation2 + $0x1d8] sm:$0xff] %v1035_v53 }
 0x2c7   :  { %v975_v26 = vadd.f32 %v959_v22, %v2375_v58 }
 0x2c9   :  { %v1036_v13 = vsub.f32 %v2574_v56, %v975_v26  ;;  %v1037_v1 = vsub.f32 %v2609_v55, %v975_v26  ;;  %v1038_v23 = vsub.f32 %v2610_v3, %v975_v26  ;;  %v1039_v47 = vsub.f32 %v2611_v17, %v975_v26 }
 0x2cb   :  { %1100 = vst [vmem:[#allocation2 + $0x1e0] sm:$0xff] %v1036_v13 }
 0x2cc   :  { %1101 = vst [vmem:[#allocation2 + $0x1e8] sm:$0xff] %v1037_v1 }
 0x2cd   :  { %1102 = vst [vmem:[#allocation2 + $0x1f0] sm:$0xff] %v1038_v23 }
 0x2ce   :  { %1103 = vst [vmem:[#allocation2 + $0x1f8] sm:$0xff] %v1039_v47 }
 0x2cf   :  { %1116 = dma.vmem_to_hbm [thread:$0]  %s1109_s26, 8192, %s1111_s29, [#allocation3], %s1617_s30, %s1617_s30, %s1618_s1  }
 0x2d0   :  { %1614 = dma.done.wait [#allocation3], 8192  }
 0x2d1   :  { %1615 = vsyncadd [#allocation3], 4294959104 }
 0x2d2   :  { %1121 = vsyncpa [#allocation3], 1 }

// kernel: forward.2
= control target key start
LH: loop header
LB: loop body
LE: loop exit
PB: predicated region body
PF: predicated region fallthrough
CT: control target
= control target key end

     0   :  { %s17129_s1 = inlined_call_operand.vmem [shape: bf16[2,128,512], index: 1, kind: input, shape index: {}]   ;;  %s17130_s0 = inlined_call_operand.vmem [shape: f32[8,16,128], index: 0, kind: input, shape index: {}]   ;;  %s17131_s2 = inlined_call_operand.vmem [shape: bf16[2,128,512], index: 2, kind: input, shape index: {}]   ;;  %s17132_s3 = inlined_call_operand.vmem [shape: f32[2,1,512], index: 3, kind: input, shape index: {}]   ;;  %s17133_s4 = inlined_call_operand.vmem [shape: f32[8,16,128], index: 4, kind: output, shape index: {}]  }
   0x1   :  { %v7418_v0 = vld [vmem:[%s17129_s1 + $0xe0] sm:$0xf]  ;;  %v10037_v1 = vld [vmem:[%s17129_s1 + $0xec] sm:$0xf0]  ;;  %v10035_v2 = vld [vmem:[%s17129_s1 + $0xe4] sm:$0xf] }
   0x2   :  { %v7419_v3 = vor.u32 %v10037_v1, %v7418_v0  ;;  %v7420_v4 = vld [vmem:[%s17129_s1 + $0xf0] sm:$0xf0]  ;;  %v7426_v5 = vld [vmem:[%s17129_s1 + $0xe8] sm:$0xf]  ;;  %v10038_v6 = vld [vmem:[%s17129_s1 + $0xf4] sm:$0xf0] }
   0x3   :  { %v7423_v7 = vor.u32 %v10035_v2, %v7420_v4  ;;  %v7427_v8 = vor.u32 %v10038_v6, %v7426_v5  ;;  %v10036_v9 = vld [vmem:[%s17129_s1 + $0xec] sm:$0xf]  ;;  %v7428_v10 = vld [vmem:[%s17129_s1 + $0xf8] sm:$0xf0]  ;;  %v7402_v11 = vld [vmem:[%s17129_s1 + $0xc0] sm:$0xf] }
   0x4   :  { %244 = vmatpush.bf16.msra.mxu0 %v7419_v3  ;;  %v7431_v12 = vor.u32 %v10036_v9, %v7428_v10  ;;  %v10033_v13 = vld [vmem:[%s17129_s1 + $0xcc] sm:$0xf0]  ;;  %v10031_v14 = vld [vmem:[%s17129_s1 + $0xc4] sm:$0xf]  ;;  %v7404_v15 = vld [vmem:[%s17129_s1 + $0xd0] sm:$0xf0] }
   0x5   :  { %293 = vmatpush.bf16.msra.mxu1 %v7423_v7  ;;  %342 = vmatpush.bf16.msra.mxu2 %v7427_v8  ;;  %v7403_v16 = vor.u32 %v10033_v13, %v7402_v11  ;;  %v7407_v17 = vor.u32 %v10031_v14, %v7404_v15  ;;  %v7410_v18 = vld [vmem:[%s17129_s1 + $0xc8] sm:$0xf]  ;;  %v10034_v19 = vld [vmem:[%s17129_s1 + $0xd4] sm:$0xf0]  ;;  %v10032_v20 = vld [vmem:[%s17129_s1 + $0xcc] sm:$0xf] }
   0x6   :  { %391 = vmatpush.bf16.msra.mxu3 %v7431_v12  ;;  %v7411_v21 = vor.u32 %v10034_v19, %v7410_v18  ;;  %v7412_v22 = vld [vmem:[%s17129_s1 + $0xd8] sm:$0xf0]  ;;  %v7386_v23 = vld [vmem:[%s17129_s1 + $0xa0] sm:$0xf]  ;;  %v10029_v24 = vld [vmem:[%s17129_s1 + $0xac] sm:$0xf0] }
   0x7   :  { %v7415_v25 = vor.u32 %v10032_v20, %v7412_v22  ;;  %v10027_v26 = vld [vmem:[%s17129_s1 + $0xa4] sm:$0xf]  ;;  %v7388_v27 = vld [vmem:[%s17129_s1 + $0xb0] sm:$0xf0]  ;;  %v7394_v28 = vld [vmem:[%s17129_s1 + $0xa8] sm:$0xf]  ;;  %v7387_v29 = vor.u32 %v10029_v24, %v7386_v23 }
   0x8   :  { %245 = vmatpush.bf16.msra.mxu0 %v7403_v16  ;;  %v10030_v30 = vld [vmem:[%s17129_s1 + $0xb4] sm:$0xf0]  ;;  %v10028_v31 = vld [vmem:[%s17129_s1 + $0xac] sm:$0xf]  ;;  %v7396_v32 = vld [vmem:[%s17129_s1 + $0xb8] sm:$0xf0]  ;;  %v7391_v33 = vor.u32 %v10027_v26, %v7388_v27 }
   0x9   :  { %294 = vmatpush.bf16.msra.mxu1 %v7407_v17  ;;  %343 = vmatpush.bf16.msra.mxu2 %v7411_v21  ;;  %v7395_v34 = vor.u32 %v10030_v30, %v7394_v28  ;;  %v7370_v35 = vld [vmem:[%s17129_s1 + $0x80] sm:$0xf]  ;;  %v10025_v36 = vld [vmem:[%s17129_s1 + $0x8c] sm:$0xf0]  ;;  %v10023_v37 = vld [vmem:[%s17129_s1 + $0x84] sm:$0xf]  ;;  %v7399_v38 = vor.u32 %v10028_v31, %v7396_v32 }
   0xa   :  { %392 = vmatpush.bf16.msra.mxu3 %v7415_v25  ;;  %v7372_v39 = vld [vmem:[%s17129_s1 + $0x90] sm:$0xf0]  ;;  %v7378_v40 = vld [vmem:[%s17129_s1 + $0x88] sm:$0xf]  ;;  %v10026_v41 = vld [vmem:[%s17129_s1 + $0x94] sm:$0xf0]  ;;  %v7371_v44 = vor.u32 %v10025_v36, %v7370_v35 }
   0xb   :  { %v10024_v42 = vld [vmem:[%s17129_s1 + $0x8c] sm:$0xf]  ;;  %v7380_v43 = vld [vmem:[%s17129_s1 + $0x98] sm:$0xf0]  ;;  %v7375_v45 = vor.u32 %v10023_v37, %v7372_v39  ;;  %v7379_v46 = vor.u32 %v10026_v41, %v7378_v40  ;;  %v7354_v47 = vld [vmem:[%s17129_s1 + $0x60] sm:$0xf] }
   0xc   :  { %246 = vmatpush.bf16.msra.mxu0 %v7387_v29  ;;  %v10021_v48 = vld [vmem:[%s17129_s1 + $0x6c] sm:$0xf0]  ;;  %v10019_v49 = vld [vmem:[%s17129_s1 + $0x64] sm:$0xf]  ;;  %v7383_v50 = vor.u32 %v10024_v42, %v7380_v43  ;;  %v7356_v51 = vld [vmem:[%s17129_s1 + $0x70] sm:$0xf0] }
   0xd   :  { %295 = vmatpush.bf16.msra.mxu1 %v7391_v33  ;;  %344 = vmatpush.bf16.msra.mxu2 %v7395_v34  ;;  %v7362_v52 = vld [vmem:[%s17129_s1 + $0x68] sm:$0xf]  ;;  %v10022_v53 = vld [vmem:[%s17129_s1 + $0x74] sm:$0xf0]  ;;  %v10020_v54 = vld [vmem:[%s17129_s1 + $0x6c] sm:$0xf]  ;;  %v7355_v56 = vor.u32 %v10021_v48, %v7354_v47  ;;  %v7359_v57 = vor.u32 %v10019_v49, %v7356_v51 }
   0xe   :  { %393 = vmatpush.bf16.msra.mxu3 %v7399_v38  ;;  %v7364_v55 = vld [vmem:[%s17129_s1 + $0x78] sm:$0xf0]  ;;  %v7363_v58 = vor.u32 %v10022_v53, %v7362_v52  ;;  %v7338_v59 = vld [vmem:[%s17129_s1 + $0x40] sm:$0xf]  ;;  %v10017_v60 = vld [vmem:[%s17129_s1 + $0x4c] sm:$0xf0] }
   0xf   :  { %v10015_v61 = vld [vmem:[%s17129_s1 + $0x44] sm:$0xf]  ;;  %v7367_v62 = vor.u32 %v10020_v54, %v7364_v55  ;;  %v7340_v63 = vld [vmem:[%s17129_s1 + $0x50] sm:$0xf0]  ;;  %v7346_v0 = vld [vmem:[%s17129_s1 + $0x48] sm:$0xf]  ;;  %v7339_v4 = vor.u32 %v10017_v60, %v7338_v59 }
  0x10   :  { %247 = vmatpush.bf16.msra.mxu0 %v7371_v44  ;;  %v10018_v1 = vld [vmem:[%s17129_s1 + $0x54] sm:$0xf0]  ;;  %v10016_v2 = vld [vmem:[%s17129_s1 + $0x4c] sm:$0xf]  ;;  %v7348_v3 = vld [vmem:[%s17129_s1 + $0x58] sm:$0xf0]  ;;  %v7343_v5 = vor.u32 %v10015_v61, %v7340_v63 }
  0x11   :  { %296 = vmatpush.bf16.msra.mxu1 %v7375_v45  ;;  %345 = vmatpush.bf16.msra.mxu2 %v7379_v46  ;;  %v7347_v6 = vor.u32 %v10018_v1, %v7346_v0  ;;  %v7322_v7 = vld [vmem:[%s17129_s1 + $0x20] sm:$0xf]  ;;  %v10013_v8 = vld [vmem:[%s17129_s1 + $0x2c] sm:$0xf0]  ;;  %v10011_v9 = vld [vmem:[%s17129_s1 + $0x24] sm:$0xf]  ;;  %v7351_v10 = vor.u32 %v10016_v2, %v7348_v3 }
  0x12   :  { %394 = vmatpush.bf16.msra.mxu3 %v7383_v50  ;;  %v7324_v11 = vld [vmem:[%s17129_s1 + $0x30] sm:$0xf0]  ;;  %v7330_v12 = vld [vmem:[%s17129_s1 + $0x28] sm:$0xf]  ;;  %v10014_v13 = vld [vmem:[%s17129_s1 + $0x34] sm:$0xf0]  ;;  %v7323_v16 = vor.u32 %v10013_v8, %v7322_v7 }
  0x13   :  { %v10012_v14 = vld [vmem:[%s17129_s1 + $0x2c] sm:$0xf]  ;;  %v7332_v15 = vld [vmem:[%s17129_s1 + $0x38] sm:$0xf0]  ;;  %v7306_v17 = vld [vmem:[%s17129_s1] sm:$0xf]  ;;  %v7327_v19 = vor.u32 %v10011_v9, %v7324_v11  ;;  %v7331_v20 = vor.u32 %v10014_v13, %v7330_v12 }
  0x14   :  { %248 = vmatpush.bf16.msra.mxu0 %v7355_v56  ;;  %v10009_v18 = vld [vmem:[%s17129_s1 + $0xc] sm:$0xf0]  ;;  %v10007_v21 = vld [vmem:[%s17129_s1 + $0x4] sm:$0xf]  ;;  %v7308_v22 = vld [vmem:[%s17129_s1 + $0x10] sm:$0xf0]  ;;  %v7335_v24 = vor.u32 %v10012_v14, %v7332_v15 }
  0x15   :  { %297 = vmatpush.bf16.msra.mxu1 %v7359_v57  ;;  %346 = vmatpush.bf16.msra.mxu2 %v7363_v58  ;;  %v7314_v23 = vld [vmem:[%s17129_s1 + $0x8] sm:$0xf]  ;;  %v10010_v25 = vld [vmem:[%s17129_s1 + $0x14] sm:$0xf0]  ;;  %v10008_v26 = vld [vmem:[%s17129_s1 + $0xc] sm:$0xf]  ;;  %v7307_v31 = vor.u32 %v10009_v18, %v7306_v17  ;;  %v7311_v35 = vor.u32 %v10007_v21, %v7308_v22 }
  0x16   :  { %395 = vmatpush.bf16.msra.mxu3 %v7367_v62  ;;  %v7316_v27 = vld [vmem:[%s17129_s1 + $0x18] sm:$0xf0]  ;;  %v18_v28 = vld [vmem:[%s17130_s0] sm:$0xff]  ;;  %v10069_v30 = vld [vmem:[%s17131_s2 + $0xec] sm:$0xf0]  ;;  %v7315_v36 = vor.u32 %v10010_v25, %v7314_v23 }
  0x17   :  { %v7546_v29 = vld [vmem:[%s17131_s2 + $0xe0] sm:$0xf]  ;;  %v19_v32 = vld [vmem:[%s17130_s0 + $0x8] sm:$0xff]  ;;  %v10067_v33 = vld [vmem:[%s17131_s2 + $0xe4] sm:$0xf]  ;;  %v7319_v37 = vor.u32 %v10008_v26, %v7316_v27 }
  0x18   :  { %249 = vmatpush.bf16.msra.mxu0 %v7339_v4  ;;  %v7548_v34 = vld [vmem:[%s17131_s2 + $0xf0] sm:$0xf0]  ;;  %v7547_v38 = vor.u32 %v10069_v30, %v7546_v29  ;;  %v10068_v39 = vld [vmem:[%s17131_s2 + $0xec] sm:$0xf]  ;;  %v7554_v40 = vld [vmem:[%s17131_s2 + $0xe8] sm:$0xf]  ;;  %v34_v42 = vpack.c.bf16 %v19_v32, %v18_v28 }
  0x19   :  { %298 = vmatpush.bf16.msra.mxu1 %v7343_v5  ;;  %347 = vmatpush.bf16.msra.mxu2 %v7347_v6  ;;  %v10070_v41 = vld [vmem:[%s17131_s2 + $0xf4] sm:$0xf0]  ;;  %v7551_v43 = vor.u32 %v10067_v33, %v7548_v34  ;;  %v7556_v44 = vld [vmem:[%s17131_s2 + $0xf8] sm:$0xf0]  ;;  %v7530_v45 = vld [vmem:[%s17131_s2 + $0xc0] sm:$0xf] }
  0x1a   :  { %396 = vmatpush.bf16.msra.mxu3 %v7351_v10  ;;  %v10065_v46 = vld [vmem:[%s17131_s2 + $0xcc] sm:$0xf0]  ;;  %v10063_v47 = vld [vmem:[%s17131_s2 + $0xc4] sm:$0xf]  ;;  %v7532_v48 = vld [vmem:[%s17131_s2 + $0xd0] sm:$0xf0]  ;;  %v7555_v49 = vor.u32 %v10070_v41, %v7554_v40  ;;  %v7559_v50 = vor.u32 %v10068_v39, %v7556_v44 }
  0x1b   :  { %v7531_v51 = vor.u32 %v10065_v46, %v7530_v45  ;;  %v7538_v52 = vld [vmem:[%s17131_s2 + $0xc8] sm:$0xf]  ;;  %v10066_v53 = vld [vmem:[%s17131_s2 + $0xd4] sm:$0xf0]  ;;  %v7535_v54 = vor.u32 %v10063_v47, %v7532_v48  ;;  %v10064_v55 = vld [vmem:[%s17131_s2 + $0xcc] sm:$0xf] }
  0x1c   :  { %250 = vmatpush.bf16.msra.mxu0 %v7323_v16  ;;  %v7540_v56 = vld [vmem:[%s17131_s2 + $0xd8] sm:$0xf0]  ;;  %v7539_v57 = vor.u32 %v10066_v53, %v7538_v52  ;;  %v7514_v58 = vld [vmem:[%s17131_s2 + $0xa0] sm:$0xf]  ;;  %v10061_v59 = vld [vmem:[%s17131_s2 + $0xac] sm:$0xf0] }
  0x1d   :  { %299 = vmatpush.bf16.msra.mxu1 %v7327_v19  ;;  %348 = vmatpush.bf16.msra.mxu2 %v7331_v20  ;;  %v10059_v60 = vld [vmem:[%s17131_s2 + $0xa4] sm:$0xf]  ;;  %v7543_v61 = vor.u32 %v10064_v55, %v7540_v56  ;;  %v7515_v62 = vor.u32 %v10061_v59, %v7514_v58  ;;  %v7516_v63 = vld [vmem:[%s17131_s2 + $0xb0] sm:$0xf0]  ;;  %v10060_v0 = vld [vmem:[%s17131_s2 + $0xac] sm:$0xf] }
  0x1e   :  { %397 = vmatpush.bf16.msra.mxu3 %v7335_v24  ;;  %v7519_v1 = vor.u32 %v10059_v60, %v7516_v63  ;;  %v7524_v2 = vld [vmem:[%s17131_s2 + $0xb8] sm:$0xf0]  ;;  %v7522_v3 = vld [vmem:[%s17131_s2 + $0xa8] sm:$0xf]  ;;  %v10062_v4 = vld [vmem:[%s17131_s2 + $0xb4] sm:$0xf0] }
  0x1f   :  { %v7523_v5 = vor.u32 %v10062_v4, %v7522_v3  ;;  %v7527_v6 = vor.u32 %v10060_v0, %v7524_v2  ;;  %v20_v7 = vld [vmem:[%s17130_s0 + $0x10] sm:$0xff]  ;;  %v21_v8 = vld [vmem:[%s17130_s0 + $0x18] sm:$0xff]  ;;  %v7498_v10 = vld [vmem:[%s17131_s2 + $0x80] sm:$0xf] }
  0x20   :  { %251 = vmatpush.bf16.msra.mxu0 %v7307_v31  ;;  %v35_v9 = vpack.c.bf16 %v21_v8, %v20_v7  ;;  %v10057_v11 = vld [vmem:[%s17131_s2 + $0x8c] sm:$0xf0]  ;;  %v10055_v12 = vld [vmem:[%s17131_s2 + $0x84] sm:$0xf]  ;;  %v7500_v14 = vld [vmem:[%s17131_s2 + $0x90] sm:$0xf0] }
  0x21   :  { %300 = vmatpush.bf16.msra.mxu1 %v7311_v35  ;;  %349 = vmatpush.bf16.msra.mxu2 %v7315_v36  ;;  %v7499_v13 = vor.u32 %v10057_v11, %v7498_v10  ;;  %v10056_v15 = vld [vmem:[%s17131_s2 + $0x8c] sm:$0xf]  ;;  %v7508_v16 = vld [vmem:[%s17131_s2 + $0x98] sm:$0xf0]  ;;  %v7503_v17 = vor.u32 %v10055_v12, %v7500_v14  ;;  %v7506_v19 = vld [vmem:[%s17131_s2 + $0x88] sm:$0xf] }
  0x22   :  { %398 = vmatpush.bf16.msra.mxu3 %v7319_v37  ;;  %v7511_v18 = vor.u32 %v10056_v15, %v7508_v16  ;;  %v10058_v20 = vld [vmem:[%s17131_s2 + $0x94] sm:$0xf0]  ;;  %v22_v22 = vld [vmem:[%s17130_s0 + $0x20] sm:$0xff]  ;;  %v23_v23 = vld [vmem:[%s17130_s0 + $0x28] sm:$0xff] }
  0x23   :  { %252 = vmatmul.bf16.vlgmr.msra.gmra.mxu0 %v34_v42  ;;  %v7507_v21 = vor.u32 %v10058_v20, %v7506_v19  ;;  %v36_v24 = vpack.c.bf16 %v23_v23, %v22_v22  ;;  %v7482_v25 = vld [vmem:[%s17131_s2 + $0x60] sm:$0xf]  ;;  %v10053_v26 = vld [vmem:[%s17131_s2 + $0x6c] sm:$0xf0]  ;;  %v10051_v27 = vld [vmem:[%s17131_s2 + $0x64] sm:$0xf] }
  0x24   :  { %704 = vmatpush.bf16.msrb.mxu0 %v7547_v38  ;;  %301 = vmatmul.bf16.vlgmr.msra.gmra.mxu1 %v34_v42  ;;  %v7483_v28 = vor.u32 %v10053_v26, %v7482_v25  ;;  %v7484_v29 = vld [vmem:[%s17131_s2 + $0x70] sm:$0xf0]  ;;  %v10052_v30 = vld [vmem:[%s17131_s2 + $0x6c] sm:$0xf]  ;;  %v7492_v31 = vld [vmem:[%s17131_s2 + $0x78] sm:$0xf0] }
  0x25   :  { %718 = vmatpush.bf16.msrb.mxu1 %v7551_v43  ;;  %350 = vmatmul.bf16.vlgmr.msra.gmra.mxu2 %v34_v42  ;;  %v7487_v32 = vor.u32 %v10051_v27, %v7484_v29  ;;  %v7495_v33 = vor.u32 %v10052_v30, %v7492_v31  ;;  %v7490_v34 = vld [vmem:[%s17131_s2 + $0x68] sm:$0xf]  ;;  %v10054_v35 = vld [vmem:[%s17131_s2 + $0x74] sm:$0xf0]  ;;  %v24_v37 = vld [vmem:[%s17130_s0 + $0x30] sm:$0xff]  ;;  %v17134_v26 = vmov 0  }
  0x26   :  { %399 = vmatmul.bf16.vlgmr.msra.gmra.mxu3 %v34_v42  ;;  %732 = vmatpush.bf16.msrb.mxu2 %v7555_v49  ;;  %v7491_v36 = vor.u32 %v10054_v35, %v7490_v34  ;;  %v25_v38 = vld [vmem:[%s17130_s0 + $0x38] sm:$0xff]  ;;  %v7466_v40 = vld [vmem:[%s17131_s2 + $0x40] sm:$0xf]  ;;  %v10049_v41 = vld [vmem:[%s17131_s2 + $0x4c] sm:$0xf0] }
  0x27   :  { %746 = vmatpush.bf16.msrb.mxu3 %v7559_v50  ;;  %v37_v39 = vpack.c.bf16 %v25_v38, %v24_v37  ;;  %v10047_v42 = vld [vmem:[%s17131_s2 + $0x44] sm:$0xf]  ;;  %v7467_v43 = vor.u32 %v10049_v41, %v7466_v40  ;;  %v7468_v44 = vld [vmem:[%s17131_s2 + $0x50] sm:$0xf0]  ;;  %v10048_v45 = vld [vmem:[%s17131_s2 + $0x4c] sm:$0xf] }
  0x28   :  { %705 = vmatpush.bf16.msrb.mxu0 %v7531_v51  ;;  %v7476_v46 = vld [vmem:[%s17131_s2 + $0x58] sm:$0xf0]  ;;  %v7471_v47 = vor.u32 %v10047_v42, %v7468_v44  ;;  %v7474_v49 = vld [vmem:[%s17131_s2 + $0x48] sm:$0xf]  ;;  %v10050_v50 = vld [vmem:[%s17131_s2 + $0x54] sm:$0xf0] }
  0x29   :  { %719 = vmatpush.bf16.msrb.mxu1 %v7535_v54  ;;  %v7479_v48 = vor.u32 %v10048_v45, %v7476_v46  ;;  %v7475_v51 = vor.u32 %v10050_v50, %v7474_v49  ;;  %v26_v52 = vld [vmem:[%s17130_s0 + $0x40] sm:$0xff]  ;;  %v27_v53 = vld [vmem:[%s17130_s0 + $0x48] sm:$0xff]  ;;  %v10045_v56 = vld [vmem:[%s17131_s2 + $0x2c] sm:$0xf0] }
  0x2a   :  { %733 = vmatpush.bf16.msrb.mxu2 %v7539_v57  ;;  %v38_v54 = vpack.c.bf16 %v27_v53, %v26_v52  ;;  %v7450_v55 = vld [vmem:[%s17131_s2 + $0x20] sm:$0xf]  ;;  %v10043_v57 = vld [vmem:[%s17131_s2 + $0x24] sm:$0xf]  ;;  %v7452_v59 = vld [vmem:[%s17131_s2 + $0x30] sm:$0xf0] }
  0x2b   :  { %747 = vmatpush.bf16.msrb.mxu3 %v7543_v61  ;;  %v7451_v58 = vor.u32 %v10045_v56, %v7450_v55  ;;  %v10044_v60 = vld [vmem:[%s17131_s2 + $0x2c] sm:$0xf]  ;;  %v7460_v61 = vld [vmem:[%s17131_s2 + $0x38] sm:$0xf0]  ;;  %v7458_v0 = vld [vmem:[%s17131_s2 + $0x28] sm:$0xf] }
  0x2c   :  { %706 = vmatpush.bf16.msrb.mxu0 %v7515_v62  ;;  %v7455_v62 = vor.u32 %v10043_v57, %v7452_v59  ;;  %v7463_v63 = vor.u32 %v10044_v60, %v7460_v61  ;;  %v28_v3 = vld [vmem:[%s17130_s0 + $0x50] sm:$0xff]  ;;  %v29_v4 = vld [vmem:[%s17130_s0 + $0x58] sm:$0xff]  ;;  %v10039_v8 = vld [vmem:[%s17131_s2 + $0x4] sm:$0xf] }
  0x2d   :  { %720 = vmatpush.bf16.msrb.mxu1 %v7519_v1  ;;  %v10046_v1 = vld [vmem:[%s17131_s2 + $0x34] sm:$0xf0]  ;;  %v10041_v7 = vld [vmem:[%s17131_s2 + $0xc] sm:$0xf0]  ;;  %v7436_v10 = vld [vmem:[%s17131_s2 + $0x10] sm:$0xf0] }
  0x2e   :  { %734 = vmatpush.bf16.msrb.mxu2 %v7523_v5  ;;  %v7459_v2 = vor.u32 %v10046_v1, %v7458_v0  ;;  %v39_v5 = vpack.c.bf16 %v29_v4, %v28_v3  ;;  %v10040_v11 = vld [vmem:[%s17131_s2 + $0xc] sm:$0xf]  ;;  %v7444_v12 = vld [vmem:[%s17131_s2 + $0x18] sm:$0xf0]  ;;  %v30_v15 = vld [vmem:[%s17130_s0 + $0x60] sm:$0xff] }
  0x2f   :  { %748 = vmatpush.bf16.msrb.mxu3 %v7527_v6  ;;  %v7434_v6 = vld [vmem:[%s17131_s2] sm:$0xf]  ;;  %v7447_v14 = vor.u32 %v10040_v11, %v7444_v12  ;;  %v31_v16 = vld [vmem:[%s17130_s0 + $0x68] sm:$0xff]  ;;  %v10042_v19 = vld [vmem:[%s17131_s2 + $0x14] sm:$0xf0] }
  0x30   :  { %707 = vmatpush.bf16.msrb.mxu0 %v7499_v13  ;;  %v7439_v13 = vor.u32 %v10039_v8, %v7436_v10  ;;  %v33_v22 = vld [vmem:[%s17130_s0 + $0x78] sm:$0xff] }
  0x31   :  { %721 = vmatpush.bf16.msrb.mxu1 %v7503_v17  ;;  %v40_v17 = vpack.c.bf16 %v31_v16, %v30_v15 }
  0x32   :  { %735 = vmatpush.bf16.msrb.mxu2 %v7507_v21  ;;  %v32_v21 = vld [vmem:[%s17130_s0 + $0x70] sm:$0xff] }
  0x33   :  { %257 = vmatmul.bf16.gmra.mxu0 %v35_v9  ;;  %749 = vmatpush.bf16.msrb.mxu3 %v7511_v18  ;;  %v7442_v18 = vld [vmem:[%s17131_s2 + $0x8] sm:$0xf]  ;;  %v41_v23 = vpack.c.bf16 %v33_v22, %v32_v21 }
  0x34   :  { %306 = vmatmul.bf16.gmra.mxu1 %v35_v9  ;;  %708 = vmatpush.bf16.msrb.mxu0 %v7483_v28  ;;  %v7443_v20 = vor.u32 %v10042_v19, %v7442_v18  ;;  %v11677_v19 = vld [vmem:[%s17132_s3] sm:$0xf] }
  0x35   :  { %355 = vmatmul.bf16.gmra.mxu2 %v35_v9  ;;  %722 = vmatpush.bf16.msrb.mxu1 %v7487_v32  ;;  %v11684_v22 = vperm.slane %v11677_v19, 0 }
  0x36   :  { %404 = vmatmul.bf16.gmra.mxu3 %v35_v9  ;;  %736 = vmatpush.bf16.msrb.mxu2 %v7491_v36  ;;  %v7435_v9 = vor.u32 %v10041_v7, %v7434_v6 }
  0x37   :  { %750 = vmatpush.bf16.msrb.mxu3 %v7495_v33 }
  0x38   :  { %709 = vmatpush.bf16.msrb.mxu0 %v7467_v43 }
  0x39   :  { %723 = vmatpush.bf16.msrb.mxu1 %v7471_v47 }
  0x3a   :  { %737 = vmatpush.bf16.msrb.mxu2 %v7475_v51 }
  0x3b   :  { %751 = vmatpush.bf16.msrb.mxu3 %v7479_v48 }
  0x3c   :  { %710 = vmatpush.bf16.msrb.mxu0 %v7451_v58 }
  0x3d   :  { %724 = vmatpush.bf16.msrb.mxu1 %v7455_v62 }
  0x3e   :  { %738 = vmatpush.bf16.msrb.mxu2 %v7459_v2 }
  0x3f   :  { %752 = vmatpush.bf16.msrb.mxu3 %v7463_v63 }
  0x40   :  { %711 = vmatpush.bf16.msrb.mxu0 %v7435_v9 }
  0x41   :  { %725 = vmatpush.bf16.msrb.mxu1 %v7439_v13 }
  0x42   :  { %739 = vmatpush.bf16.msrb.mxu2 %v7443_v20 }
  0x43   :  { %262 = vmatmul.bf16.gmra.mxu0 %v36_v24  ;;  %753 = vmatpush.bf16.msrb.mxu3 %v7447_v14 }
  0x44   :  { %311 = vmatmul.bf16.gmra.mxu1 %v36_v24 }
  0x45   :  { %360 = vmatmul.bf16.gmra.mxu2 %v36_v24 }
  0x46   :  { %409 = vmatmul.bf16.gmra.mxu3 %v36_v24 }
  0x53   :  { %267 = vmatmul.bf16.gmra.mxu0 %v37_v39 }
  0x54   :  { %316 = vmatmul.bf16.gmra.mxu1 %v37_v39 }
  0x55   :  { %365 = vmatmul.bf16.gmra.mxu2 %v37_v39 }
  0x56   :  { %414 = vmatmul.bf16.gmra.mxu3 %v37_v39 }
  0x63   :  { %272 = vmatmul.bf16.gmra.mxu0 %v38_v54 }
  0x64   :  { %321 = vmatmul.bf16.gmra.mxu1 %v38_v54 }
  0x65   :  { %370 = vmatmul.bf16.gmra.mxu2 %v38_v54 }
  0x66   :  { %419 = vmatmul.bf16.gmra.mxu3 %v38_v54 }
  0x73   :  { %277 = vmatmul.bf16.gmra.mxu0 %v39_v5 }
  0x74   :  { %326 = vmatmul.bf16.gmra.mxu1 %v39_v5 }
  0x75   :  { %375 = vmatmul.bf16.gmra.mxu2 %v39_v5 }
  0x76   :  { %424 = vmatmul.bf16.gmra.mxu3 %v39_v5 }
  0x83   :  { %282 = vmatmul.bf16.gmra.mxu0 %v40_v17 }
  0x84   :  { %331 = vmatmul.bf16.gmra.mxu1 %v40_v17 }
  0x85   :  { %380 = vmatmul.bf16.gmra.mxu2 %v40_v17 }
  0x86   :  { %429 = vmatmul.bf16.gmra.mxu3 %v40_v17 }
  0x93   :  { %287 = vmatmul.bf16.gmra.mxu0 %v41_v23 }
  0x94   :  { %336 = vmatmul.bf16.gmra.mxu1 %v41_v23 }
  0x95   :  { %385 = vmatmul.bf16.gmra.mxu2 %v41_v23 }
  0x96   :  { %434 = vmatmul.bf16.gmra.mxu3 %v41_v23 }
  0xa0   :  { %v11554_v24 = vpop.f32.mrf.mxu0 }
  0xa1   :  { %v11556_v25 = vpop.f32.mrf.mxu1 }
  0xa3   :  { %712 = vmatmul.bf16.vlgmr.msrb.gmra.mxu0 %v17134_v26 }
  0xa4   :  { %726 = vmatmul.bf16.vlgmr.msrb.gmra.mxu1 %v17134_v26 }
  0xa5   :  { %740 = vmatmul.bf16.vlgmr.msrb.gmra.mxu2 %v17134_v26 }
  0xa6   :  { %754 = vmatmul.bf16.vlgmr.msrb.gmra.mxu3 %v17134_v26  ;;  %v7680_v26 = vld [vmem:[%s17131_s2 + $0xe0] sm:$0xf] }
  0xa8   :  { %v11562_v27 = vpop.f32.mrf.mxu2  ;;  %v11566_v29 = vpop.f32.mrf.mxu0 }
  0xa9   :  { %v11564_v28 = vpop.f32.mrf.mxu3  ;;  %v11568_v30 = vpop.f32.mrf.mxu1 }
  0xb0   :  { %v11570_v31 = vpop.f32.mrf.mxu2  ;;  %v11574_v33 = vpop.f32.mrf.mxu0 }
  0xb1   :  { %v11572_v32 = vpop.f32.mrf.mxu3  ;;  %v11576_v34 = vpop.f32.mrf.mxu1 }
  0xb8   :  { %v11578_v35 = vpop.f32.mrf.mxu2  ;;  %v11582_v37 = vpop.f32.mrf.mxu0 }
  0xb9   :  { %v11580_v36 = vpop.f32.mrf.mxu3  ;;  %v11584_v38 = vpop.f32.mrf.mxu1 }
  0xc0   :  { %v11586_v39 = vpop.f32.mrf.mxu2  ;;  %v11590_v41 = vpop.f32.mrf.mxu0 }
  0xc1   :  { %v11588_v40 = vpop.f32.mrf.mxu3  ;;  %v11592_v42 = vpop.f32.mrf.mxu1 }
  0xc8   :  { %v11594_v43 = vpop.f32.mrf.mxu2  ;;  %v11598_v45 = vpop.f32.mrf.mxu0 }
  0xc9   :  { %v11596_v44 = vpop.f32.mrf.mxu3  ;;  %v11600_v46 = vpop.f32.mrf.mxu1 }
  0xd0   :  { %v11602_v47 = vpop.f32.mrf.mxu2  ;;  %v11606_v49 = vpop.f32.mrf.mxu0 }
  0xd1   :  { %v11604_v48 = vpop.f32.mrf.mxu3  ;;  %v11608_v50 = vpop.f32.mrf.mxu1 }
  0xd8   :  { %v11610_v51 = vpop.f32.mrf.mxu2  ;;  %v11614_v53 = vpop.f32.mrf.mxu0 }
  0xd9   :  { %v11612_v52 = vpop.f32.mrf.mxu3  ;;  %v11616_v54 = vpop.f32.mrf.mxu1 }
  0xe0   :  { %v11618_v55 = vpop.f32.mrf.mxu2  ;;  %v11622_v57 = vpop.f32.mrf.mxu0 }
  0xe1   :  { %v11620_v56 = vpop.f32.mrf.mxu3  ;;  %v11624_v58 = vpop.f32.mrf.mxu1 }
  0xe8   :  { %v11626_v59 = vpop.f32.mrf.mxu2  ;;  %v11630_v61 = vpop.f32.mrf.mxu0 }
  0xe9   :  { %17136 = vst [vmem:[#allocation4_spill] sm:$0xff] %v11626_v59  ;;  %v11628_v60 = vpop.f32.mrf.mxu3  ;;  %v11632_v62 = vpop.f32.mrf.mxu1 }
  0xf0   :  { %v11634_v63 = vpop.f32.mrf.mxu2  ;;  %v11638_v1 = vpop.f32.mrf.mxu0 }
  0xf1   :  { %17137 = vst [vmem:[#allocation5_spill] sm:$0xff] %v11634_v63  ;;  %v11636_v0 = vpop.f32.mrf.mxu3  ;;  %v11640_v2 = vpop.f32.mrf.mxu1 }
  0xf2   :  { %17138 = vst [vmem:[#allocation6_spill] sm:$0xff] %v11636_v0 }
  0xf3   :  { %17139 = vst [vmem:[#allocation7_spill] sm:$0xff] %v11638_v1 }
  0xf4   :  { %17140 = vst [vmem:[#allocation8_spill] sm:$0xff] %v11640_v2 }
  0xf8   :  { %v11642_v3 = vpop.f32.mrf.mxu2  ;;  %v11646_v5 = vpop.f32.mrf.mxu0 }
  0xf9   :  { %17141 = vst [vmem:[#allocation9_spill] sm:$0xff] %v11642_v3  ;;  %v11644_v4 = vpop.f32.mrf.mxu3  ;;  %v11648_v6 = vpop.f32.mrf.mxu1 }
  0xfa   :  { %17142 = vst [vmem:[#allocation10_spill] sm:$0xff] %v11644_v4 }
  0xfb   :  { %17143 = vst [vmem:[#allocation11_spill] sm:$0xff] %v11646_v5 }
  0xfc   :  { %17144 = vst [vmem:[#allocation12_spill] sm:$0xff] %v11648_v6 }
 0x100   :  { %v11650_v7 = vpop.f32.mrf.mxu2  ;;  %v11654_v9 = vpop.f32.mrf.mxu0 }
 0x101   :  { %17145 = vst [vmem:[#allocation13_spill] sm:$0xff] %v11650_v7  ;;  %v11652_v8 = vpop.f32.mrf.mxu3  ;;  %v11656_v10 = vpop.f32.mrf.mxu1 }
 0x102   :  { %17146 = vst [vmem:[#allocation14_spill] sm:$0xff] %v11652_v8 }
 0x103   :  { %17147 = vst [vmem:[#allocation15_spill] sm:$0xff] %v11654_v9  ;;  %v11748_v9 = vperm.slane %v11677_v19, 3 }
 0x104   :  { %17148 = vst [vmem:[#allocation16_spill] sm:$0xff] %v11656_v10  ;;  %v7674_v10 = vld [vmem:[%s17131_s2 + $0xd8] sm:$0xf0] }
 0x108   :  { %v11658_v11 = vpop.f32.mrf.mxu2  ;;  %v11662_v13 = vpop.f32.mrf.mxu0 }
 0x109   :  { %17149 = vst [vmem:[#allocation17_spill] sm:$0xff] %v11658_v11  ;;  %v11660_v12 = vpop.f32.mrf.mxu3  ;;  %v11664_v14 = vpop.f32.mrf.mxu1  ;;  %v11709_v11 = vperm.slane %v11677_v19, 1 }
 0x10a   :  { %17150 = vst [vmem:[#allocation18_spill] sm:$0xff] %v11660_v12  ;;  %v7664_v12 = vld [vmem:[%s17131_s2 + $0xc0] sm:$0xf] }
 0x10b   :  { %17151 = vst [vmem:[#allocation19_spill] sm:$0xff] %v11662_v13 }
 0x10c   :  { %17152 = vst [vmem:[#allocation20_spill] sm:$0xff] %v11664_v14 }
 0x110   :  { %v11668_v16 = vpop.f32.mrf.mxu0  ;;  %v11670_v17 = vpop.f32.mrf.mxu2 }
 0x111   :  { %v11666_v15 = vpop.f32.mrf.mxu3  ;;  %17154 = vst [vmem:[#allocation22_spill] sm:$0xff] %v11668_v16  ;;  %v11672_v18 = vpop.f32.mrf.mxu1  ;;  %v10099_v16 = vld [vmem:[%s17131_s2 + $0xe4] sm:$0xf] }
 0x112   :  { %17153 = vst [vmem:[#allocation21_spill] sm:$0xff] %v11666_v15  ;;  %v10102_v15 = vld [vmem:[%s17131_s2 + $0xf4] sm:$0xf0] }
 0x113   :  { %17155 = vst [vmem:[#allocation23_spill] sm:$0xff] %v11670_v17  ;;  %v7682_v17 = vld [vmem:[%s17131_s2 + $0xf0] sm:$0xf0] }
 0x114   :  { %17156 = vst [vmem:[#allocation24_spill] sm:$0xff] %v11672_v18  ;;  %v10101_v18 = vld [vmem:[%s17131_s2 + $0xec] sm:$0xf0]  ;;  %v7685_v14 = vor.u32 %v10099_v16, %v7682_v17  ;;  %v10095_v16 = vld [vmem:[%s17131_s2 + $0xc4] sm:$0xf]  ;;  %v254_v17 = vadd.f32 %v11554_v24, %v11684_v22 }
 0x116   :  { %1112 = vmatpush.bf16.msra.mxu1 %v7685_v14  ;;  %v7672_v14 = vld [vmem:[%s17131_s2 + $0xc8] sm:$0xf] }
 0x118   :  { %v11681_v21 = vpop.f32.mrf.mxu0 }
 0x119   :  { %v11679_v20 = vpop.f32.mrf.mxu3  ;;  %17158 = vst [vmem:[#allocation26_spill] sm:$0xff] %v11681_v21  ;;  %v11686_v23 = vpop.f32.mrf.mxu1  ;;  %v7681_v21 = vor.u32 %v10101_v18, %v7680_v26  ;;  %v10100_v26 = vld [vmem:[%s17131_s2 + $0xec] sm:$0xf]  ;;  %v7690_v18 = vld [vmem:[%s17131_s2 + $0xf8] sm:$0xf0] }
 0x11a   :  { %17157 = vst [vmem:[#allocation25_spill] sm:$0xff] %v11679_v20  ;;  %v11697_v20 = vpop.f32.mrf.mxu2 }
 0x11b   :  { %17159 = vst [vmem:[#allocation27_spill] sm:$0xff] %v11686_v23  ;;  %v7688_v23 = vld [vmem:[%s17131_s2 + $0xe8] sm:$0xf]  ;;  %1098 = vmatpush.bf16.msra.mxu0 %v7681_v21 }
 0x11c   :  { %17160 = vst [vmem:[#allocation28_spill] sm:$0xff] %v11697_v20  ;;  %v7689_v13 = vor.u32 %v10102_v15, %v7688_v23  ;;  %v7693_v20 = vor.u32 %v10100_v26, %v7690_v18  ;;  %v10097_v15 = vld [vmem:[%s17131_s2 + $0xcc] sm:$0xf0]  ;;  %v10098_v23 = vld [vmem:[%s17131_s2 + $0xd4] sm:$0xf0]  ;;  %v303_v26 = vadd.f32 %v11556_v25, %v11709_v11 }
 0x11d   :  { %v7665_v21 = vor.u32 %v10097_v15, %v7664_v12  ;;  %v7673_v12 = vor.u32 %v10098_v23, %v7672_v14  ;;  %v10096_v15 = vld [vmem:[%s17131_s2 + $0xcc] sm:$0xf]  ;;  %v10091_v14 = vld [vmem:[%s17131_s2 + $0xa4] sm:$0xf] }
 0x11e   :  { %1126 = vmatpush.bf16.msra.mxu2 %v7689_v13  ;;  %1140 = vmatpush.bf16.msra.mxu3 %v7693_v20  ;;  %v7666_v13 = vld [vmem:[%s17131_s2 + $0xd0] sm:$0xf0]  ;;  %v7677_v25 = vor.u32 %v10096_v15, %v7674_v10  ;;  %v7656_v10 = vld [vmem:[%s17131_s2 + $0xa8] sm:$0xf]  ;;  %v7658_v15 = vld [vmem:[%s17131_s2 + $0xb8] sm:$0xf0] }
 0x11f   :  { %v7669_v20 = vor.u32 %v10095_v16, %v7666_v13  ;;  %1099 = vmatpush.bf16.msra.mxu0 %v7665_v21  ;;  %v7648_v16 = vld [vmem:[%s17131_s2 + $0xa0] sm:$0xf]  ;;  %v10093_v13 = vld [vmem:[%s17131_s2 + $0xac] sm:$0xf0] }
 0x120   :  { %v713_v24 = vpop.f32.mrf.mxu0 }
 0x121   :  { %v11739_v18 = vpop.f32.mrf.mxu3  ;;  %v760_v7 = vadd.f32 %v713_v24, %v254_v17  ;;  %v727_v8 = vpop.f32.mrf.mxu1  ;;  %1113 = vmatpush.bf16.msra.mxu1 %v7669_v20  ;;  %v7649_v17 = vor.u32 %v10093_v13, %v7648_v16  ;;  %v10094_v24 = vld [vmem:[%s17131_s2 + $0xb4] sm:$0xf0]  ;;  %v10089_v16 = vld [vmem:[%s17131_s2 + $0x8c] sm:$0xf0]  ;;  %v10087_v13 = vld [vmem:[%s17131_s2 + $0x84] sm:$0xf] }
 0x122   :  { %17161 = vst [vmem:[#allocation29_spill] sm:$0xff] %v11739_v18  ;;  %v761_v3 = vadd.f32 %v727_v8, %v303_v26  ;;  %1127 = vmatpush.bf16.msra.mxu2 %v7673_v12  ;;  %1141 = vmatpush.bf16.msra.mxu3 %v7677_v25  ;;  %v7650_v8 = vld [vmem:[%s17131_s2 + $0xb0] sm:$0xf0]  ;;  %v11771_v20 = vpop.f32.mrf.mxu2  ;;  %v7657_v12 = vor.u32 %v10094_v24, %v7656_v10  ;;  %v7632_v25 = vld [vmem:[%s17131_s2 + $0x80] sm:$0xf] }
 0x123   :  { %v7560_v23 = vmul.f32 -1.442695, %v760_v7  ;;  %v7653_v26 = vor.u32 %v10091_v14, %v7650_v8  ;;  %v10092_v7 = vld [vmem:[%s17131_s2 + $0xac] sm:$0xf]  ;;  %17162 = vst [vmem:[#allocation30_spill] sm:$0xff] %v11771_v20  ;;  %1100 = vmatpush.bf16.msra.mxu0 %v7649_v17  ;;  %v401_v14 = vadd.f32 %v11564_v28, %v11748_v9  ;;  %v7633_v17 = vor.u32 %v10089_v16, %v7632_v25 }
 0x124   :  { %v7562_v21 = vmul.f32 -1.442695, %v761_v3  ;;  %v7661_v3 = vor.u32 %v10092_v7, %v7658_v15  ;;  %v7634_v8 = vld [vmem:[%s17131_s2 + $0x90] sm:$0xf0]  ;;  %v7640_v10 = vld [vmem:[%s17131_s2 + $0x88] sm:$0xf]  ;;  %v305_v28 = vadd.f32 %v11568_v30, %v11709_v11 }
 0x125   :  { %10584 = vpow2.f32 %v7560_v23  ;;  %1114 = vmatpush.bf16.msra.mxu1 %v7653_v26  ;;  %v256_v23 = vadd.f32 %v11566_v29, %v11684_v22  ;;  %v7637_v29 = vor.u32 %v10087_v13, %v7634_v8  ;;  %v7642_v15 = vld [vmem:[%s17131_s2 + $0x98] sm:$0xf0]  ;;  %v7616_v30 = vld [vmem:[%s17131_s2 + $0x60] sm:$0xf]  ;;  %v10083_v13 = vld [vmem:[%s17131_s2 + $0x64] sm:$0xf] }
 0x126   :  { %10586 = vpow2.f32 %v7562_v21  ;;  %1128 = vmatpush.bf16.msra.mxu2 %v7657_v12  ;;  %v10090_v21 = vld [vmem:[%s17131_s2 + $0x94] sm:$0xf0]  ;;  %1142 = vmatpush.bf16.msra.mxu3 %v7661_v3  ;;  %v10088_v12 = vld [vmem:[%s17131_s2 + $0x8c] sm:$0xf]  ;;  %v10085_v3 = vld [vmem:[%s17131_s2 + $0x6c] sm:$0xf0] }
 0x127   :  { %v7641_v7 = vor.u32 %v10090_v21, %v7640_v10  ;;  %1101 = vmatpush.bf16.msra.mxu0 %v7633_v17  ;;  %v7645_v18 = vor.u32 %v10088_v12, %v7642_v15  ;;  %v11819_v10 = vperm.slane %v11677_v19, 2  ;;  %v10086_v19 = vld [vmem:[%s17131_s2 + $0x74] sm:$0xf0]  ;;  %v7626_v15 = vld [vmem:[%s17131_s2 + $0x78] sm:$0xf0] }
 0x128   :  { %v715_v24 = vpop.f32.mrf.mxu0 }
 0x129   :  { %v755_v26 = vpop.f32.mrf.mxu3  ;;  %v764_v16 = vadd.f32 %v715_v24, %v256_v23  ;;  %v729_v20 = vpop.f32.mrf.mxu1  ;;  %1115 = vmatpush.bf16.msra.mxu1 %v7637_v29  ;;  %v7617_v23 = vor.u32 %v10085_v3, %v7616_v30  ;;  %v10081_v30 = vld [vmem:[%s17131_s2 + $0x4c] sm:$0xf0]  ;;  %v10079_v3 = vld [vmem:[%s17131_s2 + $0x44] sm:$0xf] }
 0x12a   :  { %v763_v25 = vadd.f32 %v755_v26, %v401_v14  ;;  %v765_v6 = vadd.f32 %v729_v20, %v305_v28  ;;  %1129 = vmatpush.bf16.msra.mxu2 %v7641_v7  ;;  %v7618_v20 = vld [vmem:[%s17131_s2 + $0x70] sm:$0xf0]  ;;  %1143 = vmatpush.bf16.msra.mxu3 %v7645_v18  ;;  %v7624_v7 = vld [vmem:[%s17131_s2 + $0x68] sm:$0xf]  ;;  %v403_v18 = vadd.f32 %v11572_v32, %v11748_v9  ;;  %v741_v12 = vpop.f32.mrf.mxu2 }
 0x12b   :  { %v10585_v8 = vpop.eup %10584  ;;  %v7561_v28 = vmul.f32 -1.442695, %v764_v16  ;;  %v7621_v26 = vor.u32 %v10083_v13, %v7618_v20  ;;  %1102 = vmatpush.bf16.msra.mxu0 %v7617_v23  ;;  %v352_v16 = vadd.f32 %v11562_v27, %v11819_v10  ;;  %v7608_v27 = vld [vmem:[%s17131_s2 + $0x48] sm:$0xf]  ;;  %v7625_v23 = vor.u32 %v10086_v19, %v7624_v7  ;;  %v7584_v7 = vld [vmem:[%s17131_s2 + $0x20] sm:$0xf] }
 0x12c   :  { %v7564_v14 = vmul.f32 -1.442695, %v763_v25  ;;  %v10587_v17 = vpop.eup %10586  ;;  %v11821_v21 = vadd.f32 1.0, %v10585_v8  ;;  %v7563_v29 = vmul.f32 -1.442695, %v765_v6 }
 0x12d   :  { %v11823_v24 = vadd.f32 1.0, %v10587_v17  ;;  %1116 = vmatpush.bf16.msra.mxu1 %v7621_v26  ;;  %v10084_v6 = vld [vmem:[%s17131_s2 + $0x6c] sm:$0xf]  ;;  %v7600_v25 = vld [vmem:[%s17131_s2 + $0x40] sm:$0xf] }
 0x12e   :  { %10588 = vpow2.f32 %v7564_v14  ;;  %v7602_v8 = vld [vmem:[%s17131_s2 + $0x50] sm:$0xf0]  ;;  %v762_v14 = vadd.f32 %v741_v12, %v352_v16  ;;  %v7629_v20 = vor.u32 %v10084_v6, %v7626_v15  ;;  %v7601_v17 = vor.u32 %v10081_v30, %v7600_v25  ;;  %v10080_v26 = vld [vmem:[%s17131_s2 + $0x4c] sm:$0xf]  ;;  %v10077_v19 = vld [vmem:[%s17131_s2 + $0x2c] sm:$0xf0]  ;;  %1130 = vmatpush.bf16.msra.mxu2 %v7625_v23 }
 0x12f   :  { %10590 = vrcp.f32 %v11821_v21  ;;  %v7605_v5 = vor.u32 %v10079_v3, %v7602_v8  ;;  %v10075_v16 = vld [vmem:[%s17131_s2 + $0x24] sm:$0xf]  ;;  %v7586_v30 = vld [vmem:[%s17131_s2 + $0x30] sm:$0xf0]  ;;  %v7585_v8 = vor.u32 %v10077_v19, %v7584_v7  ;;  %v787_v7 = vand.u32 2147483648, %v11821_v21 }
 0x130   :  { %10592 = vrcp.f32 %v11823_v24  ;;  %1144 = vmatpush.bf16.msra.mxu3 %v7629_v20  ;;  %1103 = vmatpush.bf16.msra.mxu0 %v7601_v17  ;;  %v7589_v23 = vor.u32 %v10075_v16, %v7586_v30  ;;  %v10078_v20 = vld [vmem:[%s17131_s2 + $0x34] sm:$0xf0]  ;;  %v785_v17 = vand.u32 2147483647, %v11821_v21  ;;  %vm781_vm2 = vweird.f32 %v11821_v21 }
 0x131   :  { %10594 = vpow2.f32 %v7561_v28  ;;  %v757_v32 = vpop.f32.mrf.mxu3  ;;  %v10082_v28 = vld [vmem:[%s17131_s2 + $0x54] sm:$0xf0]  ;;  %1117 = vmatpush.bf16.msra.mxu1 %v7605_v5  ;;  %v7594_v5 = vld [vmem:[%s17131_s2 + $0x38] sm:$0xf0]  ;;  %vm819_vm3 = vweird.f32 %v11823_v24 }
 0x132   :  { %10596 = vpow2.f32 %v7563_v29  ;;  %v767_v13 = vadd.f32 %v757_v32, %v403_v18  ;;  %v7610_v29 = vld [vmem:[%s17131_s2 + $0x58] sm:$0xf0]  ;;  %v7609_v15 = vor.u32 %v10082_v28, %v7608_v27  ;;  %v7592_v27 = vld [vmem:[%s17131_s2 + $0x28] sm:$0xf]  ;;  %v10076_v28 = vld [vmem:[%s17131_s2 + $0x2c] sm:$0xf] }
 0x133   :  { %v7613_v25 = vor.u32 %v10080_v26, %v7610_v29  ;;  %v7593_v4 = vor.u32 %v10078_v20, %v7592_v27  ;;  %v7597_v2 = vor.u32 %v10076_v28, %v7594_v5  ;;  %v354_v27 = vadd.f32 %v11570_v31, %v11819_v10 }
 0x134   :  { %v10589_v18 = vpop.eup %10588  ;;  %v7565_v32 = vmul.f32 -1.442695, %v767_v13  ;;  %1131 = vmatpush.bf16.msra.mxu2 %v7609_v15  ;;  %1104 = vmatpush.bf16.msra.mxu0 %v7585_v8  ;;  %v743_v15 = vpop.f32.mrf.mxu2  ;;  %v788_v8 = vor.u32 1.1754944e-38, %v787_v7  ;;  %vm786_vm5 = vcmp.eq.f32.partialorder %v785_v17, 8.507059e+37 }
 0x135   :  { %v11873_v12 = vpop.eup %10590  ;;  %v11875_v6 = vadd.f32 1.0, %v10589_v18  ;;  %1145 = vmatpush.bf16.msra.mxu3 %v7613_v25  ;;  %1118 = vmatpush.bf16.msra.mxu1 %v7589_v23 }
 0x136   :  { %v10593_v3 = vpop.eup %10592  ;;  %v777_v13 = vmul.f32 %v11873_v12, %v11821_v21  ;;  %10598 = vpow2.f32 %v7565_v32  ;;  %vm782_vm0 = vweird.f32 %v11873_v12 }
 0x137   :  { %v10595_v26 = vpop.eup %10594  ;;  %v815_v29 = vmul.f32 %v10593_v3, %v11823_v24  ;;  %10600 = vtanh.f32 %v762_v14  ;;  %v825_v14 = vand.u32 2147483648, %v11823_v24  ;;  %vm820_vm1 = vweird.f32 %v10593_v3  ;;  %vm783_vm4 = vmor %vm781_vm2, %vm782_vm0 }
 0x138   :  { %v10597_v18 = vpop.eup %10596  ;;  %v778_v32 = vsub.f32 1.0, %v777_v13  ;;  %10602 = vrcp.f32 %v11875_v6  ;;  %v11901_v19 = vadd.f32 1.0, %v10595_v26  ;;  %v823_v26 = vand.u32 2147483647, %v11823_v24  ;;  %1132 = vmatpush.bf16.msra.mxu2 %v7593_v4  ;;  %vm821_vm6 = vmor %vm819_vm3, %vm820_vm1  ;;  %v10073_v4 = vld [vmem:[%s17131_s2 + $0xc] sm:$0xf0] }
 0x139   :  { %v816_v16 = vsub.f32 1.0, %v815_v29  ;;  %v11903_v30 = vadd.f32 1.0, %v10597_v18  ;;  %1146 = vmatpush.bf16.msra.mxu3 %v7597_v2  ;;  %v826_v18 = vor.u32 1.1754944e-38, %v825_v14  ;;  %v7568_v2 = vld [vmem:[%s17131_s2] sm:$0xf]  ;;  %vm859_vm2 = vweird.f32 %v11875_v6 }
 0x13a   :  { %v779_v1 = vmul.f32 %v11873_v12, %v778_v32  ;;  %10604 = vrcp.f32 %v11901_v19  ;;  %vm824_vm7 = vcmp.eq.f32.partialorder %v823_v26, 8.507059e+37  ;;  %vm796_vm10 = vweird.f32 %v11901_v19 }
 0x13b   :  { %v817_v13 = vmul.f32 %v10593_v3, %v816_v16  ;;  %10606 = vrcp.f32 %v11903_v30  ;;  %vm834_vm11 = vweird.f32 %v11903_v30 }
 0x13c   :  { %v10599_v25 = vpop.eup %10598  ;;  %v780_v20 = vadd.f32 %v11873_v12, %v779_v1  ;;  %v766_v1 = vadd.f32 %v743_v15, %v354_v27  ;;  %v7576_v15 = vld [vmem:[%s17131_s2 + $0x8] sm:$0xf] }
 0x13d   :  { %v10601_v28 = vpop.eup %10600  ;;  %v818_v23 = vadd.f32 %v10593_v3, %v817_v13  ;;  %v11918_v29 = vadd.f32 1.0, %v10599_v25  ;;  %v7570_v13 = vld [vmem:[%s17131_s2 + $0x10] sm:$0xf0]  ;;  %v10074_v25 = vld [vmem:[%s17131_s2 + $0x14] sm:$0xf0] }
 0x13e   :  { %v11920_v5 = vpop.eup %10602  ;;  %v784_v31 = vsel %vm783_vm4, %v11873_v12, %v780_v20 }
 0x13f   :  { %v789_v21 = vsel %vm786_vm5, %v788_v8, %v784_v31  ;;  %v822_v24 = vsel %vm821_vm6, %v10593_v3, %v818_v23  ;;  %10608 = vrcp.f32 %v11918_v29  ;;  %v10071_v3 = vld [vmem:[%s17131_s2 + $0x4] sm:$0xf]  ;;  %v855_v20 = vmul.f32 %v11920_v5, %v11875_v6  ;;  %v10072_v23 = vld [vmem:[%s17131_s2 + $0xc] sm:$0xf] }
 0x140   :  { %v10605_v32 = vpop.eup %10604  ;;  %v827_v16 = vsel %vm824_vm7, %v826_v18, %v822_v24  ;;  %v886_v7 = vmul.f32 %v10601_v28, %v789_v21  ;;  %10610 = vtanh.f32 %v766_v1  ;;  %v7569_v8 = vor.u32 %v10073_v4, %v7568_v2  ;;  %v7578_v18 = vld [vmem:[%s17131_s2 + $0x18] sm:$0xf0] }
 0x141   :  { %v10607_v12 = vpop.eup %10606  ;;  %v884_v17 = vmul.f32 0.0, %v827_v16  ;;  %v792_v14 = vmul.f32 %v10605_v32, %v11901_v19  ;;  %v840_v1 = vand.u32 2147483648, %v11903_v30  ;;  %v802_v21 = vand.u32 2147483648, %v11901_v19 }
 0x142   :  { %v830_v26 = vmul.f32 %v10607_v12, %v11903_v30  ;;  %v7573_v24 = vor.u32 %v10071_v3, %v7570_v13  ;;  %vm797_vm8 = vweird.f32 %v10605_v32  ;;  %1105 = vmatpush.bf16.msra.mxu0 %v7569_v8  ;;  %v7577_v2 = vor.u32 %v10074_v25, %v7576_v15 }
 0x143   :  { %v11945_v27 = vadd.f32 %v886_v7, %v884_v17  ;;  %v793_v28 = vsub.f32 1.0, %v792_v14  ;;  %v800_v7 = vand.u32 2147483647, %v11901_v19  ;;  %vm835_vm9 = vweird.f32 %v10607_v12  ;;  %vm798_vm12 = vmor %vm796_vm10, %vm797_vm8 }
 0x144   :  { %v831_v31 = vsub.f32 1.0, %v830_v26  ;;  %v838_v14 = vand.u32 2147483647, %v11903_v30  ;;  %1119 = vmatpush.bf16.msra.mxu1 %v7573_v24  ;;  %v7581_v63 = vor.u32 %v10072_v23, %v7578_v18  ;;  %v856_v0 = vsub.f32 1.0, %v855_v20  ;;  %1133 = vmatpush.bf16.msra.mxu2 %v7577_v2  ;;  %vm836_vm14 = vmor %vm834_vm11, %vm835_vm9 }
 0x145   :  { %v794_v16 = vmul.f32 %v10605_v32, %v793_v28  ;;  %v10609_v4 = vpop.eup %10608  ;;  %v803_v13 = vor.u32 1.1754944e-38, %v802_v21  ;;  %v841_v25 = vor.u32 1.1754944e-38, %v840_v1  ;;  %vm801_vm13 = vcmp.eq.f32.partialorder %v800_v7, 8.507059e+37 }
 0x146   :  { %v832_v17 = vmul.f32 %v10607_v12, %v831_v31  ;;  %v870_v59 = vmul.f32 %v10609_v4, %v11918_v29  ;;  %v10611_v3 = vpop.eup %10610  ;;  %1147 = vmatpush.bf16.msra.mxu3 %v7581_v63  ;;  %vm839_vm15 = vcmp.eq.f32.partialorder %v838_v14, 8.507059e+37  ;;  %v857_v19 = vmul.f32 %v11920_v5, %v856_v0 }
 0x147   :  { %v795_v26 = vadd.f32 %v10605_v32, %v794_v16  ;;  %10612 = vtanh.f32 %v11945_v27  ;;  %vm860_vm0 = vweird.f32 %v11920_v5  ;;  %vm875_vm1 = vweird.f32 %v10609_v4 }
 0x148   :  { %v833_v15 = vadd.f32 %v10607_v12, %v832_v17  ;;  %v871_v20 = vsub.f32 1.0, %v870_v59  ;;  %v865_v59 = vand.u32 2147483648, %v11875_v6  ;;  %v880_v0 = vand.u32 2147483648, %v11918_v29  ;;  %vm861_vm3 = vmor %vm859_vm2, %vm860_vm0 }
 0x149   :  { %v799_v28 = vsel %vm798_vm12, %v10605_v32, %v795_v26  ;;  %v858_v32 = vadd.f32 %v11920_v5, %v857_v19  ;;  %vm874_vm4 = vweird.f32 %v11918_v29  ;;  %v878_v21 = vand.u32 2147483647, %v11918_v29  ;;  %v10133_v29 = vld [vmem:[%s17131_s2 + $0xec] sm:$0xf0]  ;;  %v7822_v19 = vld [vmem:[%s17131_s2 + $0xe8] sm:$0xf] }
 0x14a   :  { %v804_v8 = vsel %vm801_vm13, %v803_v13, %v799_v28  ;;  %v837_v23 = vsel %vm836_vm14, %v10607_v12, %v833_v15  ;;  %v872_v24 = vmul.f32 %v10609_v4, %v871_v20  ;;  %v863_v12 = vand.u32 2147483647, %v11875_v6  ;;  %vm876_vm5 = vmor %vm874_vm4, %vm875_vm1  ;;  %v7814_v6 = vld [vmem:[%s17131_s2 + $0xe0] sm:$0xf] }
 0x14b   :  { %v842_v18 = vsel %vm839_vm15, %v841_v25, %v837_v23  ;;  %v887_v31 = vmul.f32 %v10611_v3, %v804_v8  ;;  %v862_v16 = vsel %vm861_vm3, %v11920_v5, %v858_v32  ;;  %v866_v17 = vor.u32 1.1754944e-38, %v865_v59  ;;  %v10131_v5 = vld [vmem:[%s17131_s2 + $0xe4] sm:$0xf]  ;;  %v7816_v23 = vld [vmem:[%s17131_s2 + $0xf0] sm:$0xf0] }
 0x14c   :  { %v885_v30 = vmul.f32 0.0, %v842_v18  ;;  %v873_v1 = vadd.f32 %v10609_v4, %v872_v24  ;;  %v881_v14 = vor.u32 1.1754944e-38, %v880_v0  ;;  %vm864_vm6 = vcmp.eq.f32.partialorder %v863_v12, 8.507059e+37  ;;  %v10134_v18 = vld [vmem:[%s17131_s2 + $0xf4] sm:$0xf0] }
 0x14d   :  { %v10613_v2 = vpop.eup %10612  ;;  %vm879_vm7 = vcmp.eq.f32.partialorder %v878_v21, 8.507059e+37  ;;  %v867_v3 = vsel %vm864_vm6, %v866_v17, %v862_v16  ;;  %v308_v20 = vadd.f32 %v11576_v34, %v11709_v11  ;;  %v7815_v8 = vor.u32 %v10133_v29, %v7814_v6  ;;  %v10132_v34 = vld [vmem:[%s17131_s2 + $0xec] sm:$0xf]  ;;  %v7824_v32 = vld [vmem:[%s17131_s2 + $0xf8] sm:$0xf0] }
 0x14e   :  { %v11967_v63 = vadd.f32 %v887_v31, %v885_v30  ;;  %v877_v7 = vsel %vm876_vm5, %v10609_v4, %v873_v1  ;;  %v892_v15 = vmul.f32 %v10613_v2, %v867_v3  ;;  %v259_v4 = vadd.f32 %v11574_v33, %v11684_v22  ;;  %v7798_v12 = vld [vmem:[%s17131_s2 + $0xc0] sm:$0xf]  ;;  %v10129_v21 = vld [vmem:[%s17131_s2 + $0xcc] sm:$0xf0]  ;;  %v10127_v16 = vld [vmem:[%s17131_s2 + $0xc4] sm:$0xf] }
 0x14f   :  { %v882_v13 = vsel %vm879_vm7, %v881_v14, %v877_v7  ;;  %v7819_v30 = vor.u32 %v10131_v5, %v7816_v23  ;;  %v7823_v33 = vor.u32 %v10134_v18, %v7822_v19  ;;  %1493 = vmatpush.bf16.msrb.mxu0 %v7815_v8  ;;  %v7827_v0 = vor.u32 %v10132_v34, %v7824_v32  ;;  %v7800_v14 = vld [vmem:[%s17131_s2 + $0xd0] sm:$0xf0]  ;;  %v7806_v3 = vld [vmem:[%s17131_s2 + $0xc8] sm:$0xf]  ;;  %v7808_v6 = vld [vmem:[%s17131_s2 + $0xd8] sm:$0xf0] }
 0x150   :  { %10614 = vtanh.f32 %v11967_v63  ;;  %v7799_v17 = vor.u32 %v10129_v21, %v7798_v12  ;;  %v406_v29 = vadd.f32 %v11580_v36, %v11748_v9  ;;  %v10123_v8 = vld [vmem:[%s17131_s2 + $0xa4] sm:$0xf]  ;;  %v261_v23 = vadd.f32 %v11582_v37, %v11684_v22 }
 0x151   :  { %1507 = vmatpush.bf16.msrb.mxu1 %v7819_v30  ;;  %1521 = vmatpush.bf16.msrb.mxu2 %v7823_v33  ;;  %v310_v36 = vadd.f32 %v11584_v38, %v11709_v11  ;;  %v10126_v30 = vld [vmem:[%s17131_s2 + $0xb4] sm:$0xf0] }
 0x152   :  { %1535 = vmatpush.bf16.msrb.mxu3 %v7827_v0 }
 0x153   :  { %1494 = vmatpush.bf16.msrb.mxu0 %v7799_v17 }
 0x156   :  { %v10615_v26 = vpop.eup %10614 }
 0x157   :  { %v893_v25 = vmul.f32 %v10615_v26, %v882_v13  ;;  %v7803_v26 = vor.u32 %v10127_v16, %v7800_v14  ;;  %v10130_v13 = vld [vmem:[%s17131_s2 + $0xd4] sm:$0xf0] }
 0x159   :  { %v11978_v28 = vpack.c.bf16 %v893_v25, %v892_v15  ;;  %v10128_v15 = vld [vmem:[%s17131_s2 + $0xcc] sm:$0xf]  ;;  %v7807_v25 = vor.u32 %v10130_v13, %v7806_v3  ;;  %1508 = vmatpush.bf16.msrb.mxu1 %v7803_v26  ;;  %v10119_v3 = vld [vmem:[%s17131_s2 + $0x84] sm:$0xf] }
 0x15a   :  { %v7811_v5 = vor.u32 %v10128_v15, %v7808_v6  ;;  %v7768_v6 = vld [vmem:[%s17131_s2 + $0x90] sm:$0xf0] }
 0x15b   :  { %1106 = vmatmul.bf16.vlgmr.msra.gmra.mxu0 %v11978_v28  ;;  %1120 = vmatmul.bf16.vlgmr.msra.gmra.mxu1 %v11978_v28 }
 0x15c   :  { %1134 = vmatmul.bf16.vlgmr.msra.gmra.mxu2 %v11978_v28  ;;  %1148 = vmatmul.bf16.vlgmr.msra.gmra.mxu3 %v11978_v28 }
 0x15d   :  { %1522 = vmatpush.bf16.msrb.mxu2 %v7807_v25  ;;  %1536 = vmatpush.bf16.msrb.mxu3 %v7811_v5 }
 0x1d8   :  { %v1107_v31 = vpop.f32.mrf.mxu0  ;;  %v1121_v24 = vpop.f32.mrf.mxu1 }
 0x1d9   :  { %v1154_v1 = vadd.f32 %v1107_v31, %v259_v4  ;;  %v1155_v59 = vadd.f32 %v1121_v24, %v308_v20  ;;  %v7782_v4 = vld [vmem:[%s17131_s2 + $0xa0] sm:$0xf]  ;;  %v10125_v20 = vld [vmem:[%s17131_s2 + $0xac] sm:$0xf0]  ;;  %v7784_v31 = vld [vmem:[%s17131_s2 + $0xb0] sm:$0xf0] }
 0x1da   :  { %v7783_v18 = vor.u32 %v10125_v20, %v7782_v4  ;;  %v7790_v24 = vld [vmem:[%s17131_s2 + $0xa8] sm:$0xf]  ;;  %v7787_v38 = vor.u32 %v10123_v8, %v7784_v31  ;;  %v7771_v4 = vor.u32 %v10119_v3, %v7768_v6  ;;  %v10122_v8 = vld [vmem:[%s17131_s2 + $0x94] sm:$0xf0]  ;;  %v359_v6 = vadd.f32 %v11586_v39, %v11819_v10 }
 0x1db   :  { %v7694_v7 = vmul.f32 -1.442695, %v1154_v1  ;;  %v7696_v2 = vmul.f32 -1.442695, %v1155_v59  ;;  %v7791_v32 = vor.u32 %v10126_v30, %v7790_v24  ;;  %v10124_v1 = vld [vmem:[%s17131_s2 + $0xac] sm:$0xf] }
 0x1dc   :  { %v7792_v59 = vld [vmem:[%s17131_s2 + $0xb8] sm:$0xf0]  ;;  %1495 = vmatpush.bf16.msrb.mxu0 %v7783_v18  ;;  %1509 = vmatpush.bf16.msrb.mxu1 %v7787_v38  ;;  %v7774_v20 = vld [vmem:[%s17131_s2 + $0x88] sm:$0xf]  ;;  %v357_v18 = vadd.f32 %v11578_v35, %v11819_v10  ;;  %v10117_v24 = vld [vmem:[%s17131_s2 + $0x6c] sm:$0xf0] }
 0x1dd   :  { %10616 = vpow2.f32 %v7694_v7  ;;  %v7795_v21 = vor.u32 %v10124_v1, %v7792_v59  ;;  %v7766_v7 = vld [vmem:[%s17131_s2 + $0x80] sm:$0xf]  ;;  %1523 = vmatpush.bf16.msrb.mxu2 %v7791_v32  ;;  %v10115_v30 = vld [vmem:[%s17131_s2 + $0x64] sm:$0xf]  ;;  %v7758_v35 = vld [vmem:[%s17131_s2 + $0x68] sm:$0xf] }
 0x1de   :  { %10618 = vpow2.f32 %v7696_v2  ;;  %v10121_v2 = vld [vmem:[%s17131_s2 + $0x8c] sm:$0xf0] }
 0x1df   :  { %v1149_v19 = vpop.f32.mrf.mxu3  ;;  %v7767_v26 = vor.u32 %v10121_v2, %v7766_v7  ;;  %1537 = vmatpush.bf16.msrb.mxu3 %v7795_v21  ;;  %v1135_v5 = vpop.f32.mrf.mxu2  ;;  %v7760_v21 = vld [vmem:[%s17131_s2 + $0x78] sm:$0xf0] }
 0x1e0   :  { %v1157_v33 = vadd.f32 %v1149_v19, %v406_v29  ;;  %v1109_v37 = vpop.f32.mrf.mxu0  ;;  %v1123_v34 = vpop.f32.mrf.mxu1  ;;  %1510 = vmatpush.bf16.msrb.mxu1 %v7771_v4  ;;  %v7750_v19 = vld [vmem:[%s17131_s2 + $0x60] sm:$0xf]  ;;  %v1156_v32 = vadd.f32 %v1135_v5, %v357_v18 }
 0x1e1   :  { %v1158_v0 = vadd.f32 %v1109_v37, %v261_v23  ;;  %v1159_v12 = vadd.f32 %v1123_v34, %v310_v36  ;;  %1496 = vmatpush.bf16.msrb.mxu0 %v7767_v26  ;;  %v10120_v23 = vld [vmem:[%s17131_s2 + $0x8c] sm:$0xf]  ;;  %v7776_v36 = vld [vmem:[%s17131_s2 + $0x98] sm:$0xf0]  ;;  %v7775_v37 = vor.u32 %v10122_v8, %v7774_v20  ;;  %v7752_v34 = vld [vmem:[%s17131_s2 + $0x70] sm:$0xf0]  ;;  %v7751_v59 = vor.u32 %v10117_v24, %v7750_v19 }
 0x1e2   :  { %v7698_v16 = vmul.f32 -1.442695, %v1157_v33  ;;  %v408_v33 = vadd.f32 %v11588_v40, %v11748_v9  ;;  %v7779_v1 = vor.u32 %v10120_v23, %v7776_v36  ;;  %v10116_v40 = vld [vmem:[%s17131_s2 + $0x6c] sm:$0xf] }
 0x1e3   :  { %v10617_v17 = vpop.eup %10616  ;;  %v7695_v14 = vmul.f32 -1.442695, %v1158_v0  ;;  %v7697_v25 = vmul.f32 -1.442695, %v1159_v12  ;;  %v7755_v0 = vor.u32 %v10115_v30, %v7752_v34  ;;  %v10118_v12 = vld [vmem:[%s17131_s2 + $0x74] sm:$0xf0]  ;;  %1524 = vmatpush.bf16.msrb.mxu2 %v7775_v37 }
 0x1e4   :  { %v10619_v13 = vpop.eup %10618  ;;  %v12075_v15 = vadd.f32 1.0, %v10617_v17  ;;  %10620 = vpow2.f32 %v7698_v16  ;;  %v7759_v2 = vor.u32 %v10118_v12, %v7758_v35  ;;  %1538 = vmatpush.bf16.msrb.mxu3 %v7779_v1  ;;  %v10113_v37 = vld [vmem:[%s17131_s2 + $0x4c] sm:$0xf0]  ;;  %v10114_v12 = vld [vmem:[%s17131_s2 + $0x54] sm:$0xf0] }
 0x1e5   :  { %v12080_v29 = vadd.f32 1.0, %v10619_v13  ;;  %10622 = vpow2.f32 %v7695_v14  ;;  %1497 = vmatpush.bf16.msrb.mxu0 %v7751_v59  ;;  %v7763_v13 = vor.u32 %v10116_v40, %v7760_v21  ;;  %1511 = vmatpush.bf16.msrb.mxu1 %v7755_v0  ;;  %v7736_v59 = vld [vmem:[%s17131_s2 + $0x50] sm:$0xf0]  ;;  %v7742_v0 = vld [vmem:[%s17131_s2 + $0x48] sm:$0xf] }
 0x1e6   :  { %10624 = vrcp.f32 %v12075_v15  ;;  %v1179_v14 = vand.u32 2147483647, %v12075_v15  ;;  %v1181_v4 = vand.u32 2147483648, %v12075_v15  ;;  %vm1175_vm12 = vweird.f32 %v12075_v15  ;;  %v10108_v30 = vld [vmem:[%s17131_s2 + $0x2c] sm:$0xf] }
 0x1e7   :  { %10626 = vrcp.f32 %v12080_v29  ;;  %v1151_v31 = vpop.f32.mrf.mxu3  ;;  %v1219_v23 = vand.u32 2147483648, %v12080_v29  ;;  %v1217_v36 = vand.u32 2147483647, %v12080_v29  ;;  %v1137_v39 = vpop.f32.mrf.mxu2  ;;  %1525 = vmatpush.bf16.msrb.mxu2 %v7759_v2  ;;  %vm1213_vm11 = vweird.f32 %v12080_v29 }
 0x1e8   :  { %10628 = vpow2.f32 %v7697_v25  ;;  %v1161_v7 = vadd.f32 %v1151_v31, %v408_v33  ;;  %vm12146_vm9 = vcmp.eq.f32.partialorder %v1179_v14, 8.507059e+37  ;;  %1539 = vmatpush.bf16.msrb.mxu3 %v7763_v13  ;;  %v7734_v33 = vld [vmem:[%s17131_s2 + $0x40] sm:$0xf]  ;;  %v1182_v35 = vor.u32 1.1754944e-38, %v1181_v4 }
 0x1e9   :  { %10630 = vtanh.f32 %v1156_v32  ;;  %v1160_v1 = vadd.f32 %v1137_v39, %v359_v6  ;;  %v1220_v40 = vor.u32 1.1754944e-38, %v1219_v23  ;;  %vm12195_vm15 = vcmp.eq.f32.partialorder %v1217_v36, 8.507059e+37  ;;  %v10109_v39 = vld [vmem:[%s17131_s2 + $0x2c] sm:$0xf0] }
 0x1ea   :  { %v10621_v38 = vpop.eup %10620  ;;  %v7699_v31 = vmul.f32 -1.442695, %v1161_v7  ;;  %v7744_v7 = vld [vmem:[%s17131_s2 + $0x58] sm:$0xf0]  ;;  %v7743_v36 = vor.u32 %v10114_v12, %v7742_v0  ;;  %v7702_v12 = vld [vmem:[%s17131_s2] sm:$0xf] }
 0x1eb   :  { %v10623_v16 = vpop.eup %10622  ;;  %v12127_v26 = vadd.f32 1.0, %v10621_v38  ;;  %v10111_v38 = vld [vmem:[%s17131_s2 + $0x44] sm:$0xf]  ;;  %v7728_v0 = vld [vmem:[%s17131_s2 + $0x38] sm:$0xf0] }
 0x1ec   :  { %v12124_v17 = vpop.eup %10624  ;;  %v12129_v3 = vadd.f32 1.0, %v10623_v16  ;;  %v10112_v16 = vld [vmem:[%s17131_s2 + $0x4c] sm:$0xf]  ;;  %1526 = vmatpush.bf16.msrb.mxu2 %v7743_v36 }
 0x1ed   :  { %v12131_v25 = vpop.eup %10626  ;;  %v1171_v5 = vmul.f32 %v12124_v17, %v12075_v15  ;;  %vm1176_vm8 = vweird.f32 %v12124_v17 }
 0x1ee   :  { %v10629_v20 = vpop.eup %10628  ;;  %v1209_v8 = vmul.f32 %v12131_v25, %v12080_v29  ;;  %10632 = vrcp.f32 %v12129_v3  ;;  %vm1214_vm10 = vweird.f32 %v12131_v25  ;;  %vm12178_vm13 = vmor %vm1175_vm12, %vm1176_vm8  ;;  %v7735_v29 = vor.u32 %v10113_v37, %v7734_v33 }
 0x1ef   :  { %v1172_v19 = vsub.f32 1.0, %v1171_v5  ;;  %v12143_v18 = vadd.f32 1.0, %v10629_v20  ;;  %10634 = vrcp.f32 %v12127_v26  ;;  %v10631_v2 = vpop.eup %10630  ;;  %vm12190_vm14 = vmor %vm1213_vm11, %vm1214_vm10  ;;  %v1194_v4 = vand.u32 2147483647, %v12129_v3  ;;  %v7718_v20 = vld [vmem:[%s17131_s2 + $0x20] sm:$0xf] }
 0x1f0   :  { %v1210_v24 = vsub.f32 1.0, %v1209_v8  ;;  %1498 = vmatpush.bf16.msrb.mxu0 %v7735_v29  ;;  %vm1190_vm0 = vweird.f32 %v12129_v3 }
 0x1f1   :  { %v1173_v34 = vmul.f32 %v12124_v17, %v1172_v19  ;;  %10636 = vrcp.f32 %v12143_v18  ;;  %v7739_v19 = vor.u32 %v10111_v38, %v7736_v59  ;;  %v7726_v38 = vld [vmem:[%s17131_s2 + $0x28] sm:$0xf]  ;;  %vm1228_vm3 = vweird.f32 %v12143_v18 }
 0x1f2   :  { %v1211_v32 = vmul.f32 %v12131_v25, %v1210_v24  ;;  %10638 = vpow2.f32 %v7699_v31  ;;  %v10107_v31 = vld [vmem:[%s17131_s2 + $0x24] sm:$0xf]  ;;  %v7720_v24 = vld [vmem:[%s17131_s2 + $0x30] sm:$0xf0]  ;;  %vm1195_vm5 = vcmp.eq.f32.partialorder %v1194_v4, 8.507059e+37 }
 0x1f3   :  { %v1174_v21 = vadd.f32 %v12124_v17, %v1173_v34  ;;  %10640 = vtanh.f32 %v1160_v1  ;;  %1512 = vmatpush.bf16.msrb.mxu1 %v7739_v19  ;;  %v7747_v1 = vor.u32 %v10112_v16, %v7744_v7  ;;  %v1196_v16 = vand.u32 2147483648, %v12129_v3  ;;  %v10103_v7 = vld [vmem:[%s17131_s2 + $0x4] sm:$0xf] }
 0x1f4   :  { %v1212_v13 = vadd.f32 %v12131_v25, %v1211_v32  ;;  %v12204_v8 = vpop.eup %10632  ;;  %v10110_v32 = vld [vmem:[%s17131_s2 + $0x34] sm:$0xf0]  ;;  %v7723_v6 = vor.u32 %v10107_v31, %v7720_v24 }
 0x1f5   :  { %v1178_v23 = vsel %vm12178_vm13, %v12124_v17, %v1174_v21  ;;  %v12218_v33 = vpop.eup %10634  ;;  %v1186_v34 = vmul.f32 %v12204_v8, %v12129_v3  ;;  %v10105_v21 = vld [vmem:[%s17131_s2 + $0xc] sm:$0xf0]  ;;  %1540 = vmatpush.bf16.msrb.mxu3 %v7747_v1  ;;  %vm1191_vm1 = vweird.f32 %v12204_v8  ;;  %v1197_v1 = vor.u32 1.1754944e-38, %v1196_v16 }
 0x1f6   :  { %v1183_v17 = vsel %vm12146_vm9, %v1182_v35, %v1178_v23  ;;  %v1216_v37 = vsel %vm12190_vm14, %v12131_v25, %v1212_v13  ;;  %v1249_v13 = vmul.f32 %v12218_v33, %v12127_v26  ;;  %v7727_v23 = vor.u32 %v10110_v32, %v7726_v38  ;;  %vm1192_vm4 = vmor %vm1190_vm0, %vm1191_vm1 }
 0x1f7   :  { %v12236_v35 = vpop.eup %10636  ;;  %v1221_v25 = vsel %vm12195_vm15, %v1220_v40, %v1216_v37  ;;  %v1280_v59 = vmul.f32 %v10631_v2, %v1183_v17  ;;  %v1187_v15 = vsub.f32 1.0, %v1186_v34  ;;  %v7704_v2 = vld [vmem:[%s17131_s2 + $0x10] sm:$0xf0]  ;;  %1513 = vmatpush.bf16.msrb.mxu1 %v7723_v6  ;;  %v7731_v34 = vor.u32 %v10108_v30, %v7728_v0  ;;  %v10104_v30 = vld [vmem:[%s17131_s2 + $0xc] sm:$0xf] }
 0x1f8   :  { %v1278_v40 = vmul.f32 %v1221_v25, %v11945_v27  ;;  %v1224_v29 = vmul.f32 %v12236_v35, %v12143_v18  ;;  %v10639_v14 = vpop.eup %10638  ;;  %v7719_v27 = vor.u32 %v10109_v39, %v7718_v20  ;;  %v7703_v25 = vor.u32 %v10105_v21, %v7702_v12  ;;  %v7710_v20 = vld [vmem:[%s17131_s2 + $0x8] sm:$0xf]  ;;  %v10106_v39 = vld [vmem:[%s17131_s2 + $0x14] sm:$0xf0]  ;;  %1527 = vmatpush.bf16.msrb.mxu2 %v7727_v23 }
 0x1f9   :  { %v1188_v17 = vmul.f32 %v12204_v8, %v1187_v15  ;;  %v12266_v37 = vadd.f32 1.0, %v10639_v14  ;;  %v7707_v5 = vor.u32 %v10103_v7, %v7704_v2  ;;  %v10641_v31 = vpop.eup %10640  ;;  %vm1229_vm2 = vweird.f32 %v12236_v35  ;;  %1541 = vmatpush.bf16.msrb.mxu3 %v7731_v34 }
 0x1fa   :  { %v12262_v19 = vadd.f32 %v1280_v59, %v1278_v40  ;;  %v1225_v36 = vsub.f32 1.0, %v1224_v29  ;;  %1499 = vmatpush.bf16.msrb.mxu0 %v7719_v27  ;;  %v1232_v32 = vand.u32 2147483647, %v12143_v18  ;;  %v7712_v59 = vld [vmem:[%s17131_s2 + $0x18] sm:$0xf0]  ;;  %v1250_v0 = vsub.f32 1.0, %v1249_v13  ;;  %vm1230_vm6 = vmor %vm1228_vm3, %vm1229_vm2 }
 0x1fb   :  { %v1189_v38 = vadd.f32 %v12204_v8, %v1188_v17  ;;  %10642 = vrcp.f32 %v12266_v37  ;;  %v7711_v40 = vor.u32 %v10106_v39, %v7710_v20  ;;  %v17171_v15 = vand.u32 2147483648, %v12143_v18  ;;  %1514 = vmatpush.bf16.msrb.mxu1 %v7707_v5 }
 0x1fc   :  { %v1226_v24 = vmul.f32 %v12236_v35, %v1225_v36  ;;  %v7715_v3 = vor.u32 %v10104_v30, %v7712_v59  ;;  %vm1233_vm7 = vcmp.eq.f32.partialorder %v1232_v32, 8.507059e+37  ;;  %10644 = vtanh.f32 %v12262_v19 }
 0x1fd   :  { %v1193_v12 = vsel %vm1192_vm4, %v12204_v8, %v1189_v38  ;;  %v1235_v29 = vor.u32 1.1754944e-38, %v17171_v15  ;;  %1528 = vmatpush.bf16.msrb.mxu2 %v7711_v40  ;;  %v1251_v8 = vmul.f32 %v12218_v33, %v1250_v0  ;;  %vm1254_vm8 = vweird.f32 %v12218_v33  ;;  %v10163_v0 = vld [vmem:[%s17131_s2 + $0xe4] sm:$0xf]  ;;  %v7950_v15 = vld [vmem:[%s17131_s2 + $0xf0] sm:$0xf0] }
 0x1fe   :  { %v1227_v21 = vadd.f32 %v12236_v35, %v1226_v24  ;;  %v1198_v7 = vsel %vm1195_vm5, %v1197_v1, %v1193_v12  ;;  %1500 = vmatpush.bf16.msrb.mxu0 %v7703_v25  ;;  %1542 = vmatpush.bf16.msrb.mxu3 %v7715_v3  ;;  %vm1253_vm9 = vweird.f32 %v12127_v26  ;;  %v1259_v6 = vand.u32 2147483648, %v12127_v26 }
 0x1ff   :  { %v1281_v16 = vmul.f32 %v10641_v31, %v1198_v7  ;;  %v1252_v5 = vadd.f32 %v12218_v33, %v1251_v8  ;;  %v1257_v23 = vand.u32 2147483647, %v12127_v26  ;;  %v1272_v17 = vand.u32 2147483647, %v12266_v37  ;;  %vm1255_vm11 = vmor %vm1253_vm9, %vm1254_vm8  ;;  %v10166_v7 = vld [vmem:[%s17131_s2 + $0xf4] sm:$0xf0] }
 0x200   :  { %v1231_v4 = vsel %vm1230_vm6, %v12236_v35, %v1227_v21  ;;  %vm1268_vm12 = vweird.f32 %v12266_v37  ;;  %v1260_v39 = vor.u32 1.1754944e-38, %v1259_v6  ;;  %v264_v12 = vadd.f32 %v11590_v41, %v11684_v22 }
 0x201   :  { %v1236_v2 = vsel %vm1233_vm7, %v1235_v29, %v1231_v4  ;;  %v10643_v13 = vpop.eup %10642  ;;  %v1256_v34 = vsel %vm1255_vm11, %v12218_v33, %v1252_v5  ;;  %vm1258_vm14 = vcmp.eq.f32.partialorder %v1257_v23, 8.507059e+37  ;;  %vm1273_vm15 = vcmp.eq.f32.partialorder %v1272_v17, 8.507059e+37  ;;  %v7948_v33 = vld [vmem:[%s17131_s2 + $0xe0] sm:$0xf]  ;;  %v7956_v29 = vld [vmem:[%s17131_s2 + $0xe8] sm:$0xf] }
 0x202   :  { %v1279_v14 = vmul.f32 %v1236_v2, %v11967_v63  ;;  %v1264_v18 = vmul.f32 %v10643_v13, %v12266_v37  ;;  %v1274_v63 = vand.u32 2147483648, %v12266_v37  ;;  %vm1269_vm10 = vweird.f32 %v10643_v13  ;;  %v10645_v20 = vpop.eup %10644  ;;  %v10165_v37 = vld [vmem:[%s17131_s2 + $0xec] sm:$0xf0]  ;;  %v7958_v2 = vld [vmem:[%s17131_s2 + $0xf8] sm:$0xf0] }
 0x203   :  { %vm1270_vm13 = vmor %vm1268_vm12, %vm1269_vm10  ;;  %v1261_v32 = vsel %vm1258_vm14, %v1260_v39, %v1256_v34  ;;  %v313_v21 = vadd.f32 %v11592_v42, %v11709_v11  ;;  %v7949_v40 = vor.u32 %v10165_v37, %v7948_v33  ;;  %v7957_v41 = vor.u32 %v10166_v7, %v7956_v29  ;;  %v10164_v42 = vld [vmem:[%s17131_s2 + $0xec] sm:$0xf]  ;;  %v10161_v5 = vld [vmem:[%s17131_s2 + $0xcc] sm:$0xf0] }
 0x204   :  { %v12299_v27 = vadd.f32 %v1281_v16, %v1279_v14  ;;  %v1265_v35 = vsub.f32 1.0, %v1264_v18  ;;  %v1275_v31 = vor.u32 1.1754944e-38, %v1274_v63  ;;  %v1286_v30 = vmul.f32 %v10645_v20, %v1261_v32  ;;  %v7932_v18 = vld [vmem:[%s17131_s2 + $0xc0] sm:$0xf]  ;;  %v7940_v34 = vld [vmem:[%s17131_s2 + $0xc8] sm:$0xf] }
 0x205   :  { %v7953_v16 = vor.u32 %v10163_v0, %v7950_v15  ;;  %1888 = vmatpush.bf16.msra.mxu0 %v7949_v40  ;;  %1916 = vmatpush.bf16.msra.mxu2 %v7957_v41  ;;  %v7933_v23 = vor.u32 %v10161_v5, %v7932_v18  ;;  %v10160_v20 = vld [vmem:[%s17131_s2 + $0xcc] sm:$0xf]  ;;  %v7916_v32 = vld [vmem:[%s17131_s2 + $0xa0] sm:$0xf]  ;;  %v7918_v0 = vld [vmem:[%s17131_s2 + $0xb0] sm:$0xf0] }
 0x206   :  { %10646 = vtanh.f32 %v12299_v27  ;;  %v1266_v36 = vmul.f32 %v10643_v13, %v1265_v35  ;;  %v10159_v35 = vld [vmem:[%s17131_s2 + $0xc4] sm:$0xf]  ;;  %v10156_v7 = vld [vmem:[%s17131_s2 + $0xac] sm:$0xf] }
 0x207   :  { %1902 = vmatpush.bf16.msra.mxu1 %v7953_v16  ;;  %v10151_v5 = vld [vmem:[%s17131_s2 + $0x84] sm:$0xf] }
 0x208   :  { %v1267_v25 = vadd.f32 %v10643_v13, %v1266_v36  ;;  %v7934_v36 = vld [vmem:[%s17131_s2 + $0xd0] sm:$0xf0] }
 0x209   :  { %v7937_v17 = vor.u32 %v10159_v35, %v7934_v36  ;;  %1889 = vmatpush.bf16.msra.mxu0 %v7933_v23  ;;  %v7902_v23 = vld [vmem:[%s17131_s2 + $0x90] sm:$0xf0] }
 0x20a   :  { %v1271_v38 = vsel %vm1270_vm13, %v10643_v13, %v1267_v25  ;;  %v7961_v13 = vor.u32 %v10164_v42, %v7958_v2  ;;  %v10162_v25 = vld [vmem:[%s17131_s2 + $0xd4] sm:$0xf0]  ;;  %v7900_v2 = vld [vmem:[%s17131_s2 + $0x80] sm:$0xf] }
 0x20b   :  { %v1276_v26 = vsel %vm1273_vm15, %v1275_v31, %v1271_v38  ;;  %v7941_v39 = vor.u32 %v10162_v25, %v7940_v34  ;;  %v7942_v31 = vld [vmem:[%s17131_s2 + $0xd8] sm:$0xf0]  ;;  %1903 = vmatpush.bf16.msra.mxu1 %v7937_v17  ;;  %v7905_v34 = vor.u32 %v10151_v5, %v7902_v23  ;;  %v7908_v25 = vld [vmem:[%s17131_s2 + $0x88] sm:$0xf] }
 0x20c   :  { %v10647_v24 = vpop.eup %10646  ;;  %1930 = vmatpush.bf16.msra.mxu3 %v7961_v13  ;;  %v7945_v38 = vor.u32 %v10160_v20, %v7942_v31  ;;  %v10154_v20 = vld [vmem:[%s17131_s2 + $0x94] sm:$0xf0]  ;;  %v7910_v31 = vld [vmem:[%s17131_s2 + $0x98] sm:$0xf0] }
 0x20d   :  { %v1287_v59 = vmul.f32 %v10647_v24, %v1276_v26  ;;  %v411_v24 = vadd.f32 %v11596_v44, %v11748_v9  ;;  %v10157_v26 = vld [vmem:[%s17131_s2 + $0xac] sm:$0xf0]  ;;  %v315_v44 = vadd.f32 %v11600_v46, %v11709_v11  ;;  %1917 = vmatpush.bf16.msra.mxu2 %v7941_v39  ;;  %v10152_v39 = vld [vmem:[%s17131_s2 + $0x8c] sm:$0xf] }
 0x20e   :  { %v7917_v37 = vor.u32 %v10157_v26, %v7916_v32  ;;  %v10149_v26 = vld [vmem:[%s17131_s2 + $0x6c] sm:$0xf0] }
 0x20f   :  { %v12313_v1 = vpack.c.bf16 %v1287_v59, %v1286_v30  ;;  %v10155_v30 = vld [vmem:[%s17131_s2 + $0xa4] sm:$0xf]  ;;  %v266_v59 = vadd.f32 %v11598_v45, %v11684_v22 }
 0x210   :  { %1931 = vmatpush.bf16.msra.mxu3 %v7945_v38  ;;  %v7921_v46 = vor.u32 %v10155_v30, %v7918_v0  ;;  %1890 = vmatpush.bf16.msra.mxu0 %v7917_v37  ;;  %v362_v38 = vadd.f32 %v11594_v43, %v11819_v10  ;;  %v10147_v30 = vld [vmem:[%s17131_s2 + $0x64] sm:$0xf]  ;;  %v7892_v43 = vld [vmem:[%s17131_s2 + $0x68] sm:$0xf] }
 0x211   :  { %1501 = vmatmul.bf16.vlgmr.msrb.gmra.mxu0 %v12313_v1  ;;  %1515 = vmatmul.bf16.vlgmr.msrb.gmra.mxu1 %v12313_v1 }
 0x212   :  { %1529 = vmatmul.bf16.vlgmr.msrb.gmra.mxu2 %v12313_v1  ;;  %1543 = vmatmul.bf16.vlgmr.msrb.gmra.mxu3 %v12313_v1 }
 0x213   :  { %1904 = vmatpush.bf16.msra.mxu1 %v7921_v46 }
 0x217   :  { %1905 = vmatpush.bf16.msra.mxu1 %v7905_v34 }
 0x28e   :  { %v1502_v3 = vpop.f32.mrf.mxu0  ;;  %v1516_v4 = vpop.f32.mrf.mxu1 }
 0x28f   :  { %v1549_v8 = vadd.f32 %v1502_v3, %v264_v12  ;;  %v1550_v14 = vadd.f32 %v1516_v4, %v313_v21  ;;  %v7924_v12 = vld [vmem:[%s17131_s2 + $0xa8] sm:$0xf]  ;;  %v10158_v21 = vld [vmem:[%s17131_s2 + $0xb4] sm:$0xf0]  ;;  %v7926_v3 = vld [vmem:[%s17131_s2 + $0xb8] sm:$0xf0] }
 0x290   :  { %v7925_v29 = vor.u32 %v10158_v21, %v7924_v12  ;;  %v7929_v41 = vor.u32 %v10156_v7, %v7926_v3  ;;  %v7913_v12 = vor.u32 %v10152_v39, %v7910_v31  ;;  %v7868_v39 = vld [vmem:[%s17131_s2 + $0x40] sm:$0xf]  ;;  %v10145_v31 = vld [vmem:[%s17131_s2 + $0x4c] sm:$0xf0] }
 0x291   :  { %v7828_v6 = vmul.f32 -1.442695, %v1549_v8  ;;  %v7830_v63 = vmul.f32 -1.442695, %v1550_v14  ;;  %v10153_v8 = vld [vmem:[%s17131_s2 + $0x8c] sm:$0xf0] }
 0x292   :  { %1918 = vmatpush.bf16.msra.mxu2 %v7925_v29  ;;  %v7901_v18 = vor.u32 %v10153_v8, %v7900_v2  ;;  %1932 = vmatpush.bf16.msra.mxu3 %v7929_v41  ;;  %v364_v8 = vadd.f32 %v11602_v47, %v11819_v10 }
 0x293   :  { %10648 = vpow2.f32 %v7828_v6 }
 0x294   :  { %10650 = vpow2.f32 %v7830_v63  ;;  %1891 = vmatpush.bf16.msra.mxu0 %v7901_v18 }
 0x295   :  { %v1544_v33 = vpop.f32.mrf.mxu3  ;;  %v1530_v17 = vpop.f32.mrf.mxu2 }
 0x296   :  { %v1552_v40 = vadd.f32 %v1544_v33, %v411_v24  ;;  %v1504_v45 = vpop.f32.mrf.mxu0  ;;  %v1518_v15 = vpop.f32.mrf.mxu1  ;;  %v7884_v24 = vld [vmem:[%s17131_s2 + $0x60] sm:$0xf]  ;;  %v7886_v33 = vld [vmem:[%s17131_s2 + $0x70] sm:$0xf0]  ;;  %v1551_v0 = vadd.f32 %v1530_v17, %v362_v38  ;;  %1933 = vmatpush.bf16.msra.mxu3 %v7913_v12  ;;  %v7878_v12 = vld [vmem:[%s17131_s2 + $0x58] sm:$0xf0] }
 0x297   :  { %v1553_v4 = vadd.f32 %v1504_v45, %v266_v59  ;;  %v1554_v16 = vadd.f32 %v1518_v15, %v315_v44  ;;  %v413_v59 = vadd.f32 %v11604_v48, %v11748_v9  ;;  %v7909_v44 = vor.u32 %v10154_v20, %v7908_v25  ;;  %v10150_v45 = vld [vmem:[%s17131_s2 + $0x74] sm:$0xf0]  ;;  %v10148_v48 = vld [vmem:[%s17131_s2 + $0x6c] sm:$0xf]  ;;  %v7894_v15 = vld [vmem:[%s17131_s2 + $0x78] sm:$0xf0] }
 0x298   :  { %v7832_v42 = vmul.f32 -1.442695, %v1552_v40  ;;  %v7885_v21 = vor.u32 %v10149_v26, %v7884_v24  ;;  %v7889_v40 = vor.u32 %v10147_v30, %v7886_v33  ;;  %v7893_v7 = vor.u32 %v10150_v45, %v7892_v43  ;;  %v10146_v33 = vld [vmem:[%s17131_s2 + $0x54] sm:$0xf0] }
 0x299   :  { %v10649_v14 = vpop.eup %10648  ;;  %v7829_v13 = vmul.f32 -1.442695, %v1553_v4  ;;  %v7831_v63 = vmul.f32 -1.442695, %v1554_v16  ;;  %1919 = vmatpush.bf16.msra.mxu2 %v7909_v44  ;;  %v7876_v44 = vld [vmem:[%s17131_s2 + $0x48] sm:$0xf] }
 0x29a   :  { %v10651_v35 = vpop.eup %10650  ;;  %v12410_v6 = vadd.f32 1.0, %v10649_v14  ;;  %10652 = vpow2.f32 %v7832_v42  ;;  %1892 = vmatpush.bf16.msra.mxu0 %v7885_v21  ;;  %v7897_v42 = vor.u32 %v10148_v48, %v7894_v15  ;;  %1906 = vmatpush.bf16.msra.mxu1 %v7889_v40 }
 0x29b   :  { %v12415_v36 = vadd.f32 1.0, %v10651_v35  ;;  %10654 = vpow2.f32 %v7829_v13 }
 0x29c   :  { %10656 = vrcp.f32 %v12410_v6  ;;  %v1574_v4 = vand.u32 2147483647, %v12410_v6  ;;  %v1576_v13 = vand.u32 2147483648, %v12410_v6  ;;  %1934 = vmatpush.bf16.msra.mxu3 %v7897_v42  ;;  %vm1570_vm4 = vweird.f32 %v12410_v6 }
 0x29d   :  { %10658 = vrcp.f32 %v12415_v36  ;;  %v1546_v32 = vpop.f32.mrf.mxu3  ;;  %v1614_v35 = vand.u32 2147483648, %v12415_v36  ;;  %v1532_v47 = vpop.f32.mrf.mxu2  ;;  %1920 = vmatpush.bf16.msra.mxu2 %v7893_v7  ;;  %vm1608_vm3 = vweird.f32 %v12415_v36 }
 0x29e   :  { %10660 = vpow2.f32 %v7831_v63  ;;  %v1556_v29 = vadd.f32 %v1546_v32, %v413_v59  ;;  %v1612_v63 = vand.u32 2147483647, %v12415_v36  ;;  %vm12481_vm1 = vcmp.eq.f32.partialorder %v1574_v4, 8.507059e+37  ;;  %v10143_v32 = vld [vmem:[%s17131_s2 + $0x44] sm:$0xf] }
 0x29f   :  { %10662 = vtanh.f32 %v1551_v0  ;;  %v1577_v38 = vor.u32 1.1754944e-38, %v1576_v13  ;;  %v1555_v30 = vadd.f32 %v1532_v47, %v364_v8  ;;  %v7870_v59 = vld [vmem:[%s17131_s2 + $0x50] sm:$0xf0]  ;;  %v1615_v43 = vor.u32 1.1754944e-38, %v1614_v35  ;;  %v10144_v0 = vld [vmem:[%s17131_s2 + $0x4c] sm:$0xf] }
 0x2a0   :  { %v10653_v37 = vpop.eup %10652  ;;  %v7833_v34 = vmul.f32 -1.442695, %v1556_v29  ;;  %vm12530_vm7 = vcmp.eq.f32.partialorder %v1612_v63, 8.507059e+37  ;;  %v7852_v29 = vld [vmem:[%s17131_s2 + $0x20] sm:$0xf]  ;;  %v7873_v42 = vor.u32 %v10143_v32, %v7870_v59  ;;  %v7877_v8 = vor.u32 %v10146_v33, %v7876_v44 }
 0x2a1   :  { %v10655_v46 = vpop.eup %10654  ;;  %v12462_v16 = vadd.f32 1.0, %v10653_v37  ;;  %v10139_v13 = vld [vmem:[%s17131_s2 + $0x24] sm:$0xf]  ;;  %v10142_v47 = vld [vmem:[%s17131_s2 + $0x34] sm:$0xf0] }
 0x2a2   :  { %v12459_v3 = vpop.eup %10656  ;;  %v12464_v41 = vadd.f32 1.0, %v10655_v46  ;;  %1907 = vmatpush.bf16.msra.mxu1 %v7873_v42  ;;  %1921 = vmatpush.bf16.msra.mxu2 %v7877_v8  ;;  %v10135_v44 = vld [vmem:[%s17131_s2 + $0x4] sm:$0xf]  ;;  %v7838_v33 = vld [vmem:[%s17131_s2 + $0x10] sm:$0xf0] }
 0x2a3   :  { %v12466_v2 = vpop.eup %10658  ;;  %v1566_v14 = vmul.f32 %v12459_v3, %v12410_v6  ;;  %vm1571_vm0 = vweird.f32 %v12459_v3  ;;  %v10138_v42 = vld [vmem:[%s17131_s2 + $0x14] sm:$0xf0] }
 0x2a4   :  { %v10661_v18 = vpop.eup %10660  ;;  %v1604_v5 = vmul.f32 %v12466_v2, %v12415_v36  ;;  %10664 = vrcp.f32 %v12464_v41  ;;  %vm1609_vm2 = vweird.f32 %v12466_v2  ;;  %vm12513_vm5 = vmor %vm1570_vm4, %vm1571_vm0  ;;  %v7869_v36 = vor.u32 %v10145_v31, %v7868_v39  ;;  %v7862_v31 = vld [vmem:[%s17131_s2 + $0x38] sm:$0xf0] }
 0x2a5   :  { %v1567_v23 = vsub.f32 1.0, %v1566_v14  ;;  %v12478_v17 = vadd.f32 1.0, %v10661_v18  ;;  %10666 = vrcp.f32 %v12462_v16  ;;  %v10663_v21 = vpop.eup %10662  ;;  %vm12525_vm6 = vmor %vm1608_vm3, %vm1609_vm2  ;;  %v1589_v46 = vand.u32 2147483647, %v12464_v41  ;;  %v10141_v14 = vld [vmem:[%s17131_s2 + $0x2c] sm:$0xf0] }
 0x2a6   :  { %v1605_v25 = vsub.f32 1.0, %v1604_v5  ;;  %1893 = vmatpush.bf16.msra.mxu0 %v7869_v36  ;;  %v7854_v18 = vld [vmem:[%s17131_s2 + $0x30] sm:$0xf0]  ;;  %vm1585_vm8 = vweird.f32 %v12464_v41  ;;  %v7881_v39 = vor.u32 %v10144_v0, %v7878_v12  ;;  %v1591_v59 = vand.u32 2147483648, %v12464_v41 }
 0x2a7   :  { %v1568_v24 = vmul.f32 %v12459_v3, %v1567_v23  ;;  %10668 = vrcp.f32 %v12478_v17  ;;  %v1629_v15 = vand.u32 2147483648, %v12478_v17  ;;  %v7860_v23 = vld [vmem:[%s17131_s2 + $0x28] sm:$0xf]  ;;  %v7857_v6 = vor.u32 %v10139_v13, %v7854_v18 }
 0x2a8   :  { %v1606_v26 = vmul.f32 %v12466_v2, %v1605_v25  ;;  %10670 = vpow2.f32 %v7833_v34  ;;  %v10140_v34 = vld [vmem:[%s17131_s2 + $0x2c] sm:$0xf]  ;;  %1935 = vmatpush.bf16.msra.mxu3 %v7881_v39  ;;  %v7861_v36 = vor.u32 %v10142_v47, %v7860_v23  ;;  %v1627_v18 = vand.u32 2147483647, %v12478_v17 }
 0x2a9   :  { %v1569_v37 = vadd.f32 %v12459_v3, %v1568_v24  ;;  %10672 = vtanh.f32 %v1555_v30  ;;  %v7836_v24 = vld [vmem:[%s17131_s2] sm:$0xf]  ;;  %1908 = vmatpush.bf16.msra.mxu1 %v7857_v6  ;;  %vm1623_vm11 = vweird.f32 %v12478_v17  ;;  %vm1590_vm13 = vcmp.eq.f32.partialorder %v1589_v46, 8.507059e+37 }
 0x2aa   :  { %v1607_v45 = vadd.f32 %v12466_v2, %v1606_v26  ;;  %v12539_v7 = vpop.eup %10664  ;;  %1922 = vmatpush.bf16.msra.mxu2 %v7861_v36  ;;  %vm1628_vm15 = vcmp.eq.f32.partialorder %v1627_v18, 8.507059e+37  ;;  %v8084_v18 = vld [vmem:[%s17131_s2 + $0xf0] sm:$0xf0] }
 0x2ab   :  { %v1573_v4 = vsel %vm12513_vm5, %v12459_v3, %v1569_v37  ;;  %v12553_v5 = vpop.eup %10666  ;;  %v1581_v63 = vmul.f32 %v12539_v7, %v12464_v41  ;;  %vm1586_vm9 = vweird.f32 %v12539_v7 }
 0x2ac   :  { %v1578_v3 = vsel %vm12481_vm1, %v1577_v38, %v1573_v4  ;;  %v1611_v35 = vsel %vm12525_vm6, %v12466_v2, %v1607_v45  ;;  %v10137_v38 = vld [vmem:[%s17131_s2 + $0xc] sm:$0xf0]  ;;  %v1644_v37 = vmul.f32 %v12553_v5, %v12462_v16  ;;  %v7865_v45 = vor.u32 %v10140_v34, %v7862_v31  ;;  %vm1587_vm12 = vmor %vm1585_vm8, %vm1586_vm9 }
 0x2ad   :  { %v12571_v25 = vpop.eup %10668  ;;  %v1616_v2 = vsel %vm12530_vm7, %v1615_v43, %v1611_v35  ;;  %v1675_v20 = vmul.f32 %v10663_v21, %v1578_v3  ;;  %v1582_v26 = vsub.f32 1.0, %v1581_v63  ;;  %v7837_v48 = vor.u32 %v10137_v38, %v7836_v24  ;;  %v10136_v3 = vld [vmem:[%s17131_s2 + $0xc] sm:$0xf]  ;;  %v7846_v35 = vld [vmem:[%s17131_s2 + $0x18] sm:$0xf0] }
 0x2ae   :  { %v1673_v32 = vmul.f32 %v1616_v2, %v12262_v19  ;;  %v1619_v30 = vmul.f32 %v12571_v25, %v12478_v17  ;;  %v10671_v43 = vpop.eup %10670  ;;  %v7853_v19 = vor.u32 %v10141_v14, %v7852_v29  ;;  %v7841_v4 = vor.u32 %v10135_v44, %v7838_v33  ;;  %v7844_v29 = vld [vmem:[%s17131_s2 + $0x8] sm:$0xf]  ;;  %1936 = vmatpush.bf16.msra.mxu3 %v7865_v45 }
 0x2af   :  { %v1583_v21 = vmul.f32 %v12539_v7, %v1582_v26  ;;  %v12601_v40 = vadd.f32 1.0, %v10671_v43  ;;  %v10673_v8 = vpop.eup %10672  ;;  %vm1624_vm10 = vweird.f32 %v12571_v25  ;;  %v1592_v63 = vor.u32 1.1754944e-38, %v1591_v59 }
 0x2b0   :  { %v12597_v0 = vadd.f32 %v1675_v20, %v1673_v32  ;;  %v1620_v12 = vsub.f32 1.0, %v1619_v30  ;;  %1894 = vmatpush.bf16.msra.mxu0 %v7853_v19  ;;  %v1645_v23 = vsub.f32 1.0, %v1644_v37  ;;  %v7845_v2 = vor.u32 %v10138_v42, %v7844_v29  ;;  %vm1625_vm14 = vmor %vm1623_vm11, %vm1624_vm10  ;;  %1909 = vmatpush.bf16.msra.mxu1 %v7841_v4  ;;  %v10195_v42 = vld [vmem:[%s17131_s2 + $0xe4] sm:$0xf] }
 0x2b1   :  { %v1584_v13 = vadd.f32 %v12539_v7, %v1583_v21  ;;  %10674 = vrcp.f32 %v12601_v40  ;;  %v1630_v20 = vor.u32 1.1754944e-38, %v1629_v15  ;;  %v7849_v41 = vor.u32 %v10136_v3, %v7846_v35  ;;  %v8090_v3 = vld [vmem:[%s17131_s2 + $0xe8] sm:$0xf]  ;;  %v10198_v35 = vld [vmem:[%s17131_s2 + $0xf4] sm:$0xf0] }
 0x2b2   :  { %v1621_v14 = vmul.f32 %v12571_v25, %v1620_v12  ;;  %1923 = vmatpush.bf16.msra.mxu2 %v7845_v2  ;;  %10676 = vtanh.f32 %v12597_v0  ;;  %vm1649_vm0 = vweird.f32 %v12553_v5  ;;  %vm1648_vm1 = vweird.f32 %v12462_v16 }
 0x2b3   :  { %v1588_v47 = vsel %vm1587_vm12, %v12539_v7, %v1584_v13  ;;  %1937 = vmatpush.bf16.msra.mxu3 %v7849_v41  ;;  %v1646_v7 = vmul.f32 %v12553_v5, %v1645_v23  ;;  %v1654_v30 = vand.u32 2147483648, %v12462_v16  ;;  %v1652_v59 = vand.u32 2147483647, %v12462_v16  ;;  %vm1650_vm3 = vmor %vm1648_vm1, %vm1649_vm0  ;;  %v8066_v41 = vld [vmem:[%s17131_s2 + $0xc0] sm:$0xf] }
 0x2b4   :  { %v1622_v34 = vadd.f32 %v12571_v25, %v1621_v14  ;;  %v1593_v39 = vsel %vm1590_vm13, %v1592_v63, %v1588_v47  ;;  %1895 = vmatpush.bf16.msra.mxu0 %v7837_v48  ;;  %v1667_v33 = vand.u32 2147483647, %v12601_v40  ;;  %vm1663_vm4 = vweird.f32 %v12601_v40 }
 0x2b5   :  { %v1676_v31 = vmul.f32 %v10673_v8, %v1593_v39  ;;  %v1647_v15 = vadd.f32 %v12553_v5, %v1646_v7  ;;  %v1655_v6 = vor.u32 1.1754944e-38, %v1654_v30  ;;  %vm1653_vm6 = vcmp.eq.f32.partialorder %v1652_v59, 8.507059e+37  ;;  %v10192_v30 = vld [vmem:[%s17131_s2 + $0xcc] sm:$0xf]  ;;  %v8076_v59 = vld [vmem:[%s17131_s2 + $0xd8] sm:$0xf0] }
 0x2b6   :  { %v1626_v46 = vsel %vm1625_vm14, %v12571_v25, %v1622_v34  ;;  %vm1668_vm7 = vcmp.eq.f32.partialorder %v1667_v33, 8.507059e+37  ;;  %v269_v8 = vadd.f32 %v11606_v49, %v11684_v22  ;;  %v318_v14 = vadd.f32 %v11608_v50, %v11709_v11  ;;  %v10196_v50 = vld [vmem:[%s17131_s2 + $0xec] sm:$0xf]  ;;  %v8092_v34 = vld [vmem:[%s17131_s2 + $0xf8] sm:$0xf0] }
 0x2b7   :  { %v1631_v24 = vsel %vm1628_vm15, %v1630_v20, %v1626_v46  ;;  %v10675_v32 = vpop.eup %10674  ;;  %v1651_v43 = vsel %vm1650_vm3, %v12553_v5, %v1647_v15  ;;  %v8082_v5 = vld [vmem:[%s17131_s2 + $0xe0] sm:$0xf]  ;;  %v8087_v47 = vor.u32 %v10195_v42, %v8084_v18  ;;  %v8091_v49 = vor.u32 %v10198_v35, %v8090_v3  ;;  %v10193_v46 = vld [vmem:[%s17131_s2 + $0xcc] sm:$0xf0]  ;;  %v8074_v15 = vld [vmem:[%s17131_s2 + $0xc8] sm:$0xf] }
 0x2b8   :  { %v1674_v38 = vmul.f32 %v1631_v24, %v12299_v27  ;;  %v1659_v17 = vmul.f32 %v10675_v32, %v12601_v40  ;;  %v1669_v27 = vand.u32 2147483648, %v12601_v40  ;;  %vm1664_vm2 = vweird.f32 %v10675_v32  ;;  %v10677_v19 = vpop.eup %10676  ;;  %v10197_v40 = vld [vmem:[%s17131_s2 + $0xec] sm:$0xf0]  ;;  %v8060_v42 = vld [vmem:[%s17131_s2 + $0xb8] sm:$0xf0] }
 0x2b9   :  { %vm1665_vm5 = vmor %vm1663_vm4, %vm1664_vm2  ;;  %v1656_v45 = vsel %vm1653_vm6, %v1655_v6, %v1651_v43  ;;  %v8083_v13 = vor.u32 %v10197_v40, %v8082_v5  ;;  %v8095_v39 = vor.u32 %v10196_v50, %v8092_v34  ;;  %2297 = vmatpush.bf16.msrb.mxu1 %v8087_v47  ;;  %2311 = vmatpush.bf16.msrb.mxu2 %v8091_v49  ;;  %v8050_v43 = vld [vmem:[%s17131_s2 + $0xa0] sm:$0xf]  ;;  %v10188_v40 = vld [vmem:[%s17131_s2 + $0xac] sm:$0xf] }
 0x2ba   :  { %v12634_v26 = vadd.f32 %v1676_v31, %v1674_v38  ;;  %v1660_v25 = vsub.f32 1.0, %v1659_v17  ;;  %v1670_v36 = vor.u32 1.1754944e-38, %v1669_v27  ;;  %v1681_v48 = vmul.f32 %v10677_v19, %v1656_v45  ;;  %v10191_v31 = vld [vmem:[%s17131_s2 + $0xc4] sm:$0xf]  ;;  %v8058_v45 = vld [vmem:[%s17131_s2 + $0xa8] sm:$0xf] }
 0x2bb   :  { %2283 = vmatpush.bf16.msrb.mxu0 %v8083_v13  ;;  %2325 = vmatpush.bf16.msrb.mxu3 %v8095_v39  ;;  %v8067_v38 = vor.u32 %v10193_v46, %v8066_v41  ;;  %v8079_v33 = vor.u32 %v10192_v30, %v8076_v59  ;;  %v10187_v19 = vld [vmem:[%s17131_s2 + $0xa4] sm:$0xf]  ;;  %v271_v6 = vadd.f32 %v11614_v53, %v11684_v22  ;;  %v8034_v3 = vld [vmem:[%s17131_s2 + $0x80] sm:$0xf]  ;;  %v10185_v35 = vld [vmem:[%s17131_s2 + $0x8c] sm:$0xf0] }
 0x2bc   :  { %10678 = vtanh.f32 %v12634_v26  ;;  %v1661_v44 = vmul.f32 %v10675_v32, %v1660_v25  ;;  %v10194_v25 = vld [vmem:[%s17131_s2 + $0xd4] sm:$0xf0]  ;;  %v8063_v13 = vor.u32 %v10188_v40, %v8060_v42  ;;  %v8035_v47 = vor.u32 %v10185_v35, %v8034_v3  ;;  %v10183_v49 = vld [vmem:[%s17131_s2 + $0x84] sm:$0xf] }
 0x2bd   :  { %v8075_v27 = vor.u32 %v10194_v25, %v8074_v15  ;;  %v10181_v25 = vld [vmem:[%s17131_s2 + $0x6c] sm:$0xf0]  ;;  %v10179_v30 = vld [vmem:[%s17131_s2 + $0x64] sm:$0xf]  ;;  %v369_v40 = vadd.f32 %v11618_v55, %v11819_v10 }
 0x2be   :  { %v1662_v37 = vadd.f32 %v10675_v32, %v1661_v44  ;;  %v416_v44 = vadd.f32 %v11612_v52, %v11748_v9  ;;  %v320_v52 = vadd.f32 %v11616_v54, %v11709_v11 }
 0x2bf   :  { %2284 = vmatpush.bf16.msrb.mxu0 %v8067_v38  ;;  %2312 = vmatpush.bf16.msrb.mxu2 %v8075_v27  ;;  %v8044_v38 = vld [vmem:[%s17131_s2 + $0x98] sm:$0xf0]  ;;  %v418_v27 = vadd.f32 %v11620_v56, %v11748_v9  ;;  %v10180_v56 = vld [vmem:[%s17131_s2 + $0x6c] sm:$0xf] }
 0x2c0   :  { %v1666_v21 = vsel %vm1665_vm5, %v10675_v32, %v1662_v37  ;;  %v8068_v32 = vld [vmem:[%s17131_s2 + $0xd0] sm:$0xf0]  ;;  %v10189_v37 = vld [vmem:[%s17131_s2 + $0xac] sm:$0xf0]  ;;  %2326 = vmatpush.bf16.msrb.mxu3 %v8079_v33 }
 0x2c1   :  { %v1671_v16 = vsel %vm1668_vm7, %v1670_v36, %v1666_v21  ;;  %v8071_v17 = vor.u32 %v10191_v31, %v8068_v32  ;;  %v8052_v21 = vld [vmem:[%s17131_s2 + $0xb0] sm:$0xf0]  ;;  %v8042_v31 = vld [vmem:[%s17131_s2 + $0x88] sm:$0xf]  ;;  %v8018_v32 = vld [vmem:[%s17131_s2 + $0x60] sm:$0xf] }
 0x2c2   :  { %v10679_v12 = vpop.eup %10678  ;;  %v8055_v54 = vor.u32 %v10187_v19, %v8052_v21  ;;  %v8019_v19 = vor.u32 %v10181_v25, %v8018_v32  ;;  %v10178_v32 = vld [vmem:[%s17131_s2 + $0x54] sm:$0xf0]  ;;  %v10176_v25 = vld [vmem:[%s17131_s2 + $0x4c] sm:$0xf] }
 0x2c3   :  { %v1682_v4 = vmul.f32 %v10679_v12, %v1671_v16  ;;  %2298 = vmatpush.bf16.msrb.mxu1 %v8071_v17  ;;  %v8051_v12 = vor.u32 %v10189_v37, %v8050_v43  ;;  %v10190_v16 = vld [vmem:[%s17131_s2 + $0xb4] sm:$0xf0]  ;;  %v367_v17 = vadd.f32 %v11610_v51, %v11819_v10  ;;  %v8026_v51 = vld [vmem:[%s17131_s2 + $0x68] sm:$0xf] }
 0x2c4   :  { %v8059_v5 = vor.u32 %v10190_v16, %v8058_v45  ;;  %2327 = vmatpush.bf16.msrb.mxu3 %v8063_v13 }
 0x2c5   :  { %v12648_v29 = vpack.c.bf16 %v1682_v4, %v1681_v48  ;;  %2285 = vmatpush.bf16.msrb.mxu0 %v8051_v12 }
 0x2c6   :  { %2313 = vmatpush.bf16.msrb.mxu2 %v8059_v5 }
 0x2c7   :  { %1896 = vmatmul.bf16.vlgmr.msra.gmra.mxu0 %v12648_v29  ;;  %1910 = vmatmul.bf16.vlgmr.msra.gmra.mxu1 %v12648_v29 }
 0x2c8   :  { %1924 = vmatmul.bf16.vlgmr.msra.gmra.mxu2 %v12648_v29  ;;  %1938 = vmatmul.bf16.vlgmr.msra.gmra.mxu3 %v12648_v29 }
 0x2c9   :  { %2299 = vmatpush.bf16.msrb.mxu1 %v8055_v54  ;;  %2286 = vmatpush.bf16.msrb.mxu0 %v8035_v47 }
 0x2cd   :  { %2287 = vmatpush.bf16.msrb.mxu0 %v8019_v19 }
 0x344   :  { %v1897_v63 = vpop.f32.mrf.mxu0  ;;  %v1911_v23 = vpop.f32.mrf.mxu1 }
 0x345   :  { %v1944_v2 = vadd.f32 %v1897_v63, %v269_v8  ;;  %v1945_v20 = vadd.f32 %v1911_v23, %v318_v14 }
 0x347   :  { %v7962_v24 = vmul.f32 -1.442695, %v1944_v2  ;;  %v7964_v7 = vmul.f32 -1.442695, %v1945_v20  ;;  %v8036_v20 = vld [vmem:[%s17131_s2 + $0x90] sm:$0xf0] }
 0x348   :  { %v8039_v46 = vor.u32 %v10183_v49, %v8036_v20 }
 0x349   :  { %10680 = vpow2.f32 %v7962_v24  ;;  %v10186_v24 = vld [vmem:[%s17131_s2 + $0x94] sm:$0xf0] }
 0x34a   :  { %10682 = vpow2.f32 %v7964_v7  ;;  %2300 = vmatpush.bf16.msrb.mxu1 %v8039_v46  ;;  %v10184_v7 = vld [vmem:[%s17131_s2 + $0x8c] sm:$0xf]  ;;  %v8043_v59 = vor.u32 %v10186_v24, %v8042_v31  ;;  %v10175_v46 = vld [vmem:[%s17131_s2 + $0x44] sm:$0xf] }
 0x34b   :  { %v1939_v36 = vpop.f32.mrf.mxu3  ;;  %v1925_v41 = vpop.f32.mrf.mxu2  ;;  %v8047_v37 = vor.u32 %v10184_v7, %v8044_v38  ;;  %v8004_v7 = vld [vmem:[%s17131_s2 + $0x50] sm:$0xf0]  ;;  %v8010_v38 = vld [vmem:[%s17131_s2 + $0x48] sm:$0xf] }
 0x34c   :  { %v1947_v48 = vadd.f32 %v1939_v36, %v416_v44  ;;  %v1899_v53 = vpop.f32.mrf.mxu0  ;;  %v1913_v4 = vpop.f32.mrf.mxu1  ;;  %v8020_v44 = vld [vmem:[%s17131_s2 + $0x70] sm:$0xf0]  ;;  %v1946_v43 = vadd.f32 %v1925_v41, %v367_v17  ;;  %v8028_v36 = vld [vmem:[%s17131_s2 + $0x78] sm:$0xf0]  ;;  %2314 = vmatpush.bf16.msrb.mxu2 %v8043_v59 }
 0x34d   :  { %v1948_v8 = vadd.f32 %v1899_v53, %v271_v6  ;;  %v1949_v14 = vadd.f32 %v1913_v4, %v320_v52  ;;  %v8023_v6 = vor.u32 %v10179_v30, %v8020_v44  ;;  %v10182_v52 = vld [vmem:[%s17131_s2 + $0x74] sm:$0xf0]  ;;  %2328 = vmatpush.bf16.msrb.mxu3 %v8047_v37  ;;  %v8031_v54 = vor.u32 %v10180_v56, %v8028_v36  ;;  %v8012_v30 = vld [vmem:[%s17131_s2 + $0x58] sm:$0xf0]  ;;  %v7986_v37 = vld [vmem:[%s17131_s2 + $0x20] sm:$0xf] }
 0x34e   :  { %v7966_v18 = vmul.f32 -1.442695, %v1947_v48  ;;  %v8027_v45 = vor.u32 %v10182_v52, %v8026_v51  ;;  %v8007_v52 = vor.u32 %v10175_v46, %v8004_v7  ;;  %v8011_v56 = vor.u32 %v10178_v32, %v8010_v38  ;;  %v10173_v36 = vld [vmem:[%s17131_s2 + $0x2c] sm:$0xf0] }
 0x34f   :  { %v10681_v63 = vpop.eup %10680  ;;  %v7963_v23 = vmul.f32 -1.442695, %v1948_v8  ;;  %v7965_v2 = vmul.f32 -1.442695, %v1949_v14  ;;  %2301 = vmatpush.bf16.msrb.mxu1 %v8023_v6 }
 0x350   :  { %v10683_v50 = vpop.eup %10682  ;;  %v12745_v34 = vadd.f32 1.0, %v10681_v63  ;;  %10684 = vpow2.f32 %v7966_v18  ;;  %2315 = vmatpush.bf16.msrb.mxu2 %v8027_v45 }
 0x351   :  { %v12750_v39 = vadd.f32 1.0, %v10683_v50  ;;  %10686 = vpow2.f32 %v7963_v23  ;;  %2329 = vmatpush.bf16.msrb.mxu3 %v8031_v54  ;;  %v8002_v50 = vld [vmem:[%s17131_s2 + $0x40] sm:$0xf] }
 0x352   :  { %10688 = vrcp.f32 %v12745_v34  ;;  %v1969_v48 = vand.u32 2147483647, %v12745_v34  ;;  %v1971_v8 = vand.u32 2147483648, %v12745_v34  ;;  %vm1965_vm12 = vweird.f32 %v12745_v34 }
 0x353   :  { %10690 = vrcp.f32 %v12750_v39  ;;  %v1941_v15 = vpop.f32.mrf.mxu3  ;;  %v2009_v18 = vand.u32 2147483648, %v12750_v39  ;;  %v2007_v3 = vand.u32 2147483647, %v12750_v39  ;;  %v1927_v55 = vpop.f32.mrf.mxu2  ;;  %vm2003_vm11 = vweird.f32 %v12750_v39  ;;  %2302 = vmatpush.bf16.msrb.mxu1 %v8007_v52 }
 0x354   :  { %10692 = vpow2.f32 %v7965_v2  ;;  %v1951_v21 = vadd.f32 %v1941_v15, %v418_v27  ;;  %vm12816_vm9 = vcmp.eq.f32.partialorder %v1969_v48, 8.507059e+37  ;;  %v10177_v2 = vld [vmem:[%s17131_s2 + $0x4c] sm:$0xf0]  ;;  %v1972_v41 = vor.u32 1.1754944e-38, %v1971_v8  ;;  %v10172_v8 = vld [vmem:[%s17131_s2 + $0x2c] sm:$0xf]  ;;  %2316 = vmatpush.bf16.msrb.mxu2 %v8011_v56 }
 0x355   :  { %10694 = vtanh.f32 %v1946_v43  ;;  %v1950_v24 = vadd.f32 %v1927_v55, %v369_v40  ;;  %v2010_v17 = vor.u32 1.1754944e-38, %v2009_v18  ;;  %vm12865_vm15 = vcmp.eq.f32.partialorder %v2007_v3, 8.507059e+37  ;;  %v7994_v40 = vld [vmem:[%s17131_s2 + $0x28] sm:$0xf]  ;;  %v7996_v3 = vld [vmem:[%s17131_s2 + $0x38] sm:$0xf0] }
 0x356   :  { %v10685_v33 = vpop.eup %10684  ;;  %v7967_v23 = vmul.f32 -1.442695, %v1951_v21  ;;  %v7988_v21 = vld [vmem:[%s17131_s2 + $0x30] sm:$0xf0]  ;;  %v8015_v18 = vor.u32 %v10176_v25, %v8012_v30  ;;  %v10169_v55 = vld [vmem:[%s17131_s2 + $0xc] sm:$0xf0] }
 0x357   :  { %v10687_v12 = vpop.eup %10686  ;;  %v12797_v53 = vadd.f32 1.0, %v10685_v33  ;;  %v7978_v25 = vld [vmem:[%s17131_s2 + $0x8] sm:$0xf]  ;;  %v10170_v30 = vld [vmem:[%s17131_s2 + $0x14] sm:$0xf0] }
 0x358   :  { %v12794_v16 = vpop.eup %10688  ;;  %v12799_v4 = vadd.f32 1.0, %v10687_v12  ;;  %v10171_v12 = vld [vmem:[%s17131_s2 + $0x24] sm:$0xf]  ;;  %2330 = vmatpush.bf16.msrb.mxu3 %v8015_v18 }
 0x359   :  { %v12801_v5 = vpop.eup %10690  ;;  %v1961_v42 = vmul.f32 %v12794_v16, %v12745_v34  ;;  %vm1966_vm8 = vweird.f32 %v12794_v16  ;;  %v2047_v18 = vand.u32 2147483647, %v12797_v53 }
 0x35a   :  { %v10693_v14 = vpop.eup %10692  ;;  %v1999_v13 = vmul.f32 %v12801_v5, %v12750_v39  ;;  %10696 = vrcp.f32 %v12799_v4  ;;  %vm2004_vm10 = vweird.f32 %v12801_v5  ;;  %vm12848_vm13 = vmor %vm1965_vm12, %vm1966_vm8  ;;  %v8003_v39 = vor.u32 %v10177_v2, %v8002_v50  ;;  %v10167_v2 = vld [vmem:[%s17131_s2 + $0x4] sm:$0xf] }
 0x35b   :  { %v1962_v35 = vsub.f32 1.0, %v1961_v42  ;;  %v12813_v63 = vadd.f32 1.0, %v10693_v14  ;;  %10698 = vrcp.f32 %v12797_v53  ;;  %v10695_v27 = vpop.eup %10694  ;;  %vm12860_vm14 = vmor %vm2003_vm11, %vm2004_vm10  ;;  %v1984_v43 = vand.u32 2147483647, %v12799_v4  ;;  %v10174_v42 = vld [vmem:[%s17131_s2 + $0x34] sm:$0xf0] }
 0x35c   :  { %v2000_v47 = vsub.f32 1.0, %v1999_v13  ;;  %2288 = vmatpush.bf16.msrb.mxu0 %v8003_v39  ;;  %vm1980_vm0 = vweird.f32 %v12799_v4  ;;  %v1986_v50 = vand.u32 2147483648, %v12799_v4 }
 0x35d   :  { %v1963_v20 = vmul.f32 %v12794_v16, %v1962_v35  ;;  %10700 = vrcp.f32 %v12813_v63  ;;  %v2024_v33 = vand.u32 2147483648, %v12813_v63  ;;  %v7970_v35 = vld [vmem:[%s17131_s2] sm:$0xf]  ;;  %v2022_v51 = vand.u32 2147483647, %v12813_v63 }
 0x35e   :  { %v2001_v31 = vmul.f32 %v12801_v5, %v2000_v47  ;;  %10702 = vpow2.f32 %v7967_v23  ;;  %v7971_v34 = vor.u32 %v10169_v55, %v7970_v35  ;;  %vm2018_vm3 = vweird.f32 %v12813_v63 }
 0x35f   :  { %v1964_v15 = vadd.f32 %v12794_v16, %v1963_v20  ;;  %10704 = vtanh.f32 %v1950_v24  ;;  %v7972_v20 = vld [vmem:[%s17131_s2 + $0x10] sm:$0xf0]  ;;  %v7995_v24 = vor.u32 %v10174_v42, %v7994_v40  ;;  %vm1985_vm5 = vcmp.eq.f32.partialorder %v1984_v43, 8.507059e+37 }
 0x360   :  { %v2002_v44 = vadd.f32 %v12801_v5, %v2001_v31  ;;  %v12874_v19 = vpop.eup %10696  ;;  %v7991_v31 = vor.u32 %v10171_v12, %v7988_v21  ;;  %v7975_v39 = vor.u32 %v10167_v2, %v7972_v20  ;;  %v1987_v52 = vor.u32 1.1754944e-38, %v1986_v50 }
 0x361   :  { %v1968_v6 = vsel %vm12848_vm13, %v12794_v16, %v1964_v15  ;;  %v12888_v45 = vpop.eup %10698  ;;  %v1976_v54 = vmul.f32 %v12874_v19, %v12799_v4  ;;  %vm1981_vm1 = vweird.f32 %v12874_v19  ;;  %v7999_v15 = vor.u32 %v10172_v8, %v7996_v3  ;;  %2317 = vmatpush.bf16.msrb.mxu2 %v7995_v24  ;;  %v10229_v24 = vld [vmem:[%s17131_s2 + $0xec] sm:$0xf0] }
 0x362   :  { %v1973_v16 = vsel %vm12816_vm9, %v1972_v41, %v1968_v6  ;;  %v2006_v48 = vsel %vm12860_vm14, %v12801_v5, %v2002_v44  ;;  %v2039_v46 = vmul.f32 %v12888_v45, %v12797_v53  ;;  %2303 = vmatpush.bf16.msrb.mxu1 %v7991_v31  ;;  %v7980_v6 = vld [vmem:[%s17131_s2 + $0x18] sm:$0xf0]  ;;  %vm1982_vm4 = vmor %vm1980_vm0, %vm1981_vm1  ;;  %v7979_v21 = vor.u32 %v10170_v30, %v7978_v25  ;;  %v10230_v25 = vld [vmem:[%s17131_s2 + $0xf4] sm:$0xf0] }
 0x363   :  { %v12906_v14 = vpop.eup %10700  ;;  %v2011_v5 = vsel %vm12865_vm15, %v2010_v17, %v2006_v48  ;;  %v2070_v13 = vmul.f32 %v10695_v27, %v1973_v16  ;;  %v1977_v47 = vsub.f32 1.0, %v1976_v54  ;;  %2331 = vmatpush.bf16.msrb.mxu3 %v7999_v15  ;;  %v2025_v16 = vor.u32 1.1754944e-38, %v2024_v33 }
 0x364   :  { %v2068_v23 = vmul.f32 %v2011_v5, %v12597_v0  ;;  %v2014_v49 = vmul.f32 %v12906_v14, %v12813_v63  ;;  %v10703_v41 = vpop.eup %10702  ;;  %v7987_v0 = vor.u32 %v10173_v36, %v7986_v37  ;;  %vm2019_vm2 = vweird.f32 %v12906_v14  ;;  %v10168_v37 = vld [vmem:[%s17131_s2 + $0xc] sm:$0xf] }
 0x365   :  { %v1978_v32 = vmul.f32 %v12874_v19, %v1977_v47  ;;  %v12936_v17 = vadd.f32 1.0, %v10703_v41  ;;  %v10705_v27 = vpop.eup %10704  ;;  %v2040_v56 = vsub.f32 1.0, %v2039_v46  ;;  %vm2020_vm6 = vmor %vm2018_vm3, %vm2019_vm2  ;;  %v7983_v4 = vor.u32 %v10168_v37, %v7980_v6  ;;  %2318 = vmatpush.bf16.msrb.mxu2 %v7979_v21 }
 0x366   :  { %v12932_v7 = vadd.f32 %v2070_v13, %v2068_v23  ;;  %v2015_v38 = vsub.f32 1.0, %v2014_v49  ;;  %2289 = vmatpush.bf16.msrb.mxu0 %v7987_v0  ;;  %2304 = vmatpush.bf16.msrb.mxu1 %v7975_v39  ;;  %vm2023_vm7 = vcmp.eq.f32.partialorder %v2022_v51, 8.507059e+37  ;;  %vm2044_vm8 = vweird.f32 %v12888_v45  ;;  %v8224_v39 = vld [vmem:[%s17131_s2 + $0xe8] sm:$0xf] }
 0x367   :  { %v1979_v44 = vadd.f32 %v12874_v19, %v1978_v32  ;;  %10706 = vrcp.f32 %v12936_v17  ;;  %2332 = vmatpush.bf16.msrb.mxu3 %v7983_v4  ;;  %vm2043_vm9 = vweird.f32 %v12797_v53  ;;  %v2049_v13 = vand.u32 2147483648, %v12797_v53 }
 0x368   :  { %v2016_v59 = vmul.f32 %v12906_v14, %v2015_v38  ;;  %10708 = vtanh.f32 %v12932_v7  ;;  %v2062_v35 = vand.u32 2147483647, %v12936_v17  ;;  %vm2045_vm11 = vmor %vm2043_vm9, %vm2044_vm8  ;;  %vm2058_vm12 = vweird.f32 %v12936_v17  ;;  %v10227_v38 = vld [vmem:[%s17131_s2 + $0xe4] sm:$0xf] }
 0x369   :  { %v1983_v36 = vsel %vm1982_vm4, %v12874_v19, %v1979_v44  ;;  %v2041_v19 = vmul.f32 %v12888_v45, %v2040_v56  ;;  %v2050_v49 = vor.u32 1.1754944e-38, %v2049_v13  ;;  %vm2048_vm14 = vcmp.eq.f32.partialorder %v2047_v18, 8.507059e+37  ;;  %v8226_v44 = vld [vmem:[%s17131_s2 + $0xf8] sm:$0xf0]  ;;  %v10225_v56 = vld [vmem:[%s17131_s2 + $0xcc] sm:$0xf0] }
 0x36a   :  { %v2017_v12 = vadd.f32 %v12906_v14, %v2016_v59  ;;  %v1988_v48 = vsel %vm1985_vm5, %v1987_v52, %v1983_v36  ;;  %2290 = vmatpush.bf16.msrb.mxu0 %v7971_v34  ;;  %vm2063_vm15 = vcmp.eq.f32.partialorder %v2062_v35, 8.507059e+37  ;;  %v274_v32 = vadd.f32 %v11622_v57, %v11684_v22  ;;  %v8218_v34 = vld [vmem:[%s17131_s2 + $0xf0] sm:$0xf0]  ;;  %v8200_v52 = vld [vmem:[%s17131_s2 + $0xc0] sm:$0xf] }
 0x36b   :  { %v2071_v54 = vmul.f32 %v10705_v27, %v1988_v48  ;;  %v2042_v33 = vadd.f32 %v12888_v45, %v2041_v19  ;;  %v8221_v59 = vor.u32 %v10227_v38, %v8218_v34  ;;  %v8225_v57 = vor.u32 %v10230_v25, %v8224_v39  ;;  %v10223_v36 = vld [vmem:[%s17131_s2 + $0xc4] sm:$0xf]  ;;  %v8202_v48 = vld [vmem:[%s17131_s2 + $0xd0] sm:$0xf0] }
 0x36c   :  { %v2021_v43 = vsel %vm2020_vm6, %v12906_v14, %v2017_v12  ;;  %v8205_v4 = vor.u32 %v10223_v36, %v8202_v48  ;;  %v10219_v13 = vld [vmem:[%s17131_s2 + $0xa4] sm:$0xf]  ;;  %v8186_v35 = vld [vmem:[%s17131_s2 + $0xb0] sm:$0xf0] }
 0x36d   :  { %v2026_v40 = vsel %vm2023_vm7, %v2025_v16, %v2021_v43  ;;  %v10707_v8 = vpop.eup %10706  ;;  %v2046_v55 = vsel %vm2045_vm11, %v12888_v45, %v2042_v33  ;;  %v8216_v45 = vld [vmem:[%s17131_s2 + $0xe0] sm:$0xf]  ;;  %2692 = vmatpush.bf16.msra.mxu1 %v8221_v59  ;;  %2706 = vmatpush.bf16.msra.mxu2 %v8225_v57  ;;  %v8201_v16 = vor.u32 %v10225_v56, %v8200_v52  ;;  %v8208_v43 = vld [vmem:[%s17131_s2 + $0xc8] sm:$0xf] }
 0x36e   :  { %v2069_v42 = vmul.f32 %v2026_v40, %v12634_v26  ;;  %v2054_v63 = vmul.f32 %v10707_v8, %v12936_v17  ;;  %v2064_v26 = vand.u32 2147483648, %v12936_v17  ;;  %vm2059_vm10 = vweird.f32 %v10707_v8  ;;  %v10709_v47 = vpop.eup %10708  ;;  %v10224_v40 = vld [vmem:[%s17131_s2 + $0xcc] sm:$0xf]  ;;  %v8184_v33 = vld [vmem:[%s17131_s2 + $0xa0] sm:$0xf] }
 0x36f   :  { %vm2060_vm13 = vmor %vm2058_vm12, %vm2059_vm10  ;;  %v2051_v41 = vsel %vm2048_vm14, %v2050_v49, %v2046_v55  ;;  %v323_v17 = vadd.f32 %v11624_v58, %v11709_v11  ;;  %v8217_v15 = vor.u32 %v10229_v24, %v8216_v45  ;;  %v10228_v58 = vld [vmem:[%s17131_s2 + $0xec] sm:$0xf]  ;;  %v8192_v55 = vld [vmem:[%s17131_s2 + $0xa8] sm:$0xf] }
 0x370   :  { %v12969_v5 = vadd.f32 %v2071_v54, %v2069_v42  ;;  %v2055_v14 = vsub.f32 1.0, %v2054_v63  ;;  %v2065_v50 = vor.u32 1.1754944e-38, %v2064_v26  ;;  %v2076_v46 = vmul.f32 %v10709_v47, %v2051_v41  ;;  %v10226_v54 = vld [vmem:[%s17131_s2 + $0xd4] sm:$0xf0]  ;;  %v8210_v42 = vld [vmem:[%s17131_s2 + $0xd8] sm:$0xf0] }
 0x371   :  { %2678 = vmatpush.bf16.msra.mxu0 %v8217_v15  ;;  %v8229_v6 = vor.u32 %v10228_v58, %v8226_v44  ;;  %v8209_v19 = vor.u32 %v10226_v54, %v8208_v43  ;;  %2693 = vmatpush.bf16.msra.mxu1 %v8205_v4  ;;  %v8213_v63 = vor.u32 %v10224_v40, %v8210_v42  ;;  %v8168_v45 = vld [vmem:[%s17131_s2 + $0x80] sm:$0xf]  ;;  %v10217_v24 = vld [vmem:[%s17131_s2 + $0x8c] sm:$0xf0]  ;;  %v10215_v15 = vld [vmem:[%s17131_s2 + $0x84] sm:$0xf] }
 0x372   :  { %10710 = vtanh.f32 %v12969_v5  ;;  %v2056_v3 = vmul.f32 %v10707_v8, %v2055_v14  ;;  %v10221_v14 = vld [vmem:[%s17131_s2 + $0xac] sm:$0xf0]  ;;  %v276_v26 = vadd.f32 %v11630_v61, %v11684_v22  ;;  %v8176_v58 = vld [vmem:[%s17131_s2 + $0x88] sm:$0xf]  ;;  %v10218_v44 = vld [vmem:[%s17131_s2 + $0x94] sm:$0xf0] }
 0x373   :  { %2720 = vmatpush.bf16.msra.mxu3 %v8229_v6  ;;  %2707 = vmatpush.bf16.msra.mxu2 %v8209_v19  ;;  %v8152_v6 = vld [vmem:[%s17131_s2 + $0x60] sm:$0xf]  ;;  %v8177_v4 = vor.u32 %v10218_v44, %v8176_v58  ;;  %v8154_v43 = vld [vmem:[%s17131_s2 + $0x70] sm:$0xf0]  ;;  %v8160_v54 = vld [vmem:[%s17131_s2 + $0x68] sm:$0xf] }
 0x374   :  { %v2057_v23 = vadd.f32 %v10707_v8, %v2056_v3  ;;  %v8185_v3 = vor.u32 %v10221_v14, %v8184_v33  ;;  %v17188_v52 = vld [vmem:[#allocation4_spill] sm:$0xff]  ;;  %v10214_v33 = vld [vmem:[%s17131_s2 + $0x74] sm:$0xf0]  ;;  %v10212_v14 = vld [vmem:[%s17131_s2 + $0x6c] sm:$0xf] }
 0x375   :  { %2679 = vmatpush.bf16.msra.mxu0 %v8201_v16  ;;  %v372_v56 = vadd.f32 %v17188_v52, %v11819_v10  ;;  %v17189_v16 = vld [vmem:[#allocation6_spill] sm:$0xff] }
 0x376   :  { %v2061_v20 = vsel %vm2060_vm13, %v10707_v8, %v2057_v23  ;;  %v421_v8 = vadd.f32 %v11628_v60, %v11748_v9  ;;  %v325_v60 = vadd.f32 %v11632_v62, %v11709_v11  ;;  %v10222_v23 = vld [vmem:[%s17131_s2 + $0xb4] sm:$0xf0]  ;;  %v8189_v62 = vor.u32 %v10219_v13, %v8186_v35  ;;  %v8162_v13 = vld [vmem:[%s17131_s2 + $0x78] sm:$0xf0]  ;;  %v8138_v44 = vld [vmem:[%s17131_s2 + $0x50] sm:$0xf0] }
 0x377   :  { %v2066_v53 = vsel %vm2063_vm15, %v2065_v50, %v2061_v20  ;;  %2721 = vmatpush.bf16.msra.mxu3 %v8213_v63  ;;  %v8193_v50 = vor.u32 %v10222_v23, %v8192_v55  ;;  %v8194_v20 = vld [vmem:[%s17131_s2 + $0xb8] sm:$0xf0]  ;;  %v423_v48 = vadd.f32 %v17189_v16, %v11748_v9 }
 0x378   :  { %v10711_v2 = vpop.eup %10710  ;;  %2694 = vmatpush.bf16.msra.mxu1 %v8189_v62 }
 0x379   :  { %v2077_v0 = vmul.f32 %v10711_v2, %v2066_v53  ;;  %v10220_v2 = vld [vmem:[%s17131_s2 + $0xac] sm:$0xf]  ;;  %2680 = vmatpush.bf16.msra.mxu0 %v8185_v3  ;;  %2708 = vmatpush.bf16.msra.mxu2 %v8193_v50 }
 0x37b   :  { %v12983_v31 = vpack.c.bf16 %v2077_v0, %v2076_v46  ;;  %v8197_v46 = vor.u32 %v10220_v2, %v8194_v20 }
 0x37d   :  { %2291 = vmatmul.bf16.vlgmr.msrb.gmra.mxu0 %v12983_v31  ;;  %2305 = vmatmul.bf16.vlgmr.msrb.gmra.mxu1 %v12983_v31 }
 0x37e   :  { %2319 = vmatmul.bf16.vlgmr.msrb.gmra.mxu2 %v12983_v31  ;;  %2333 = vmatmul.bf16.vlgmr.msrb.gmra.mxu3 %v12983_v31 }
 0x37f   :  { %2722 = vmatpush.bf16.msra.mxu3 %v8197_v46  ;;  %2709 = vmatpush.bf16.msra.mxu2 %v8177_v4 }
 0x3fa   :  { %v2292_v30 = vpop.f32.mrf.mxu0  ;;  %v2306_v27 = vpop.f32.mrf.mxu1 }
 0x3fb   :  { %v2339_v51 = vadd.f32 %v2292_v30, %v274_v32  ;;  %v2340_v37 = vadd.f32 %v2306_v27, %v323_v17  ;;  %v8169_v17 = vor.u32 %v10217_v24, %v8168_v45  ;;  %v8170_v30 = vld [vmem:[%s17131_s2 + $0x90] sm:$0xf0] }
 0x3fc   :  { %v8173_v57 = vor.u32 %v10215_v15, %v8170_v30  ;;  %v8136_v15 = vld [vmem:[%s17131_s2 + $0x40] sm:$0xf] }
 0x3fd   :  { %v8096_v12 = vmul.f32 -1.442695, %v2339_v51  ;;  %v8098_v21 = vmul.f32 -1.442695, %v2340_v37  ;;  %2681 = vmatpush.bf16.msra.mxu0 %v8169_v17  ;;  %v10216_v51 = vld [vmem:[%s17131_s2 + $0x8c] sm:$0xf] }
 0x3fe   :  { %2695 = vmatpush.bf16.msra.mxu1 %v8173_v57  ;;  %v8178_v37 = vld [vmem:[%s17131_s2 + $0x98] sm:$0xf0] }
 0x3ff   :  { %10712 = vpow2.f32 %v8096_v12  ;;  %v10213_v12 = vld [vmem:[%s17131_s2 + $0x6c] sm:$0xf0]  ;;  %v8181_v42 = vor.u32 %v10216_v51, %v8178_v37  ;;  %v8144_v51 = vld [vmem:[%s17131_s2 + $0x48] sm:$0xf]  ;;  %v10210_v37 = vld [vmem:[%s17131_s2 + $0x54] sm:$0xf0] }
 0x400   :  { %10714 = vpow2.f32 %v8098_v21  ;;  %v10211_v21 = vld [vmem:[%s17131_s2 + $0x64] sm:$0xf] }
 0x401   :  { %v2334_v18 = vpop.f32.mrf.mxu3  ;;  %v2320_v59 = vpop.f32.mrf.mxu2  ;;  %v8157_v63 = vor.u32 %v10211_v21, %v8154_v43  ;;  %2723 = vmatpush.bf16.msra.mxu3 %v8181_v42  ;;  %v8114_v21 = vld [vmem:[%s17131_s2 + $0x18] sm:$0xf0] }
 0x402   :  { %v2342_v47 = vadd.f32 %v2334_v18, %v421_v8  ;;  %v2294_v61 = vpop.f32.mrf.mxu0  ;;  %v2308_v49 = vpop.f32.mrf.mxu1  ;;  %v2341_v19 = vadd.f32 %v2320_v59, %v372_v56  ;;  %v8153_v8 = vor.u32 %v10213_v12, %v8152_v6  ;;  %v8161_v18 = vor.u32 %v10214_v33, %v8160_v54  ;;  %v10207_v59 = vld [vmem:[%s17131_s2 + $0x44] sm:$0xf]  ;;  %v10208_v56 = vld [vmem:[%s17131_s2 + $0x4c] sm:$0xf]  ;;  %v8120_v54 = vld [vmem:[%s17131_s2 + $0x20] sm:$0xf] }
 0x403   :  { %v2343_v41 = vadd.f32 %v2294_v61, %v276_v26  ;;  %v2344_v53 = vadd.f32 %v2308_v49, %v325_v60  ;;  %v17190_v49 = vld [vmem:[#allocation5_spill] sm:$0xff]  ;;  %2696 = vmatpush.bf16.msra.mxu1 %v8157_v63  ;;  %v8141_v42 = vor.u32 %v10207_v59, %v8138_v44  ;;  %v10205_v63 = vld [vmem:[%s17131_s2 + $0x2c] sm:$0xf0]  ;;  %v10203_v33 = vld [vmem:[%s17131_s2 + $0x24] sm:$0xf] }
 0x404   :  { %v8100_v0 = vmul.f32 -1.442695, %v2342_v47  ;;  %2682 = vmatpush.bf16.msra.mxu0 %v8153_v8  ;;  %v8165_v47 = vor.u32 %v10212_v14, %v8162_v13  ;;  %v374_v62 = vadd.f32 %v17190_v49, %v11819_v10  ;;  %2710 = vmatpush.bf16.msra.mxu2 %v8161_v18  ;;  %v8145_v8 = vor.u32 %v10210_v37, %v8144_v51  ;;  %v8122_v14 = vld [vmem:[%s17131_s2 + $0x30] sm:$0xf0] }
 0x405   :  { %v10713_v38 = vpop.eup %10712  ;;  %v8097_v32 = vmul.f32 -1.442695, %v2343_v41  ;;  %v8099_v25 = vmul.f32 -1.442695, %v2344_v53 }
 0x406   :  { %v10715_v34 = vpop.eup %10714  ;;  %v13080_v39 = vadd.f32 1.0, %v10713_v38  ;;  %10716 = vpow2.f32 %v8100_v0  ;;  %2724 = vmatpush.bf16.msra.mxu3 %v8165_v47  ;;  %v10204_v47 = vld [vmem:[%s17131_s2 + $0x2c] sm:$0xf] }
 0x407   :  { %v13085_v27 = vadd.f32 1.0, %v10715_v34  ;;  %10718 = vpow2.f32 %v8097_v32  ;;  %v10209_v34 = vld [vmem:[%s17131_s2 + $0x4c] sm:$0xf0]  ;;  %2697 = vmatpush.bf16.msra.mxu1 %v8141_v42 }
 0x408   :  { %10720 = vrcp.f32 %v13080_v39  ;;  %v2364_v35 = vand.u32 2147483647, %v13080_v39  ;;  %v2366_v2 = vand.u32 2147483648, %v13080_v39  ;;  %vm2360_vm4 = vweird.f32 %v13080_v39  ;;  %2711 = vmatpush.bf16.msra.mxu2 %v8145_v8 }
 0x409   :  { %10722 = vrcp.f32 %v13085_v27  ;;  %v2336_v36 = vpop.f32.mrf.mxu3  ;;  %v2404_v53 = vand.u32 2147483648, %v13085_v27  ;;  %v2402_v46 = vand.u32 2147483647, %v13085_v27  ;;  %v2322_v24 = vpop.f32.mrf.mxu2  ;;  %vm2398_vm3 = vweird.f32 %v13085_v27 }
 0x40a   :  { %10724 = vpow2.f32 %v8099_v25  ;;  %v2346_v60 = vadd.f32 %v2336_v36, %v423_v48  ;;  %vm13151_vm1 = vcmp.eq.f32.partialorder %v2364_v35, 8.507059e+37  ;;  %v2367_v30 = vor.u32 1.1754944e-38, %v2366_v2  ;;  %v8146_v36 = vld [vmem:[%s17131_s2 + $0x58] sm:$0xf0]  ;;  %v10206_v35 = vld [vmem:[%s17131_s2 + $0x34] sm:$0xf0] }
 0x40b   :  { %10726 = vtanh.f32 %v2341_v19  ;;  %v2345_v58 = vadd.f32 %v2322_v24, %v374_v62  ;;  %v2405_v6 = vor.u32 1.1754944e-38, %v2404_v53  ;;  %vm13200_vm7 = vcmp.eq.f32.partialorder %v2402_v46, 8.507059e+37  ;;  %v8130_v2 = vld [vmem:[%s17131_s2 + $0x38] sm:$0xf0] }
 0x40c   :  { %v10717_v40 = vpop.eup %10716  ;;  %v8101_v38 = vmul.f32 -1.442695, %v2346_v60  ;;  %v8133_v44 = vor.u32 %v10204_v47, %v8130_v2 }
 0x40d   :  { %v10719_v26 = vpop.eup %10718  ;;  %v13132_v55 = vadd.f32 1.0, %v10717_v40 }
 0x40e   :  { %v13129_v3 = vpop.eup %10720  ;;  %v13134_v23 = vadd.f32 1.0, %v10719_v26 }
 0x40f   :  { %v13136_v61 = vpop.eup %10722  ;;  %v2356_v50 = vmul.f32 %v13129_v3, %v13080_v39  ;;  %vm2361_vm0 = vweird.f32 %v13129_v3  ;;  %v2442_v47 = vand.u32 2147483647, %v13132_v55 }
 0x410   :  { %v10725_v20 = vpop.eup %10724  ;;  %v2394_v41 = vmul.f32 %v13136_v61, %v13085_v27  ;;  %10728 = vrcp.f32 %v13134_v23  ;;  %vm2399_vm2 = vweird.f32 %v13136_v61  ;;  %vm13183_vm5 = vmor %vm2360_vm4, %vm2361_vm0  ;;  %v8137_v27 = vor.u32 %v10209_v34, %v8136_v15 }
 0x411   :  { %v2357_v0 = vsub.f32 1.0, %v2356_v50  ;;  %v13148_v45 = vadd.f32 1.0, %v10725_v20  ;;  %10730 = vrcp.f32 %v13132_v55  ;;  %v10727_v12 = vpop.eup %10726  ;;  %vm13195_vm6 = vmor %vm2398_vm3, %vm2399_vm2  ;;  %v2379_v43 = vand.u32 2147483647, %v13134_v23  ;;  %v8104_v20 = vld [vmem:[%s17131_s2] sm:$0xf] }
 0x412   :  { %v2395_v32 = vsub.f32 1.0, %v2394_v41  ;;  %2683 = vmatpush.bf16.msra.mxu0 %v8137_v27  ;;  %vm2375_vm8 = vweird.f32 %v13134_v23  ;;  %v8149_v50 = vor.u32 %v10208_v56, %v8146_v36  ;;  %v10201_v41 = vld [vmem:[%s17131_s2 + $0xc] sm:$0xf0]  ;;  %v2381_v24 = vand.u32 2147483648, %v13134_v23 }
 0x413   :  { %v2358_v25 = vmul.f32 %v13129_v3, %v2357_v0  ;;  %10732 = vrcp.f32 %v13148_v45  ;;  %v2419_v4 = vand.u32 2147483648, %v13148_v45  ;;  %v8125_v34 = vor.u32 %v10203_v33, %v8122_v14 }
 0x414   :  { %v2396_v57 = vmul.f32 %v13136_v61, %v2395_v32  ;;  %10734 = vpow2.f32 %v8101_v38  ;;  %v10199_v38 = vld [vmem:[%s17131_s2 + $0x4] sm:$0xf]  ;;  %v8106_v32 = vld [vmem:[%s17131_s2 + $0x10] sm:$0xf0]  ;;  %2725 = vmatpush.bf16.msra.mxu3 %v8149_v50  ;;  %v8105_v51 = vor.u32 %v10201_v41, %v8104_v20  ;;  %v2417_v36 = vand.u32 2147483647, %v13148_v45 }
 0x415   :  { %v2359_v52 = vadd.f32 %v13129_v3, %v2358_v25  ;;  %10736 = vtanh.f32 %v2345_v58  ;;  %2698 = vmatpush.bf16.msra.mxu1 %v8125_v34  ;;  %v8109_v37 = vor.u32 %v10199_v38, %v8106_v32  ;;  %vm2413_vm11 = vweird.f32 %v13148_v45 }
 0x416   :  { %v2397_v16 = vadd.f32 %v13136_v61, %v2396_v57  ;;  %v13209_v40 = vpop.eup %10728  ;;  %vm2380_vm13 = vcmp.eq.f32.partialorder %v2379_v43, 8.507059e+37  ;;  %v2420_v8 = vor.u32 1.1754944e-38, %v2419_v4  ;;  %vm2418_vm15 = vcmp.eq.f32.partialorder %v2417_v36, 8.507059e+37 }
 0x417   :  { %v2363_v19 = vsel %vm13183_vm5, %v13129_v3, %v2359_v52  ;;  %v13223_v13 = vpop.eup %10730  ;;  %v2371_v18 = vmul.f32 %v13209_v40, %v13134_v23  ;;  %v8128_v3 = vld [vmem:[%s17131_s2 + $0x28] sm:$0xf]  ;;  %vm2376_vm9 = vweird.f32 %v13209_v40  ;;  %v10202_v52 = vld [vmem:[%s17131_s2 + $0x14] sm:$0xf0] }
 0x418   :  { %v2368_v26 = vsel %vm13151_vm1, %v2367_v30, %v2363_v19  ;;  %v2401_v60 = vsel %vm13195_vm6, %v13136_v61, %v2397_v16  ;;  %v2434_v15 = vmul.f32 %v13223_v13, %v13132_v55  ;;  %v8129_v25 = vor.u32 %v10206_v35, %v8128_v3  ;;  %vm2377_vm12 = vmor %vm2375_vm8, %vm2376_vm9  ;;  %2726 = vmatpush.bf16.msra.mxu3 %v8133_v44  ;;  %v8358_v44 = vld [vmem:[%s17131_s2 + $0xe8] sm:$0xf] }
 0x419   :  { %v13241_v49 = vpop.eup %10732  ;;  %v2406_v61 = vsel %vm13200_vm7, %v2405_v6, %v2401_v60  ;;  %v2465_v62 = vmul.f32 %v10727_v12, %v2368_v26  ;;  %v2372_v46 = vsub.f32 1.0, %v2371_v18  ;;  %v8112_v6 = vld [vmem:[%s17131_s2 + $0x8] sm:$0xf]  ;;  %v10200_v12 = vld [vmem:[%s17131_s2 + $0xc] sm:$0xf]  ;;  %v2382_v16 = vor.u32 1.1754944e-38, %v2381_v24  ;;  %2699 = vmatpush.bf16.msra.mxu1 %v8109_v37 }
 0x41a   :  { %v2463_v53 = vmul.f32 %v2406_v61, %v12932_v7  ;;  %v2409_v0 = vmul.f32 %v13241_v49, %v13148_v45  ;;  %v10735_v17 = vpop.eup %10734  ;;  %v8121_v7 = vor.u32 %v10205_v63, %v8120_v54  ;;  %vm2414_vm10 = vweird.f32 %v13241_v49  ;;  %2712 = vmatpush.bf16.msra.mxu2 %v8129_v25  ;;  %v17200_v25 = vld [vmem:[#allocation8_spill] sm:$0xff] }
 0x41b   :  { %v2373_v57 = vmul.f32 %v13209_v40, %v2372_v46  ;;  %v13271_v58 = vadd.f32 1.0, %v10735_v17  ;;  %v10737_v39 = vpop.eup %10736  ;;  %v2435_v48 = vsub.f32 1.0, %v2434_v15  ;;  %v8113_v42 = vor.u32 %v10202_v52, %v8112_v6  ;;  %vm2415_vm14 = vmor %vm2413_vm11, %vm2414_vm10  ;;  %v10261_v17 = vld [vmem:[%s17131_s2 + $0xec] sm:$0xf0]  ;;  %v10259_v15 = vld [vmem:[%s17131_s2 + $0xe4] sm:$0xf] }
 0x41c   :  { %v13267_v30 = vadd.f32 %v2465_v62, %v2463_v53  ;;  %v2410_v59 = vsub.f32 1.0, %v2409_v0  ;;  %2684 = vmatpush.bf16.msra.mxu0 %v8121_v7  ;;  %v8117_v23 = vor.u32 %v10200_v12, %v8114_v21  ;;  %vm2439_vm0 = vweird.f32 %v13223_v13  ;;  %v17199_v7 = vld [vmem:[#allocation7_spill] sm:$0xff] }
 0x41d   :  { %v2374_v56 = vadd.f32 %v13209_v40, %v2373_v57  ;;  %10738 = vrcp.f32 %v13271_v58  ;;  %vm2438_vm1 = vweird.f32 %v13132_v55  ;;  %v2444_v35 = vand.u32 2147483648, %v13132_v55 }
 0x41e   :  { %v2411_v27 = vmul.f32 %v13241_v49, %v2410_v59  ;;  %2713 = vmatpush.bf16.msra.mxu2 %v8113_v42  ;;  %2727 = vmatpush.bf16.msra.mxu3 %v8117_v23  ;;  %10740 = vtanh.f32 %v13267_v30  ;;  %v2457_v61 = vand.u32 2147483647, %v13271_v58  ;;  %vm2440_vm3 = vmor %vm2438_vm1, %vm2439_vm0  ;;  %vm2453_vm4 = vweird.f32 %v13271_v58 }
 0x41f   :  { %v2378_v54 = vsel %vm2377_vm12, %v13209_v40, %v2374_v56  ;;  %v2436_v40 = vmul.f32 %v13223_v13, %v2435_v48  ;;  %v2445_v20 = vor.u32 1.1754944e-38, %v2444_v35  ;;  %vm2443_vm6 = vcmp.eq.f32.partialorder %v2442_v47, 8.507059e+37  ;;  %v8360_v56 = vld [vmem:[%s17131_s2 + $0xf8] sm:$0xf0]  ;;  %v10257_v48 = vld [vmem:[%s17131_s2 + $0xcc] sm:$0xf0] }
 0x420   :  { %v2412_v19 = vadd.f32 %v13241_v49, %v2411_v27  ;;  %v2383_v63 = vsel %vm2380_vm13, %v2382_v16, %v2378_v54  ;;  %2685 = vmatpush.bf16.msra.mxu0 %v8105_v51  ;;  %vm2458_vm7 = vcmp.eq.f32.partialorder %v2457_v61, 8.507059e+37  ;;  %v279_v34 = vadd.f32 %v17199_v7, %v11684_v22  ;;  %v10262_v51 = vld [vmem:[%s17131_s2 + $0xf4] sm:$0xf0]  ;;  %v10260_v27 = vld [vmem:[%s17131_s2 + $0xec] sm:$0xf]  ;;  %v17203_v61 = vld [vmem:[#allocation12_spill] sm:$0xff] }
 0x421   :  { %v2466_v33 = vmul.f32 %v10737_v39, %v2383_v63  ;;  %v2437_v4 = vadd.f32 %v13223_v13, %v2436_v40  ;;  %v328_v59 = vadd.f32 %v17200_v25, %v11709_v11  ;;  %v8359_v39 = vor.u32 %v10262_v51, %v8358_v44  ;;  %v8334_v16 = vld [vmem:[%s17131_s2 + $0xc0] sm:$0xf]  ;;  %v10255_v54 = vld [vmem:[%s17131_s2 + $0xc4] sm:$0xf]  ;;  %v8336_v63 = vld [vmem:[%s17131_s2 + $0xd0] sm:$0xf0] }
 0x422   :  { %v2416_v43 = vsel %vm2415_vm14, %v13241_v49, %v2412_v19  ;;  %v8363_v21 = vor.u32 %v10260_v27, %v8360_v56  ;;  %v8339_v23 = vor.u32 %v10255_v54, %v8336_v63  ;;  %v10253_v35 = vld [vmem:[%s17131_s2 + $0xac] sm:$0xf0]  ;;  %v17202_v47 = vld [vmem:[#allocation11_spill] sm:$0xff]  ;;  %v8304_v27 = vld [vmem:[%s17131_s2 + $0x90] sm:$0xf0] }
 0x423   :  { %v2421_v14 = vsel %vm2418_vm15, %v2420_v8, %v2416_v43  ;;  %v10739_v60 = vpop.eup %10738  ;;  %v2441_v62 = vsel %vm2440_vm3, %v13223_v13, %v2437_v4  ;;  %v8350_v13 = vld [vmem:[%s17131_s2 + $0xe0] sm:$0xf]  ;;  %3101 = vmatpush.bf16.msrb.mxu2 %v8359_v39  ;;  %v8335_v8 = vor.u32 %v10257_v48, %v8334_v16  ;;  %v8342_v43 = vld [vmem:[%s17131_s2 + $0xc8] sm:$0xf]  ;;  %v10250_v16 = vld [vmem:[%s17131_s2 + $0x94] sm:$0xf0] }
 0x424   :  { %v2464_v26 = vmul.f32 %v2421_v14, %v12969_v5  ;;  %v2449_v45 = vmul.f32 %v10739_v60, %v13271_v58  ;;  %v2459_v5 = vand.u32 2147483648, %v13271_v58  ;;  %vm2454_vm2 = vweird.f32 %v10739_v60  ;;  %v10741_v2 = vpop.eup %10740  ;;  %v8352_v58 = vld [vmem:[%s17131_s2 + $0xf0] sm:$0xf0]  ;;  %3115 = vmatpush.bf16.msrb.mxu3 %v8363_v21  ;;  %v10256_v14 = vld [vmem:[%s17131_s2 + $0xcc] sm:$0xf] }
 0x425   :  { %vm2455_vm5 = vmor %vm2453_vm4, %vm2454_vm2  ;;  %v2446_v0 = vsel %vm2443_vm6, %v2445_v20, %v2441_v62  ;;  %v8351_v57 = vor.u32 %v10261_v17, %v8350_v13  ;;  %v8355_v52 = vor.u32 %v10259_v15, %v8352_v58  ;;  %v330_v62 = vadd.f32 %v17203_v61, %v11709_v11  ;;  %v8320_v20 = vld [vmem:[%s17131_s2 + $0xb0] sm:$0xf0]  ;;  %v10252_v13 = vld [vmem:[%s17131_s2 + $0xac] sm:$0xf] }
 0x426   :  { %v13304_v18 = vadd.f32 %v2466_v33, %v2464_v26  ;;  %v2450_v3 = vsub.f32 1.0, %v2449_v45  ;;  %v2460_v41 = vor.u32 1.1754944e-38, %v2459_v5  ;;  %v2471_v24 = vmul.f32 %v10741_v2, %v2446_v0  ;;  %v10258_v33 = vld [vmem:[%s17131_s2 + $0xd4] sm:$0xf0]  ;;  %v8344_v26 = vld [vmem:[%s17131_s2 + $0xd8] sm:$0xf0] }
 0x427   :  { %3073 = vmatpush.bf16.msrb.mxu0 %v8351_v57  ;;  %3087 = vmatpush.bf16.msrb.mxu1 %v8355_v52  ;;  %v8343_v40 = vor.u32 %v10258_v33, %v8342_v43  ;;  %v8347_v4 = vor.u32 %v10256_v14, %v8344_v26  ;;  %v10251_v5 = vld [vmem:[%s17131_s2 + $0xa4] sm:$0xf]  ;;  %v8328_v17 = vld [vmem:[%s17131_s2 + $0xb8] sm:$0xf0]  ;;  %v10249_v57 = vld [vmem:[%s17131_s2 + $0x8c] sm:$0xf0] }
 0x428   :  { %10742 = vtanh.f32 %v13304_v18  ;;  %v2451_v49 = vmul.f32 %v10739_v60, %v2450_v3  ;;  %v8318_v3 = vld [vmem:[%s17131_s2 + $0xa0] sm:$0xf]  ;;  %v8310_v21 = vld [vmem:[%s17131_s2 + $0x88] sm:$0xf]  ;;  %v10248_v48 = vld [vmem:[%s17131_s2 + $0x8c] sm:$0xf] }
 0x429   :  { %3102 = vmatpush.bf16.msrb.mxu2 %v8343_v40  ;;  %v8319_v2 = vor.u32 %v10253_v35, %v8318_v3  ;;  %3116 = vmatpush.bf16.msrb.mxu3 %v8347_v4  ;;  %v8312_v54 = vld [vmem:[%s17131_s2 + $0x98] sm:$0xf0]  ;;  %v10243_v43 = vld [vmem:[%s17131_s2 + $0x64] sm:$0xf]  ;;  %v17205_v33 = vld [vmem:[#allocation14_spill] sm:$0xff]  ;;  %v8311_v40 = vor.u32 %v10250_v16, %v8310_v21 }
 0x42a   :  { %v2452_v50 = vadd.f32 %v10739_v60, %v2451_v49  ;;  %v281_v49 = vadd.f32 %v17202_v47, %v11684_v22  ;;  %v428_v14 = vadd.f32 %v17205_v33, %v11748_v9  ;;  %v8288_v26 = vld [vmem:[%s17131_s2 + $0x70] sm:$0xf0]  ;;  %v8315_v3 = vor.u32 %v10248_v48, %v8312_v54  ;;  %v10246_v47 = vld [vmem:[%s17131_s2 + $0x74] sm:$0xf0]  ;;  %v8296_v61 = vld [vmem:[%s17131_s2 + $0x78] sm:$0xf0] }
 0x42b   :  { %3074 = vmatpush.bf16.msrb.mxu0 %v8335_v8  ;;  %3088 = vmatpush.bf16.msrb.mxu1 %v8339_v23  ;;  %v10245_v23 = vld [vmem:[%s17131_s2 + $0x6c] sm:$0xf0]  ;;  %v8272_v48 = vld [vmem:[%s17131_s2 + $0x50] sm:$0xf0]  ;;  %v8278_v54 = vld [vmem:[%s17131_s2 + $0x48] sm:$0xf] }
 0x42c   :  { %v2456_v46 = vsel %vm2455_vm5, %v10739_v60, %v2452_v50  ;;  %v17201_v60 = vld [vmem:[#allocation10_spill] sm:$0xff]  ;;  %v10232_v33 = vld [vmem:[%s17131_s2 + $0xc] sm:$0xf] }
 0x42d   :  { %v2461_v55 = vsel %vm2458_vm7, %v2460_v41, %v2456_v46  ;;  %v426_v45 = vadd.f32 %v17201_v60, %v11748_v9  ;;  %v8326_v41 = vld [vmem:[%s17131_s2 + $0xa8] sm:$0xf] }
 0x42e   :  { %v10743_v53 = vpop.eup %10742  ;;  %v8294_v60 = vld [vmem:[%s17131_s2 + $0x68] sm:$0xf] }
 0x42f   :  { %v2472_v38 = vmul.f32 %v10743_v53, %v2461_v55  ;;  %v10254_v53 = vld [vmem:[%s17131_s2 + $0xb4] sm:$0xf0]  ;;  %3075 = vmatpush.bf16.msrb.mxu0 %v8319_v2  ;;  %v8295_v2 = vor.u32 %v10246_v47, %v8294_v60  ;;  %v10237_v47 = vld [vmem:[%s17131_s2 + $0x2c] sm:$0xf0] }
 0x431   :  { %v13318_v32 = vpack.c.bf16 %v2472_v38, %v2471_v24  ;;  %v8323_v24 = vor.u32 %v10251_v5, %v8320_v20  ;;  %v8327_v38 = vor.u32 %v10254_v53, %v8326_v41  ;;  %v8291_v5 = vor.u32 %v10243_v43, %v8288_v26 }
 0x433   :  { %2686 = vmatmul.bf16.vlgmr.msra.gmra.mxu0 %v13318_v32  ;;  %2700 = vmatmul.bf16.vlgmr.msra.gmra.mxu1 %v13318_v32 }
 0x434   :  { %2714 = vmatmul.bf16.vlgmr.msra.gmra.mxu2 %v13318_v32  ;;  %2728 = vmatmul.bf16.vlgmr.msra.gmra.mxu3 %v13318_v32 }
 0x435   :  { %3089 = vmatpush.bf16.msrb.mxu1 %v8323_v24  ;;  %3103 = vmatpush.bf16.msrb.mxu2 %v8327_v38  ;;  %v17206_v24 = vld [vmem:[#allocation13_spill] sm:$0xff] }
 0x436   :  { %v379_v38 = vadd.f32 %v17206_v24, %v11819_v10  ;;  %v10236_v24 = vld [vmem:[%s17131_s2 + $0x2c] sm:$0xf] }
 0x439   :  { %3104 = vmatpush.bf16.msrb.mxu2 %v8311_v40 }
 0x43d   :  { %3105 = vmatpush.bf16.msrb.mxu2 %v8295_v2 }
 0x4b0   :  { %v2687_v37 = vpop.f32.mrf.mxu0  ;;  %v2701_v6 = vpop.f32.mrf.mxu1 }
 0x4b1   :  { %v2734_v36 = vadd.f32 %v2687_v37, %v279_v34  ;;  %v2735_v12 = vadd.f32 %v2701_v6, %v328_v59  ;;  %v8331_v34 = vor.u32 %v10252_v13, %v8328_v17  ;;  %v8302_v59 = vld [vmem:[%s17131_s2 + $0x80] sm:$0xf]  ;;  %v10247_v37 = vld [vmem:[%s17131_s2 + $0x84] sm:$0xf] }
 0x4b2   :  { %v8303_v51 = vor.u32 %v10249_v57, %v8302_v59 }
 0x4b3   :  { %v8230_v19 = vmul.f32 -1.442695, %v2734_v36  ;;  %v8232_v42 = vmul.f32 -1.442695, %v2735_v12  ;;  %3117 = vmatpush.bf16.msrb.mxu3 %v8331_v34  ;;  %v8307_v12 = vor.u32 %v10247_v37, %v8304_v27  ;;  %v8240_v37 = vld [vmem:[%s17131_s2 + $0x10] sm:$0xf0] }
 0x4b4   :  { %3076 = vmatpush.bf16.msrb.mxu0 %v8303_v51 }
 0x4b5   :  { %10744 = vpow2.f32 %v8230_v19  ;;  %3090 = vmatpush.bf16.msrb.mxu1 %v8307_v12  ;;  %v8286_v19 = vld [vmem:[%s17131_s2 + $0x60] sm:$0xf]  ;;  %v10239_v12 = vld [vmem:[%s17131_s2 + $0x44] sm:$0xf] }
 0x4b6   :  { %10746 = vpow2.f32 %v8232_v42  ;;  %v17204_v42 = vld [vmem:[#allocation9_spill] sm:$0xff]  ;;  %v8287_v35 = vor.u32 %v10245_v23, %v8286_v19  ;;  %v10242_v19 = vld [vmem:[%s17131_s2 + $0x54] sm:$0xf0]  ;;  %v8280_v23 = vld [vmem:[%s17131_s2 + $0x58] sm:$0xf0] }
 0x4b7   :  { %v2729_v50 = vpop.f32.mrf.mxu3  ;;  %v2715_v36 = vpop.f32.mrf.mxu2  ;;  %v377_v8 = vadd.f32 %v17204_v42, %v11819_v10  ;;  %3118 = vmatpush.bf16.msrb.mxu3 %v8315_v3 }
 0x4b8   :  { %v2737_v46 = vadd.f32 %v2729_v50, %v426_v45  ;;  %v2689_v0 = vpop.f32.mrf.mxu0  ;;  %v2703_v55 = vpop.f32.mrf.mxu1  ;;  %3077 = vmatpush.bf16.msrb.mxu0 %v8287_v35  ;;  %v8275_v35 = vor.u32 %v10239_v12, %v8272_v48 }
 0x4b9   :  { %v2738_v15 = vadd.f32 %v2689_v0, %v281_v49  ;;  %v2739_v7 = vadd.f32 %v2703_v55, %v330_v62  ;;  %v2736_v4 = vadd.f32 %v2715_v36, %v377_v8  ;;  %v10244_v49 = vld [vmem:[%s17131_s2 + $0x6c] sm:$0xf]  ;;  %3091 = vmatpush.bf16.msrb.mxu1 %v8291_v5  ;;  %v8279_v5 = vor.u32 %v10242_v19, %v8278_v54 }
 0x4ba   :  { %v8234_v25 = vmul.f32 -1.442695, %v2737_v46  ;;  %v8299_v0 = vor.u32 %v10244_v49, %v8296_v61  ;;  %v10235_v49 = vld [vmem:[%s17131_s2 + $0x24] sm:$0xf]  ;;  %v8256_v61 = vld [vmem:[%s17131_s2 + $0x30] sm:$0xf0] }
 0x4bb   :  { %v10745_v58 = vpop.eup %10744  ;;  %v8231_v44 = vmul.f32 -1.442695, %v2738_v15  ;;  %v8233_v39 = vmul.f32 -1.442695, %v2739_v7  ;;  %3106 = vmatpush.bf16.msrb.mxu2 %v8279_v5 }
 0x4bc   :  { %v10747_v6 = vpop.eup %10746  ;;  %v13415_v52 = vadd.f32 1.0, %v10745_v58  ;;  %10748 = vpow2.f32 %v8234_v25  ;;  %3119 = vmatpush.bf16.msrb.mxu3 %v8299_v0  ;;  %v10238_v0 = vld [vmem:[%s17131_s2 + $0x34] sm:$0xf0] }
 0x4bd   :  { %v13420_v56 = vadd.f32 1.0, %v10747_v6  ;;  %10750 = vpow2.f32 %v8231_v44  ;;  %v8270_v6 = vld [vmem:[%s17131_s2 + $0x40] sm:$0xf]  ;;  %3092 = vmatpush.bf16.msrb.mxu1 %v8275_v35 }
 0x4be   :  { %10752 = vrcp.f32 %v13415_v52  ;;  %v2759_v41 = vand.u32 2147483647, %v13415_v52  ;;  %v2761_v17 = vand.u32 2147483648, %v13415_v52  ;;  %vm2755_vm12 = vweird.f32 %v13415_v52 }
 0x4bf   :  { %10754 = vrcp.f32 %v13420_v56  ;;  %v2731_v63 = vpop.f32.mrf.mxu3  ;;  %v2799_v34 = vand.u32 2147483648, %v13420_v56  ;;  %v2797_v25 = vand.u32 2147483647, %v13420_v56  ;;  %v2717_v58 = vpop.f32.mrf.mxu2  ;;  %vm2793_vm11 = vweird.f32 %v13420_v56 }
 0x4c0   :  { %10756 = vpow2.f32 %v8233_v39  ;;  %v2741_v50 = vadd.f32 %v2731_v63, %v428_v14  ;;  %vm13486_vm9 = vcmp.eq.f32.partialorder %v2759_v41, 8.507059e+37  ;;  %v10241_v39 = vld [vmem:[%s17131_s2 + $0x4c] sm:$0xf0]  ;;  %v2762_v36 = vor.u32 1.1754944e-38, %v2761_v17  ;;  %v10240_v63 = vld [vmem:[%s17131_s2 + $0x4c] sm:$0xf] }
 0x4c1   :  { %10758 = vtanh.f32 %v2736_v4  ;;  %v2740_v16 = vadd.f32 %v2717_v58, %v379_v38  ;;  %v2800_v42 = vor.u32 1.1754944e-38, %v2799_v34  ;;  %vm13535_vm15 = vcmp.eq.f32.partialorder %v2797_v25, 8.507059e+37  ;;  %v8262_v41 = vld [vmem:[%s17131_s2 + $0x28] sm:$0xf]  ;;  %v10233_v34 = vld [vmem:[%s17131_s2 + $0xc] sm:$0xf0] }
 0x4c2   :  { %v10749_v45 = vpop.eup %10748  ;;  %v8235_v44 = vmul.f32 -1.442695, %v2741_v50  ;;  %v8283_v17 = vor.u32 %v10240_v63, %v8280_v23 }
 0x4c3   :  { %v10751_v62 = vpop.eup %10750  ;;  %v13467_v53 = vadd.f32 1.0, %v10749_v45  ;;  %v8254_v45 = vld [vmem:[%s17131_s2 + $0x20] sm:$0xf] }
 0x4c4   :  { %v13464_v20 = vpop.eup %10752  ;;  %v13469_v46 = vadd.f32 1.0, %v10751_v62  ;;  %3120 = vmatpush.bf16.msrb.mxu3 %v8283_v17 }
 0x4c5   :  { %v13471_v55 = vpop.eup %10754  ;;  %v2751_v13 = vmul.f32 %v13464_v20, %v13415_v52  ;;  %vm2756_vm8 = vweird.f32 %v13464_v20  ;;  %v10234_v52 = vld [vmem:[%s17131_s2 + $0x14] sm:$0xf0] }
 0x4c6   :  { %v10757_v15 = vpop.eup %10756  ;;  %v2789_v7 = vmul.f32 %v13471_v55, %v13420_v56  ;;  %10760 = vrcp.f32 %v13469_v46  ;;  %vm2794_vm10 = vweird.f32 %v13471_v55  ;;  %vm13518_vm13 = vmor %vm2755_vm12, %vm2756_vm8  ;;  %v8271_v56 = vor.u32 %v10241_v39, %v8270_v6 }
 0x4c7   :  { %v2752_v59 = vsub.f32 1.0, %v2751_v13  ;;  %v13483_v57 = vadd.f32 1.0, %v10757_v15  ;;  %10762 = vrcp.f32 %v13467_v53  ;;  %v10759_v43 = vpop.eup %10758  ;;  %vm13530_vm14 = vmor %vm2793_vm11, %vm2794_vm10  ;;  %v2774_v60 = vand.u32 2147483647, %v13469_v46  ;;  %v8264_v15 = vld [vmem:[%s17131_s2 + $0x38] sm:$0xf0] }
 0x4c8   :  { %v2790_v51 = vsub.f32 1.0, %v2789_v7  ;;  %3078 = vmatpush.bf16.msrb.mxu0 %v8271_v56  ;;  %vm2770_vm0 = vweird.f32 %v13469_v46  ;;  %v8238_v7 = vld [vmem:[%s17131_s2] sm:$0xf]  ;;  %v8267_v54 = vor.u32 %v10236_v24, %v8264_v15  ;;  %v2839_v24 = vand.u32 2147483648, %v13467_v53 }
 0x4c9   :  { %v2753_v27 = vmul.f32 %v13464_v20, %v2752_v59  ;;  %10764 = vrcp.f32 %v13483_v57  ;;  %v2814_v26 = vand.u32 2147483648, %v13483_v57  ;;  %v8239_v19 = vor.u32 %v10233_v34, %v8238_v7 }
 0x4ca   :  { %v2791_v21 = vmul.f32 %v13471_v55, %v2790_v51  ;;  %10766 = vpow2.f32 %v8235_v44  ;;  %v2776_v44 = vand.u32 2147483648, %v13469_v46  ;;  %v10231_v51 = vld [vmem:[%s17131_s2 + $0x4] sm:$0xf]  ;;  %vm2808_vm3 = vweird.f32 %v13483_v57  ;;  %3121 = vmatpush.bf16.msrb.mxu3 %v8267_v54 }
 0x4cb   :  { %v2754_v8 = vadd.f32 %v13464_v20, %v2753_v27  ;;  %10768 = vtanh.f32 %v2740_v16  ;;  %v8259_v27 = vor.u32 %v10235_v49, %v8256_v61  ;;  %vm2775_vm5 = vcmp.eq.f32.partialorder %v2774_v60, 8.507059e+37 }
 0x4cc   :  { %v2792_v14 = vadd.f32 %v13471_v55, %v2791_v21  ;;  %v13544_v4 = vpop.eup %10760  ;;  %v2777_v40 = vor.u32 1.1754944e-38, %v2776_v44  ;;  %v2840_v34 = vor.u32 1.1754944e-38, %v2839_v24  ;;  %v8436_v24 = vld [vmem:[%s17131_s2 + $0x80] sm:$0xf] }
 0x4cd   :  { %v2758_v3 = vsel %vm13518_vm13, %v13464_v20, %v2754_v8  ;;  %v13558_v62 = vpop.eup %10762  ;;  %v2766_v20 = vmul.f32 %v13544_v4, %v13469_v46  ;;  %vm2771_vm1 = vweird.f32 %v13544_v4  ;;  %3093 = vmatpush.bf16.msrb.mxu1 %v8259_v27  ;;  %v8246_v8 = vld [vmem:[%s17131_s2 + $0x8] sm:$0xf] }
 0x4ce   :  { %v2763_v50 = vsel %vm13486_vm9, %v2762_v36, %v2758_v3  ;;  %v2796_v2 = vsel %vm13530_vm14, %v13471_v55, %v2792_v14  ;;  %v2829_v39 = vmul.f32 %v13558_v62, %v13467_v53  ;;  %v8263_v36 = vor.u32 %v10238_v0, %v8262_v41  ;;  %v8248_v14 = vld [vmem:[%s17131_s2 + $0x18] sm:$0xf0]  ;;  %vm2772_vm4 = vmor %vm2770_vm0, %vm2771_vm1 }
 0x4cf   :  { %v13576_v38 = vpop.eup %10764  ;;  %v2801_v55 = vsel %vm13535_vm15, %v2800_v42, %v2796_v2  ;;  %v2860_v13 = vmul.f32 %v10759_v43, %v2763_v50  ;;  %v2767_v59 = vsub.f32 1.0, %v2766_v20  ;;  %v8243_v42 = vor.u32 %v10231_v51, %v8240_v37 }
 0x4d0   :  { %v2858_v25 = vmul.f32 %v2801_v55, %v13267_v30  ;;  %v2804_v58 = vmul.f32 %v13576_v38, %v13483_v57  ;;  %v10767_v6 = vpop.eup %10766  ;;  %v8255_v30 = vor.u32 %v10237_v47, %v8254_v45  ;;  %vm2809_vm2 = vweird.f32 %v13576_v38  ;;  %3107 = vmatpush.bf16.msrb.mxu2 %v8263_v36  ;;  %v8486_v36 = vld [vmem:[%s17131_s2 + $0xf0] sm:$0xf0] }
 0x4d1   :  { %v2768_v16 = vmul.f32 %v13544_v4, %v2767_v59  ;;  %v13606_v48 = vadd.f32 1.0, %v10767_v6  ;;  %v10769_v56 = vpop.eup %10768  ;;  %v2812_v43 = vand.u32 2147483647, %v13483_v57  ;;  %v2830_v45 = vsub.f32 1.0, %v2829_v39  ;;  %vm2810_vm6 = vmor %vm2808_vm3, %vm2809_vm2  ;;  %3094 = vmatpush.bf16.msrb.mxu1 %v8243_v42  ;;  %v10293_v39 = vld [vmem:[%s17131_s2 + $0xec] sm:$0xf0] }
 0x4d2   :  { %v13602_v12 = vadd.f32 %v2860_v13, %v2858_v25  ;;  %v2805_v21 = vsub.f32 1.0, %v2804_v58  ;;  %3079 = vmatpush.bf16.msrb.mxu0 %v8255_v30  ;;  %v8247_v5 = vor.u32 %v10234_v52, %v8246_v8  ;;  %v2815_v47 = vor.u32 1.1754944e-38, %v2814_v26  ;;  %v10291_v30 = vld [vmem:[%s17131_s2 + $0xe4] sm:$0xf]  ;;  %v8494_v42 = vld [vmem:[%s17131_s2 + $0xf8] sm:$0xf0] }
 0x4d3   :  { %v2769_v23 = vadd.f32 %v13544_v4, %v2768_v16  ;;  %10770 = vrcp.f32 %v13606_v48  ;;  %v8251_v46 = vor.u32 %v10232_v33, %v8248_v14  ;;  %vm2813_vm7 = vcmp.eq.f32.partialorder %v2812_v43, 8.507059e+37  ;;  %v10294_v16 = vld [vmem:[%s17131_s2 + $0xf4] sm:$0xf0]  ;;  %v8468_v52 = vld [vmem:[%s17131_s2 + $0xc0] sm:$0xf] }
 0x4d4   :  { %v2806_v63 = vmul.f32 %v13576_v38, %v2805_v21  ;;  %3108 = vmatpush.bf16.msrb.mxu2 %v8247_v5  ;;  %10772 = vtanh.f32 %v13602_v12  ;;  %vm2834_vm8 = vweird.f32 %v13558_v62  ;;  %vm2833_vm9 = vweird.f32 %v13467_v53  ;;  %v8492_v21 = vld [vmem:[%s17131_s2 + $0xe8] sm:$0xf]  ;;  %v8470_v43 = vld [vmem:[%s17131_s2 + $0xd0] sm:$0xf0]  ;;  %v10290_v14 = vld [vmem:[%s17131_s2 + $0xd4] sm:$0xf0] }
 0x4d5   :  { %v2773_v3 = vsel %vm2772_vm4, %v13544_v4, %v2769_v23  ;;  %3122 = vmatpush.bf16.msrb.mxu3 %v8251_v46  ;;  %v2831_v4 = vmul.f32 %v13558_v62, %v2830_v45  ;;  %v2852_v13 = vand.u32 2147483647, %v13606_v48  ;;  %vm2835_vm11 = vmor %vm2833_vm9, %vm2834_vm8  ;;  %vm2848_vm12 = vweird.f32 %v13606_v48  ;;  %v8476_v33 = vld [vmem:[%s17131_s2 + $0xc8] sm:$0xf]  ;;  %v10283_v46 = vld [vmem:[%s17131_s2 + $0xa4] sm:$0xf] }
 0x4d6   :  { %v2807_v35 = vadd.f32 %v13576_v38, %v2806_v63  ;;  %v2778_v49 = vsel %vm2775_vm5, %v2777_v40, %v2773_v3  ;;  %3080 = vmatpush.bf16.msrb.mxu0 %v8239_v19  ;;  %v8493_v54 = vor.u32 %v10294_v16, %v8492_v21  ;;  %v10292_v19 = vld [vmem:[%s17131_s2 + $0xec] sm:$0xf]  ;;  %v10287_v63 = vld [vmem:[%s17131_s2 + $0xc4] sm:$0xf]  ;;  %v8477_v45 = vor.u32 %v10290_v14, %v8476_v33  ;;  %v10277_v21 = vld [vmem:[%s17131_s2 + $0x6c] sm:$0xf0] }
 0x4d7   :  { %v2861_v61 = vmul.f32 %v10769_v56, %v2778_v49  ;;  %v2832_v26 = vadd.f32 %v13558_v62, %v2831_v4  ;;  %vm2853_vm15 = vcmp.eq.f32.partialorder %v2852_v13, 8.507059e+37  ;;  %v8497_v8 = vor.u32 %v10292_v19, %v8494_v42  ;;  %v10289_v56 = vld [vmem:[%s17131_s2 + $0xcc] sm:$0xf0]  ;;  %v10288_v3 = vld [vmem:[%s17131_s2 + $0xcc] sm:$0xf] }
 0x4d8   :  { %v2811_v60 = vsel %vm2810_vm6, %v13576_v38, %v2807_v35  ;;  %v2837_v38 = vand.u32 2147483647, %v13467_v53  ;;  %3496 = vmatpush.bf16.msra.mxu2 %v8493_v54  ;;  %v8469_v23 = vor.u32 %v10289_v56, %v8468_v52  ;;  %v8473_v40 = vor.u32 %v10287_v63, %v8470_v43  ;;  %v8478_v35 = vld [vmem:[%s17131_s2 + $0xd8] sm:$0xf0]  ;;  %v10285_v49 = vld [vmem:[%s17131_s2 + $0xac] sm:$0xf0] }
 0x4d9   :  { %v2816_v50 = vsel %vm2813_vm7, %v2815_v47, %v2811_v60  ;;  %v10771_v20 = vpop.eup %10770  ;;  %v2836_v17 = vsel %vm2835_vm11, %v13558_v62, %v2832_v26  ;;  %v8484_v62 = vld [vmem:[%s17131_s2 + $0xe0] sm:$0xf]  ;;  %3510 = vmatpush.bf16.msra.mxu3 %v8497_v8  ;;  %v8481_v5 = vor.u32 %v10288_v3, %v8478_v35  ;;  %v10286_v4 = vld [vmem:[%s17131_s2 + $0xb4] sm:$0xf0]  ;;  %v8462_v26 = vld [vmem:[%s17131_s2 + $0xb8] sm:$0xf0] }
 0x4da   :  { %v2859_v2 = vmul.f32 %v2816_v50, %v13304_v18  ;;  %v2844_v57 = vmul.f32 %v10771_v20, %v13606_v48  ;;  %v2854_v18 = vand.u32 2147483648, %v13606_v48  ;;  %vm2849_vm10 = vweird.f32 %v10771_v20  ;;  %v10773_v7 = vpop.eup %10772  ;;  %v8452_v47 = vld [vmem:[%s17131_s2 + $0xa0] sm:$0xf]  ;;  %v8460_v50 = vld [vmem:[%s17131_s2 + $0xa8] sm:$0xf]  ;;  %v17217_v3 = vld [vmem:[#allocation18_spill] sm:$0xff] }
 0x4db   :  { %vm2850_vm13 = vmor %vm2848_vm12, %vm2849_vm10  ;;  %vm2838_vm14 = vcmp.eq.f32.partialorder %v2837_v38, 8.507059e+37  ;;  %v8485_v27 = vor.u32 %v10293_v39, %v8484_v62  ;;  %v8489_v48 = vor.u32 %v10291_v30, %v8486_v36  ;;  %v8453_v60 = vor.u32 %v10285_v49, %v8452_v47  ;;  %v10279_v38 = vld [vmem:[%s17131_s2 + $0x84] sm:$0xf]  ;;  %v8438_v13 = vld [vmem:[%s17131_s2 + $0x90] sm:$0xf0] }
 0x4dc   :  { %v13639_v41 = vadd.f32 %v2861_v61, %v2859_v2  ;;  %v2845_v0 = vsub.f32 1.0, %v2844_v57  ;;  %v2855_v25 = vor.u32 1.1754944e-38, %v2854_v18  ;;  %v2841_v44 = vsel %vm2838_vm14, %v2840_v34, %v2836_v17  ;;  %3497 = vmatpush.bf16.msra.mxu2 %v8477_v45  ;;  %v8454_v61 = vld [vmem:[%s17131_s2 + $0xb0] sm:$0xf0]  ;;  %v10284_v57 = vld [vmem:[%s17131_s2 + $0xac] sm:$0xf] }
 0x4dd   :  { %v2866_v51 = vmul.f32 %v10773_v7, %v2841_v44  ;;  %3468 = vmatpush.bf16.msra.mxu0 %v8485_v27  ;;  %3482 = vmatpush.bf16.msra.mxu1 %v8489_v48  ;;  %v8457_v2 = vor.u32 %v10283_v46, %v8454_v61  ;;  %v10281_v18 = vld [vmem:[%s17131_s2 + $0x8c] sm:$0xf0]  ;;  %v8444_v17 = vld [vmem:[%s17131_s2 + $0x88] sm:$0xf]  ;;  %v17215_v7 = vld [vmem:[#allocation15_spill] sm:$0xff]  ;;  %v431_v35 = vadd.f32 %v17217_v3, %v11748_v9 }
 0x4de   :  { %10774 = vtanh.f32 %v13639_v41  ;;  %v2846_v55 = vmul.f32 %v10771_v20, %v2845_v0  ;;  %3511 = vmatpush.bf16.msra.mxu3 %v8481_v5  ;;  %v8465_v0 = vor.u32 %v10284_v57, %v8462_v26  ;;  %v284_v34 = vadd.f32 %v17215_v7, %v11684_v22  ;;  %v8420_v36 = vld [vmem:[%s17131_s2 + $0x60] sm:$0xf]  ;;  %v10275_v16 = vld [vmem:[%s17131_s2 + $0x64] sm:$0xf]  ;;  %v8422_v54 = vld [vmem:[%s17131_s2 + $0x70] sm:$0xf0] }
 0x4df   :  { %v8421_v48 = vor.u32 %v10277_v21, %v8420_v36  ;;  %v8428_v19 = vld [vmem:[%s17131_s2 + $0x68] sm:$0xf]  ;;  %v10278_v42 = vld [vmem:[%s17131_s2 + $0x74] sm:$0xf0]  ;;  %v8425_v56 = vor.u32 %v10275_v16, %v8422_v54  ;;  %v8430_v43 = vld [vmem:[%s17131_s2 + $0x78] sm:$0xf0] }
 0x4e0   :  { %v2847_v15 = vadd.f32 %v10771_v20, %v2846_v55  ;;  %v8437_v55 = vor.u32 %v10281_v18, %v8436_v24  ;;  %v8429_v63 = vor.u32 %v10278_v42, %v8428_v19  ;;  %v8404_v14 = vld [vmem:[%s17131_s2 + $0x40] sm:$0xf]  ;;  %v10271_v45 = vld [vmem:[%s17131_s2 + $0x44] sm:$0xf]  ;;  %v8406_v47 = vld [vmem:[%s17131_s2 + $0x50] sm:$0xf0] }
 0x4e1   :  { %3469 = vmatpush.bf16.msra.mxu0 %v8469_v23  ;;  %3483 = vmatpush.bf16.msra.mxu1 %v8473_v40  ;;  %v10276_v23 = vld [vmem:[%s17131_s2 + $0x6c] sm:$0xf]  ;;  %v10273_v40 = vld [vmem:[%s17131_s2 + $0x4c] sm:$0xf0]  ;;  %v8412_v49 = vld [vmem:[%s17131_s2 + $0x48] sm:$0xf] }
 0x4e2   :  { %v2851_v58 = vsel %vm2850_vm13, %v10771_v20, %v2847_v15  ;;  %v8461_v20 = vor.u32 %v10286_v4, %v8460_v50  ;;  %3512 = vmatpush.bf16.msra.mxu3 %v8465_v0  ;;  %v10282_v15 = vld [vmem:[%s17131_s2 + $0x94] sm:$0xf0]  ;;  %v8433_v33 = vor.u32 %v10276_v23, %v8430_v43  ;;  %v8405_v5 = vor.u32 %v10273_v40, %v8404_v14  ;;  %v17219_v50 = vld [vmem:[#allocation20_spill] sm:$0xff]  ;;  %v10272_v26 = vld [vmem:[%s17131_s2 + $0x4c] sm:$0xf] }
 0x4e3   :  { %v2856_v53 = vsel %vm2853_vm15, %v2855_v25, %v2851_v58  ;;  %v17216_v25 = vld [vmem:[#allocation16_spill] sm:$0xff]  ;;  %v8441_v58 = vor.u32 %v10279_v38, %v8438_v13  ;;  %v8445_v44 = vor.u32 %v10282_v15, %v8444_v17  ;;  %v10274_v46 = vld [vmem:[%s17131_s2 + $0x54] sm:$0xf0]  ;;  %v335_v4 = vadd.f32 %v17219_v50, %v11709_v11  ;;  %v8414_v0 = vld [vmem:[%s17131_s2 + $0x58] sm:$0xf0] }
 0x4e4   :  { %v10775_v59 = vpop.eup %10774  ;;  %3498 = vmatpush.bf16.msra.mxu2 %v8461_v20  ;;  %v8409_v20 = vor.u32 %v10271_v45, %v8406_v47  ;;  %v8413_v57 = vor.u32 %v10274_v46, %v8412_v49  ;;  %v8388_v15 = vld [vmem:[%s17131_s2 + $0x20] sm:$0xf]  ;;  %v10269_v7 = vld [vmem:[%s17131_s2 + $0x2c] sm:$0xf0]  ;;  %v10268_v16 = vld [vmem:[%s17131_s2 + $0x2c] sm:$0xf] }
 0x4e5   :  { %v2867_v37 = vmul.f32 %v10775_v59, %v2856_v53  ;;  %3470 = vmatpush.bf16.msra.mxu0 %v8453_v60  ;;  %3484 = vmatpush.bf16.msra.mxu1 %v8457_v2  ;;  %v333_v59 = vadd.f32 %v17216_v25, %v11709_v11  ;;  %v10280_v53 = vld [vmem:[%s17131_s2 + $0x8c] sm:$0xf]  ;;  %v17218_v60 = vld [vmem:[#allocation19_spill] sm:$0xff]  ;;  %v8374_v23 = vld [vmem:[%s17131_s2 + $0x10] sm:$0xf0] }
 0x4e6   :  { %v286_v61 = vadd.f32 %v17218_v60, %v11684_v22  ;;  %v17220_v42 = vld [vmem:[#allocation17_spill] sm:$0xff]  ;;  %v10266_v45 = vld [vmem:[%s17131_s2 + $0x14] sm:$0xf0]  ;;  %v8382_v46 = vld [vmem:[%s17131_s2 + $0x18] sm:$0xf0] }
 0x4e7   :  { %v13653_v6 = vpack.c.bf16 %v2867_v37, %v2866_v51  ;;  %v8446_v51 = vld [vmem:[%s17131_s2 + $0x98] sm:$0xf0]  ;;  %v8380_v40 = vld [vmem:[%s17131_s2 + $0x8] sm:$0xf]  ;;  %v10264_v49 = vld [vmem:[%s17131_s2 + $0xc] sm:$0xf] }
 0x4e8   :  { %v8449_v39 = vor.u32 %v10280_v53, %v8446_v51  ;;  %3499 = vmatpush.bf16.msra.mxu2 %v8445_v44  ;;  %v8396_v44 = vld [vmem:[%s17131_s2 + $0x28] sm:$0xf]  ;;  %v8381_v50 = vor.u32 %v10266_v45, %v8380_v40  ;;  %v10321_v40 = vld [vmem:[%s17129_s1 + $0x1cc] sm:$0xf0] }
 0x4e9   :  { %3081 = vmatmul.bf16.vlgmr.msrb.gmra.mxu0 %v13653_v6  ;;  %3095 = vmatmul.bf16.vlgmr.msrb.gmra.mxu1 %v13653_v6  ;;  %v17221_v3 = vld [vmem:[#allocation21_spill] sm:$0xff] }
 0x4ea   :  { %3109 = vmatmul.bf16.vlgmr.msrb.gmra.mxu2 %v13653_v6  ;;  %3123 = vmatmul.bf16.vlgmr.msrb.gmra.mxu3 %v13653_v6 }
 0x4eb   :  { %3471 = vmatpush.bf16.msra.mxu0 %v8437_v55  ;;  %3485 = vmatpush.bf16.msra.mxu1 %v8441_v58  ;;  %v8417_v55 = vor.u32 %v10272_v26, %v8414_v0  ;;  %v8390_v58 = vld [vmem:[%s17131_s2 + $0x30] sm:$0xf0] }
 0x4ec   :  { %3513 = vmatpush.bf16.msra.mxu3 %v8449_v39  ;;  %3500 = vmatpush.bf16.msra.mxu2 %v8429_v63  ;;  %v10263_v63 = vld [vmem:[%s17131_s2 + $0x4] sm:$0xf] }
 0x4ef   :  { %3472 = vmatpush.bf16.msra.mxu0 %v8421_v48  ;;  %3486 = vmatpush.bf16.msra.mxu1 %v8425_v56  ;;  %v8398_v48 = vld [vmem:[%s17131_s2 + $0x38] sm:$0xf0]  ;;  %v10265_v56 = vld [vmem:[%s17131_s2 + $0xc] sm:$0xf0] }
 0x4f0   :  { %3514 = vmatpush.bf16.msra.mxu3 %v8433_v33  ;;  %3501 = vmatpush.bf16.msra.mxu2 %v8413_v57  ;;  %v8401_v19 = vor.u32 %v10268_v16, %v8398_v48  ;;  %v10323_v57 = vld [vmem:[%s17129_s1 + $0x1e4] sm:$0xf] }
 0x4f3   :  { %3473 = vmatpush.bf16.msra.mxu0 %v8405_v5  ;;  %3487 = vmatpush.bf16.msra.mxu1 %v8409_v20  ;;  %v10325_v20 = vld [vmem:[%s17129_s1 + $0x1ec] sm:$0xf0] }
 0x4f4   :  { %3515 = vmatpush.bf16.msra.mxu3 %v8417_v55 }
 0x4f8   :  { %3516 = vmatpush.bf16.msra.mxu3 %v8401_v19  ;;  %v8659_v19 = vld [vmem:[%s17129_s1 + $0x1e8] sm:$0xf] }
 0x566   :  { %v3082_v37 = vpop.f32.mrf.mxu0  ;;  %v3096_v62 = vpop.f32.mrf.mxu1 }
 0x567   :  { %v3129_v30 = vadd.f32 %v3082_v37, %v284_v34  ;;  %v3130_v27 = vadd.f32 %v3096_v62, %v333_v59  ;;  %v10267_v34 = vld [vmem:[%s17131_s2 + $0x24] sm:$0xf]  ;;  %v8389_v59 = vor.u32 %v10269_v7, %v8388_v15 }
 0x568   :  { %v8393_v39 = vor.u32 %v10267_v34, %v8390_v58  ;;  %v17222_v34 = vld [vmem:[#allocation23_spill] sm:$0xff] }
 0x569   :  { %v8364_v8 = vmul.f32 -1.442695, %v3129_v30  ;;  %v8366_v52 = vmul.f32 -1.442695, %v3130_v27  ;;  %v10270_v30 = vld [vmem:[%s17131_s2 + $0x34] sm:$0xf0]  ;;  %3474 = vmatpush.bf16.msra.mxu0 %v8389_v59 }
 0x56a   :  { %v8397_v21 = vor.u32 %v10270_v30, %v8396_v44  ;;  %3488 = vmatpush.bf16.msra.mxu1 %v8393_v39 }
 0x56b   :  { %10776 = vpow2.f32 %v8364_v8  ;;  %v382_v8 = vadd.f32 %v17220_v42, %v11819_v10  ;;  %v10326_v42 = vld [vmem:[%s17129_s1 + $0x1f4] sm:$0xf0] }
 0x56c   :  { %10778 = vpow2.f32 %v8366_v52  ;;  %3502 = vmatpush.bf16.msra.mxu2 %v8397_v21  ;;  %v8372_v52 = vld [vmem:[%s17131_s2] sm:$0xf] }
 0x56d   :  { %v3124_v2 = vpop.f32.mrf.mxu3  ;;  %v3110_v51 = vpop.f32.mrf.mxu2  ;;  %v8373_v47 = vor.u32 %v10265_v56, %v8372_v52  ;;  %v10324_v56 = vld [vmem:[%s17129_s1 + $0x1ec] sm:$0xf] }
 0x56e   :  { %v3132_v24 = vadd.f32 %v3124_v2, %v431_v35  ;;  %v3084_v18 = vpop.f32.mrf.mxu0  ;;  %v3098_v38 = vpop.f32.mrf.mxu1  ;;  %v3131_v43 = vadd.f32 %v3110_v51, %v382_v8  ;;  %v433_v35 = vadd.f32 %v17221_v3, %v11748_v9  ;;  %v8651_v2 = vld [vmem:[%s17129_s1 + $0x1e0] sm:$0xf] }
 0x56f   :  { %v3133_v13 = vadd.f32 %v3084_v18, %v286_v61  ;;  %v3134_v17 = vadd.f32 %v3098_v38, %v335_v4  ;;  %v8377_v61 = vor.u32 %v10263_v63, %v8374_v23  ;;  %v8385_v4 = vor.u32 %v10264_v49, %v8382_v46  ;;  %3475 = vmatpush.bf16.msra.mxu0 %v8373_v47  ;;  %v8653_v38 = vld [vmem:[%s17129_s1 + $0x1f0] sm:$0xf0]  ;;  %v8661_v63 = vld [vmem:[%s17129_s1 + $0x1f8] sm:$0xf0]  ;;  %v10319_v47 = vld [vmem:[%s17129_s1 + $0x1c4] sm:$0xf] }
 0x570   :  { %v8368_v25 = vmul.f32 -1.442695, %v3132_v24  ;;  %v8652_v18 = vor.u32 %v10325_v20, %v8651_v2  ;;  %3503 = vmatpush.bf16.msra.mxu2 %v8381_v50  ;;  %v8656_v15 = vor.u32 %v10323_v57, %v8653_v38  ;;  %v8637_v49 = vld [vmem:[%s17129_s1 + $0x1d0] sm:$0xf0]  ;;  %v10322_v2 = vld [vmem:[%s17129_s1 + $0x1d4] sm:$0xf0] }
 0x571   :  { %v10777_v53 = vpop.eup %10776  ;;  %v8365_v37 = vmul.f32 -1.442695, %v3133_v13  ;;  %v8367_v62 = vmul.f32 -1.442695, %v3134_v17  ;;  %3489 = vmatpush.bf16.msra.mxu1 %v8377_v61  ;;  %3517 = vmatpush.bf16.msra.mxu3 %v8385_v4  ;;  %v8643_v4 = vld [vmem:[%s17129_s1 + $0x1c8] sm:$0xf] }
 0x572   :  { %v10779_v27 = vpop.eup %10778  ;;  %v13831_v36 = vadd.f32 1.0, %v10777_v53  ;;  %10780 = vpow2.f32 %v8368_v25  ;;  %v384_v25 = vadd.f32 %v17222_v34, %v11819_v10  ;;  %v10320_v38 = vld [vmem:[%s17129_s1 + $0x1cc] sm:$0xf]  ;;  %v8611_v20 = vld [vmem:[%s17129_s1 + $0x188] sm:$0xf] }
 0x573   :  { %v13839_v54 = vadd.f32 1.0, %v10779_v27  ;;  %10782 = vpow2.f32 %v8365_v37  ;;  %3889 = vmatpush.bf16.msrb.mxu0 %v8652_v18 }
 0x574   :  { %10784 = vrcp.f32 %v13831_v36  ;;  %v3154_v33 = vand.u32 2147483647, %v13831_v36  ;;  %v3156_v5 = vand.u32 2147483648, %v13831_v36  ;;  %vm3150_vm1 = vweird.f32 %v13831_v36 }
 0x575   :  { %10786 = vrcp.f32 %v13839_v54  ;;  %v3126_v14 = vpop.f32.mrf.mxu3  ;;  %v3194_v13 = vand.u32 2147483648, %v13839_v54  ;;  %v3112_v58 = vpop.f32.mrf.mxu2  ;;  %3938 = vmatpush.bf16.msrb.mxu1 %v8656_v15  ;;  %vm3188_vm3 = vweird.f32 %v13839_v54 }
 0x576   :  { %10788 = vpow2.f32 %v8367_v62  ;;  %v3136_v24 = vadd.f32 %v3126_v14, %v433_v35  ;;  %vm13901_vm0 = vcmp.eq.f32.partialorder %v3154_v33, 8.507059e+37  ;;  %v3157_v37 = vor.u32 1.1754944e-38, %v3156_v5  ;;  %v8635_v14 = vld [vmem:[%s17129_s1 + $0x1c0] sm:$0xf]  ;;  %v8581_v35 = vld [vmem:[%s17129_s1 + $0x158] sm:$0xf0] }
 0x577   :  { %10790 = vtanh.f32 %v3131_v43  ;;  %v3192_v62 = vand.u32 2147483647, %v13839_v54  ;;  %v3195_v16 = vor.u32 1.1754944e-38, %v3194_v13  ;;  %v3135_v48 = vadd.f32 %v3112_v58, %v384_v25  ;;  %v10317_v58 = vld [vmem:[%s17129_s1 + $0x1ac] sm:$0xf0] }
 0x578   :  { %v10781_v60 = vpop.eup %10780  ;;  %v8369_v27 = vmul.f32 -1.442695, %v3136_v24  ;;  %v8660_v5 = vor.u32 %v10326_v42, %v8659_v19  ;;  %v8664_v24 = vor.u32 %v10324_v56, %v8661_v63  ;;  %v8636_v18 = vor.u32 %v10321_v40, %v8635_v14  ;;  %v10316_v19 = vld [vmem:[%s17129_s1 + $0x1ac] sm:$0xf]  ;;  %v8629_v42 = vld [vmem:[%s17129_s1 + $0x1b8] sm:$0xf0] }
 0x579   :  { %v10783_v26 = vpop.eup %10782  ;;  %v13882_v0 = vadd.f32 1.0, %v10781_v60  ;;  %vm13939_vm5 = vcmp.eq.f32.partialorder %v3192_v62, 8.507059e+37  ;;  %v8621_v62 = vld [vmem:[%s17129_s1 + $0x1b0] sm:$0xf0]  ;;  %v8644_v56 = vor.u32 %v10322_v2, %v8643_v4  ;;  %v8632_v46 = vor.u32 %v10316_v19, %v8629_v42  ;;  %v8597_v25 = vld [vmem:[%s17129_s1 + $0x178] sm:$0xf0] }
 0x57a   :  { %v13887_v55 = vpop.eup %10784  ;;  %v13890_v17 = vadd.f32 1.0, %v10783_v26  ;;  %3987 = vmatpush.bf16.msrb.mxu2 %v8660_v5  ;;  %4036 = vmatpush.bf16.msrb.mxu3 %v8664_v24  ;;  %v8605_v2 = vld [vmem:[%s17129_s1 + $0x190] sm:$0xf0]  ;;  %v10312_v24 = vld [vmem:[%s17129_s1 + $0x18c] sm:$0xf] }
 0x57b   :  { %v13892_v7 = vpop.eup %10786  ;;  %v3146_v59 = vmul.f32 %v13887_v55, %v13831_v36  ;;  %10792 = vrcp.f32 %v13882_v0  ;;  %vm3151_vm2 = vweird.f32 %v13887_v55  ;;  %3890 = vmatpush.bf16.msrb.mxu0 %v8636_v18  ;;  %v8613_v18 = vld [vmem:[%s17129_s1 + $0x198] sm:$0xf0] }
 0x57c   :  { %v10789_v44 = vpop.eup %10788  ;;  %v3184_v53 = vmul.f32 %v13892_v7, %v13839_v54  ;;  %10794 = vrcp.f32 %v13890_v17  ;;  %vm3189_vm4 = vweird.f32 %v13892_v7  ;;  %v3169_v33 = vand.u32 2147483647, %v13890_v17  ;;  %vm13953_vm6 = vmor %vm3150_vm1, %vm3151_vm2  ;;  %v8645_v54 = vld [vmem:[%s17129_s1 + $0x1d8] sm:$0xf0] }
 0x57d   :  { %v3147_v39 = vsub.f32 1.0, %v3146_v59  ;;  %v13907_v30 = vadd.f32 1.0, %v10789_v44  ;;  %v10791_v23 = vpop.eup %10790  ;;  %v3171_v61 = vand.u32 2147483648, %v13890_v17  ;;  %vm13972_vm7 = vmor %vm3188_vm3, %vm3189_vm4  ;;  %v8619_v59 = vld [vmem:[%s17129_s1 + $0x1a0] sm:$0xf]  ;;  %vm3165_vm9 = vweird.f32 %v13890_v17 }
 0x57e   :  { %v3185_v21 = vsub.f32 1.0, %v3184_v53  ;;  %vm13998_vm8 = vcmp.eq.f32.partialorder %v3169_v33, 8.507059e+37  ;;  %v8648_v63 = vor.u32 %v10320_v38, %v8645_v54  ;;  %3988 = vmatpush.bf16.msrb.mxu2 %v8644_v56  ;;  %v8587_v38 = vld [vmem:[%s17129_s1 + $0x160] sm:$0xf]  ;;  %v3232_v56 = vand.u32 2147483647, %v13882_v0 }
 0x57f   :  { %v3148_v8 = vmul.f32 %v13887_v55, %v3147_v39  ;;  %10796 = vrcp.f32 %v13907_v30  ;;  %v3209_v52 = vand.u32 2147483648, %v13907_v30  ;;  %v3207_v50 = vand.u32 2147483647, %v13907_v30  ;;  %v8627_v39 = vld [vmem:[%s17129_s1 + $0x1a8] sm:$0xf] }
 0x580   :  { %v3186_v43 = vmul.f32 %v13892_v7, %v3185_v21  ;;  %10798 = vpow2.f32 %v8369_v27  ;;  %v10318_v27 = vld [vmem:[%s17129_s1 + $0x1b4] sm:$0xf0]  ;;  %4037 = vmatpush.bf16.msrb.mxu3 %v8648_v63  ;;  %vm3203_vm13 = vweird.f32 %v13907_v30  ;;  %vm3228_vm1 = vweird.f32 %v13882_v0 }
 0x581   :  { %v13936_v45 = vpop.eup %10792  ;;  %v3149_v3 = vadd.f32 %v13887_v55, %v3148_v8  ;;  %10800 = vtanh.f32 %v3135_v48  ;;  %v13979_v26 = vor.u32 1.1754944e-38, %v3209_v52  ;;  %v3172_v52 = vor.u32 1.1754944e-38, %v3171_v61  ;;  %v10311_v61 = vld [vmem:[%s17129_s1 + $0x184] sm:$0xf] }
 0x582   :  { %v3187_v60 = vadd.f32 %v13892_v7, %v3186_v43  ;;  %v13966_v36 = vpop.eup %10794  ;;  %v13994_v15 = vmul.f32 %v13936_v45, %v13882_v0  ;;  %vm3208_vm15 = vcmp.eq.f32.partialorder %v3207_v50, 8.507059e+37  ;;  %v10308_v50 = vld [vmem:[%s17129_s1 + $0x16c] sm:$0xf] }
 0x583   :  { %v3153_v57 = vsel %vm13953_vm6, %v13887_v55, %v3149_v3  ;;  %v3161_v34 = vmul.f32 %v13966_v36, %v13890_v17  ;;  %vm3166_vm10 = vweird.f32 %v13966_v36  ;;  %v8603_v3 = vld [vmem:[%s17129_s1 + $0x180] sm:$0xf]  ;;  %vm3233_vm6 = vcmp.eq.f32.partialorder %v3232_v56, 8.507059e+37 }
 0x584   :  { %v3158_v13 = vsel %vm13901_vm0, %v3157_v37, %v3153_v57  ;;  %v3191_v55 = vsel %vm13972_vm7, %v13892_v7, %v3187_v60  ;;  %v10315_v7 = vld [vmem:[%s17129_s1 + $0x1a4] sm:$0xf]  ;;  %v8640_v37 = vor.u32 %v10319_v47, %v8637_v49  ;;  %v3225_v33 = vsub.f32 1.0, %v13994_v15  ;;  %vm14046_vm11 = vmor %vm3165_vm9, %vm3166_vm10  ;;  %v10313_v60 = vld [vmem:[%s17129_s1 + $0x18c] sm:$0xf0]  ;;  %4038 = vmatpush.bf16.msrb.mxu3 %v8632_v46 }
 0x585   :  { %v14011_v44 = vpop.eup %10796  ;;  %v3196_v53 = vsel %vm13939_vm5, %v3195_v16, %v3191_v55  ;;  %v3255_v51 = vmul.f32 %v10791_v23, %v3158_v13  ;;  %v3162_v16 = vsub.f32 1.0, %v3161_v34  ;;  %v8624_v47 = vor.u32 %v10315_v7, %v8621_v62  ;;  %v10314_v57 = vld [vmem:[%s17129_s1 + $0x194] sm:$0xf0]  ;;  %v10309_v15 = vld [vmem:[%s17129_s1 + $0x16c] sm:$0xf0] }
 0x586   :  { %v3253_v21 = vmul.f32 %v3196_v53, %v13602_v12  ;;  %v3199_v48 = vmul.f32 %v14011_v44, %v13907_v30  ;;  %v10799_v8 = vpop.eup %10798  ;;  %3939 = vmatpush.bf16.msrb.mxu1 %v8640_v37  ;;  %v8620_v12 = vor.u32 %v10317_v58, %v8619_v59  ;;  %v8628_v49 = vor.u32 %v10318_v27, %v8627_v39  ;;  %v10307_v34 = vld [vmem:[%s17129_s1 + $0x164] sm:$0xf]  ;;  %v8589_v59 = vld [vmem:[%s17129_s1 + $0x170] sm:$0xf0]  ;;  %v10310_v30 = vld [vmem:[%s17129_s1 + $0x174] sm:$0xf0] }
 0x587   :  { %v10801_v23 = vpop.eup %10800  ;;  %v3163_v40 = vmul.f32 %v13966_v36, %v3162_v16  ;;  %v14050_v5 = vadd.f32 1.0, %v10799_v8  ;;  %vm3204_vm12 = vweird.f32 %v14011_v44  ;;  %v8604_v55 = vor.u32 %v10313_v60, %v8603_v3  ;;  %v8571_v16 = vld [vmem:[%s17129_s1 + $0x140] sm:$0xf]  ;;  %v10303_v8 = vld [vmem:[%s17129_s1 + $0x144] sm:$0xf] }
 0x588   :  { %v14035_v43 = vadd.f32 %v3255_v51, %v3253_v21  ;;  %v3200_v14 = vsub.f32 1.0, %v3199_v48  ;;  %3891 = vmatpush.bf16.msrb.mxu0 %v8620_v12  ;;  %vm14096_vm14 = vmor %vm3203_vm13, %vm3204_vm12  ;;  %3989 = vmatpush.bf16.msrb.mxu2 %v8628_v49  ;;  %v8608_v7 = vor.u32 %v10311_v61, %v8605_v2  ;;  %v8612_v53 = vor.u32 %v10314_v57, %v8611_v20  ;;  %v8595_v51 = vld [vmem:[%s17129_s1 + $0x168] sm:$0xf]  ;;  %v10305_v48 = vld [vmem:[%s17129_s1 + $0x14c] sm:$0xf0] }
 0x589   :  { %v3164_v4 = vadd.f32 %v13966_v36, %v3163_v40  ;;  %10802 = vrcp.f32 %v14050_v5  ;;  %v8616_v39 = vor.u32 %v10312_v24, %v8613_v18  ;;  %v8588_v21 = vor.u32 %v10309_v15, %v8587_v38  ;;  %v10306_v40 = vld [vmem:[%s17129_s1 + $0x154] sm:$0xf0]  ;;  %v10304_v3 = vld [vmem:[%s17129_s1 + $0x14c] sm:$0xf]  ;;  %v8555_v46 = vld [vmem:[%s17129_s1 + $0x120] sm:$0xf] }
 0x58a   :  { %v3201_v17 = vmul.f32 %v14011_v44, %v3200_v14  ;;  %3940 = vmatpush.bf16.msrb.mxu1 %v8624_v47  ;;  %v3226_v19 = vmul.f32 %v13936_v45, %v3225_v33  ;;  %v8596_v63 = vor.u32 %v10310_v30, %v8595_v51  ;;  %v8600_v12 = vor.u32 %v10308_v50, %v8597_v25  ;;  %v10301_v60 = vld [vmem:[%s17129_s1 + $0x12c] sm:$0xf0]  ;;  %v8557_v2 = vld [vmem:[%s17129_s1 + $0x130] sm:$0xf0]  ;;  %v8563_v38 = vld [vmem:[%s17129_s1 + $0x128] sm:$0xf] }
 0x58b   :  { %v3168_v54 = vsel %vm14046_vm11, %v13966_v36, %v3164_v4  ;;  %4039 = vmatpush.bf16.msrb.mxu3 %v8616_v39  ;;  %v8572_v14 = vor.u32 %v10305_v48, %v8571_v16  ;;  %10804 = vtanh.f32 %v14035_v43  ;;  %v3234_v47 = vand.u32 2147483648, %v13882_v0  ;;  %v10299_v4 = vld [vmem:[%s17129_s1 + $0x124] sm:$0xf]  ;;  %v10300_v15 = vld [vmem:[%s17129_s1 + $0x12c] sm:$0xf] }
 0x58c   :  { %v3202_v13 = vadd.f32 %v14011_v44, %v3201_v17  ;;  %v3173_v36 = vsel %vm13998_vm8, %v3172_v52, %v3168_v54  ;;  %3892 = vmatpush.bf16.msrb.mxu0 %v8604_v55  ;;  %3990 = vmatpush.bf16.msrb.mxu2 %v8612_v53  ;;  %v3227_v61 = vadd.f32 %v13936_v45, %v3226_v19  ;;  %vm3229_vm0 = vweird.f32 %v13936_v45  ;;  %v10302_v55 = vld [vmem:[%s17129_s1 + $0x134] sm:$0xf0]  ;;  %v8539_v58 = vld [vmem:[%s17129_s1 + $0x100] sm:$0xf]  ;;  %v10295_v51 = vld [vmem:[%s17129_s1 + $0x104] sm:$0xf] }
 0x58d   :  { %v3256_v62 = vmul.f32 %v10801_v23, %v3173_v36  ;;  %v3247_v20 = vand.u32 2147483647, %v14050_v5  ;;  %v3249_v57 = vand.u32 2147483648, %v14050_v5  ;;  %v8584_v18 = vor.u32 %v10304_v3, %v8581_v35  ;;  %vm14189_vm3 = vmor %vm3228_vm1, %vm3229_vm0  ;;  %v10297_v36 = vld [vmem:[%s17129_s1 + $0x10c] sm:$0xf0] }
 0x58e   :  { %v3206_v37 = vsel %vm14096_vm14, %v14011_v44, %v3202_v13  ;;  %3941 = vmatpush.bf16.msrb.mxu1 %v8608_v7  ;;  %v8592_v44 = vor.u32 %v10307_v34, %v8589_v59  ;;  %v8556_v13 = vor.u32 %v10301_v60, %v8555_v46  ;;  %v8565_v34 = vld [vmem:[%s17129_s1 + $0x138] sm:$0xf0]  ;;  %v8560_v59 = vor.u32 %v10299_v4, %v8557_v2  ;;  %v10298_v19 = vld [vmem:[%s17129_s1 + $0x114] sm:$0xf0]  ;;  %v8795_v60 = vld [vmem:[%s17131_s2 + $0x1c0] sm:$0xf] }
 0x58f   :  { %v3211_v27 = vsel %vm3208_vm15, %v13979_v26, %v3206_v37  ;;  %v8573_v26 = vld [vmem:[%s17129_s1 + $0x150] sm:$0xf0]  ;;  %v14134_v52 = vpop.eup %10802  ;;  %4040 = vmatpush.bf16.msrb.mxu3 %v8600_v12  ;;  %v3231_v7 = vsel %vm14189_vm3, %v13936_v45, %v3227_v61  ;;  %vm3243_vm4 = vweird.f32 %v14050_v5  ;;  %v3235_v39 = vor.u32 1.1754944e-38, %v3234_v47  ;;  %v8821_v3 = vld [vmem:[%s17131_s2 + $0x1f8] sm:$0xf0] }
 0x590   :  { %v3254_v42 = vmul.f32 %v3211_v27, %v13639_v41  ;;  %v8579_v41 = vld [vmem:[%s17129_s1 + $0x148] sm:$0xf]  ;;  %v3239_v33 = vmul.f32 %v14134_v52, %v14050_v5  ;;  %3893 = vmatpush.bf16.msrb.mxu0 %v8588_v21  ;;  %v8576_v49 = vor.u32 %v10303_v8, %v8573_v26  ;;  %3991 = vmatpush.bf16.msrb.mxu2 %v8596_v63  ;;  %vm3244_vm2 = vweird.f32 %v14134_v52  ;;  %v8541_v37 = vld [vmem:[%s17129_s1 + $0x110] sm:$0xf0]  ;;  %v8549_v8 = vld [vmem:[%s17129_s1 + $0x118] sm:$0xf0] }
 0x591   :  { %v8580_v24 = vor.u32 %v10306_v40, %v8579_v41  ;;  %vm3245_vm5 = vmor %vm3243_vm4, %vm3244_vm2  ;;  %v3250_v30 = vor.u32 1.1754944e-38, %v3249_v57  ;;  %v8564_v45 = vor.u32 %v10302_v55, %v8563_v38  ;;  %v8568_v50 = vor.u32 %v10300_v15, %v8565_v34  ;;  %v8547_v21 = vld [vmem:[%s17129_s1 + $0x108] sm:$0xf]  ;;  %v8811_v41 = vld [vmem:[%s17131_s2 + $0x1e0] sm:$0xf] }
 0x592   :  { %v14140_v23 = vadd.f32 %v3256_v62, %v3254_v42  ;;  %3942 = vmatpush.bf16.msrb.mxu1 %v8592_v44  ;;  %v3240_v17 = vsub.f32 1.0, %v3239_v33  ;;  %v10805_v62 = vpop.eup %10804  ;;  %vm3248_vm7 = vcmp.eq.f32.partialorder %v3247_v20, 8.507059e+37  ;;  %v8540_v27 = vor.u32 %v10297_v36, %v8539_v58  ;;  %v10296_v42 = vld [vmem:[%s17129_s1 + $0x10c] sm:$0xf]  ;;  %v10357_v33 = vld [vmem:[%s17131_s2 + $0x1ec] sm:$0xf0] }
 0x593   :  { %4041 = vmatpush.bf16.msrb.mxu3 %v8584_v18  ;;  %v3236_v44 = vsel %vm3233_vm6, %v3235_v39, %v3231_v7  ;;  %v8544_v48 = vor.u32 %v10295_v51, %v8541_v37  ;;  %v8548_v63 = vor.u32 %v10298_v19, %v8547_v21  ;;  %v8552_v12 = vor.u32 %v10296_v42, %v8549_v8  ;;  %v8813_v40 = vld [vmem:[%s17131_s2 + $0x1f0] sm:$0xf0]  ;;  %v10358_v46 = vld [vmem:[%s17131_s2 + $0x1f4] sm:$0xf0]  ;;  %v10352_v57 = vld [vmem:[%s17131_s2 + $0x1cc] sm:$0xf] }
 0x594   :  { %10806 = vtanh.f32 %v14140_v23  ;;  %v3241_v54 = vmul.f32 %v14134_v52, %v3240_v17  ;;  %3894 = vmatpush.bf16.msrb.mxu0 %v8572_v14  ;;  %3992 = vmatpush.bf16.msrb.mxu2 %v8580_v24  ;;  %v3261_v26 = vmul.f32 %v10805_v62, %v3236_v44  ;;  %v8812_v14 = vor.u32 %v10357_v33, %v8811_v41  ;;  %v10353_v17 = vld [vmem:[%s17131_s2 + $0x1cc] sm:$0xf0]  ;;  %v8797_v4 = vld [vmem:[%s17131_s2 + $0x1d0] sm:$0xf0]  ;;  %v8805_v24 = vld [vmem:[%s17131_s2 + $0x1d8] sm:$0xf0] }
 0x595   :  { %v8796_v2 = vor.u32 %v10353_v17, %v8795_v60  ;;  %v8808_v18 = vor.u32 %v10352_v57, %v8805_v24  ;;  %v8803_v38 = vld [vmem:[%s17131_s2 + $0x1c8] sm:$0xf]  ;;  %v10349_v15 = vld [vmem:[%s17131_s2 + $0x1ac] sm:$0xf0]  ;;  %v8781_v34 = vld [vmem:[%s17131_s2 + $0x1b0] sm:$0xf0] }
 0x596   :  { %3943 = vmatpush.bf16.msrb.mxu1 %v8576_v49  ;;  %v3242_v53 = vadd.f32 %v14134_v52, %v3241_v54  ;;  %v8819_v49 = vld [vmem:[%s17131_s2 + $0x1e8] sm:$0xf]  ;;  %v10354_v54 = vld [vmem:[%s17131_s2 + $0x1d4] sm:$0xf0]  ;;  %v10348_v58 = vld [vmem:[%s17131_s2 + $0x1ac] sm:$0xf] }
 0x597   :  { %4042 = vmatpush.bf16.msrb.mxu3 %v8568_v50  ;;  %v8820_v61 = vor.u32 %v10358_v46, %v8819_v49  ;;  %v8804_v55 = vor.u32 %v10354_v54, %v8803_v38  ;;  %v8789_v36 = vld [vmem:[%s17131_s2 + $0x1b8] sm:$0xf0]  ;;  %v10350_v51 = vld [vmem:[%s17131_s2 + $0x1b4] sm:$0xf0]  ;;  %v8763_v37 = vld [vmem:[%s17131_s2 + $0x180] sm:$0xf] }
 0x598   :  { %v3246_v5 = vsel %vm3245_vm5, %v14134_v52, %v3242_v53  ;;  %3895 = vmatpush.bf16.msrb.mxu0 %v8556_v13  ;;  %3993 = vmatpush.bf16.msrb.mxu2 %v8564_v45  ;;  %v8779_v13 = vld [vmem:[%s17131_s2 + $0x1a0] sm:$0xf]  ;;  %v8792_v7 = vor.u32 %v10348_v58, %v8789_v36  ;;  %v8787_v53 = vld [vmem:[%s17131_s2 + $0x1a8] sm:$0xf]  ;;  %v10345_v39 = vld [vmem:[%s17131_s2 + $0x18c] sm:$0xf0] }
 0x599   :  { %v3251_v16 = vsel %vm3248_vm7, %v3250_v30, %v3246_v5  ;;  %v8780_v0 = vor.u32 %v10349_v15, %v8779_v13  ;;  %v8788_v62 = vor.u32 %v10350_v51, %v8787_v53  ;;  %v8765_v30 = vld [vmem:[%s17131_s2 + $0x190] sm:$0xf0]  ;;  %v8764_v45 = vor.u32 %v10345_v39, %v8763_v37  ;;  %v8773_v5 = vld [vmem:[%s17131_s2 + $0x198] sm:$0xf0]  ;;  %v8771_v21 = vld [vmem:[%s17131_s2 + $0x188] sm:$0xf] }
 0x59a   :  { %v10807_v25 = vpop.eup %10806  ;;  %3944 = vmatpush.bf16.msrb.mxu1 %v8560_v59  ;;  %v10346_v44 = vld [vmem:[%s17131_s2 + $0x194] sm:$0xf0]  ;;  %v17240_v19 = vld [vmem:[#allocation24_spill] sm:$0xff]  ;;  %v10341_v33 = vld [vmem:[%s17131_s2 + $0x16c] sm:$0xf0] }
 0x59b   :  { %v3262_v52 = vmul.f32 %v10807_v25, %v3251_v16  ;;  %4043 = vmatpush.bf16.msrb.mxu3 %v8552_v12  ;;  %v10344_v25 = vld [vmem:[%s17131_s2 + $0x18c] sm:$0xf]  ;;  %v8772_v16 = vor.u32 %v10346_v44, %v8771_v21  ;;  %v338_v42 = vadd.f32 %v17240_v19, %v11709_v11  ;;  %v8747_v41 = vld [vmem:[%s17131_s2 + $0x160] sm:$0xf]  ;;  %v17242_v60 = vld [vmem:[#allocation26_spill] sm:$0xff] }
 0x59c   :  { %3896 = vmatpush.bf16.msrb.mxu0 %v8540_v27  ;;  %3994 = vmatpush.bf16.msrb.mxu2 %v8548_v63  ;;  %v8776_v27 = vor.u32 %v10344_v25, %v8773_v5  ;;  %v17243_v17 = vld [vmem:[#allocation27_spill] sm:$0xff]  ;;  %v8731_v37 = vld [vmem:[%s17131_s2 + $0x140] sm:$0xf]  ;;  %v10335_v39 = vld [vmem:[%s17131_s2 + $0x144] sm:$0xf] }
 0x59d   :  { %v14225_v56 = vpack.c.bf16 %v3262_v52, %v3261_v26  ;;  %v10342_v53 = vld [vmem:[%s17131_s2 + $0x174] sm:$0xf0]  ;;  %v10336_v25 = vld [vmem:[%s17131_s2 + $0x14c] sm:$0xf]  ;;  %v8741_v5 = vld [vmem:[%s17131_s2 + $0x158] sm:$0xf0] }
 0x59e   :  { %3945 = vmatpush.bf16.msrb.mxu1 %v8544_v48 }
 0x59f   :  { %3476 = vmatmul.bf16.vlgmr.msra.gmra.mxu0 %v14225_v56  ;;  %3490 = vmatmul.bf16.vlgmr.msra.gmra.mxu1 %v14225_v56 }
 0x5a0   :  { %3504 = vmatmul.bf16.vlgmr.msra.gmra.mxu2 %v14225_v56  ;;  %3518 = vmatmul.bf16.vlgmr.msra.gmra.mxu3 %v14225_v56 }
 0x5a1   :  { %4350 = vmatpush.bf16.msra.mxu0 %v8812_v14  ;;  %4378 = vmatpush.bf16.msra.mxu2 %v8820_v61  ;;  %v8748_v14 = vor.u32 %v10341_v33, %v8747_v41  ;;  %v291_v61 = vadd.f32 %v17242_v60, %v11684_v22  ;;  %v8715_v60 = vld [vmem:[%s17131_s2 + $0x120] sm:$0xf] }
 0x5a5   :  { %4351 = vmatpush.bf16.msra.mxu0 %v8796_v2  ;;  %4379 = vmatpush.bf16.msra.mxu2 %v8804_v55 }
 0x5a9   :  { %4352 = vmatpush.bf16.msra.mxu0 %v8780_v0  ;;  %4380 = vmatpush.bf16.msra.mxu2 %v8788_v62 }
 0x5ad   :  { %4353 = vmatpush.bf16.msra.mxu0 %v8764_v45  ;;  %4381 = vmatpush.bf16.msra.mxu2 %v8772_v16 }
 0x5af   :  { %3897 = vmatmul.bf16.vlgmr.msrb.gmra.mxu0 %v11978_v28  ;;  %3946 = vmatmul.bf16.vlgmr.msrb.gmra.mxu1 %v11978_v28 }
 0x5b0   :  { %3995 = vmatmul.bf16.vlgmr.msrb.gmra.mxu2 %v11978_v28  ;;  %4044 = vmatmul.bf16.vlgmr.msrb.gmra.mxu3 %v11978_v28  ;;  %v10355_v28 = vld [vmem:[%s17131_s2 + $0x1e4] sm:$0xf] }
 0x5b1   :  { %v8816_v35 = vor.u32 %v10355_v28, %v8813_v40  ;;  %v10339_v28 = vld [vmem:[%s17131_s2 + $0x164] sm:$0xf]  ;;  %v8749_v40 = vld [vmem:[%s17131_s2 + $0x170] sm:$0xf0]  ;;  %4354 = vmatpush.bf16.msra.mxu0 %v8748_v14 }
 0x5b2   :  { %v8752_v49 = vor.u32 %v10339_v28, %v8749_v40 }
 0x5b3   :  { %4364 = vmatpush.bf16.msra.mxu1 %v8816_v35  ;;  %v17241_v35 = vld [vmem:[#allocation25_spill] sm:$0xff] }
 0x5bf   :  { %3902 = vmatmul.bf16.gmra.mxu0 %v12313_v1  ;;  %3951 = vmatmul.bf16.gmra.mxu1 %v12313_v1 }
 0x5c0   :  { %4000 = vmatmul.bf16.gmra.mxu2 %v12313_v1  ;;  %4049 = vmatmul.bf16.gmra.mxu3 %v12313_v1  ;;  %v10356_v1 = vld [vmem:[%s17131_s2 + $0x1ec] sm:$0xf] }
 0x5c1   :  { %v8824_v47 = vor.u32 %v10356_v1, %v8821_v3  ;;  %v10340_v1 = vld [vmem:[%s17131_s2 + $0x16c] sm:$0xf]  ;;  %v8757_v3 = vld [vmem:[%s17131_s2 + $0x178] sm:$0xf0] }
 0x5c2   :  { %v8760_v46 = vor.u32 %v10340_v1, %v8757_v3 }
 0x5c3   :  { %4392 = vmatpush.bf16.msra.mxu3 %v8824_v47  ;;  %v436_v47 = vadd.f32 %v17241_v35, %v11748_v9 }
 0x5c7   :  { %4393 = vmatpush.bf16.msra.mxu3 %v8808_v18 }
 0x5cb   :  { %4394 = vmatpush.bf16.msra.mxu3 %v8792_v7  ;;  %v8755_v7 = vld [vmem:[%s17131_s2 + $0x168] sm:$0xf] }
 0x5cc   :  { %v8756_v45 = vor.u32 %v10342_v53, %v8755_v7 }
 0x5ce   :  { %4382 = vmatpush.bf16.msra.mxu2 %v8756_v45 }
 0x5cf   :  { %3907 = vmatmul.bf16.gmra.mxu0 %v12648_v29  ;;  %3956 = vmatmul.bf16.gmra.mxu1 %v12648_v29 }
 0x5d0   :  { %4005 = vmatmul.bf16.gmra.mxu2 %v12648_v29  ;;  %4054 = vmatmul.bf16.gmra.mxu3 %v12648_v29  ;;  %v10351_v29 = vld [vmem:[%s17131_s2 + $0x1c4] sm:$0xf] }
 0x5d1   :  { %v8800_v20 = vor.u32 %v10351_v29, %v8797_v4  ;;  %4395 = vmatpush.bf16.msra.mxu3 %v8776_v27  ;;  %v340_v29 = vadd.f32 %v17243_v17, %v11709_v11  ;;  %v17244_v11 = vld [vmem:[#allocation28_spill] sm:$0xff]  ;;  %v8739_v27 = vld [vmem:[%s17131_s2 + $0x148] sm:$0xf] }
 0x5d2   :  { %v387_v0 = vadd.f32 %v17244_v11, %v11819_v10 }
 0x5d3   :  { %4365 = vmatpush.bf16.msra.mxu1 %v8800_v20 }
 0x5d5   :  { %4396 = vmatpush.bf16.msra.mxu3 %v8760_v46 }
 0x5df   :  { %3912 = vmatmul.bf16.gmra.mxu0 %v12983_v31  ;;  %3961 = vmatmul.bf16.gmra.mxu1 %v12983_v31 }
 0x5e0   :  { %4010 = vmatmul.bf16.gmra.mxu2 %v12983_v31  ;;  %4059 = vmatmul.bf16.gmra.mxu3 %v12983_v31  ;;  %v10347_v31 = vld [vmem:[%s17131_s2 + $0x1a4] sm:$0xf] }
 0x5e1   :  { %v8784_v59 = vor.u32 %v10347_v31, %v8781_v34 }
 0x5e3   :  { %4366 = vmatpush.bf16.msra.mxu1 %v8784_v59  ;;  %v17245_v59 = vld [vmem:[#allocation29_spill] sm:$0xff] }
 0x5e4   :  { %v438_v58 = vadd.f32 %v17245_v59, %v11748_v9  ;;  %v10337_v9 = vld [vmem:[%s17131_s2 + $0x14c] sm:$0xf0] }
 0x5ef   :  { %3917 = vmatmul.bf16.gmra.mxu0 %v13318_v32  ;;  %3966 = vmatmul.bf16.gmra.mxu1 %v13318_v32 }
 0x5f0   :  { %4015 = vmatmul.bf16.gmra.mxu2 %v13318_v32  ;;  %4064 = vmatmul.bf16.gmra.mxu3 %v13318_v32  ;;  %v10343_v32 = vld [vmem:[%s17131_s2 + $0x184] sm:$0xf] }
 0x5f1   :  { %v8768_v50 = vor.u32 %v10343_v32, %v8765_v30  ;;  %v8733_v32 = vld [vmem:[%s17131_s2 + $0x150] sm:$0xf0] }
 0x5f2   :  { %v8736_v16 = vor.u32 %v10335_v39, %v8733_v32 }
 0x5f3   :  { %4367 = vmatpush.bf16.msra.mxu1 %v8768_v50  ;;  %v8732_v50 = vor.u32 %v10337_v9, %v8731_v37 }
 0x5f5   :  { %4355 = vmatpush.bf16.msra.mxu0 %v8732_v50 }
 0x5f7   :  { %4368 = vmatpush.bf16.msra.mxu1 %v8752_v49 }
 0x5fb   :  { %4369 = vmatpush.bf16.msra.mxu1 %v8736_v16 }
 0x5ff   :  { %3922 = vmatmul.bf16.gmra.mxu0 %v13653_v6  ;;  %3971 = vmatmul.bf16.gmra.mxu1 %v13653_v6 }
 0x600   :  { %4020 = vmatmul.bf16.gmra.mxu2 %v13653_v6  ;;  %4069 = vmatmul.bf16.gmra.mxu3 %v13653_v6  ;;  %v17239_v6 = vld [vmem:[#allocation22_spill] sm:$0xff] }
 0x601   :  { %v289_v48 = vadd.f32 %v17239_v6, %v11684_v22  ;;  %v8744_v6 = vor.u32 %v10336_v25, %v8741_v5 }
 0x603   :  { %4397 = vmatpush.bf16.msra.mxu3 %v8744_v6 }
 0x60f   :  { %3927 = vmatmul.bf16.gmra.mxu0 %v14225_v56  ;;  %3976 = vmatmul.bf16.gmra.mxu1 %v14225_v56 }
 0x610   :  { %4025 = vmatmul.bf16.gmra.mxu2 %v14225_v56  ;;  %4074 = vmatmul.bf16.gmra.mxu3 %v14225_v56 }
 0x61c   :  { %v3477_v8 = vpop.f32.mrf.mxu0  ;;  %v3491_v26 = vpop.f32.mrf.mxu1 }
 0x61d   :  { %v3524_v52 = vadd.f32 %v3477_v8, %v289_v48  ;;  %v3525_v56 = vadd.f32 %v3491_v26, %v338_v42  ;;  %v10338_v48 = vld [vmem:[%s17131_s2 + $0x154] sm:$0xf0] }
 0x61f   :  { %v8498_v63 = vmul.f32 -1.442695, %v3524_v52  ;;  %v8500_v12 = vmul.f32 -1.442695, %v3525_v56  ;;  %v8740_v52 = vor.u32 %v10338_v48, %v8739_v27  ;;  %v8723_v27 = vld [vmem:[%s17131_s2 + $0x128] sm:$0xf] }
 0x621   :  { %10808 = vpow2.f32 %v8498_v63  ;;  %v17246_v63 = vld [vmem:[#allocation30_spill] sm:$0xff]  ;;  %4383 = vmatpush.bf16.msra.mxu2 %v8740_v52 }
 0x622   :  { %10810 = vpow2.f32 %v8500_v12  ;;  %v389_v12 = vadd.f32 %v17246_v63, %v11819_v10 }
 0x623   :  { %v3519_v4 = vpop.f32.mrf.mxu3  ;;  %v3505_v38 = vpop.f32.mrf.mxu2 }
 0x624   :  { %v3527_v2 = vadd.f32 %v3519_v4, %v436_v47  ;;  %v3479_v20 = vpop.f32.mrf.mxu0  ;;  %v3493_v57 = vpop.f32.mrf.mxu1  ;;  %v3526_v51 = vadd.f32 %v3505_v38, %v387_v0 }
 0x625   :  { %v3528_v24 = vadd.f32 %v3479_v20, %v291_v61  ;;  %v3529_v18 = vadd.f32 %v3493_v57, %v340_v29  ;;  %v10333_v61 = vld [vmem:[%s17131_s2 + $0x12c] sm:$0xf0]  ;;  %v10331_v20 = vld [vmem:[%s17131_s2 + $0x124] sm:$0xf]  ;;  %v8717_v57 = vld [vmem:[%s17131_s2 + $0x130] sm:$0xf0] }
 0x626   :  { %v8502_v54 = vmul.f32 -1.442695, %v3527_v2  ;;  %v8716_v0 = vor.u32 %v10333_v61, %v8715_v60  ;;  %v8720_v7 = vor.u32 %v10331_v20, %v8717_v57  ;;  %v10328_v60 = vld [vmem:[%s17131_s2 + $0x10c] sm:$0xf]  ;;  %v8709_v61 = vld [vmem:[%s17131_s2 + $0x118] sm:$0xf0] }
 0x627   :  { %v10809_v13 = vpop.eup %10808  ;;  %v8499_v55 = vmul.f32 -1.442695, %v3528_v24  ;;  %v8501_v22 = vmul.f32 -1.442695, %v3529_v18  ;;  %v8707_v20 = vld [vmem:[%s17131_s2 + $0x108] sm:$0xf] }
 0x628   :  { %v10811_v15 = vpop.eup %10810  ;;  %v14383_v31 = vadd.f32 1.0, %v10809_v13  ;;  %10812 = vpow2.f32 %v8502_v54  ;;  %v10332_v13 = vld [vmem:[%s17131_s2 + $0x12c] sm:$0xf]  ;;  %4356 = vmatpush.bf16.msra.mxu0 %v8716_v0  ;;  %4370 = vmatpush.bf16.msra.mxu1 %v8720_v7  ;;  %v10330_v57 = vld [vmem:[%s17131_s2 + $0x114] sm:$0xf0] }
 0x629   :  { %v14385_v34 = vadd.f32 1.0, %v10811_v15  ;;  %10814 = vpow2.f32 %v8499_v55  ;;  %v8725_v55 = vld [vmem:[%s17131_s2 + $0x138] sm:$0xf0] }
 0x62a   :  { %10816 = vrcp.f32 %v14383_v31  ;;  %v3549_v33 = vand.u32 2147483647, %v14383_v31  ;;  %v3551_v1 = vand.u32 2147483648, %v14383_v31  ;;  %vm3545_vm8 = vweird.f32 %v14383_v31 }
 0x62b   :  { %10818 = vrcp.f32 %v14385_v34  ;;  %v3521_v36 = vpop.f32.mrf.mxu3  ;;  %v3507_v8 = vpop.f32.mrf.mxu2  ;;  %v3589_v40 = vand.u32 2147483648, %v14385_v34  ;;  %v3587_v10 = vand.u32 2147483647, %v14385_v34  ;;  %vm3583_vm9 = vweird.f32 %v14385_v34 }
 0x62c   :  { %10820 = vpow2.f32 %v8501_v22  ;;  %v3531_v62 = vadd.f32 %v3521_v36, %v438_v58  ;;  %v3530_v47 = vadd.f32 %v3507_v8, %v389_v12  ;;  %vm14448_vm12 = vcmp.eq.f32.partialorder %v3549_v33, 8.507059e+37  ;;  %v8699_v33 = vld [vmem:[%s17131_s2 + $0x100] sm:$0xf] }
 0x62d   :  { %10822 = vtanh.f32 %v3526_v51  ;;  %v3552_v2 = vor.u32 1.1754944e-38, %v3551_v1  ;;  %v3590_v18 = vor.u32 1.1754944e-38, %v3589_v40  ;;  %vm14460_vm13 = vcmp.eq.f32.partialorder %v3587_v10, 8.507059e+37  ;;  %v10327_v10 = vld [vmem:[%s17131_s2 + $0x104] sm:$0xf] }
 0x62e   :  { %v10813_v30 = vpop.eup %10812  ;;  %v8503_v26 = vmul.f32 -1.442695, %v3531_v62  ;;  %v8728_v9 = vor.u32 %v10332_v13, %v8725_v55 }
 0x62f   :  { %v10815_v21 = vpop.eup %10814  ;;  %v14420_v44 = vadd.f32 1.0, %v10813_v30 }
 0x630   :  { %v10817_v19 = vpop.eup %10816  ;;  %v14425_v42 = vadd.f32 1.0, %v10815_v21  ;;  %4398 = vmatpush.bf16.msra.mxu3 %v8728_v9  ;;  %v10334_v21 = vld [vmem:[%s17131_s2 + $0x134] sm:$0xf0] }
 0x631   :  { %v10819_v56 = vpop.eup %10818  ;;  %v3541_v41 = vmul.f32 %v10817_v19, %v14383_v31  ;;  %10824 = vrcp.f32 %v14420_v44  ;;  %vm3546_vm10 = vweird.f32 %v10817_v19  ;;  %vm3623_vm5 = vweird.f32 %v14420_v44 }
 0x632   :  { %v10821_v28 = vpop.eup %10820  ;;  %v3579_v14 = vmul.f32 %v10819_v56, %v14385_v34  ;;  %10826 = vrcp.f32 %v14425_v42  ;;  %vm3584_vm11 = vweird.f32 %v10819_v56  ;;  %vm3547_vm14 = vmor %vm3545_vm8, %vm3546_vm10  ;;  %vm3560_vm15 = vweird.f32 %v14425_v42 }
 0x633   :  { %v3542_v3 = vsub.f32 1.0, %v3541_v41  ;;  %v14437_v35 = vadd.f32 1.0, %v10821_v28  ;;  %10828 = vpow2.f32 %v8503_v26  ;;  %v10823_v17 = vpop.eup %10822  ;;  %vm3585_vm0 = vmor %vm3583_vm9, %vm3584_vm11  ;;  %v3566_v36 = vand.u32 2147483648, %v14425_v42  ;;  %v10329_v28 = vld [vmem:[%s17131_s2 + $0x10c] sm:$0xf0]  ;;  %v14553_v9 = vpop.f32.mrf.mxu3 }
 0x634   :  { %v3580_v49 = vsub.f32 1.0, %v3579_v14  ;;  %v3564_v5 = vand.u32 2147483647, %v14425_v42  ;;  %v3629_v41 = vand.u32 2147483648, %v14420_v44  ;;  %v3627_v40 = vand.u32 2147483647, %v14420_v44 }
 0x635   :  { %v3543_v46 = vmul.f32 %v10817_v19, %v3542_v3  ;;  %10830 = vrcp.f32 %v14437_v35  ;;  %v3604_v6 = vand.u32 2147483648, %v14437_v35  ;;  %v3567_v8 = vor.u32 1.1754944e-38, %v3566_v36 }
 0x636   :  { %v3581_v29 = vmul.f32 %v10819_v56, %v3580_v49  ;;  %10832 = vtanh.f32 %v3530_v47  ;;  %v3602_v26 = vand.u32 2147483647, %v14437_v35  ;;  %vm3565_vm6 = vcmp.eq.f32.partialorder %v3564_v5, 8.507059e+37  ;;  %v8701_v47 = vld [vmem:[%s17131_s2 + $0x110] sm:$0xf0] }
 0x637   :  { %v14458_v24 = vpop.eup %10824  ;;  %v3544_v38 = vadd.f32 %v10817_v19, %v3543_v46  ;;  %vm3598_vm7 = vweird.f32 %v14437_v35  ;;  %v8700_v46 = vor.u32 %v10329_v28, %v8699_v33  ;;  %vm3628_vm11 = vcmp.eq.f32.partialorder %v3627_v40, 8.507059e+37 }
 0x638   :  { %v10827_v15 = vpop.eup %10826  ;;  %v3582_v22 = vadd.f32 %v10819_v56, %v3581_v29  ;;  %v3619_v11 = vmul.f32 %v14458_v24, %v14420_v44  ;;  %vm3624_vm2 = vweird.f32 %v14458_v24  ;;  %v3605_v44 = vor.u32 1.1754944e-38, %v3604_v6 }
 0x639   :  { %v3548_v59 = vsel %vm3547_vm14, %v10817_v19, %v3544_v38  ;;  %v3556_v58 = vmul.f32 %v10827_v15, %v14425_v42  ;;  %v10829_v53 = vpop.eup %10828  ;;  %vm3561_vm1 = vweird.f32 %v10827_v15  ;;  %vm14516_vm8 = vmor %vm3623_vm5, %vm3624_vm2  ;;  %vm3603_vm10 = vcmp.eq.f32.partialorder %v3602_v26, 8.507059e+37  ;;  %4357 = vmatpush.bf16.msra.mxu0 %v8700_v46 }
 0x63a   :  { %v3553_v31 = vsel %vm14448_vm12, %v3552_v2, %v3548_v59  ;;  %v3586_v51 = vsel %vm3585_vm0, %v10819_v56, %v3582_v22  ;;  %v3620_v37 = vsub.f32 1.0, %v3619_v11  ;;  %v14485_v30 = vadd.f32 1.0, %v10829_v53  ;;  %vm3562_vm4 = vmor %vm3560_vm15, %vm3561_vm1  ;;  %v14544_v59 = vpop.f32.mrf.mxu0 }
 0x63b   :  { %v10831_v62 = vpop.eup %10830  ;;  %v3591_v39 = vsel %vm14460_vm13, %v3590_v18, %v3586_v51  ;;  %v3650_v34 = vmul.f32 %v10823_v17, %v3553_v31  ;;  %v3557_v32 = vsub.f32 1.0, %v3556_v58  ;;  %v8724_v56 = vor.u32 %v10334_v21, %v8723_v27  ;;  %v14546_v58 = vpop.f32.mrf.mxu1 }
 0x63c   :  { %v3648_v45 = vmul.f32 %v3591_v39, %v14035_v43  ;;  %v3621_v50 = vmul.f32 %v14458_v24, %v3620_v37  ;;  %v3594_v25 = vmul.f32 %v10831_v62, %v14437_v35  ;;  %v10833_v16 = vpop.eup %10832  ;;  %10834 = vrcp.f32 %v14485_v30  ;;  %v14551_v37 = vpop.f32.mrf.mxu2 }
 0x63d   :  { %v3558_v48 = vmul.f32 %v10827_v15, %v3557_v32  ;;  %vm3599_vm3 = vweird.f32 %v10831_v62  ;;  %4384 = vmatpush.bf16.msra.mxu2 %v8724_v56  ;;  %v3630_v2 = vor.u32 1.1754944e-38, %v3629_v41  ;;  %v8712_v22 = vor.u32 %v10328_v60, %v8709_v61 }
 0x63e   :  { %v3652_v43 = vadd.f32 %v3650_v34, %v3648_v45  ;;  %v3595_v19 = vsub.f32 1.0, %v3594_v25  ;;  %v3622_v63 = vadd.f32 %v14458_v24, %v3621_v50  ;;  %vm3600_vm9 = vmor %vm3598_vm7, %vm3599_vm3  ;;  %v8708_v11 = vor.u32 %v10330_v57, %v8707_v20  ;;  %v14561_v25 = vpop.f32.mrf.mxu3 }
 0x63f   :  { %v3559_v52 = vadd.f32 %v10827_v15, %v3558_v48  ;;  %4399 = vmatpush.bf16.msra.mxu3 %v8712_v22  ;;  %v3644_v53 = vand.u32 2147483648, %v14485_v30  ;;  %vm3638_vm13 = vweird.f32 %v14485_v30  ;;  %v17253_v6 = vmov 0  }
 0x640   :  { %10836 = vtanh.f32 %v3652_v43  ;;  %v3596_v12 = vmul.f32 %v10831_v62, %v3595_v19  ;;  %v3626_v35 = vsel %vm14516_vm8, %v14458_v24, %v3622_v63 }
 0x641   :  { %v3563_v14 = vsel %vm3562_vm4, %v10827_v15, %v3559_v52  ;;  %v3631_v13 = vsel %vm3628_vm11, %v3630_v2, %v3626_v35  ;;  %v8704_v15 = vor.u32 %v10327_v10, %v8701_v47  ;;  %4385 = vmatpush.bf16.msra.mxu2 %v8708_v11  ;;  %v3645_v51 = vor.u32 1.1754944e-38, %v3644_v53 }
 0x642   :  { %v3568_v42 = vsel %vm3565_vm6, %v3567_v8, %v3563_v14  ;;  %v3597_v1 = vadd.f32 %v10831_v62, %v3596_v12  ;;  %v10835_v49 = vpop.eup %10834  ;;  %v14555_v32 = vpop.f32.mrf.mxu0 }
 0x643   :  { %v3651_v29 = vmul.f32 %v10833_v16, %v3568_v42  ;;  %v3634_v4 = vmul.f32 %v10835_v49, %v14485_v30  ;;  %vm3639_vm12 = vweird.f32 %v10835_v49  ;;  %4371 = vmatpush.bf16.msra.mxu1 %v8704_v15  ;;  %v14557_v45 = vpop.f32.mrf.mxu1 }
 0x644   :  { %v3601_v17 = vsel %vm3600_vm9, %v10831_v62, %v3597_v1  ;;  %vm3640_vm14 = vmor %vm3638_vm13, %vm3639_vm12 }
 0x645   :  { %v3606_v24 = vsel %vm3603_vm10, %v3605_v44, %v3601_v17  ;;  %v3635_v54 = vsub.f32 1.0, %v3634_v4 }
 0x646   :  { %v10837_v18 = vpop.eup %10836  ;;  %v3649_v38 = vmul.f32 %v3606_v24, %v14140_v23  ;;  %v3642_v23 = vand.u32 2147483647, %v14485_v30  ;;  %v14559_v30 = vpop.f32.mrf.mxu2 }
 0x647   :  { %v3656_v55 = vmul.f32 %v10837_v18, %v3631_v13  ;;  %v3636_v36 = vmul.f32 %v10835_v49, %v3635_v54  ;;  %v14569_v16 = vpop.f32.mrf.mxu3 }
 0x648   :  { %v3653_v0 = vadd.f32 %v3651_v29, %v3649_v38  ;;  %vm3643_vm15 = vcmp.eq.f32.partialorder %v3642_v23, 8.507059e+37 }
 0x649   :  { %v3637_v7 = vadd.f32 %v10835_v49, %v3636_v36 }
 0x64a   :  { %10838 = vtanh.f32 %v3653_v0  ;;  %v14563_v5 = vpop.f32.mrf.mxu0 }
 0x64b   :  { %v3641_v31 = vsel %vm3640_vm14, %v10835_v49, %v3637_v7  ;;  %v14565_v27 = vpop.f32.mrf.mxu1 }
 0x64c   :  { %v3646_v39 = vsel %vm3643_vm15, %v3645_v51, %v3641_v31 }
 0x64e   :  { %v14567_v21 = vpop.f32.mrf.mxu2 }
 0x64f   :  { %v14581_v8 = vpop.f32.mrf.mxu3 }
 0x650   :  { %v10839_v62 = vpop.eup %10838 }
 0x651   :  { %v3657_v34 = vmul.f32 %v10839_v62, %v3646_v39  ;;  %v8536_v39 = vld [vmem:[%s17132_s3 + $0x4] sm:$0xf] }
 0x652   :  { %v14573_v48 = vpop.f32.mrf.mxu0 }
 0x653   :  { %v3684_v50 = vpack.c.bf16 %v3657_v34, %v3656_v55  ;;  %v14575_v43 = vpop.f32.mrf.mxu1 }
 0x655   :  { %3932 = vmatmul.bf16.gmra.mxu0 %v3684_v50  ;;  %3981 = vmatmul.bf16.gmra.mxu1 %v3684_v50 }
 0x656   :  { %4030 = vmatmul.bf16.gmra.mxu2 %v3684_v50  ;;  %4079 = vmatmul.bf16.gmra.mxu3 %v3684_v50  ;;  %v14579_v19 = vpop.f32.mrf.mxu2 }
 0x657   :  { %v14589_v63 = vpop.f32.mrf.mxu3 }
 0x65a   :  { %v14583_v26 = vpop.f32.mrf.mxu0 }
 0x65b   :  { %v14585_v52 = vpop.f32.mrf.mxu1 }
 0x65e   :  { %v14587_v56 = vpop.f32.mrf.mxu2 }
 0x65f   :  { %v14597_v28 = vpop.f32.mrf.mxu3 }
 0x662   :  { %v14591_v12 = vpop.f32.mrf.mxu0 }
 0x663   :  { %v14593_v41 = vpop.f32.mrf.mxu1 }
 0x665   :  { %4358 = vmatmul.bf16.vlgmr.msra.gmra.mxu0 %v17253_v6  ;;  %4372 = vmatmul.bf16.vlgmr.msra.gmra.mxu1 %v17253_v6 }
 0x666   :  { %4386 = vmatmul.bf16.vlgmr.msra.gmra.mxu2 %v17253_v6  ;;  %4400 = vmatmul.bf16.vlgmr.msra.gmra.mxu3 %v17253_v6  ;;  %v14595_v33 = vpop.f32.mrf.mxu2  ;;  %v14678_v6 = vperm.slane %v8536_v39, 0 }
 0x667   :  { %v14605_v1 = vpop.f32.mrf.mxu3 }
 0x66a   :  { %v14599_v14 = vpop.f32.mrf.mxu0 }
 0x66b   :  { %v14601_v40 = vpop.f32.mrf.mxu1 }
 0x66e   :  { %v14603_v42 = vpop.f32.mrf.mxu2 }
 0x66f   :  { %v14613_v49 = vpop.f32.mrf.mxu3 }
 0x672   :  { %v14607_v3 = vpop.f32.mrf.mxu0 }
 0x673   :  { %v14609_v10 = vpop.f32.mrf.mxu1 }
 0x676   :  { %v14611_v47 = vpop.f32.mrf.mxu2 }
 0x677   :  { %v14621_v60 = vpop.f32.mrf.mxu3 }
 0x678   :  { %17256 = vst [vmem:[#allocation5_spill] sm:$0xff] %v14621_v60 }
 0x67a   :  { %v14615_v44 = vpop.f32.mrf.mxu0 }
 0x67b   :  { %v14617_v35 = vpop.f32.mrf.mxu1 }
 0x67c   :  { %17254 = vst [vmem:[#allocation4_spill] sm:$0xff] %v14617_v35 }
 0x67e   :  { %v14619_v46 = vpop.f32.mrf.mxu2 }
 0x67f   :  { %17255 = vst [vmem:[#allocation6_spill] sm:$0xff] %v14619_v46  ;;  %v14629_v4 = vpop.f32.mrf.mxu3  ;;  %v8907_v46 = vld [vmem:[%s17131_s2 + $0x158] sm:$0xf0] }
 0x680   :  { %17260 = vst [vmem:[#allocation11_spill] sm:$0xff] %v14629_v4  ;;  %v10368_v4 = vld [vmem:[%s17131_s2 + $0x14c] sm:$0xf] }
 0x682   :  { %v14623_v61 = vpop.f32.mrf.mxu0 }
 0x683   :  { %17257 = vst [vmem:[#allocation7_spill] sm:$0xff] %v14623_v61  ;;  %v14625_v17 = vpop.f32.mrf.mxu1 }
 0x684   :  { %17258 = vst [vmem:[#allocation8_spill] sm:$0xff] %v14625_v17 }
 0x686   :  { %v14627_v29 = vpop.f32.mrf.mxu2 }
 0x687   :  { %17259 = vst [vmem:[#allocation10_spill] sm:$0xff] %v14627_v29  ;;  %v14637_v24 = vpop.f32.mrf.mxu3 }
 0x688   :  { %17264 = vst [vmem:[#allocation13_spill] sm:$0xff] %v14637_v24 }
 0x68a   :  { %v14631_v2 = vpop.f32.mrf.mxu0 }
 0x68b   :  { %17261 = vst [vmem:[#allocation12_spill] sm:$0xff] %v14631_v2  ;;  %v14633_v20 = vpop.f32.mrf.mxu1  ;;  %v8881_v2 = vld [vmem:[%s17131_s2 + $0x120] sm:$0xf] }
 0x68c   :  { %17262 = vst [vmem:[#allocation9_spill] sm:$0xff] %v14633_v20 }
 0x68e   :  { %v14635_v57 = vpop.f32.mrf.mxu2 }
 0x68f   :  { %17263 = vst [vmem:[#allocation14_spill] sm:$0xff] %v14635_v57  ;;  %v14645_v13 = vpop.f32.mrf.mxu3 }
 0x690   :  { %17268 = vst [vmem:[#allocation19_spill] sm:$0xff] %v14645_v13 }
 0x692   :  { %v14639_v18 = vpop.f32.mrf.mxu0 }
 0x693   :  { %17265 = vst [vmem:[#allocation15_spill] sm:$0xff] %v14639_v18  ;;  %v14641_v38 = vpop.f32.mrf.mxu1 }
 0x694   :  { %17266 = vst [vmem:[#allocation16_spill] sm:$0xff] %v14641_v38 }
 0x696   :  { %v14643_v54 = vpop.f32.mrf.mxu2 }
 0x697   :  { %17267 = vst [vmem:[#allocation18_spill] sm:$0xff] %v14643_v54  ;;  %v14653_v11 = vpop.f32.mrf.mxu3 }
 0x698   :  { %17272 = vst [vmem:[#allocation23_spill] sm:$0xff] %v14653_v11 }
 0x69a   :  { %v14647_v55 = vpop.f32.mrf.mxu0 }
 0x69b   :  { %17269 = vst [vmem:[#allocation20_spill] sm:$0xff] %v14647_v55  ;;  %v14649_v15 = vpop.f32.mrf.mxu1 }
 0x69c   :  { %17270 = vst [vmem:[#allocation17_spill] sm:$0xff] %v14649_v15 }
 0x69e   :  { %v14651_v22 = vpop.f32.mrf.mxu2 }
 0x69f   :  { %17271 = vst [vmem:[#allocation21_spill] sm:$0xff] %v14651_v22  ;;  %v14661_v53 = vpop.f32.mrf.mxu3 }
 0x6a0   :  { %17276 = vst [vmem:[#allocation26_spill] sm:$0xff] %v14661_v53  ;;  %v14690_v53 = vperm.slane %v8536_v39, 3 }
 0x6a2   :  { %v14655_v0 = vpop.f32.mrf.mxu0 }
 0x6a3   :  { %17273 = vst [vmem:[#allocation22_spill] sm:$0xff] %v14655_v0  ;;  %v14657_v36 = vpop.f32.mrf.mxu1  ;;  %v8977_v0 = vld [vmem:[%s17131_s2 + $0x1e0] sm:$0xf] }
 0x6a4   :  { %17274 = vst [vmem:[#allocation24_spill] sm:$0xff] %v14657_v36 }
 0x6a6   :  { %v14659_v7 = vpop.f32.mrf.mxu2 }
 0x6a7   :  { %17275 = vst [vmem:[#allocation25_spill] sm:$0xff] %v14659_v7  ;;  %v14680_v7 = vperm.slane %v8536_v39, 1 }
 0x6d2   :  { %v14663_v23 = vpop.f32.mrf.mxu0  ;;  %v14665_v31 = vpop.f32.mrf.mxu1 }
 0x6d3   :  { %17277 = vst [vmem:[#allocation27_spill] sm:$0xff] %v14663_v23  ;;  %v3899_v23 = vadd.f32 %v14544_v59, %v14678_v6  ;;  %v10389_v59 = vld [vmem:[%s17131_s2 + $0x1ec] sm:$0xf0] }
 0x6d4   :  { %17278 = vst [vmem:[#allocation28_spill] sm:$0xff] %v14665_v31 }
 0x6d9   :  { %v14667_v51 = vpop.f32.mrf.mxu2  ;;  %v14669_v62 = vpop.f32.mrf.mxu3 }
 0x6da   :  { %17279 = vst [vmem:[#allocation29_spill] sm:$0xff] %v14667_v51  ;;  %v14674_v34 = vpop.f32.mrf.mxu0  ;;  %v14676_v50 = vpop.f32.mrf.mxu1  ;;  %v3948_v51 = vadd.f32 %v14546_v58, %v14680_v7  ;;  %v10387_v58 = vld [vmem:[%s17131_s2 + $0x1e4] sm:$0xf] }
 0x6db   :  { %17280 = vst [vmem:[#allocation30_spill] sm:$0xff] %v14669_v62 }
 0x6dc   :  { %17281 = vst [vmem:[#allocation31_spill] sm:$0xff] %v14674_v34 }
 0x6dd   :  { %17282 = vst [vmem:[#allocation32_spill] sm:$0xff] %v14676_v50 }
 0x6e1   :  { %v14686_v31 = vpop.f32.mrf.mxu2  ;;  %v14688_v62 = vpop.f32.mrf.mxu3 }
 0x6e2   :  { %17283 = vst [vmem:[#allocation33_spill] sm:$0xff] %v14686_v31  ;;  %v4359_v22 = vpop.f32.mrf.mxu0  ;;  %v4373_v34 = vpop.f32.mrf.mxu1  ;;  %v8978_v31 = vor.u32 %v10389_v59, %v8977_v0  ;;  %v10388_v0 = vld [vmem:[%s17131_s2 + $0x1ec] sm:$0xf]  ;;  %v8987_v59 = vld [vmem:[%s17131_s2 + $0x1f8] sm:$0xf0] }
 0x6e3   :  { %17284 = vst [vmem:[#allocation34_spill] sm:$0xff] %v14688_v62  ;;  %v4406_v36 = vadd.f32 %v4359_v22, %v3899_v23  ;;  %v4407_v50 = vadd.f32 %v4373_v34, %v3948_v51  ;;  %v8979_v62 = vld [vmem:[%s17131_s2 + $0x1f0] sm:$0xf0]  ;;  %v8985_v22 = vld [vmem:[%s17131_s2 + $0x1e8] sm:$0xf]  ;;  %v8990_v55 = vor.u32 %v10388_v0, %v8987_v59 }
 0x6e4   :  { %v10390_v23 = vld [vmem:[%s17131_s2 + $0x1f4] sm:$0xf0]  ;;  %v8982_v11 = vor.u32 %v10387_v58, %v8979_v62  ;;  %4743 = vmatpush.bf16.msrb.mxu0 %v8978_v31  ;;  %v10385_v62 = vld [vmem:[%s17131_s2 + $0x1cc] sm:$0xf0]  ;;  %v10383_v31 = vld [vmem:[%s17131_s2 + $0x1c4] sm:$0xf] }
 0x6e5   :  { %v8825_v51 = vmul.f32 -1.442695, %v4406_v36  ;;  %v8827_v34 = vmul.f32 -1.442695, %v4407_v50  ;;  %v8986_v15 = vor.u32 %v10390_v23, %v8985_v22  ;;  %v8961_v36 = vld [vmem:[%s17131_s2 + $0x1c0] sm:$0xf]  ;;  %v4046_v50 = vadd.f32 %v14553_v9, %v14690_v53  ;;  %4785 = vmatpush.bf16.msrb.mxu3 %v8990_v55 }
 0x6e6   :  { %4757 = vmatpush.bf16.msrb.mxu1 %v8982_v11  ;;  %v8962_v58 = vor.u32 %v10385_v62, %v8961_v36  ;;  %v8969_v11 = vld [vmem:[%s17131_s2 + $0x1c8] sm:$0xf]  ;;  %v10386_v22 = vld [vmem:[%s17131_s2 + $0x1d4] sm:$0xf0]  ;;  %v3901_v23 = vadd.f32 %v14555_v32, %v14678_v6  ;;  %v3950_v9 = vadd.f32 %v14557_v45, %v14680_v7  ;;  %v10384_v59 = vld [vmem:[%s17131_s2 + $0x1cc] sm:$0xf] }
 0x6e7   :  { %10840 = vpow2.f32 %v8825_v51  ;;  %4771 = vmatpush.bf16.msrb.mxu2 %v8986_v15  ;;  %v8963_v15 = vld [vmem:[%s17131_s2 + $0x1d0] sm:$0xf0]  ;;  %v8970_v0 = vor.u32 %v10386_v22, %v8969_v11  ;;  %v8971_v36 = vld [vmem:[%s17131_s2 + $0x1d8] sm:$0xf0]  ;;  %v14746_v62 = vperm.slane %v8536_v39, 2 }
 0x6e8   :  { %10842 = vpow2.f32 %v8827_v34  ;;  %v8966_v34 = vor.u32 %v10383_v31, %v8963_v15  ;;  %4744 = vmatpush.bf16.msrb.mxu0 %v8962_v58  ;;  %v8974_v57 = vor.u32 %v10384_v59, %v8971_v36  ;;  %v8945_v31 = vld [vmem:[%s17131_s2 + $0x1a0] sm:$0xf]  ;;  %v10381_v15 = vld [vmem:[%s17131_s2 + $0x1ac] sm:$0xf0]  ;;  %v10379_v39 = vld [vmem:[%s17131_s2 + $0x1a4] sm:$0xf] }
 0x6e9   :  { %v4401_v51 = vpop.f32.mrf.mxu3  ;;  %v4387_v45 = vpop.f32.mrf.mxu2  ;;  %v8946_v58 = vor.u32 %v10381_v15, %v8945_v31  ;;  %v8953_v11 = vld [vmem:[%s17131_s2 + $0x1a8] sm:$0xf]  ;;  %v10380_v36 = vld [vmem:[%s17131_s2 + $0x1ac] sm:$0xf]  ;;  %v8929_v31 = vld [vmem:[%s17131_s2 + $0x180] sm:$0xf]  ;;  %v3999_v18 = vadd.f32 %v14559_v30, %v14746_v62 }
 0x6ea   :  { %v4409_v54 = vadd.f32 %v4401_v51, %v4046_v50  ;;  %v4361_v13 = vpop.f32.mrf.mxu0  ;;  %v4375_v32 = vpop.f32.mrf.mxu1  ;;  %4758 = vmatpush.bf16.msrb.mxu1 %v8966_v34  ;;  %4786 = vmatpush.bf16.msrb.mxu3 %v8974_v57  ;;  %v10382_v34 = vld [vmem:[%s17131_s2 + $0x1b4] sm:$0xf0]  ;;  %v10377_v15 = vld [vmem:[%s17131_s2 + $0x18c] sm:$0xf0] }
 0x6eb   :  { %v4410_v38 = vadd.f32 %v4361_v13, %v3901_v23  ;;  %v4411_v55 = vadd.f32 %v4375_v32, %v3950_v9  ;;  %4772 = vmatpush.bf16.msrb.mxu2 %v8970_v0  ;;  %v8947_v13 = vld [vmem:[%s17131_s2 + $0x1b0] sm:$0xf0]  ;;  %v8954_v59 = vor.u32 %v10382_v34, %v8953_v11  ;;  %v8937_v11 = vld [vmem:[%s17131_s2 + $0x188] sm:$0xf] }
 0x6ec   :  { %v8829_v50 = vmul.f32 -1.442695, %v4409_v54  ;;  %v8950_v51 = vor.u32 %v10379_v39, %v8947_v13  ;;  %4745 = vmatpush.bf16.msrb.mxu0 %v8946_v58  ;;  %v10375_v39 = vld [vmem:[%s17131_s2 + $0x184] sm:$0xf] }
 0x6ed   :  { %v10841_v22 = vpop.eup %10840  ;;  %v8826_v23 = vmul.f32 -1.442695, %v4410_v38  ;;  %v8828_v9 = vmul.f32 -1.442695, %v4411_v55  ;;  %v8955_v38 = vld [vmem:[%s17131_s2 + $0x1b8] sm:$0xf0]  ;;  %v3997_v55 = vadd.f32 %v14551_v37, %v14746_v62 }
 0x6ee   :  { %v10843_v0 = vpop.eup %10842  ;;  %v14766_v54 = vadd.f32 1.0, %v10841_v22  ;;  %10844 = vpow2.f32 %v8829_v50  ;;  %4759 = vmatpush.bf16.msrb.mxu1 %v8950_v51  ;;  %v8958_v32 = vor.u32 %v10380_v36, %v8955_v38  ;;  %v8931_v37 = vld [vmem:[%s17131_s2 + $0x190] sm:$0xf0]  ;;  %v10378_v22 = vld [vmem:[%s17131_s2 + $0x194] sm:$0xf0] }
 0x6ef   :  { %v14774_v57 = vadd.f32 1.0, %v10843_v0  ;;  %10846 = vpow2.f32 %v8826_v23  ;;  %4773 = vmatpush.bf16.msrb.mxu2 %v8954_v59  ;;  %v4408_v50 = vadd.f32 %v4387_v45, %v3997_v55  ;;  %v4048_v23 = vadd.f32 %v14561_v25, %v14690_v53  ;;  %v8939_v0 = vld [vmem:[%s17131_s2 + $0x198] sm:$0xf0]  ;;  %v8913_v25 = vld [vmem:[%s17131_s2 + $0x160] sm:$0xf] }
 0x6f0   :  { %10848 = vrcp.f32 %v14766_v54  ;;  %4787 = vmatpush.bf16.msrb.mxu3 %v8958_v32  ;;  %v4431_v58 = vand.u32 2147483647, %v14766_v54  ;;  %v4433_v34 = vand.u32 2147483648, %v14766_v54  ;;  %v8930_v45 = vor.u32 %v10377_v15, %v8929_v31  ;;  %v10373_v55 = vld [vmem:[%s17131_s2 + $0x16c] sm:$0xf0] }
 0x6f1   :  { %10850 = vrcp.f32 %v14774_v57  ;;  %v4403_v13 = vpop.f32.mrf.mxu3  ;;  %v4471_v51 = vand.u32 2147483648, %v14774_v57  ;;  %v8934_v36 = vor.u32 %v10375_v39, %v8931_v37  ;;  %v8938_v38 = vor.u32 %v10378_v22, %v8937_v11  ;;  %v10371_v31 = vld [vmem:[%s17131_s2 + $0x164] sm:$0xf]  ;;  %v4389_v39 = vpop.f32.mrf.mxu2  ;;  %v8915_v22 = vld [vmem:[%s17131_s2 + $0x170] sm:$0xf0] }
 0x6f2   :  { %10852 = vpow2.f32 %v8828_v9  ;;  %v10376_v9 = vld [vmem:[%s17131_s2 + $0x18c] sm:$0xf]  ;;  %v4413_v37 = vadd.f32 %v4403_v13, %v4048_v23  ;;  %4746 = vmatpush.bf16.msrb.mxu0 %v8930_v45  ;;  %v8914_v11 = vor.u32 %v10373_v55, %v8913_v25  ;;  %v8918_v30 = vor.u32 %v10371_v31, %v8915_v22 }
 0x6f3   :  { %v8942_v32 = vor.u32 %v10376_v9, %v8939_v0  ;;  %v4469_v0 = vand.u32 2147483647, %v14774_v57  ;;  %10854 = vtanh.f32 %v4408_v50  ;;  %4760 = vmatpush.bf16.msrb.mxu1 %v8934_v36  ;;  %4774 = vmatpush.bf16.msrb.mxu2 %v8938_v38  ;;  %vm4427_vm0 = vweird.f32 %v14766_v54 }
 0x6f4   :  { %v10845_v59 = vpop.eup %10844  ;;  %vm14835_vm1 = vcmp.eq.f32.partialorder %v4431_v58, 8.507059e+37  ;;  %v4472_v36 = vor.u32 1.1754944e-38, %v4471_v51  ;;  %v4434_v38 = vor.u32 1.1754944e-38, %v4433_v34  ;;  %v4412_v25 = vadd.f32 %v4389_v39, %v3999_v18  ;;  %v8921_v58 = vld [vmem:[%s17131_s2 + $0x168] sm:$0xf] }
 0x6f5   :  { %v10847_v15 = vpop.eup %10846  ;;  %v14820_v24 = vadd.f32 1.0, %v10845_v59  ;;  %4788 = vmatpush.bf16.msrb.mxu3 %v8942_v32  ;;  %vm4465_vm2 = vweird.f32 %v14774_v57  ;;  %vm14850_vm4 = vcmp.eq.f32.partialorder %v4469_v0, 8.507059e+37  ;;  %v10374_v18 = vld [vmem:[%s17131_s2 + $0x174] sm:$0xf0]  ;;  %v10372_v34 = vld [vmem:[%s17131_s2 + $0x16c] sm:$0xf] }
 0x6f6   :  { %v14825_v9 = vpop.eup %10848  ;;  %v14828_v20 = vadd.f32 1.0, %v10847_v15  ;;  %v8830_v15 = vmul.f32 -1.442695, %v4413_v37  ;;  %4747 = vmatpush.bf16.msrb.mxu0 %v8914_v11  ;;  %v8923_v37 = vld [vmem:[%s17131_s2 + $0x178] sm:$0xf0] }
 0x6f7   :  { %v14830_v59 = vpop.eup %10850  ;;  %v4423_v13 = vmul.f32 %v14825_v9, %v14766_v54  ;;  %10856 = vrcp.f32 %v14820_v24  ;;  %vm4428_vm3 = vweird.f32 %v14825_v9  ;;  %4761 = vmatpush.bf16.msrb.mxu1 %v8918_v30  ;;  %v8897_v11 = vld [vmem:[%s17131_s2 + $0x140] sm:$0xf]  ;;  %vm4505_vm9 = vweird.f32 %v14820_v24  ;;  %v10366_v54 = vld [vmem:[%s17131_s2 + $0x134] sm:$0xf0] }
 0x6f8   :  { %v10853_v50 = vpop.eup %10852  ;;  %v4461_v45 = vmul.f32 %v14830_v59, %v14774_v57  ;;  %10858 = vrcp.f32 %v14828_v20  ;;  %vm4466_vm5 = vweird.f32 %v14830_v59  ;;  %vm14883_vm6 = vmor %vm4427_vm0, %vm4428_vm3  ;;  %vm4442_vm8 = vweird.f32 %v14828_v20  ;;  %v10370_v57 = vld [vmem:[%s17131_s2 + $0x154] sm:$0xf0] }
 0x6f9   :  { %v4424_v55 = vsub.f32 1.0, %v4423_v13  ;;  %v14843_v31 = vadd.f32 1.0, %v10853_v50  ;;  %v10855_v0 = vpop.eup %10854  ;;  %v10367_v50 = vld [vmem:[%s17131_s2 + $0x144] sm:$0xf]  ;;  %vm14899_vm7 = vmor %vm4465_vm2, %vm4466_vm5 }
 0x6fa   :  { %v4462_v22 = vsub.f32 1.0, %v4461_v45  ;;  %v10369_v45 = vld [vmem:[%s17131_s2 + $0x14c] sm:$0xf0] }
 0x6fb   :  { %v4425_v32 = vmul.f32 %v14825_v9, %v4424_v55  ;;  %10860 = vrcp.f32 %v14843_v31  ;;  %vm4480_vm13 = vweird.f32 %v14843_v31 }
 0x6fc   :  { %v4463_v30 = vmul.f32 %v14830_v59, %v4462_v22  ;;  %10862 = vtanh.f32 %v4412_v25  ;;  %v8922_v25 = vor.u32 %v10374_v18, %v8921_v58  ;;  %v8926_v18 = vor.u32 %v10372_v34, %v8923_v37 }
 0x6fd   :  { %v14876_v55 = vpop.eup %10856  ;;  %v4426_v39 = vadd.f32 %v14825_v9, %v4425_v32  ;;  %10864 = vpow2.f32 %v8830_v15  ;;  %v8899_v32 = vld [vmem:[%s17131_s2 + $0x150] sm:$0xf0]  ;;  %v8898_v58 = vor.u32 %v10369_v45, %v8897_v11  ;;  %v10365_v11 = vld [vmem:[%s17131_s2 + $0x12c] sm:$0xf0]  ;;  %v10363_v45 = vld [vmem:[%s17131_s2 + $0x124] sm:$0xf] }
 0x6fe   :  { %v4464_v13 = vadd.f32 %v14830_v59, %v4463_v30  ;;  %v4501_v15 = vmul.f32 %v14876_v55, %v14820_v24  ;;  %v8905_v30 = vld [vmem:[%s17131_s2 + $0x148] sm:$0xf]  ;;  %v14914_v22 = vpop.eup %10858  ;;  %vm4506_vm10 = vweird.f32 %v14876_v55  ;;  %4775 = vmatpush.bf16.msrb.mxu2 %v8922_v25  ;;  %4789 = vmatpush.bf16.msrb.mxu3 %v8926_v18 }
 0x6ff   :  { %v4430_v29 = vsel %vm14883_vm6, %v14825_v9, %v4426_v39  ;;  %v4438_v37 = vmul.f32 %v14914_v22, %v14828_v20  ;;  %vm4443_vm11 = vweird.f32 %v14914_v22  ;;  %4748 = vmatpush.bf16.msrb.mxu0 %v8898_v58  ;;  %v8891_v58 = vld [vmem:[%s17131_s2 + $0x138] sm:$0xf0]  ;;  %vm15014_vm15 = vmor %vm4505_vm9, %vm4506_vm10 }
 0x700   :  { %v4435_v9 = vsel %vm14835_vm1, %v4434_v38, %v4430_v29  ;;  %v4468_v34 = vsel %vm14899_vm7, %v14830_v59, %v4464_v13  ;;  %v4502_v39 = vsub.f32 1.0, %v4501_v15  ;;  %v8902_v59 = vor.u32 %v10367_v50, %v8899_v32  ;;  %v8883_v38 = vld [vmem:[%s17131_s2 + $0x130] sm:$0xf0]  ;;  %v8889_v13 = vld [vmem:[%s17131_s2 + $0x128] sm:$0xf]  ;;  %vm4444_vm14 = vmor %vm4442_vm8, %vm4443_vm11 }
 0x701   :  { %v14943_v25 = vpop.eup %10860  ;;  %v4473_v29 = vsel %vm14850_vm4, %v4472_v36, %v4468_v34  ;;  %v4532_v23 = vmul.f32 %v10855_v0, %v4435_v9  ;;  %v4439_v15 = vsub.f32 1.0, %v4438_v37  ;;  %v10364_v32 = vld [vmem:[%s17131_s2 + $0x12c] sm:$0xf]  ;;  %v8906_v9 = vor.u32 %v10370_v57, %v8905_v30  ;;  %v10361_v37 = vld [vmem:[%s17131_s2 + $0x10c] sm:$0xf0] }
 0x702   :  { %v10863_v51 = vpop.eup %10862  ;;  %v4530_v36 = vmul.f32 0.0, %v4473_v29  ;;  %v4503_v0 = vmul.f32 %v14876_v55, %v4502_v39  ;;  %v4476_v50 = vmul.f32 %v14943_v25, %v14843_v31  ;;  %vm4481_vm12 = vweird.f32 %v14943_v25  ;;  %4762 = vmatpush.bf16.msrb.mxu1 %v8902_v59  ;;  %v8865_v39 = vld [vmem:[%s17131_s2 + $0x100] sm:$0xf] }
 0x703   :  { %v10865_v18 = vpop.eup %10864  ;;  %v8910_v34 = vor.u32 %v10368_v4, %v8907_v46  ;;  %v8882_v29 = vor.u32 %v10365_v11, %v8881_v2  ;;  %v4440_v35 = vmul.f32 %v14914_v22, %v4439_v15  ;;  %v10359_v46 = vld [vmem:[%s17131_s2 + $0x104] sm:$0xf]  ;;  %4776 = vmatpush.bf16.msrb.mxu2 %v8906_v9  ;;  %v8886_v30 = vor.u32 %v10363_v45, %v8883_v38  ;;  %v8867_v11 = vld [vmem:[%s17131_s2 + $0x110] sm:$0xf0]  ;;  %v10362_v45 = vld [vmem:[%s17131_s2 + $0x114] sm:$0xf0] }
 0x704   :  { %v14973_v17 = vadd.f32 %v4532_v23, %v4530_v36  ;;  %v4504_v61 = vadd.f32 %v14876_v55, %v4503_v0  ;;  %v4477_v60 = vsub.f32 1.0, %v4476_v50  ;;  %v14980_v4 = vadd.f32 1.0, %v10865_v18  ;;  %v8873_v23 = vld [vmem:[%s17131_s2 + $0x108] sm:$0xf]  ;;  %v10360_v38 = vld [vmem:[%s17131_s2 + $0x10c] sm:$0xf]  ;;  %vm4482_vm1 = vmor %vm4480_vm13, %vm4481_vm12 }
 0x705   :  { %4790 = vmatpush.bf16.msrb.mxu3 %v8910_v34  ;;  %v8890_v57 = vor.u32 %v10366_v54, %v8889_v13  ;;  %v8894_v2 = vor.u32 %v10364_v32, %v8891_v58  ;;  %v4441_v36 = vadd.f32 %v14914_v22, %v4440_v35  ;;  %4749 = vmatpush.bf16.msrb.mxu0 %v8882_v29  ;;  %v8875_v13 = vld [vmem:[%s17131_s2 + $0x118] sm:$0xf0]  ;;  %v17293_v54 = vand.u32 2147483648, %v14820_v24 }
 0x706   :  { %10866 = vtanh.f32 %v14973_v17  ;;  %v4478_v59 = vmul.f32 %v14943_v25, %v4477_v60  ;;  %v8866_v0 = vor.u32 %v10361_v37, %v8865_v39  ;;  %v17294_v35 = vand.u32 2147483648, %v14828_v20  ;;  %4763 = vmatpush.bf16.msrb.mxu1 %v8886_v30 }
 0x707   :  { %v4512_v15 = vor.u32 1.1754944e-38, %v17293_v54  ;;  %10868 = vrcp.f32 %v14980_v4  ;;  %v4445_v32 = vsel %vm4444_vm14, %v14914_v22, %v4441_v36  ;;  %v17297_v58 = vand.u32 2147483647, %v14828_v20  ;;  %4777 = vmatpush.bf16.msrb.mxu2 %v8890_v57 }
 0x708   :  { %v4449_v60 = vor.u32 1.1754944e-38, %v17294_v35  ;;  %v4479_v18 = vadd.f32 %v14943_v25, %v4478_v59  ;;  %v8870_v9 = vor.u32 %v10359_v46, %v8867_v11  ;;  %v17298_v34 = vand.u32 2147483648, %v14843_v31 }
 0x709   :  { %vm4447_vm0 = vcmp.eq.f32.partialorder %v17297_v58, 8.507059e+37  ;;  %4791 = vmatpush.bf16.msrb.mxu3 %v8894_v2  ;;  %v8874_v37 = vor.u32 %v10362_v45, %v8873_v23  ;;  %v8878_v30 = vor.u32 %v10360_v38, %v8875_v13  ;;  %v17299_v22 = vand.u32 2147483647, %v14843_v31  ;;  %4750 = vmatpush.bf16.msrb.mxu0 %v8866_v0  ;;  %v10419_v58 = vld [vmem:[%s17131_s2 + $0x1e4] sm:$0xf] }
 0x70a   :  { %v4487_v29 = vor.u32 1.1754944e-38, %v17298_v34  ;;  %v4450_v39 = vsel %vm4447_vm0, %v4449_v60, %v4445_v32  ;;  %v4483_v54 = vsel %vm4482_vm1, %v14943_v25, %v4479_v18  ;;  %v4508_v46 = vsel %vm15014_vm15, %v14876_v55, %v4504_v61  ;;  %4764 = vmatpush.bf16.msrb.mxu1 %v8870_v9  ;;  %v10421_v32 = vld [vmem:[%s17131_s2 + $0x1ec] sm:$0xf0]  ;;  %v9147_v9 = vld [vmem:[%s17131_s2 + $0x1f0] sm:$0xf0] }
 0x70b   :  { %vm4485_vm2 = vcmp.eq.f32.partialorder %v17299_v22, 8.507059e+37  ;;  %v4533_v20 = vmul.f32 %v10863_v51, %v4450_v39  ;;  %v17300_v11 = vand.u32 2147483647, %v14820_v24  ;;  %4778 = vmatpush.bf16.msrb.mxu2 %v8874_v37  ;;  %v4526_v24 = vand.u32 2147483648, %v14980_v4  ;;  %v9153_v34 = vld [vmem:[%s17131_s2 + $0x1e8] sm:$0xf] }
 0x70c   :  { %v4488_v59 = vsel %vm4485_vm2, %v4487_v29, %v4483_v54  ;;  %v10867_v57 = vpop.eup %10866  ;;  %v4524_v0 = vand.u32 2147483647, %v14980_v4  ;;  %vm4520_vm5 = vweird.f32 %v14980_v4  ;;  %v10422_v29 = vld [vmem:[%s17131_s2 + $0x1f4] sm:$0xf0]  ;;  %v3904_v39 = vadd.f32 %v14563_v5, %v14678_v6  ;;  %v10420_v22 = vld [vmem:[%s17131_s2 + $0x1ec] sm:$0xf] }
 0x70d   :  { %vm4510_vm3 = vcmp.eq.f32.partialorder %v17300_v11, 8.507059e+37  ;;  %v4531_v2 = vmul.f32 0.0, %v4488_v59  ;;  %v10869_v36 = vpop.eup %10868  ;;  %4792 = vmatpush.bf16.msrb.mxu3 %v8878_v30  ;;  %v4527_v38 = vor.u32 1.1754944e-38, %v4526_v24  ;;  %v3953_v37 = vadd.f32 %v14565_v27, %v14680_v7  ;;  %v9129_v5 = vld [vmem:[%s17131_s2 + $0x1c0] sm:$0xf] }
 0x70e   :  { %v4513_v23 = vsel %vm4510_vm3, %v4512_v15, %v4508_v46  ;;  %v4516_v51 = vmul.f32 %v10869_v36, %v14980_v4  ;;  %vm4521_vm4 = vweird.f32 %v10869_v36  ;;  %vm4525_vm7 = vcmp.eq.f32.partialorder %v4524_v0, 8.507059e+37  ;;  %v9145_v4 = vld [vmem:[%s17131_s2 + $0x1e0] sm:$0xf]  ;;  %v10417_v27 = vld [vmem:[%s17131_s2 + $0x1cc] sm:$0xf0] }
 0x70f   :  { %v4538_v25 = vmul.f32 %v10867_v57, %v4513_v23  ;;  %v15034_v31 = vadd.f32 %v4533_v20, %v4531_v2  ;;  %vm4522_vm6 = vmor %vm4520_vm5, %vm4521_vm4  ;;  %v9146_v18 = vor.u32 %v10421_v32, %v9145_v4  ;;  %v9150_v30 = vor.u32 %v10419_v58, %v9147_v9  ;;  %v9155_v20 = vld [vmem:[%s17131_s2 + $0x1f8] sm:$0xf0]  ;;  %v10415_v23 = vld [vmem:[%s17131_s2 + $0x1c4] sm:$0xf] }
 0x710   :  { %v4517_v61 = vsub.f32 1.0, %v4516_v51  ;;  %v9154_v54 = vor.u32 %v10422_v29, %v9153_v34  ;;  %v9158_v59 = vor.u32 %v10420_v22, %v9155_v20  ;;  %v9137_v51 = vld [vmem:[%s17131_s2 + $0x1c8] sm:$0xf]  ;;  %v4051_v4 = vadd.f32 %v14569_v16, %v14690_v53  ;;  %v9115_v58 = vld [vmem:[%s17131_s2 + $0x1b0] sm:$0xf0] }
 0x711   :  { %4540 = vst [vmem:[%s17133_s4] sm:$0xff] %v4538_v25  ;;  %10870 = vtanh.f32 %v15034_v31  ;;  %5137 = vmatpush.bf16.msra.mxu0 %v9146_v18  ;;  %5151 = vmatpush.bf16.msra.mxu1 %v9150_v30  ;;  %v9121_v18 = vld [vmem:[%s17131_s2 + $0x1a8] sm:$0xf]  ;;  %v10414_v9 = vld [vmem:[%s17131_s2 + $0x1b4] sm:$0xf0]  ;;  %v3906_v34 = vadd.f32 %v14573_v48, %v14678_v6  ;;  %v3955_v16 = vadd.f32 %v14575_v43, %v14680_v7  ;;  %v10412_v30 = vld [vmem:[%s17131_s2 + $0x1ac] sm:$0xf] }
 0x712   :  { %v4518_v55 = vmul.f32 %v10869_v36, %v4517_v61  ;;  %5165 = vmatpush.bf16.msra.mxu2 %v9154_v54  ;;  %5179 = vmatpush.bf16.msra.mxu3 %v9158_v59  ;;  %v10418_v61 = vld [vmem:[%s17131_s2 + $0x1d4] sm:$0xf0]  ;;  %v9123_v54 = vld [vmem:[%s17131_s2 + $0x1b8] sm:$0xf0] }
 0x713   :  { %v9126_v48 = vor.u32 %v10412_v30, %v9123_v54 }
 0x714   :  { %v4519_v45 = vadd.f32 %v10869_v36, %v4518_v55 }
 0x716   :  { %v4523_v15 = vsel %vm4522_vm6, %v10869_v36, %v4519_v45  ;;  %v9130_v36 = vor.u32 %v10417_v27, %v9129_v5  ;;  %v9138_v45 = vor.u32 %v10418_v61, %v9137_v51  ;;  %v10407_v5 = vld [vmem:[%s17131_s2 + $0x184] sm:$0xf] }
 0x717   :  { %v10871_v13 = vpop.eup %10870  ;;  %v4528_v35 = vsel %vm4525_vm7, %v4527_v38, %v4523_v15  ;;  %v10416_v38 = vld [vmem:[%s17131_s2 + $0x1cc] sm:$0xf] }
 0x718   :  { %v4539_v60 = vmul.f32 %v10871_v13, %v4528_v35  ;;  %5138 = vmatpush.bf16.msra.mxu0 %v9130_v36  ;;  %v9139_v13 = vld [vmem:[%s17131_s2 + $0x1d8] sm:$0xf0]  ;;  %5166 = vmatpush.bf16.msra.mxu2 %v9138_v45  ;;  %v9113_v35 = vld [vmem:[%s17131_s2 + $0x1a0] sm:$0xf]  ;;  %v9099_v36 = vld [vmem:[%s17131_s2 + $0x190] sm:$0xf0] }
 0x719   :  { %v9142_v15 = vor.u32 %v10416_v38, %v9139_v13 }
 0x71a   :  { %4541 = vst [vmem:[%s17133_s4 + $0x8] sm:$0xff] %v4539_v60  ;;  %v4550_v50 = vpack.c.bf16 %v4539_v60, %v4538_v25  ;;  %v9131_v25 = vld [vmem:[%s17131_s2 + $0x1d0] sm:$0xf0]  ;;  %v10413_v60 = vld [vmem:[%s17131_s2 + $0x1ac] sm:$0xf0] }
 0x71b   :  { %v9134_v0 = vor.u32 %v10415_v23, %v9131_v25  ;;  %v9114_v32 = vor.u32 %v10413_v60, %v9113_v35  ;;  %5180 = vmatpush.bf16.msra.mxu3 %v9142_v15  ;;  %v9105_v25 = vld [vmem:[%s17131_s2 + $0x188] sm:$0xf]  ;;  %v10408_v15 = vld [vmem:[%s17131_s2 + $0x18c] sm:$0xf]  ;;  %v9107_v35 = vld [vmem:[%s17131_s2 + $0x198] sm:$0xf0] }
 0x71c   :  { %4751 = vmatmul.bf16.vlgmr.msrb.gmra.mxu0 %v4550_v50  ;;  %4765 = vmatmul.bf16.vlgmr.msrb.gmra.mxu1 %v4550_v50 }
 0x71d   :  { %4779 = vmatmul.bf16.vlgmr.msrb.gmra.mxu2 %v4550_v50  ;;  %4793 = vmatmul.bf16.vlgmr.msrb.gmra.mxu3 %v4550_v50  ;;  %v10411_v50 = vld [vmem:[%s17131_s2 + $0x1a4] sm:$0xf] }
 0x71e   :  { %5152 = vmatpush.bf16.msra.mxu1 %v9134_v0  ;;  %5139 = vmatpush.bf16.msra.mxu0 %v9114_v32  ;;  %v10410_v0 = vld [vmem:[%s17131_s2 + $0x194] sm:$0xf0]  ;;  %v9081_v32 = vld [vmem:[%s17131_s2 + $0x160] sm:$0xf] }
 0x71f   :  { %5181 = vmatpush.bf16.msra.mxu3 %v9126_v48  ;;  %v9106_v13 = vor.u32 %v10410_v0, %v9105_v25 }
 0x799   :  { %v4752_v46 = vpop.f32.mrf.mxu0  ;;  %v4766_v11 = vpop.f32.mrf.mxu1 }
 0x79a   :  { %v4799_v57 = vadd.f32 %v4752_v46, %v3904_v39  ;;  %v4800_v2 = vadd.f32 %v4766_v11, %v3953_v37  ;;  %v9118_v39 = vor.u32 %v10411_v50, %v9115_v58  ;;  %v9122_v37 = vor.u32 %v10414_v9, %v9121_v18  ;;  %v10405_v58 = vld [vmem:[%s17131_s2 + $0x16c] sm:$0xf0]  ;;  %v10403_v18 = vld [vmem:[%s17131_s2 + $0x164] sm:$0xf] }
 0x79b   :  { %v9110_v50 = vor.u32 %v10408_v15, %v9107_v35 }
 0x79c   :  { %v8991_v24 = vmul.f32 -1.442695, %v4799_v57  ;;  %v8993_v55 = vmul.f32 -1.442695, %v4800_v2  ;;  %5153 = vmatpush.bf16.msra.mxu1 %v9118_v39  ;;  %5167 = vmatpush.bf16.msra.mxu2 %v9122_v37  ;;  %v9097_v57 = vld [vmem:[%s17131_s2 + $0x180] sm:$0xf]  ;;  %v4053_v37 = vadd.f32 %v14581_v8, %v14690_v53 }
 0x79d   :  { %v10409_v2 = vld [vmem:[%s17131_s2 + $0x18c] sm:$0xf0]  ;;  %5182 = vmatpush.bf16.msra.mxu3 %v9110_v50  ;;  %v10406_v39 = vld [vmem:[%s17131_s2 + $0x174] sm:$0xf0]  ;;  %v9065_v8 = vld [vmem:[%s17131_s2 + $0x140] sm:$0xf] }
 0x79e   :  { %10872 = vpow2.f32 %v8991_v24  ;;  %v9098_v23 = vor.u32 %v10409_v2, %v9097_v57  ;;  %v10401_v57 = vld [vmem:[%s17131_s2 + $0x14c] sm:$0xf0]  ;;  %v10399_v2 = vld [vmem:[%s17131_s2 + $0x144] sm:$0xf] }
 0x79f   :  { %10874 = vpow2.f32 %v8993_v55  ;;  %v9102_v55 = vor.u32 %v10407_v5, %v9099_v36 }
 0x7a0   :  { %v4794_v29 = vpop.f32.mrf.mxu3  ;;  %v4780_v11 = vpop.f32.mrf.mxu2  ;;  %5140 = vmatpush.bf16.msra.mxu0 %v9098_v23  ;;  %5168 = vmatpush.bf16.msra.mxu2 %v9106_v13 }
 0x7a1   :  { %v4802_v22 = vadd.f32 %v4794_v29, %v4051_v4  ;;  %v4754_v20 = vpop.f32.mrf.mxu0  ;;  %v4768_v46 = vpop.f32.mrf.mxu1  ;;  %5154 = vmatpush.bf16.msra.mxu1 %v9102_v55  ;;  %v4002_v4 = vadd.f32 %v14567_v21, %v14746_v62  ;;  %v9083_v21 = vld [vmem:[%s17131_s2 + $0x170] sm:$0xf0]  ;;  %v9089_v29 = vld [vmem:[%s17131_s2 + $0x168] sm:$0xf] }
 0x7a2   :  { %v4803_v59 = vadd.f32 %v4754_v20, %v3906_v34  ;;  %v4804_v43 = vadd.f32 %v4768_v46, %v3955_v16  ;;  %v10404_v20 = vld [vmem:[%s17131_s2 + $0x16c] sm:$0xf]  ;;  %v9091_v46 = vld [vmem:[%s17131_s2 + $0x178] sm:$0xf0] }
 0x7a3   :  { %v8995_v27 = vmul.f32 -1.442695, %v4802_v22  ;;  %v4801_v9 = vadd.f32 %v4780_v11, %v4002_v4  ;;  %v9082_v22 = vor.u32 %v10405_v58, %v9081_v32  ;;  %v9086_v11 = vor.u32 %v10403_v18, %v9083_v21 }
 0x7a4   :  { %v10873_v51 = vpop.eup %10872  ;;  %v8992_v61 = vmul.f32 -1.442695, %v4803_v59  ;;  %v8994_v24 = vmul.f32 -1.442695, %v4804_v43  ;;  %v9090_v59 = vor.u32 %v10406_v39, %v9089_v29  ;;  %v9094_v43 = vor.u32 %v10404_v20, %v9091_v46  ;;  %v9073_v29 = vld [vmem:[%s17131_s2 + $0x148] sm:$0xf] }
 0x7a5   :  { %v10875_v45 = vpop.eup %10874  ;;  %v15147_v38 = vadd.f32 1.0, %v10873_v51  ;;  %10876 = vpow2.f32 %v8995_v27  ;;  %v4004_v27 = vadd.f32 %v14579_v19, %v14746_v62  ;;  %5141 = vmatpush.bf16.msra.mxu0 %v9082_v22  ;;  %v9066_v51 = vor.u32 %v10401_v57, %v9065_v8  ;;  %5155 = vmatpush.bf16.msra.mxu1 %v9086_v11  ;;  %v10402_v39 = vld [vmem:[%s17131_s2 + $0x154] sm:$0xf0]  ;;  %v9049_v22 = vld [vmem:[%s17131_s2 + $0x120] sm:$0xf] }
 0x7a6   :  { %v15155_v60 = vadd.f32 1.0, %v10875_v45  ;;  %10878 = vpow2.f32 %v8992_v61  ;;  %v9067_v61 = vld [vmem:[%s17131_s2 + $0x150] sm:$0xf0]  ;;  %5169 = vmatpush.bf16.msra.mxu2 %v9090_v59  ;;  %5183 = vmatpush.bf16.msra.mxu3 %v9094_v43  ;;  %v10397_v59 = vld [vmem:[%s17131_s2 + $0x12c] sm:$0xf0] }
 0x7a7   :  { %10880 = vrcp.f32 %v15147_v38  ;;  %v4824_v34 = vand.u32 2147483647, %v15147_v38  ;;  %v4826_v54 = vand.u32 2147483648, %v15147_v38  ;;  %v9070_v19 = vor.u32 %v10399_v2, %v9067_v61 }
 0x7a8   :  { %10882 = vrcp.f32 %v15155_v60  ;;  %v4796_v16 = vpop.f32.mrf.mxu3  ;;  %v4864_v30 = vand.u32 2147483648, %v15155_v60  ;;  %v4782_v36 = vpop.f32.mrf.mxu2  ;;  %v4862_v55 = vand.u32 2147483647, %v15155_v60  ;;  %vm4820_vm9 = vweird.f32 %v15147_v38 }
 0x7a9   :  { %10884 = vpow2.f32 %v8994_v24  ;;  %v4806_v25 = vadd.f32 %v4796_v16, %v4053_v37  ;;  %vm15215_vm8 = vcmp.eq.f32.partialorder %v4824_v34, 8.507059e+37  ;;  %v4827_v32 = vor.u32 1.1754944e-38, %v4826_v54  ;;  %5142 = vmatpush.bf16.msra.mxu0 %v9066_v51  ;;  %5156 = vmatpush.bf16.msra.mxu1 %v9070_v19  ;;  %v9075_v54 = vld [vmem:[%s17131_s2 + $0x158] sm:$0xf0]  ;;  %v9057_v19 = vld [vmem:[%s17131_s2 + $0x128] sm:$0xf] }
 0x7aa   :  { %10886 = vtanh.f32 %v4801_v9  ;;  %v4865_v4 = vor.u32 1.1754944e-38, %v4864_v30  ;;  %v4805_v58 = vadd.f32 %v4782_v36, %v4004_v27  ;;  %vm15227_vm11 = vcmp.eq.f32.partialorder %v4862_v55, 8.507059e+37  ;;  %v10400_v30 = vld [vmem:[%s17131_s2 + $0x14c] sm:$0xf]  ;;  %v10395_v27 = vld [vmem:[%s17131_s2 + $0x124] sm:$0xf] }
 0x7ab   :  { %v10877_v48 = vpop.eup %10876  ;;  %v8996_v9 = vmul.f32 -1.442695, %v4806_v25  ;;  %vm4858_vm12 = vweird.f32 %v15155_v60  ;;  %v9051_v36 = vld [vmem:[%s17131_s2 + $0x130] sm:$0xf0] }
 0x7ac   :  { %v10879_v5 = vpop.eup %10878  ;;  %v15201_v23 = vadd.f32 1.0, %v10877_v48 }
 0x7ad   :  { %v15206_v24 = vpop.eup %10880  ;;  %v15209_v0 = vadd.f32 1.0, %v10879_v5  ;;  %v9074_v5 = vor.u32 %v10402_v39, %v9073_v29 }
 0x7ae   :  { %v15211_v45 = vpop.eup %10882  ;;  %v4816_v13 = vmul.f32 %v15206_v24, %v15147_v38  ;;  %10888 = vrcp.f32 %v15201_v23  ;;  %vm4821_vm10 = vweird.f32 %v15206_v24  ;;  %v4904_v48 = vand.u32 2147483648, %v15201_v23 }
 0x7af   :  { %v10885_v35 = vpop.eup %10884  ;;  %v4854_v50 = vmul.f32 %v15211_v45, %v15155_v60  ;;  %10890 = vrcp.f32 %v15209_v0  ;;  %vm4859_vm13 = vweird.f32 %v15211_v45  ;;  %v4839_v11 = vand.u32 2147483647, %v15209_v0  ;;  %vm15263_vm14 = vmor %vm4820_vm9, %vm4821_vm10  ;;  %v10398_v60 = vld [vmem:[%s17131_s2 + $0x134] sm:$0xf0]  ;;  %5170 = vmatpush.bf16.msra.mxu2 %v9074_v5 }
 0x7b0   :  { %v4817_v18 = vsub.f32 1.0, %v4816_v13  ;;  %v15223_v21 = vadd.f32 1.0, %v10885_v35  ;;  %v10887_v20 = vpop.eup %10886  ;;  %vm15278_vm15 = vmor %vm4858_vm12, %vm4859_vm13  ;;  %v4841_v61 = vand.u32 2147483648, %v15209_v0  ;;  %vm4835_vm0 = vweird.f32 %v15209_v0 }
 0x7b1   :  { %v4855_v34 = vsub.f32 1.0, %v4854_v50  ;;  %v9078_v50 = vor.u32 %v10400_v30, %v9075_v54  ;;  %v10393_v30 = vld [vmem:[%s17131_s2 + $0x10c] sm:$0xf0]  ;;  %v10391_v54 = vld [vmem:[%s17131_s2 + $0x104] sm:$0xf]  ;;  %vm4898_vm4 = vweird.f32 %v15201_v23 }
 0x7b2   :  { %v4818_v37 = vmul.f32 %v15206_v24, %v4817_v18  ;;  %10892 = vrcp.f32 %v15223_v21  ;;  %v4879_v2 = vand.u32 2147483648, %v15223_v21  ;;  %v10396_v18 = vld [vmem:[%s17131_s2 + $0x12c] sm:$0xf]  ;;  %vm4873_vm7 = vweird.f32 %v15223_v21 }
 0x7b3   :  { %v4856_v46 = vmul.f32 %v15211_v45, %v4855_v34  ;;  %10894 = vtanh.f32 %v4805_v58  ;;  %v9050_v58 = vor.u32 %v10397_v59, %v9049_v22  ;;  %v9033_v34 = vld [vmem:[%s17131_s2 + $0x100] sm:$0xf]  ;;  %5184 = vmatpush.bf16.msra.mxu3 %v9078_v50  ;;  %v9041_v59 = vld [vmem:[%s17131_s2 + $0x108] sm:$0xf] }
 0x7b4   :  { %v15256_v43 = vpop.eup %10888  ;;  %v4819_v8 = vadd.f32 %v15206_v24, %v4818_v37  ;;  %10896 = vpow2.f32 %v8996_v9  ;;  %v9059_v9 = vld [vmem:[%s17131_s2 + $0x138] sm:$0xf0] }
 0x7b5   :  { %v4857_v25 = vadd.f32 %v15211_v45, %v4856_v46  ;;  %v4894_v51 = vmul.f32 %v15256_v43, %v15201_v23  ;;  %v15293_v13 = vpop.eup %10890  ;;  %vm4899_vm1 = vweird.f32 %v15256_v43  ;;  %5143 = vmatpush.bf16.msra.mxu0 %v9050_v58  ;;  %v9035_v46 = vld [vmem:[%s17131_s2 + $0x110] sm:$0xf0] }
 0x7b6   :  { %v4823_v35 = vsel %vm15263_vm14, %v15206_v24, %v4819_v8  ;;  %v4831_v37 = vmul.f32 %v15293_v13, %v15209_v0  ;;  %v10394_v8 = vld [vmem:[%s17131_s2 + $0x114] sm:$0xf0]  ;;  %vm4836_vm2 = vweird.f32 %v15293_v13  ;;  %vm15357_vm6 = vmor %vm4898_vm4, %vm4899_vm1 }
 0x7b7   :  { %v4828_v24 = vsel %vm15215_vm8, %v4827_v32, %v4823_v35  ;;  %v4861_v29 = vsel %vm15278_vm15, %v15211_v45, %v4857_v25  ;;  %v4895_v39 = vsub.f32 1.0, %v4894_v51  ;;  %v9054_v45 = vor.u32 %v10395_v27, %v9051_v36  ;;  %v10392_v27 = vld [vmem:[%s17131_s2 + $0x10c] sm:$0xf]  ;;  %v9043_v36 = vld [vmem:[%s17131_s2 + $0x118] sm:$0xf0]  ;;  %vm4837_vm5 = vmor %vm4835_vm0, %vm4836_vm2 }
 0x7b8   :  { %v10893_v22 = vpop.eup %10892  ;;  %v4866_v15 = vsel %vm15227_vm11, %v4865_v4, %v4861_v29  ;;  %v4925_v32 = vmul.f32 %v10887_v20, %v4828_v24  ;;  %v4832_v57 = vsub.f32 1.0, %v4831_v37  ;;  %v9058_v25 = vor.u32 %v10398_v60, %v9057_v19 }
 0x7b9   :  { %v10895_v16 = vpop.eup %10894  ;;  %v4923_v4 = vmul.f32 %v4866_v15, %v14973_v17  ;;  %v4896_v20 = vmul.f32 %v15256_v43, %v4895_v39  ;;  %v4869_v5 = vmul.f32 %v10893_v22, %v15223_v21  ;;  %5157 = vmatpush.bf16.msra.mxu1 %v9054_v45  ;;  %v9062_v51 = vor.u32 %v10396_v18, %v9059_v9 }
 0x7ba   :  { %v10897_v38 = vpop.eup %10896  ;;  %v9034_v17 = vor.u32 %v10393_v30, %v9033_v34  ;;  %v4833_v24 = vmul.f32 %v15293_v13, %v4832_v57  ;;  %5171 = vmatpush.bf16.msra.mxu2 %v9058_v25  ;;  %v9038_v39 = vor.u32 %v10391_v54, %v9035_v46  ;;  %v9042_v37 = vor.u32 %v10394_v8, %v9041_v59  ;;  %v9313_v25 = vld [vmem:[%s17131_s2 + $0x1e0] sm:$0xf] }
 0x7bb   :  { %v15343_v35 = vadd.f32 %v4925_v32, %v4923_v4  ;;  %v4897_v50 = vadd.f32 %v15256_v43, %v4896_v20  ;;  %v4870_v58 = vsub.f32 1.0, %v4869_v5  ;;  %v4892_v29 = vadd.f32 1.0, %v10897_v38  ;;  %5185 = vmatpush.bf16.msra.mxu3 %v9062_v51  ;;  %v10453_v51 = vld [vmem:[%s17131_s2 + $0x1ec] sm:$0xf0] }
 0x7bc   :  { %v9046_v15 = vor.u32 %v10392_v27, %v9043_v36  ;;  %vm4874_vm3 = vweird.f32 %v10893_v22  ;;  %v4834_v19 = vadd.f32 %v15293_v13, %v4833_v24  ;;  %5144 = vmatpush.bf16.msra.mxu0 %v9034_v17  ;;  %v4902_v60 = vand.u32 2147483647, %v15201_v23  ;;  %v10451_v17 = vld [vmem:[%s17131_s2 + $0x1e4] sm:$0xf]  ;;  %v9321_v24 = vld [vmem:[%s17131_s2 + $0x1e8] sm:$0xf] }
 0x7bd   :  { %10898 = vtanh.f32 %v15343_v35  ;;  %v4871_v55 = vmul.f32 %v10893_v22, %v4870_v58  ;;  %v4842_v18 = vor.u32 1.1754944e-38, %v4841_v61  ;;  %5158 = vmatpush.bf16.msra.mxu1 %v9038_v39  ;;  %vm4840_vm8 = vcmp.eq.f32.partialorder %v4839_v11, 8.507059e+37  ;;  %vm4875_vm9 = vmor %vm4873_vm7, %vm4874_vm3  ;;  %v9315_v58 = vld [vmem:[%s17131_s2 + $0x1f0] sm:$0xf0] }
 0x7be   :  { %10900 = vrcp.f32 %v4892_v29  ;;  %v4838_v34 = vsel %vm4837_vm5, %v15293_v13, %v4834_v19  ;;  %v4880_v61 = vor.u32 1.1754944e-38, %v4879_v2  ;;  %5172 = vmatpush.bf16.msra.mxu2 %v9042_v37  ;;  %v4901_v32 = vsel %vm15357_vm6, %v15256_v43, %v4897_v50 }
 0x7bf   :  { %v4872_v30 = vadd.f32 %v10893_v22, %v4871_v55  ;;  %v4843_v54 = vsel %vm4840_vm8, %v4842_v18, %v4838_v34  ;;  %5186 = vmatpush.bf16.msra.mxu3 %v9046_v15  ;;  %v4905_v45 = vor.u32 1.1754944e-38, %v4904_v48  ;;  %v17311_v13 = vand.u32 2147483647, %v15223_v21  ;;  %v9323_v18 = vld [vmem:[%s17131_s2 + $0x1f8] sm:$0xf0] }
 0x7c0   :  { %v4926_v0 = vmul.f32 %v10895_v16, %v4843_v54  ;;  %vm4903_vm11 = vcmp.eq.f32.partialorder %v4902_v60, 8.507059e+37  ;;  %v4919_v21 = vand.u32 2147483648, %v4892_v29  ;;  %v4917_v43 = vand.u32 2147483647, %v4892_v29  ;;  %v10452_v60 = vld [vmem:[%s17131_s2 + $0x1ec] sm:$0xf] }
 0x7c1   :  { %v4876_v46 = vsel %vm4875_vm9, %v10893_v22, %v4872_v30  ;;  %vm4878_vm10 = vcmp.eq.f32.partialorder %v17311_v13, 8.507059e+37  ;;  %v4906_v59 = vsel %vm4903_vm11, %v4905_v45, %v4901_v32  ;;  %vm4913_vm13 = vweird.f32 %v4892_v29  ;;  %v10447_v32 = vld [vmem:[%s17131_s2 + $0x1c4] sm:$0xf]  ;;  %v9305_v13 = vld [vmem:[%s17131_s2 + $0x1c8] sm:$0xf] }
 0x7c2   :  { %v4881_v11 = vsel %vm4878_vm10, %v4880_v61, %v4876_v46  ;;  %vm4918_vm15 = vcmp.eq.f32.partialorder %v4917_v43, 8.507059e+37  ;;  %v9314_v50 = vor.u32 %v10453_v51, %v9313_v25  ;;  %v3909_v39 = vadd.f32 %v14583_v26, %v14678_v6  ;;  %v9297_v26 = vld [vmem:[%s17131_s2 + $0x1c0] sm:$0xf]  ;;  %v9299_v46 = vld [vmem:[%s17131_s2 + $0x1d0] sm:$0xf0] }
 0x7c3   :  { %v10899_v55 = vpop.eup %10898  ;;  %v4924_v2 = vmul.f32 %v4881_v11, %v15034_v31  ;;  %v4920_v31 = vor.u32 1.1754944e-38, %v4919_v21  ;;  %v3958_v37 = vadd.f32 %v14585_v52, %v14680_v7  ;;  %v9318_v15 = vor.u32 %v10451_v17, %v9315_v58  ;;  %v10449_v52 = vld [vmem:[%s17131_s2 + $0x1cc] sm:$0xf0]  ;;  %v10444_v51 = vld [vmem:[%s17131_s2 + $0x1ac] sm:$0xf] }
 0x7c4   :  { %v10901_v8 = vpop.eup %10900  ;;  %v4931_v4 = vmul.f32 %v10899_v55, %v4906_v59  ;;  %5531 = vmatpush.bf16.msrb.mxu0 %v9314_v50  ;;  %v9326_v30 = vor.u32 %v10452_v60, %v9323_v18  ;;  %v9298_v45 = vor.u32 %v10449_v52, %v9297_v26  ;;  %v10445_v21 = vld [vmem:[%s17131_s2 + $0x1ac] sm:$0xf0]  ;;  %v4056_v43 = vadd.f32 %v14589_v63, %v14690_v53  ;;  %v9291_v17 = vld [vmem:[%s17131_s2 + $0x1b8] sm:$0xf0]  ;;  %v10442_v52 = vld [vmem:[%s17131_s2 + $0x194] sm:$0xf0] }
 0x7c5   :  { %v15375_v20 = vadd.f32 %v4926_v0, %v4924_v2  ;;  %v4909_v57 = vmul.f32 %v10901_v8, %v4892_v29  ;;  %vm4914_vm12 = vweird.f32 %v10901_v8  ;;  %v10454_v29 = vld [vmem:[%s17131_s2 + $0x1f4] sm:$0xf0]  ;;  %5545 = vmatpush.bf16.msrb.mxu1 %v9318_v15  ;;  %v9302_v2 = vor.u32 %v10447_v32, %v9299_v46  ;;  %v10441_v15 = vld [vmem:[%s17131_s2 + $0x18c] sm:$0xf0] }
 0x7c6   :  { %8997 = vst [vmem:[%s17133_s4 + $0x10] sm:$0xff] %v4931_v4  ;;  %vm4915_vm14 = vmor %vm4913_vm13, %vm4914_vm12  ;;  %v9322_v19 = vor.u32 %v10454_v29, %v9321_v24  ;;  %5573 = vmatpush.bf16.msrb.mxu3 %v9326_v30  ;;  %v10450_v0 = vld [vmem:[%s17131_s2 + $0x1d4] sm:$0xf0]  ;;  %v3960_v63 = vadd.f32 %v14593_v41, %v14680_v7 }
 0x7c7   :  { %10902 = vtanh.f32 %v15375_v20  ;;  %v4910_v23 = vsub.f32 1.0, %v4909_v57  ;;  %v9306_v59 = vor.u32 %v10450_v0, %v9305_v13  ;;  %v10440_v13 = vld [vmem:[%s17131_s2 + $0x18c] sm:$0xf]  ;;  %v9275_v0 = vld [vmem:[%s17131_s2 + $0x198] sm:$0xf0] }
 0x7c8   :  { %5559 = vmatpush.bf16.msrb.mxu2 %v9322_v19  ;;  %5532 = vmatpush.bf16.msrb.mxu0 %v9298_v45  ;;  %v10439_v19 = vld [vmem:[%s17131_s2 + $0x184] sm:$0xf] }
 0x7c9   :  { %v4911_v48 = vmul.f32 %v10901_v8, %v4910_v23  ;;  %5546 = vmatpush.bf16.msrb.mxu1 %v9302_v2  ;;  %v9281_v23 = vld [vmem:[%s17131_s2 + $0x1a0] sm:$0xf]  ;;  %v4007_v2 = vadd.f32 %v14587_v56, %v14746_v62  ;;  %v9251_v56 = vld [vmem:[%s17131_s2 + $0x170] sm:$0xf0] }
 0x7cb   :  { %v4912_v22 = vadd.f32 %v10901_v8, %v4911_v48  ;;  %v10443_v48 = vld [vmem:[%s17131_s2 + $0x1a4] sm:$0xf] }
 0x7cc   :  { %5560 = vmatpush.bf16.msrb.mxu2 %v9306_v59  ;;  %v9249_v59 = vld [vmem:[%s17131_s2 + $0x160] sm:$0xf] }
 0x7cd   :  { %v10903_v16 = vpop.eup %10902  ;;  %v4916_v5 = vsel %vm4915_vm14, %v10901_v8, %v4912_v22  ;;  %v10448_v8 = vld [vmem:[%s17131_s2 + $0x1cc] sm:$0xf]  ;;  %v9282_v22 = vor.u32 %v10445_v21, %v9281_v23 }
 0x7ce   :  { %v4921_v27 = vsel %vm4918_vm15, %v4920_v31, %v4916_v5  ;;  %v9283_v31 = vld [vmem:[%s17131_s2 + $0x1b0] sm:$0xf0]  ;;  %v10446_v5 = vld [vmem:[%s17131_s2 + $0x1b4] sm:$0xf0] }
 0x7cf   :  { %v4932_v36 = vmul.f32 %v10903_v16, %v4921_v27  ;;  %v9289_v16 = vld [vmem:[%s17131_s2 + $0x1a8] sm:$0xf]  ;;  %v3911_v27 = vadd.f32 %v14591_v12, %v14678_v6  ;;  %5533 = vmatpush.bf16.msrb.mxu0 %v9282_v22  ;;  %v9294_v12 = vor.u32 %v10444_v51, %v9291_v17  ;;  %v4058_v22 = vadd.f32 %v14597_v28, %v14690_v53  ;;  %v9233_v28 = vld [vmem:[%s17131_s2 + $0x140] sm:$0xf]  ;;  %v10433_v17 = vld [vmem:[%s17131_s2 + $0x14c] sm:$0xf0] }
 0x7d0   :  { %v9290_v25 = vor.u32 %v10446_v5, %v9289_v16 }
 0x7d1   :  { %8998 = vst [vmem:[%s17133_s4 + $0x18] sm:$0xff] %v4932_v36  ;;  %v4944_v38 = vpack.c.bf16 %v4932_v36, %v4931_v4  ;;  %v9307_v4 = vld [vmem:[%s17131_s2 + $0x1d8] sm:$0xf0] }
 0x7d2   :  { %v9310_v57 = vor.u32 %v10448_v8, %v9307_v4  ;;  %5561 = vmatpush.bf16.msrb.mxu2 %v9290_v25  ;;  %v10437_v8 = vld [vmem:[%s17131_s2 + $0x16c] sm:$0xf0]  ;;  %v10435_v4 = vld [vmem:[%s17131_s2 + $0x164] sm:$0xf] }
 0x7d3   :  { %5145 = vmatmul.bf16.vlgmr.msra.gmra.mxu0 %v4944_v38  ;;  %5159 = vmatmul.bf16.vlgmr.msra.gmra.mxu1 %v4944_v38  ;;  %v9250_v5 = vor.u32 %v10437_v8, %v9249_v59  ;;  %v10434_v59 = vld [vmem:[%s17131_s2 + $0x154] sm:$0xf0] }
 0x7d4   :  { %5173 = vmatmul.bf16.vlgmr.msra.gmra.mxu2 %v4944_v38  ;;  %5187 = vmatmul.bf16.vlgmr.msra.gmra.mxu3 %v4944_v38  ;;  %v9286_v38 = vor.u32 %v10443_v48, %v9283_v31  ;;  %v9257_v48 = vld [vmem:[%s17131_s2 + $0x168] sm:$0xf] }
 0x7d5   :  { %5574 = vmatpush.bf16.msrb.mxu3 %v9310_v57 }
 0x7d6   :  { %5547 = vmatpush.bf16.msrb.mxu1 %v9286_v38  ;;  %v9254_v38 = vor.u32 %v10435_v4, %v9251_v56  ;;  %v10432_v4 = vld [vmem:[%s17131_s2 + $0x14c] sm:$0xf]  ;;  %v9243_v56 = vld [vmem:[%s17131_s2 + $0x158] sm:$0xf0] }
 0x7d9   :  { %5575 = vmatpush.bf16.msrb.mxu3 %v9294_v12 }
 0x850   :  { %v5146_v9 = vpop.f32.mrf.mxu0  ;;  %v5160_v34 = vpop.f32.mrf.mxu1 }
 0x851   :  { %v5193_v61 = vadd.f32 %v5146_v9, %v3909_v39  ;;  %v5194_v54 = vadd.f32 %v5160_v34, %v3958_v37  ;;  %v9265_v37 = vld [vmem:[%s17131_s2 + $0x180] sm:$0xf]  ;;  %v9267_v9 = vld [vmem:[%s17131_s2 + $0x190] sm:$0xf0]  ;;  %v9273_v34 = vld [vmem:[%s17131_s2 + $0x188] sm:$0xf] }
 0x852   :  { %v9266_v18 = vor.u32 %v10441_v15, %v9265_v37  ;;  %v9270_v26 = vor.u32 %v10439_v19, %v9267_v9  ;;  %v9274_v46 = vor.u32 %v10442_v52, %v9273_v34  ;;  %v9235_v37 = vld [vmem:[%s17131_s2 + $0x150] sm:$0xf0] }
 0x853   :  { %v9159_v11 = vmul.f32 -1.442695, %v5193_v61  ;;  %v9161_v55 = vmul.f32 -1.442695, %v5194_v54 }
 0x854   :  { %5534 = vmatpush.bf16.msrb.mxu0 %v9266_v18  ;;  %5548 = vmatpush.bf16.msrb.mxu1 %v9270_v26 }
 0x855   :  { %10904 = vpow2.f32 %v9159_v11  ;;  %5562 = vmatpush.bf16.msrb.mxu2 %v9274_v46 }
 0x856   :  { %10906 = vpow2.f32 %v9161_v55  ;;  %v9278_v55 = vor.u32 %v10440_v13, %v9275_v0 }
 0x857   :  { %v5188_v36 = vpop.f32.mrf.mxu3  ;;  %v5174_v29 = vpop.f32.mrf.mxu2 }
 0x858   :  { %v5196_v50 = vadd.f32 %v5188_v36, %v4056_v43  ;;  %v5148_v58 = vpop.f32.mrf.mxu0  ;;  %v5162_v24 = vpop.f32.mrf.mxu1  ;;  %5576 = vmatpush.bf16.msrb.mxu3 %v9278_v55  ;;  %v5195_v57 = vadd.f32 %v5174_v29, %v4007_v2  ;;  %v10438_v43 = vld [vmem:[%s17131_s2 + $0x174] sm:$0xf0]  ;;  %5535 = vmatpush.bf16.msrb.mxu0 %v9250_v5  ;;  %v9241_v2 = vld [vmem:[%s17131_s2 + $0x148] sm:$0xf] }
 0x859   :  { %v5197_v39 = vadd.f32 %v5148_v58, %v3911_v27  ;;  %v5198_v41 = vadd.f32 %v5162_v24, %v3960_v63  ;;  %v10436_v27 = vld [vmem:[%s17131_s2 + $0x16c] sm:$0xf]  ;;  %v9259_v63 = vld [vmem:[%s17131_s2 + $0x178] sm:$0xf0]  ;;  %v9258_v25 = vor.u32 %v10438_v43, %v9257_v48  ;;  %v4009_v24 = vadd.f32 %v14595_v33, %v14746_v62  ;;  %5549 = vmatpush.bf16.msrb.mxu1 %v9254_v38  ;;  %v9219_v38 = vld [vmem:[%s17131_s2 + $0x130] sm:$0xf0] }
 0x85a   :  { %v9163_v60 = vmul.f32 -1.442695, %v5196_v50  ;;  %v9262_v51 = vor.u32 %v10436_v27, %v9259_v63  ;;  %v10431_v50 = vld [vmem:[%s17131_s2 + $0x144] sm:$0xf]  ;;  %v9242_v63 = vor.u32 %v10434_v59, %v9241_v2  ;;  %v10426_v2 = vld [vmem:[%s17131_s2 + $0x114] sm:$0xf0] }
 0x85b   :  { %v10905_v30 = vpop.eup %10904  ;;  %v9160_v61 = vmul.f32 -1.442695, %v5197_v39  ;;  %v9162_v54 = vmul.f32 -1.442695, %v5198_v41  ;;  %v9234_v41 = vor.u32 %v10433_v17, %v9233_v28  ;;  %5563 = vmatpush.bf16.msrb.mxu2 %v9258_v25  ;;  %v9238_v33 = vor.u32 %v10431_v50, %v9235_v37  ;;  %v9225_v50 = vld [vmem:[%s17131_s2 + $0x128] sm:$0xf] }
 0x85c   :  { %v10907_v32 = vpop.eup %10906  ;;  %v15484_v45 = vadd.f32 1.0, %v10905_v30  ;;  %10908 = vpow2.f32 %v9163_v60  ;;  %5577 = vmatpush.bf16.msrb.mxu3 %v9262_v51  ;;  %v9227_v37 = vld [vmem:[%s17131_s2 + $0x138] sm:$0xf0] }
 0x85d   :  { %v15492_v11 = vadd.f32 1.0, %v10907_v32  ;;  %10910 = vpow2.f32 %v9160_v61  ;;  %5536 = vmatpush.bf16.msrb.mxu0 %v9234_v41  ;;  %5550 = vmatpush.bf16.msrb.mxu1 %v9238_v33  ;;  %v10428_v41 = vld [vmem:[%s17131_s2 + $0x12c] sm:$0xf] }
 0x85e   :  { %10912 = vrcp.f32 %v15484_v45  ;;  %v5218_v23 = vand.u32 2147483647, %v15484_v45  ;;  %v5220_v16 = vand.u32 2147483648, %v15484_v45  ;;  %vm5214_vm1 = vweird.f32 %v15484_v45 }
 0x85f   :  { %10914 = vrcp.f32 %v15492_v11  ;;  %v5190_v21 = vpop.f32.mrf.mxu3  ;;  %v5258_v31 = vand.u32 2147483648, %v15492_v11  ;;  %v5176_v29 = vpop.f32.mrf.mxu2  ;;  %v5256_v19 = vand.u32 2147483647, %v15492_v11  ;;  %vm5252_vm4 = vweird.f32 %v15492_v11  ;;  %5564 = vmatpush.bf16.msrb.mxu2 %v9242_v63 }
 0x860   :  { %10916 = vpow2.f32 %v9162_v54  ;;  %v5200_v39 = vadd.f32 %v5190_v21, %v4058_v22  ;;  %vm15552_vm0 = vcmp.eq.f32.partialorder %v5218_v23, 8.507059e+37  ;;  %v5221_v26 = vor.u32 1.1754944e-38, %v5220_v16  ;;  %v10429_v22 = vld [vmem:[%s17131_s2 + $0x12c] sm:$0xf0] }
 0x861   :  { %10918 = vtanh.f32 %v5195_v57  ;;  %v5259_v54 = vor.u32 1.1754944e-38, %v5258_v31  ;;  %v5199_v52 = vadd.f32 %v5176_v29, %v4009_v24  ;;  %vm15564_vm3 = vcmp.eq.f32.partialorder %v5256_v19, 8.507059e+37  ;;  %v9217_v57 = vld [vmem:[%s17131_s2 + $0x120] sm:$0xf] }
 0x862   :  { %v10909_v36 = vpop.eup %10908  ;;  %v9164_v13 = vmul.f32 -1.442695, %v5200_v39  ;;  %v9246_v29 = vor.u32 %v10432_v4, %v9243_v56  ;;  %v9218_v39 = vor.u32 %v10429_v22, %v9217_v57  ;;  %v9201_v19 = vld [vmem:[%s17131_s2 + $0x100] sm:$0xf]  ;;  %v10424_v56 = vld [vmem:[%s17131_s2 + $0x10c] sm:$0xf]  ;;  %v9230_v22 = vor.u32 %v10428_v41, %v9227_v37 }
 0x863   :  { %v10911_v58 = vpop.eup %10910  ;;  %v15538_v12 = vadd.f32 1.0, %v10909_v36  ;;  %v10427_v36 = vld [vmem:[%s17131_s2 + $0x124] sm:$0xf]  ;;  %v9211_v57 = vld [vmem:[%s17131_s2 + $0x118] sm:$0xf0] }
 0x864   :  { %v15543_v15 = vpop.eup %10912  ;;  %v15546_v60 = vadd.f32 1.0, %v10911_v58  ;;  %5578 = vmatpush.bf16.msrb.mxu3 %v9246_v29  ;;  %5537 = vmatpush.bf16.msrb.mxu0 %v9218_v39  ;;  %v10482_v39 = vld [vmem:[%s17131_s2 + $0x1d4] sm:$0xf0] }
 0x865   :  { %v15548_v18 = vpop.eup %10914  ;;  %v5210_v9 = vmul.f32 %v15543_v15, %v15484_v45  ;;  %10920 = vrcp.f32 %v15538_v12  ;;  %vm5215_vm2 = vweird.f32 %v15543_v15  ;;  %v5298_v48 = vand.u32 2147483648, %v15538_v12 }
 0x866   :  { %v10917_v30 = vpop.eup %10916  ;;  %v5248_v61 = vmul.f32 %v15548_v18, %v15492_v11  ;;  %10922 = vrcp.f32 %v15546_v60  ;;  %vm5253_vm5 = vweird.f32 %v15548_v18  ;;  %v5233_v43 = vand.u32 2147483647, %v15546_v60  ;;  %vm15600_vm6 = vmor %vm5214_vm1, %vm5215_vm2  ;;  %v10430_v11 = vld [vmem:[%s17131_s2 + $0x134] sm:$0xf0] }
 0x867   :  { %v5211_v32 = vsub.f32 1.0, %v5210_v9  ;;  %v15560_v46 = vadd.f32 1.0, %v10917_v30  ;;  %v10919_v23 = vpop.eup %10918  ;;  %vm15615_vm7 = vmor %vm5252_vm4, %vm5253_vm5  ;;  %v5235_v28 = vand.u32 2147483648, %v15546_v60  ;;  %vm5229_vm8 = vweird.f32 %v15546_v60 }
 0x868   :  { %v5249_v0 = vsub.f32 1.0, %v5248_v61  ;;  %v10425_v61 = vld [vmem:[%s17131_s2 + $0x10c] sm:$0xf0]  ;;  %5579 = vmatpush.bf16.msrb.mxu3 %v9230_v22  ;;  %vm5292_vm12 = vweird.f32 %v15538_v12 }
 0x869   :  { %v5212_v8 = vmul.f32 %v15543_v15, %v5211_v32  ;;  %10924 = vrcp.f32 %v15560_v46  ;;  %v5273_v27 = vand.u32 2147483648, %v15560_v46  ;;  %v5271_v17 = vand.u32 2147483647, %v15560_v46 }
 0x86a   :  { %v5250_v21 = vmul.f32 %v15548_v18, %v5249_v0  ;;  %10926 = vtanh.f32 %v5199_v52  ;;  %v10423_v52 = vld [vmem:[%s17131_s2 + $0x104] sm:$0xf]  ;;  %v9209_v0 = vld [vmem:[%s17131_s2 + $0x108] sm:$0xf]  ;;  %v5236_v29 = vor.u32 1.1754944e-38, %v5235_v28  ;;  %vm5267_vm15 = vweird.f32 %v15560_v46 }
 0x86b   :  { %v15593_v31 = vpop.eup %10920  ;;  %v5213_v16 = vadd.f32 %v15543_v15, %v5212_v8  ;;  %10928 = vpow2.f32 %v9164_v13  ;;  %v9203_v13 = vld [vmem:[%s17131_s2 + $0x110] sm:$0xf0]  ;;  %v5274_v28 = vor.u32 1.1754944e-38, %v5273_v27  ;;  %vm5272_vm2 = vcmp.eq.f32.partialorder %v5271_v17, 8.507059e+37 }
 0x86c   :  { %v5251_v25 = vadd.f32 %v15548_v18, %v5250_v21  ;;  %v5288_v51 = vmul.f32 %v15593_v31, %v15538_v12  ;;  %v15630_v58 = vpop.eup %10922  ;;  %vm5293_vm9 = vweird.f32 %v15593_v31  ;;  %v9226_v21 = vor.u32 %v10430_v11, %v9225_v50 }
 0x86d   :  { %v5217_v24 = vsel %vm15600_vm6, %v15543_v15, %v5213_v16  ;;  %v5225_v30 = vmul.f32 %v15630_v58, %v15546_v60  ;;  %vm5230_vm10 = vweird.f32 %v15630_v58  ;;  %v9206_v45 = vor.u32 %v10423_v52, %v9203_v13  ;;  %vm15694_vm14 = vmor %vm5292_vm12, %vm5293_vm9 }
 0x86e   :  { %v5222_v15 = vsel %vm15552_vm0, %v5221_v26, %v5217_v24  ;;  %v5255_v33 = vsel %vm15615_vm7, %v15548_v18, %v5251_v25  ;;  %v5289_v9 = vsub.f32 1.0, %v5288_v51  ;;  %v9222_v18 = vor.u32 %v10427_v36, %v9219_v38  ;;  %5565 = vmatpush.bf16.msrb.mxu2 %v9226_v21  ;;  %vm5231_vm13 = vmor %vm5229_vm8, %vm5230_vm10 }
 0x86f   :  { %v10925_v32 = vpop.eup %10924  ;;  %v5260_v34 = vsel %vm15564_vm3, %v5259_v54, %v5255_v33  ;;  %v5319_v26 = vmul.f32 %v10919_v23, %v5222_v15  ;;  %v5226_v8 = vsub.f32 1.0, %v5225_v30  ;;  %v9210_v25 = vor.u32 %v10426_v2, %v9209_v0 }
 0x870   :  { %v10927_v55 = vpop.eup %10926  ;;  %v5317_v54 = vmul.f32 %v5260_v34, %v15343_v35  ;;  %v5290_v59 = vmul.f32 %v15593_v31, %v5289_v9  ;;  %v5263_v4 = vmul.f32 %v10925_v32, %v15560_v46  ;;  %5551 = vmatpush.bf16.msrb.mxu1 %v9222_v18  ;;  %v9202_v35 = vor.u32 %v10425_v61, %v9201_v19 }
 0x871   :  { %v10929_v23 = vpop.eup %10928  ;;  %v5227_v36 = vmul.f32 %v15630_v58, %v5226_v8  ;;  %v9214_v51 = vor.u32 %v10424_v56, %v9211_v57  ;;  %vm5268_vm11 = vweird.f32 %v10925_v32  ;;  %v5296_v11 = vand.u32 2147483647, %v15538_v12  ;;  %v9489_v56 = vld [vmem:[%s17131_s2 + $0x1e8] sm:$0xf]  ;;  %v10486_v57 = vld [vmem:[%s17131_s2 + $0x1f4] sm:$0xf0] }
 0x872   :  { %v15680_v16 = vadd.f32 %v5319_v26, %v5317_v54  ;;  %v5291_v5 = vadd.f32 %v15593_v31, %v5290_v59  ;;  %v5264_v63 = vsub.f32 1.0, %v5263_v4  ;;  %v5286_v38 = vadd.f32 1.0, %v10929_v23  ;;  %5538 = vmatpush.bf16.msrb.mxu0 %v9202_v35  ;;  %vm5269_vm1 = vmor %vm5267_vm15, %vm5268_vm11  ;;  %5566 = vmatpush.bf16.msrb.mxu2 %v9210_v25  ;;  %v10485_v54 = vld [vmem:[%s17131_s2 + $0x1ec] sm:$0xf0]  ;;  %v10483_v59 = vld [vmem:[%s17131_s2 + $0x1e4] sm:$0xf] }
 0x873   :  { %v5228_v50 = vadd.f32 %v15630_v58, %v5227_v36  ;;  %vm5234_vm0 = vcmp.eq.f32.partialorder %v5233_v43, 8.507059e+37  ;;  %5580 = vmatpush.bf16.msrb.mxu3 %v9214_v51  ;;  %v5299_v33 = vor.u32 1.1754944e-38, %v5298_v48  ;;  %vm5297_vm3 = vcmp.eq.f32.partialorder %v5296_v11, 8.507059e+37  ;;  %v9483_v4 = vld [vmem:[%s17131_s2 + $0x1f0] sm:$0xf0] }
 0x874   :  { %10930 = vtanh.f32 %v15680_v16  ;;  %v5265_v24 = vmul.f32 %v10925_v32, %v5264_v63  ;;  %5552 = vmatpush.bf16.msrb.mxu1 %v9206_v45  ;;  %v5295_v15 = vsel %vm15694_vm14, %v15593_v31, %v5291_v5  ;;  %v5313_v46 = vand.u32 2147483648, %v5286_v38  ;;  %v10484_v5 = vld [vmem:[%s17131_s2 + $0x1ec] sm:$0xf]  ;;  %v9491_v63 = vld [vmem:[%s17131_s2 + $0x1f8] sm:$0xf0] }
 0x875   :  { %10932 = vrcp.f32 %v5286_v38  ;;  %v5232_v41 = vsel %vm5231_vm13, %v15630_v58, %v5228_v50  ;;  %v5300_v30 = vsel %vm5297_vm3, %v5299_v33, %v5295_v15  ;;  %v5311_v31 = vand.u32 2147483647, %v5286_v38  ;;  %v9467_v11 = vld [vmem:[%s17131_s2 + $0x1d0] sm:$0xf0]  ;;  %v10480_v15 = vld [vmem:[%s17131_s2 + $0x1cc] sm:$0xf] }
 0x876   :  { %v5266_v37 = vadd.f32 %v10925_v32, %v5265_v24  ;;  %v5237_v19 = vsel %vm5234_vm0, %v5236_v29, %v5232_v41  ;;  %vm5307_vm5 = vweird.f32 %v5286_v38  ;;  %v3914_v23 = vadd.f32 %v14599_v14, %v14678_v6  ;;  %v9465_v14 = vld [vmem:[%s17131_s2 + $0x1c0] sm:$0xf]  ;;  %v10479_v24 = vld [vmem:[%s17131_s2 + $0x1c4] sm:$0xf]  ;;  %v9473_v29 = vld [vmem:[%s17131_s2 + $0x1c8] sm:$0xf] }
 0x877   :  { %v5320_v60 = vmul.f32 %v10927_v55, %v5237_v19  ;;  %vm5312_vm7 = vcmp.eq.f32.partialorder %v5311_v31, 8.507059e+37  ;;  %v9481_v55 = vld [vmem:[%s17131_s2 + $0x1e0] sm:$0xf]  ;;  %v3963_v21 = vadd.f32 %v14601_v40, %v14680_v7  ;;  %v9486_v22 = vor.u32 %v10483_v59, %v9483_v4  ;;  %v10481_v40 = vld [vmem:[%s17131_s2 + $0x1cc] sm:$0xf0] }
 0x878   :  { %v5270_v9 = vsel %vm5269_vm1, %v10925_v32, %v5266_v37  ;;  %v9482_v8 = vor.u32 %v10485_v54, %v9481_v55  ;;  %v9490_v35 = vor.u32 %v10486_v57, %v9489_v56  ;;  %v9494_v45 = vor.u32 %v10484_v5, %v9491_v63  ;;  %v9475_v33 = vld [vmem:[%s17131_s2 + $0x1d8] sm:$0xf0]  ;;  %v9433_v55 = vld [vmem:[%s17131_s2 + $0x180] sm:$0xf]  ;;  %v10473_v54 = vld [vmem:[%s17131_s2 + $0x18c] sm:$0xf0] }
 0x879   :  { %v5275_v43 = vsel %vm5272_vm2, %v5274_v28, %v5270_v9  ;;  %5939 = vmatpush.bf16.msra.mxu1 %v9486_v22  ;;  %v9466_v50 = vor.u32 %v10481_v40, %v9465_v14  ;;  %v9470_v28 = vor.u32 %v10479_v24, %v9467_v11  ;;  %v9474_v19 = vor.u32 %v10482_v39, %v9473_v29  ;;  %v10471_v59 = vld [vmem:[%s17131_s2 + $0x184] sm:$0xf]  ;;  %v9435_v56 = vld [vmem:[%s17131_s2 + $0x190] sm:$0xf0]  ;;  %v9441_v57 = vld [vmem:[%s17131_s2 + $0x188] sm:$0xf] }
 0x87a   :  { %v10931_v58 = vpop.eup %10930  ;;  %v5318_v27 = vmul.f32 %v5275_v43, %v15375_v20  ;;  %v5314_v20 = vor.u32 1.1754944e-38, %v5313_v46  ;;  %5925 = vmatpush.bf16.msra.mxu0 %v9482_v8  ;;  %5953 = vmatpush.bf16.msra.mxu2 %v9490_v35  ;;  %v9478_v9 = vor.u32 %v10480_v15, %v9475_v33  ;;  %v10477_v43 = vld [vmem:[%s17131_s2 + $0x1ac] sm:$0xf0]  ;;  %v9434_v4 = vor.u32 %v10473_v54, %v9433_v55  ;;  %v10474_v5 = vld [vmem:[%s17131_s2 + $0x194] sm:$0xf0] }
 0x87b   :  { %v10933_v61 = vpop.eup %10932  ;;  %v5325_v52 = vmul.f32 %v10931_v58, %v5300_v30  ;;  %5967 = vmatpush.bf16.msra.mxu3 %v9494_v45  ;;  %v10475_v58 = vld [vmem:[%s17131_s2 + $0x1a4] sm:$0xf]  ;;  %v9438_v35 = vor.u32 %v10471_v59, %v9435_v56  ;;  %v10472_v45 = vld [vmem:[%s17131_s2 + $0x18c] sm:$0xf]  ;;  %v4012_v40 = vadd.f32 %v14603_v42, %v14746_v62  ;;  %v9417_v24 = vld [vmem:[%s17131_s2 + $0x160] sm:$0xf] }
 0x87c   :  { %v15712_v34 = vadd.f32 %v5320_v60, %v5318_v27  ;;  %v5303_v26 = vmul.f32 %v10933_v61, %v5286_v38  ;;  %vm5308_vm4 = vweird.f32 %v10933_v61  ;;  %v9449_v60 = vld [vmem:[%s17131_s2 + $0x1a0] sm:$0xf]  ;;  %v4061_v27 = vadd.f32 %v14605_v1, %v14690_v53  ;;  %v10467_v11 = vld [vmem:[%s17131_s2 + $0x164] sm:$0xf]  ;;  %v9419_v42 = vld [vmem:[%s17131_s2 + $0x170] sm:$0xf0] }
 0x87d   :  { %9165 = vst [vmem:[%s17133_s4 + $0x20] sm:$0xff] %v5325_v52  ;;  %vm5309_vm6 = vmor %vm5307_vm5, %vm5308_vm4  ;;  %5940 = vmatpush.bf16.msra.mxu1 %v9470_v28  ;;  %v9450_v30 = vor.u32 %v10477_v43, %v9449_v60  ;;  %v3965_v1 = vadd.f32 %v14609_v10, %v14680_v7  ;;  %v10470_v28 = vld [vmem:[%s17131_s2 + $0x174] sm:$0xf0]  ;;  %v10468_v60 = vld [vmem:[%s17131_s2 + $0x16c] sm:$0xf] }
 0x87e   :  { %10934 = vtanh.f32 %v15712_v34  ;;  %v5304_v12 = vsub.f32 1.0, %v5303_v26  ;;  %5926 = vmatpush.bf16.msra.mxu0 %v9466_v50  ;;  %5954 = vmatpush.bf16.msra.mxu2 %v9474_v19  ;;  %v10478_v26 = vld [vmem:[%s17131_s2 + $0x1b4] sm:$0xf0]  ;;  %v10469_v50 = vld [vmem:[%s17131_s2 + $0x16c] sm:$0xf0]  ;;  %v4063_v19 = vadd.f32 %v14613_v49, %v14690_v53 }
 0x87f   :  { %5968 = vmatpush.bf16.msra.mxu3 %v9478_v9  ;;  %v9418_v9 = vor.u32 %v10469_v50, %v9417_v24  ;;  %v9427_v43 = vld [vmem:[%s17131_s2 + $0x178] sm:$0xf0]  ;;  %v9401_v49 = vld [vmem:[%s17131_s2 + $0x140] sm:$0xf]  ;;  %v10461_v50 = vld [vmem:[%s17131_s2 + $0x12c] sm:$0xf0] }
 0x880   :  { %v5305_v48 = vmul.f32 %v10933_v61, %v5304_v12  ;;  %v3916_v12 = vadd.f32 %v14607_v3, %v14678_v6 }
 0x882   :  { %v5306_v17 = vadd.f32 %v10933_v61, %v5305_v48  ;;  %5927 = vmatpush.bf16.msra.mxu0 %v9450_v30 }
 0x884   :  { %v10935_v32 = vpop.eup %10934  ;;  %v5310_v18 = vsel %vm5309_vm6, %v10933_v61, %v5306_v17  ;;  %v9451_v61 = vld [vmem:[%s17131_s2 + $0x1b0] sm:$0xf0]  ;;  %v10476_v17 = vld [vmem:[%s17131_s2 + $0x1ac] sm:$0xf] }
 0x885   :  { %v5315_v13 = vsel %vm5312_vm7, %v5314_v20, %v5310_v18  ;;  %v9454_v48 = vor.u32 %v10475_v58, %v9451_v61  ;;  %v9459_v20 = vld [vmem:[%s17131_s2 + $0x1b8] sm:$0xf0]  ;;  %v9430_v61 = vor.u32 %v10468_v60, %v9427_v43  ;;  %v9393_v60 = vld [vmem:[%s17131_s2 + $0x128] sm:$0xf] }
 0x886   :  { %v5326_v0 = vmul.f32 %v10935_v32, %v5315_v13  ;;  %v9462_v3 = vor.u32 %v10476_v17, %v9459_v20  ;;  %5928 = vmatpush.bf16.msra.mxu0 %v9434_v4  ;;  %v9403_v20 = vld [vmem:[%s17131_s2 + $0x150] sm:$0xf0] }
 0x887   :  { %5941 = vmatpush.bf16.msra.mxu1 %v9454_v48 }
 0x888   :  { %9166 = vst [vmem:[%s17133_s4 + $0x28] sm:$0xff] %v5326_v0  ;;  %v5338_v2 = vpack.c.bf16 %v5326_v0, %v5325_v52  ;;  %v9457_v52 = vld [vmem:[%s17131_s2 + $0x1a8] sm:$0xf]  ;;  %5969 = vmatpush.bf16.msra.mxu3 %v9462_v3 }
 0x889   :  { %v9458_v31 = vor.u32 %v10478_v26, %v9457_v52  ;;  %v10465_v52 = vld [vmem:[%s17131_s2 + $0x14c] sm:$0xf0]  ;;  %v10463_v26 = vld [vmem:[%s17131_s2 + $0x144] sm:$0xf] }
 0x88a   :  { %5539 = vmatmul.bf16.vlgmr.msrb.gmra.mxu0 %v5338_v2  ;;  %5553 = vmatmul.bf16.vlgmr.msrb.gmra.mxu1 %v5338_v2  ;;  %v9402_v17 = vor.u32 %v10465_v52, %v9401_v49  ;;  %v9395_v49 = vld [vmem:[%s17131_s2 + $0x138] sm:$0xf0]  ;;  %v9369_v52 = vld [vmem:[%s17131_s2 + $0x100] sm:$0xf] }
 0x88b   :  { %5567 = vmatmul.bf16.vlgmr.msrb.gmra.mxu2 %v5338_v2  ;;  %5581 = vmatmul.bf16.vlgmr.msrb.gmra.mxu3 %v5338_v2 }
 0x88c   :  { %5955 = vmatpush.bf16.msra.mxu2 %v9458_v31  ;;  %5942 = vmatpush.bf16.msra.mxu1 %v9438_v35  ;;  %v10466_v35 = vld [vmem:[%s17131_s2 + $0x154] sm:$0xf0] }
 0x88d   :  { %5929 = vmatpush.bf16.msra.mxu0 %v9418_v9 }
 0x891   :  { %5930 = vmatpush.bf16.msra.mxu0 %v9402_v17  ;;  %v10455_v17 = vld [vmem:[%s17131_s2 + $0x104] sm:$0xf] }
 0x907   :  { %v5540_v36 = vpop.f32.mrf.mxu0  ;;  %v5554_v38 = vpop.f32.mrf.mxu1 }
 0x908   :  { %v5587_v25 = vadd.f32 %v5540_v36, %v3914_v23  ;;  %v5588_v51 = vadd.f32 %v5554_v38, %v3963_v21  ;;  %v9442_v38 = vor.u32 %v10474_v5, %v9441_v57 }
 0x90a   :  { %v9327_v41 = vmul.f32 -1.442695, %v5587_v25  ;;  %v9329_v37 = vmul.f32 -1.442695, %v5588_v51  ;;  %v9443_v25 = vld [vmem:[%s17131_s2 + $0x198] sm:$0xf0]  ;;  %5956 = vmatpush.bf16.msra.mxu2 %v9442_v38 }
 0x90b   :  { %v9446_v14 = vor.u32 %v10472_v45, %v9443_v25  ;;  %v9411_v38 = vld [vmem:[%s17131_s2 + $0x158] sm:$0xf0]  ;;  %v9385_v45 = vld [vmem:[%s17131_s2 + $0x120] sm:$0xf] }
 0x90c   :  { %10936 = vpow2.f32 %v9327_v41 }
 0x90d   :  { %10938 = vpow2.f32 %v9329_v37  ;;  %5970 = vmatpush.bf16.msra.mxu3 %v9446_v14  ;;  %v9425_v37 = vld [vmem:[%s17131_s2 + $0x168] sm:$0xf] }
 0x90e   :  { %v5582_v46 = vpop.f32.mrf.mxu3  ;;  %v5568_v0 = vpop.f32.mrf.mxu2  ;;  %v9426_v30 = vor.u32 %v10470_v28, %v9425_v37  ;;  %v10459_v37 = vld [vmem:[%s17131_s2 + $0x124] sm:$0xf]  ;;  %v9387_v28 = vld [vmem:[%s17131_s2 + $0x130] sm:$0xf0] }
 0x90f   :  { %v5590_v32 = vadd.f32 %v5582_v46, %v4061_v27  ;;  %v5542_v18 = vpop.f32.mrf.mxu0  ;;  %v5556_v13 = vpop.f32.mrf.mxu1  ;;  %v5589_v29 = vadd.f32 %v5568_v0, %v4012_v40  ;;  %v9422_v27 = vor.u32 %v10467_v11, %v9419_v42 }
 0x910   :  { %v5591_v2 = vadd.f32 %v5542_v18, %v3916_v12  ;;  %v5592_v10 = vadd.f32 %v5556_v13, %v3965_v1  ;;  %v4014_v1 = vadd.f32 %v14611_v47, %v14746_v62  ;;  %5957 = vmatpush.bf16.msra.mxu2 %v9426_v30  ;;  %v9406_v47 = vor.u32 %v10463_v26, %v9403_v20 }
 0x911   :  { %v9331_v8 = vmul.f32 -1.442695, %v5590_v32  ;;  %5943 = vmatpush.bf16.msra.mxu1 %v9422_v27  ;;  %5971 = vmatpush.bf16.msra.mxu3 %v9430_v61  ;;  %v9386_v30 = vor.u32 %v10461_v50, %v9385_v45  ;;  %v10460_v61 = vld [vmem:[%s17131_s2 + $0x12c] sm:$0xf] }
 0x912   :  { %v10937_v23 = vpop.eup %10936  ;;  %v9328_v21 = vmul.f32 -1.442695, %v5591_v2  ;;  %v9330_v22 = vmul.f32 -1.442695, %v5592_v10  ;;  %v10458_v2 = vld [vmem:[%s17131_s2 + $0x114] sm:$0xf0] }
 0x913   :  { %v10939_v63 = vpop.eup %10938  ;;  %v15821_v36 = vadd.f32 1.0, %v10937_v23  ;;  %10940 = vpow2.f32 %v9331_v8  ;;  %5931 = vmatpush.bf16.msra.mxu0 %v9386_v30 }
 0x914   :  { %v15829_v51 = vadd.f32 1.0, %v10939_v63  ;;  %10942 = vpow2.f32 %v9328_v21  ;;  %v10464_v63 = vld [vmem:[%s17131_s2 + $0x14c] sm:$0xf] }
 0x915   :  { %10944 = vrcp.f32 %v15821_v36  ;;  %v5612_v39 = vand.u32 2147483647, %v15821_v36  ;;  %v5614_v33 = vand.u32 2147483648, %v15821_v36  ;;  %vm5608_vm9 = vweird.f32 %v15821_v36  ;;  %5944 = vmatpush.bf16.msra.mxu1 %v9406_v47 }
 0x916   :  { %10946 = vrcp.f32 %v15829_v51  ;;  %v5584_v41 = vpop.f32.mrf.mxu3  ;;  %v5652_v15 = vand.u32 2147483648, %v15829_v51  ;;  %v5570_v48 = vpop.f32.mrf.mxu2  ;;  %v5650_v18 = vand.u32 2147483647, %v15829_v51  ;;  %vm5646_vm12 = vweird.f32 %v15829_v51 }
 0x917   :  { %10948 = vpow2.f32 %v9330_v22  ;;  %v5594_v31 = vadd.f32 %v5584_v41, %v4063_v19  ;;  %vm15889_vm8 = vcmp.eq.f32.partialorder %v5612_v39, 8.507059e+37  ;;  %v5615_v59 = vor.u32 1.1754944e-38, %v5614_v33  ;;  %v9409_v22 = vld [vmem:[%s17131_s2 + $0x148] sm:$0xf] }
 0x918   :  { %10950 = vtanh.f32 %v5589_v29  ;;  %v5653_v54 = vor.u32 1.1754944e-38, %v5652_v15  ;;  %v5593_v8 = vadd.f32 %v5570_v48, %v4014_v1  ;;  %vm15901_vm11 = vcmp.eq.f32.partialorder %v5650_v18, 8.507059e+37 }
 0x919   :  { %v10941_v58 = vpop.eup %10940  ;;  %v9332_v57 = vmul.f32 -1.442695, %v5594_v31  ;;  %v9410_v41 = vor.u32 %v10466_v35, %v9409_v22  ;;  %v9414_v27 = vor.u32 %v10464_v63, %v9411_v38  ;;  %v10457_v31 = vld [vmem:[%s17131_s2 + $0x10c] sm:$0xf0]  ;;  %v9390_v47 = vor.u32 %v10459_v37, %v9387_v28  ;;  %v9643_v28 = vld [vmem:[%s17131_s2 + $0x1d8] sm:$0xf0] }
 0x91a   :  { %v10943_v12 = vpop.eup %10942  ;;  %v15875_v46 = vadd.f32 1.0, %v10941_v58  ;;  %v9398_v22 = vor.u32 %v10460_v61, %v9395_v49 }
 0x91b   :  { %v15880_v32 = vpop.eup %10944  ;;  %v15883_v13 = vadd.f32 1.0, %v10943_v12  ;;  %5958 = vmatpush.bf16.msra.mxu2 %v9410_v41  ;;  %5972 = vmatpush.bf16.msra.mxu3 %v9414_v27 }
 0x91c   :  { %v15885_v3 = vpop.eup %10946  ;;  %v5604_v0 = vmul.f32 %v15880_v32, %v15821_v36  ;;  %10952 = vrcp.f32 %v15875_v46  ;;  %vm5609_vm10 = vweird.f32 %v15880_v32  ;;  %v5692_v40 = vand.u32 2147483648, %v15875_v46  ;;  %5945 = vmatpush.bf16.msra.mxu1 %v9390_v47  ;;  %v9651_v47 = vld [vmem:[%s17131_s2 + $0x1f0] sm:$0xf0] }
 0x91d   :  { %v10949_v10 = vpop.eup %10948  ;;  %v5642_v55 = vmul.f32 %v15885_v3, %v15829_v51  ;;  %10954 = vrcp.f32 %v15883_v13  ;;  %vm5647_vm13 = vweird.f32 %v15885_v3  ;;  %v5627_v24 = vand.u32 2147483647, %v15883_v13  ;;  %vm15937_vm14 = vmor %vm5608_vm9, %vm5609_vm10  ;;  %v10462_v51 = vld [vmem:[%s17131_s2 + $0x134] sm:$0xf0] }
 0x91e   :  { %v5605_v4 = vsub.f32 1.0, %v5604_v0  ;;  %v15897_v56 = vadd.f32 1.0, %v10949_v10  ;;  %v10951_v25 = vpop.eup %10950  ;;  %vm15952_vm15 = vmor %vm5646_vm12, %vm5647_vm13  ;;  %v5629_v33 = vand.u32 2147483648, %v15883_v13  ;;  %vm5623_vm0 = vweird.f32 %v15883_v13  ;;  %v9377_v0 = vld [vmem:[%s17131_s2 + $0x108] sm:$0xf] }
 0x91f   :  { %v5643_v23 = vsub.f32 1.0, %v5642_v55  ;;  %v9394_v21 = vor.u32 %v10462_v51, %v9393_v60  ;;  %5973 = vmatpush.bf16.msra.mxu3 %v9398_v22  ;;  %vm5686_vm4 = vweird.f32 %v15875_v46  ;;  %v5690_v41 = vand.u32 2147483647, %v15875_v46 }
 0x920   :  { %v5606_v5 = vmul.f32 %v15880_v32, %v5605_v4  ;;  %10956 = vrcp.f32 %v15897_v56  ;;  %v5667_v39 = vand.u32 2147483648, %v15897_v56  ;;  %v5665_v9 = vand.u32 2147483647, %v15897_v56  ;;  %v10456_v4 = vld [vmem:[%s17131_s2 + $0x10c] sm:$0xf] }
 0x921   :  { %v5644_v14 = vmul.f32 %v15885_v3, %v5643_v23  ;;  %10958 = vtanh.f32 %v5593_v8  ;;  %5959 = vmatpush.bf16.msra.mxu2 %v9394_v21  ;;  %v5630_v37 = vor.u32 1.1754944e-38, %v5629_v33  ;;  %vm5661_vm7 = vweird.f32 %v15897_v56 }
 0x922   :  { %v15930_v11 = vpop.eup %10952  ;;  %v5607_v42 = vadd.f32 %v15880_v32, %v5606_v5  ;;  %10960 = vpow2.f32 %v9332_v57  ;;  %v9379_v57 = vld [vmem:[%s17131_s2 + $0x118] sm:$0xf0]  ;;  %v5693_v51 = vor.u32 1.1754944e-38, %v5692_v40  ;;  %vm5666_vm10 = vcmp.eq.f32.partialorder %v5665_v9, 8.507059e+37 }
 0x923   :  { %v5645_v19 = vadd.f32 %v15885_v3, %v5644_v14  ;;  %v5682_v15 = vmul.f32 %v15930_v11, %v15875_v46  ;;  %v15967_v43 = vpop.eup %10954  ;;  %vm5687_vm1 = vweird.f32 %v15930_v11  ;;  %v9378_v14 = vor.u32 %v10458_v2, %v9377_v0  ;;  %v10518_v0 = vld [vmem:[%s17131_s2 + $0x1f4] sm:$0xf0] }
 0x924   :  { %v5611_v58 = vsel %vm15937_vm14, %v15880_v32, %v5607_v42  ;;  %v5619_v48 = vmul.f32 %v15967_v43, %v15883_v13  ;;  %vm5624_vm2 = vweird.f32 %v15967_v43  ;;  %v9382_v50 = vor.u32 %v10456_v4, %v9379_v57  ;;  %vm16031_vm6 = vmor %vm5686_vm4, %vm5687_vm1  ;;  %v9659_v4 = vld [vmem:[%s17131_s2 + $0x1f8] sm:$0xf0] }
 0x925   :  { %v5616_v26 = vsel %vm15889_vm8, %v5615_v59, %v5611_v58  ;;  %v5649_v12 = vsel %vm15952_vm15, %v15885_v3, %v5645_v19  ;;  %v5683_v1 = vsub.f32 1.0, %v5682_v15  ;;  %v9371_v3 = vld [vmem:[%s17131_s2 + $0x110] sm:$0xf0]  ;;  %vm5625_vm5 = vmor %vm5623_vm0, %vm5624_vm2  ;;  %vm5628_vm8 = vcmp.eq.f32.partialorder %v5627_v24, 8.507059e+37  ;;  %5960 = vmatpush.bf16.msra.mxu2 %v9378_v14  ;;  %v10514_v14 = vld [vmem:[%s17131_s2 + $0x1d4] sm:$0xf0] }
 0x926   :  { %v10957_v20 = vpop.eup %10956  ;;  %v5654_v32 = vsel %vm15901_vm11, %v5653_v54, %v5649_v12  ;;  %v5713_v18 = vmul.f32 %v10951_v25, %v5616_v26  ;;  %v5620_v59 = vsub.f32 1.0, %v5619_v48  ;;  %v9374_v25 = vor.u32 %v10455_v17, %v9371_v3  ;;  %5974 = vmatpush.bf16.msra.mxu3 %v9382_v50  ;;  %v9649_v17 = vld [vmem:[%s17131_s2 + $0x1e0] sm:$0xf]  ;;  %v9657_v3 = vld [vmem:[%s17131_s2 + $0x1e8] sm:$0xf] }
 0x927   :  { %v10959_v10 = vpop.eup %10958  ;;  %v5711_v55 = vmul.f32 %v5654_v32, %v15680_v16  ;;  %v5684_v54 = vmul.f32 %v15930_v11, %v5683_v1  ;;  %v5657_v8 = vmul.f32 %v10957_v20, %v15897_v56  ;;  %v9370_v16 = vor.u32 %v10457_v31, %v9369_v52  ;;  %v10515_v32 = vld [vmem:[%s17131_s2 + $0x1e4] sm:$0xf] }
 0x928   :  { %v10961_v23 = vpop.eup %10960  ;;  %v5621_v38 = vmul.f32 %v15967_v43, %v5620_v59  ;;  %vm5662_vm3 = vweird.f32 %v10957_v20  ;;  %5946 = vmatpush.bf16.msra.mxu1 %v9374_v25  ;;  %v5668_v15 = vor.u32 1.1754944e-38, %v5667_v39  ;;  %vm5691_vm11 = vcmp.eq.f32.partialorder %v5690_v41, 8.507059e+37  ;;  %v9641_v25 = vld [vmem:[%s17131_s2 + $0x1c8] sm:$0xf] }
 0x929   :  { %v16017_v35 = vadd.f32 %v5713_v18, %v5711_v55  ;;  %v5685_v5 = vadd.f32 %v15930_v11, %v5684_v54  ;;  %v5658_v63 = vsub.f32 1.0, %v5657_v8  ;;  %v5680_v45 = vadd.f32 1.0, %v10961_v23  ;;  %5932 = vmatpush.bf16.msra.mxu0 %v9370_v16  ;;  %vm5663_vm9 = vmor %vm5661_vm7, %vm5662_vm3  ;;  %v10516_v8 = vld [vmem:[%s17131_s2 + $0x1ec] sm:$0xf] }
 0x92a   :  { %v5622_v29 = vadd.f32 %v15967_v43, %v5621_v38  ;;  %v3919_v2 = vadd.f32 %v14615_v44, %v14678_v6  ;;  %v9654_v54 = vor.u32 %v10515_v32, %v9651_v47  ;;  %v9658_v59 = vor.u32 %v10518_v0, %v9657_v3  ;;  %v9633_v44 = vld [vmem:[%s17131_s2 + $0x1c0] sm:$0xf]  ;;  %v10503_v32 = vld [vmem:[%s17131_s2 + $0x184] sm:$0xf]  ;;  %v9603_v3 = vld [vmem:[%s17131_s2 + $0x190] sm:$0xf0] }
 0x92b   :  { %10962 = vtanh.f32 %v16017_v35  ;;  %v5659_v42 = vmul.f32 %v10957_v20, %v5658_v63  ;;  %v5689_v60 = vsel %vm16031_vm6, %v15930_v11, %v5685_v5  ;;  %v5707_v56 = vand.u32 2147483648, %v5680_v45  ;;  %v10513_v5 = vld [vmem:[%s17131_s2 + $0x1cc] sm:$0xf0]  ;;  %v10511_v63 = vld [vmem:[%s17131_s2 + $0x1c4] sm:$0xf] }
 0x92c   :  { %10964 = vrcp.f32 %v5680_v45  ;;  %v5626_v36 = vsel %vm5625_vm5, %v15967_v43, %v5622_v29  ;;  %v5694_v27 = vsel %vm5691_vm11, %v5693_v51, %v5689_v60  ;;  %v5705_v11 = vand.u32 2147483647, %v5680_v45  ;;  %6333 = vmatpush.bf16.msrb.mxu1 %v9654_v54  ;;  %6347 = vmatpush.bf16.msrb.mxu2 %v9658_v59  ;;  %v17333_v60 = vld [vmem:[#allocation5_spill] sm:$0xff]  ;;  %v10506_v59 = vld [vmem:[%s17131_s2 + $0x194] sm:$0xf0] }
 0x92d   :  { %v5660_v19 = vadd.f32 %v10957_v20, %v5659_v42  ;;  %v5631_v33 = vsel %vm5628_vm8, %v5630_v37, %v5626_v36  ;;  %vm5701_vm13 = vweird.f32 %v5680_v45  ;;  %v9662_v21 = vor.u32 %v10516_v8, %v9659_v4  ;;  %v10512_v37 = vld [vmem:[%s17131_s2 + $0x1cc] sm:$0xf]  ;;  %v9609_v0 = vld [vmem:[%s17131_s2 + $0x188] sm:$0xf] }
 0x92e   :  { %v5714_v13 = vmul.f32 %v10959_v10, %v5631_v33  ;;  %vm5706_vm15 = vcmp.eq.f32.partialorder %v5705_v11, 8.507059e+37  ;;  %v17332_v10 = vld [vmem:[#allocation4_spill] sm:$0xff]  ;;  %v9634_v38 = vor.u32 %v10513_v5, %v9633_v44  ;;  %v9642_v41 = vor.u32 %v10514_v14, %v9641_v25  ;;  %v9627_v11 = vld [vmem:[%s17131_s2 + $0x1b8] sm:$0xf0]  ;;  %v17336_v44 = vld [vmem:[#allocation6_spill] sm:$0xff] }
 0x92f   :  { %v5664_v58 = vsel %vm5663_vm9, %v10957_v20, %v5660_v19  ;;  %v10517_v20 = vld [vmem:[%s17131_s2 + $0x1ec] sm:$0xf0]  ;;  %v3968_v55 = vadd.f32 %v17332_v10, %v14680_v7  ;;  %6361 = vmatpush.bf16.msrb.mxu3 %v9662_v21  ;;  %v9646_v36 = vor.u32 %v10512_v37, %v9643_v28  ;;  %v9617_v19 = vld [vmem:[%s17131_s2 + $0x1a0] sm:$0xf]  ;;  %v10507_v33 = vld [vmem:[%s17131_s2 + $0x1a4] sm:$0xf]  ;;  %v4066_v51 = vadd.f32 %v17333_v60, %v14690_v53 }
 0x930   :  { %v5669_v24 = vsel %vm5666_vm10, %v5668_v15, %v5664_v58  ;;  %v9650_v18 = vor.u32 %v10517_v20, %v9649_v17  ;;  %6348 = vmatpush.bf16.msrb.mxu2 %v9642_v41  ;;  %v10509_v15 = vld [vmem:[%s17131_s2 + $0x1ac] sm:$0xf0]  ;;  %v9601_v17 = vld [vmem:[%s17131_s2 + $0x180] sm:$0xf]  ;;  %v9606_v54 = vor.u32 %v10503_v32, %v9603_v3  ;;  %v9611_v21 = vld [vmem:[%s17131_s2 + $0x198] sm:$0xf0]  ;;  %v4017_v5 = vadd.f32 %v17336_v44, %v14746_v62 }
 0x931   :  { %v10963_v43 = vpop.eup %10962  ;;  %v5712_v39 = vmul.f32 %v5669_v24, %v15712_v34  ;;  %v5708_v34 = vor.u32 1.1754944e-38, %v5707_v56  ;;  %v9618_v58 = vor.u32 %v10509_v15, %v9617_v19  ;;  %v9625_v24 = vld [vmem:[%s17131_s2 + $0x1a8] sm:$0xf]  ;;  %v10505_v20 = vld [vmem:[%s17131_s2 + $0x18c] sm:$0xf0]  ;;  %v17337_v37 = vld [vmem:[#allocation11_spill] sm:$0xff] }
 0x932   :  { %v10965_v30 = vpop.eup %10964  ;;  %v5719_v61 = vmul.f32 %v10963_v43, %v5694_v27  ;;  %6319 = vmatpush.bf16.msrb.mxu0 %v9650_v18  ;;  %v10510_v43 = vld [vmem:[%s17131_s2 + $0x1b4] sm:$0xf0]  ;;  %v9602_v47 = vor.u32 %v10505_v20, %v9601_v17  ;;  %v9587_v25 = vld [vmem:[%s17131_s2 + $0x170] sm:$0xf0]  ;;  %v4068_v28 = vadd.f32 %v17337_v37, %v14690_v53  ;;  %v9595_v60 = vld [vmem:[%s17131_s2 + $0x178] sm:$0xf0] }
 0x933   :  { %v16049_v49 = vadd.f32 %v5714_v13, %v5712_v39  ;;  %v5697_v52 = vmul.f32 %v10965_v30, %v5680_v45  ;;  %vm5702_vm12 = vweird.f32 %v10965_v30  ;;  %v9635_v45 = vld [vmem:[%s17131_s2 + $0x1d0] sm:$0xf0]  ;;  %v17334_v39 = vld [vmem:[#allocation7_spill] sm:$0xff]  ;;  %6362 = vmatpush.bf16.msrb.mxu3 %v9646_v36  ;;  %v9626_v56 = vor.u32 %v10510_v43, %v9625_v24  ;;  %v9569_v43 = vld [vmem:[%s17131_s2 + $0x140] sm:$0xf] }
 0x934   :  { %9333 = vst [vmem:[%s17133_s4 + $0x30] sm:$0xff] %v5719_v61  ;;  %vm5703_vm14 = vmor %vm5701_vm13, %vm5702_vm12  ;;  %v9638_v29 = vor.u32 %v10511_v63, %v9635_v45  ;;  %v9619_v13 = vld [vmem:[%s17131_s2 + $0x1b0] sm:$0xf0]  ;;  %v3921_v27 = vadd.f32 %v17334_v39, %v14678_v6  ;;  %v9585_v63 = vld [vmem:[%s17131_s2 + $0x160] sm:$0xf] }
 0x935   :  { %10966 = vtanh.f32 %v16049_v49  ;;  %v5698_v46 = vsub.f32 1.0, %v5697_v52  ;;  %6349 = vmatpush.bf16.msrb.mxu2 %v9626_v56  ;;  %v10499_v45 = vld [vmem:[%s17131_s2 + $0x164] sm:$0xf]  ;;  %v10502_v41 = vld [vmem:[%s17131_s2 + $0x174] sm:$0xf0] }
 0x936   :  { %6320 = vmatpush.bf16.msrb.mxu0 %v9634_v38  ;;  %6334 = vmatpush.bf16.msrb.mxu1 %v9638_v29  ;;  %v10501_v38 = vld [vmem:[%s17131_s2 + $0x16c] sm:$0xf0]  ;;  %v9593_v29 = vld [vmem:[%s17131_s2 + $0x168] sm:$0xf]  ;;  %v9555_v37 = vld [vmem:[%s17131_s2 + $0x130] sm:$0xf0] }
 0x937   :  { %v5699_v40 = vmul.f32 %v10965_v30, %v5698_v46  ;;  %v9622_v46 = vor.u32 %v10507_v33, %v9619_v13  ;;  %v9586_v15 = vor.u32 %v10501_v38, %v9585_v63  ;;  %v10500_v33 = vld [vmem:[%s17131_s2 + $0x16c] sm:$0xf]  ;;  %v9594_v13 = vor.u32 %v10502_v41, %v9593_v29  ;;  %v10497_v39 = vld [vmem:[%s17131_s2 + $0x14c] sm:$0xf0]  ;;  %v10491_v41 = vld [vmem:[%s17131_s2 + $0x124] sm:$0xf] }
 0x938   :  { %v9598_v24 = vor.u32 %v10500_v33, %v9595_v60  ;;  %v9561_v33 = vld [vmem:[%s17131_s2 + $0x128] sm:$0xf] }
 0x939   :  { %v5700_v9 = vadd.f32 %v10965_v30, %v5699_v40  ;;  %v10508_v40 = vld [vmem:[%s17131_s2 + $0x1ac] sm:$0xf] }
 0x93a   :  { %6321 = vmatpush.bf16.msrb.mxu0 %v9618_v58  ;;  %6335 = vmatpush.bf16.msrb.mxu1 %v9622_v46  ;;  %v9590_v58 = vor.u32 %v10499_v45, %v9587_v25  ;;  %v10493_v45 = vld [vmem:[%s17131_s2 + $0x12c] sm:$0xf0] }
 0x93b   :  { %v10967_v26 = vpop.eup %10966  ;;  %v5704_v12 = vsel %vm5703_vm14, %v10965_v30, %v5700_v9  ;;  %v17335_v30 = vld [vmem:[#allocation8_spill] sm:$0xff] }
 0x93c   :  { %v5709_v1 = vsel %vm5706_vm15, %v5708_v34, %v5704_v12  ;;  %v9630_v12 = vor.u32 %v10508_v40, %v9627_v11  ;;  %v9570_v11 = vor.u32 %v10497_v39, %v9569_v43  ;;  %v9563_v43 = vld [vmem:[%s17131_s2 + $0x138] sm:$0xf0]  ;;  %v9537_v39 = vld [vmem:[%s17131_s2 + $0x100] sm:$0xf] }
 0x93d   :  { %v5720_v48 = vmul.f32 %v10967_v26, %v5709_v1 }
 0x93e   :  { %6363 = vmatpush.bf16.msrb.mxu3 %v9630_v12  ;;  %6322 = vmatpush.bf16.msrb.mxu0 %v9602_v47 }
 0x93f   :  { %9334 = vst [vmem:[%s17133_s4 + $0x38] sm:$0xff] %v5720_v48  ;;  %v5732_v31 = vpack.c.bf16 %v5720_v48, %v5719_v61  ;;  %v3970_v61 = vadd.f32 %v17335_v30, %v14680_v7  ;;  %6336 = vmatpush.bf16.msrb.mxu1 %v9606_v54 }
 0x941   :  { %5933 = vmatmul.bf16.vlgmr.msra.gmra.mxu0 %v5732_v31  ;;  %5947 = vmatmul.bf16.vlgmr.msra.gmra.mxu1 %v5732_v31 }
 0x942   :  { %5961 = vmatmul.bf16.vlgmr.msra.gmra.mxu2 %v5732_v31  ;;  %5975 = vmatmul.bf16.vlgmr.msra.gmra.mxu3 %v5732_v31 }
 0x943   :  { %6323 = vmatpush.bf16.msrb.mxu0 %v9586_v15  ;;  %6337 = vmatpush.bf16.msrb.mxu1 %v9590_v58 }
 0x947   :  { %6324 = vmatpush.bf16.msrb.mxu0 %v9570_v11 }
 0x9be   :  { %v5934_v57 = vpop.f32.mrf.mxu0  ;;  %v5948_v23 = vpop.f32.mrf.mxu1 }
 0x9bf   :  { %v5981_v22 = vadd.f32 %v5934_v57, %v3919_v2  ;;  %v5982_v16 = vadd.f32 %v5948_v23, %v3968_v55  ;;  %v9610_v57 = vor.u32 %v10506_v59, %v9609_v0  ;;  %v10504_v23 = vld [vmem:[%s17131_s2 + $0x18c] sm:$0xf]  ;;  %v9577_v59 = vld [vmem:[%s17131_s2 + $0x148] sm:$0xf] }
 0x9c1   :  { %v9495_v50 = vmul.f32 -1.442695, %v5981_v22  ;;  %v9497_v42 = vmul.f32 -1.442695, %v5982_v16  ;;  %v9614_v16 = vor.u32 %v10504_v23, %v9611_v21  ;;  %6350 = vmatpush.bf16.msrb.mxu2 %v9610_v57  ;;  %v10496_v23 = vld [vmem:[%s17131_s2 + $0x14c] sm:$0xf] }
 0x9c2   :  { %v9579_v21 = vld [vmem:[%s17131_s2 + $0x158] sm:$0xf0] }
 0x9c3   :  { %10968 = vpow2.f32 %v9495_v50  ;;  %6364 = vmatpush.bf16.msrb.mxu3 %v9614_v16  ;;  %v9553_v16 = vld [vmem:[%s17131_s2 + $0x120] sm:$0xf]  ;;  %v9582_v58 = vor.u32 %v10496_v23, %v9579_v21 }
 0x9c4   :  { %10970 = vpow2.f32 %v9497_v42 }
 0x9c5   :  { %v5976_v52 = vpop.f32.mrf.mxu3  ;;  %v5962_v1 = vpop.f32.mrf.mxu2  ;;  %6351 = vmatpush.bf16.msrb.mxu2 %v9594_v13  ;;  %v9554_v13 = vor.u32 %v10493_v45, %v9553_v16 }
 0x9c6   :  { %v5984_v9 = vadd.f32 %v5976_v52, %v4066_v51  ;;  %v5936_v34 = vpop.f32.mrf.mxu0  ;;  %v5950_v26 = vpop.f32.mrf.mxu1  ;;  %v5983_v14 = vadd.f32 %v5962_v1, %v4017_v5 }
 0x9c7   :  { %v5985_v48 = vadd.f32 %v5936_v34, %v3921_v27  ;;  %v5986_v31 = vadd.f32 %v5950_v26, %v3970_v61  ;;  %v10495_v27 = vld [vmem:[%s17131_s2 + $0x144] sm:$0xf]  ;;  %v17338_v61 = vld [vmem:[#allocation10_spill] sm:$0xff]  ;;  %6365 = vmatpush.bf16.msrb.mxu3 %v9598_v24  ;;  %v10492_v24 = vld [vmem:[%s17131_s2 + $0x12c] sm:$0xf]  ;;  %6325 = vmatpush.bf16.msrb.mxu0 %v9554_v13 }
 0x9c8   :  { %v9499_v18 = vmul.f32 -1.442695, %v5984_v9  ;;  %v4019_v52 = vadd.f32 %v17338_v61, %v14746_v62  ;;  %v9571_v9 = vld [vmem:[%s17131_s2 + $0x150] sm:$0xf0]  ;;  %v9566_v54 = vor.u32 %v10492_v24, %v9563_v43 }
 0x9c9   :  { %v10969_v2 = vpop.eup %10968  ;;  %v9496_v10 = vmul.f32 -1.442695, %v5985_v48  ;;  %v9498_v55 = vmul.f32 -1.442695, %v5986_v31  ;;  %v9574_v1 = vor.u32 %v10495_v27, %v9571_v9 }
 0x9ca   :  { %v10971_v8 = vpop.eup %10970  ;;  %v16158_v4 = vadd.f32 1.0, %v10969_v2  ;;  %10972 = vpow2.f32 %v9499_v18 }
 0x9cb   :  { %v16166_v22 = vadd.f32 1.0, %v10971_v8  ;;  %10974 = vpow2.f32 %v9496_v10  ;;  %6338 = vmatpush.bf16.msrb.mxu1 %v9574_v1  ;;  %v10498_v8 = vld [vmem:[%s17131_s2 + $0x154] sm:$0xf0]  ;;  %6366 = vmatpush.bf16.msrb.mxu3 %v9582_v58  ;;  %v9539_v1 = vld [vmem:[%s17131_s2 + $0x110] sm:$0xf0] }
 0x9cc   :  { %10976 = vrcp.f32 %v16158_v4  ;;  %v6006_v50 = vand.u32 2147483647, %v16158_v4  ;;  %v6008_v19 = vand.u32 2147483648, %v16158_v4  ;;  %vm6002_vm1 = vweird.f32 %v16158_v4 }
 0x9cd   :  { %10978 = vrcp.f32 %v16166_v22  ;;  %v5978_v42 = vpop.f32.mrf.mxu3  ;;  %v6046_v36 = vand.u32 2147483648, %v16166_v22  ;;  %v5964_v56 = vpop.f32.mrf.mxu2  ;;  %v6044_v26 = vand.u32 2147483647, %v16166_v22  ;;  %vm6040_vm4 = vweird.f32 %v16166_v22 }
 0x9ce   :  { %10980 = vpow2.f32 %v9498_v55  ;;  %v5988_v40 = vadd.f32 %v5978_v42, %v4068_v28  ;;  %vm16226_vm0 = vcmp.eq.f32.partialorder %v6006_v50, 8.507059e+37  ;;  %v6009_v47 = vor.u32 1.1754944e-38, %v6008_v19 }
 0x9cf   :  { %10982 = vtanh.f32 %v5983_v14  ;;  %v6047_v18 = vor.u32 1.1754944e-38, %v6046_v36  ;;  %v5987_v3 = vadd.f32 %v5964_v56, %v4019_v52  ;;  %vm16238_vm3 = vcmp.eq.f32.partialorder %v6044_v26, 8.507059e+37  ;;  %v10489_v56 = vld [vmem:[%s17131_s2 + $0x10c] sm:$0xf0]  ;;  %6367 = vmatpush.bf16.msrb.mxu3 %v9566_v54 }
 0x9d0   :  { %v10973_v51 = vpop.eup %10972  ;;  %v9500_v10 = vmul.f32 -1.442695, %v5988_v40  ;;  %v9578_v29 = vor.u32 %v10498_v8, %v9577_v59  ;;  %v10487_v40 = vld [vmem:[%s17131_s2 + $0x104] sm:$0xf]  ;;  %v9558_v26 = vor.u32 %v10491_v41, %v9555_v37  ;;  %v10544_v41 = vld [vmem:[%s17131_s2 + $0x1cc] sm:$0xf] }
 0x9d1   :  { %v10975_v30 = vpop.eup %10974  ;;  %v16212_v46 = vadd.f32 1.0, %v10973_v51  ;;  %v9542_v16 = vor.u32 %v10487_v40, %v9539_v1  ;;  %v10549_v40 = vld [vmem:[%s17131_s2 + $0x1ec] sm:$0xf0]  ;;  %v10550_v1 = vld [vmem:[%s17131_s2 + $0x1f4] sm:$0xf0] }
 0x9d2   :  { %v16217_v34 = vpop.eup %10976  ;;  %v16220_v12 = vadd.f32 1.0, %v10975_v30  ;;  %6352 = vmatpush.bf16.msrb.mxu2 %v9578_v29  ;;  %6339 = vmatpush.bf16.msrb.mxu1 %v9558_v26  ;;  %v9825_v26 = vld [vmem:[%s17131_s2 + $0x1e8] sm:$0xf] }
 0x9d3   :  { %v16222_v48 = vpop.eup %10978  ;;  %v5998_v31 = vmul.f32 %v16217_v34, %v16158_v4  ;;  %10984 = vrcp.f32 %v16212_v46  ;;  %vm6003_vm2 = vweird.f32 %v16217_v34  ;;  %v6086_v63 = vand.u32 2147483648, %v16212_v46 }
 0x9d4   :  { %v10981_v20 = vpop.eup %10980  ;;  %v6036_v32 = vmul.f32 %v16222_v48, %v16166_v22  ;;  %10986 = vrcp.f32 %v16220_v12  ;;  %vm6041_vm5 = vweird.f32 %v16222_v48  ;;  %v6021_v38 = vand.u32 2147483647, %v16220_v12  ;;  %vm16274_vm6 = vmor %vm6002_vm1, %vm6003_vm2  ;;  %v10494_v22 = vld [vmem:[%s17131_s2 + $0x134] sm:$0xf0] }
 0x9d5   :  { %v5999_v0 = vsub.f32 1.0, %v5998_v31  ;;  %v16234_v2 = vadd.f32 1.0, %v10981_v20  ;;  %v10983_v44 = vpop.eup %10982  ;;  %vm16289_vm7 = vmor %vm6040_vm4, %vm6041_vm5  ;;  %v6023_v19 = vand.u32 2147483648, %v16220_v12  ;;  %vm6017_vm8 = vweird.f32 %v16220_v12  ;;  %v10490_v31 = vld [vmem:[%s17131_s2 + $0x114] sm:$0xf0] }
 0x9d6   :  { %v6037_v55 = vsub.f32 1.0, %v6036_v32  ;;  %vm6080_vm12 = vweird.f32 %v16212_v46  ;;  %v6084_v50 = vand.u32 2147483647, %v16212_v46  ;;  %6340 = vmatpush.bf16.msrb.mxu1 %v9542_v16  ;;  %v9803_v16 = vld [vmem:[%s17131_s2 + $0x1d0] sm:$0xf0] }
 0x9d7   :  { %v6000_v57 = vmul.f32 %v16217_v34, %v5999_v0  ;;  %10988 = vrcp.f32 %v16234_v2  ;;  %v6061_v42 = vand.u32 2147483648, %v16234_v2  ;;  %v6059_v15 = vand.u32 2147483647, %v16234_v2  ;;  %v9547_v0 = vld [vmem:[%s17131_s2 + $0x118] sm:$0xf0] }
 0x9d8   :  { %v6038_v5 = vmul.f32 %v16222_v48, %v6037_v55  ;;  %10990 = vtanh.f32 %v5987_v3  ;;  %v10488_v3 = vld [vmem:[%s17131_s2 + $0x10c] sm:$0xf]  ;;  %v9562_v55 = vor.u32 %v10494_v22, %v9561_v33  ;;  %v6024_v29 = vor.u32 1.1754944e-38, %v6023_v19 }
 0x9d9   :  { %v16267_v25 = vpop.eup %10984  ;;  %v6001_v14 = vadd.f32 %v16217_v34, %v6000_v57  ;;  %10992 = vpow2.f32 %v9500_v10  ;;  %vm6055_vm15 = vweird.f32 %v16234_v2  ;;  %v6087_v33 = vor.u32 1.1754944e-38, %v6086_v63 }
 0x9da   :  { %v6039_v28 = vadd.f32 %v16222_v48, %v6038_v5  ;;  %v6076_v36 = vmul.f32 %v16267_v25, %v16212_v46  ;;  %v16304_v60 = vpop.eup %10986  ;;  %vm6081_vm9 = vweird.f32 %v16267_v25  ;;  %6353 = vmatpush.bf16.msrb.mxu2 %v9562_v55  ;;  %v9550_v5 = vor.u32 %v10488_v3, %v9547_v0  ;;  %v9827_v3 = vld [vmem:[%s17131_s2 + $0x1f8] sm:$0xf0] }
 0x9db   :  { %v6005_v51 = vsel %vm16274_vm6, %v16217_v34, %v6001_v14  ;;  %v6013_v52 = vmul.f32 %v16304_v60, %v16220_v12  ;;  %vm6018_vm10 = vweird.f32 %v16304_v60  ;;  %vm16368_vm14 = vmor %vm6080_vm12, %vm6081_vm9  ;;  %vm6060_vm2 = vcmp.eq.f32.partialorder %v6059_v15, 8.507059e+37 }
 0x9dc   :  { %v6010_v27 = vsel %vm16226_vm0, %v6009_v47, %v6005_v51  ;;  %v6043_v30 = vsel %vm16289_vm7, %v16222_v48, %v6039_v28  ;;  %v6077_v61 = vsub.f32 1.0, %v6076_v36  ;;  %v9545_v48 = vld [vmem:[%s17131_s2 + $0x108] sm:$0xf]  ;;  %vm6019_vm13 = vmor %vm6017_vm8, %vm6018_vm10  ;;  %vm6022_vm0 = vcmp.eq.f32.partialorder %v6021_v38, 8.507059e+37  ;;  %6368 = vmatpush.bf16.msrb.mxu3 %v9550_v5  ;;  %v10546_v5 = vld [vmem:[%s17131_s2 + $0x1d4] sm:$0xf0] }
 0x9dd   :  { %v10989_v11 = vpop.eup %10988  ;;  %v6048_v9 = vsel %vm16238_vm3, %v6047_v18, %v6043_v30  ;;  %v6107_v34 = vmul.f32 %v10983_v44, %v6010_v27  ;;  %v6014_v18 = vsub.f32 1.0, %v6013_v52  ;;  %v9546_v44 = vor.u32 %v10490_v31, %v9545_v48  ;;  %v17349_v48 = vld [vmem:[#allocation12_spill] sm:$0xff] }
 0x9de   :  { %v10991_v17 = vpop.eup %10990  ;;  %v6105_v20 = vmul.f32 %v6048_v9, %v16017_v35  ;;  %v6078_v32 = vmul.f32 %v16267_v25, %v6077_v61  ;;  %v6051_v47 = vmul.f32 %v10989_v11, %v16234_v2  ;;  %v9538_v35 = vor.u32 %v10489_v56, %v9537_v39  ;;  %v9817_v56 = vld [vmem:[%s17131_s2 + $0x1e0] sm:$0xf] }
 0x9df   :  { %v10993_v10 = vpop.eup %10992  ;;  %v6015_v23 = vmul.f32 %v16304_v60, %v6014_v18  ;;  %vm6056_vm11 = vweird.f32 %v10989_v11  ;;  %v6062_v28 = vor.u32 1.1754944e-38, %v6061_v42  ;;  %6354 = vmatpush.bf16.msrb.mxu2 %v9546_v44  ;;  %vm6085_vm3 = vcmp.eq.f32.partialorder %v6084_v50, 8.507059e+37  ;;  %v9809_v44 = vld [vmem:[%s17131_s2 + $0x1c8] sm:$0xf] }
 0x9e0   :  { %v16354_v59 = vadd.f32 %v6107_v34, %v6105_v20  ;;  %v6079_v8 = vadd.f32 %v16267_v25, %v6078_v32  ;;  %v6052_v57 = vsub.f32 1.0, %v6051_v47  ;;  %v6074_v21 = vadd.f32 1.0, %v10993_v10  ;;  %6326 = vmatpush.bf16.msrb.mxu0 %v9538_v35  ;;  %vm6057_vm1 = vmor %vm6055_vm15, %vm6056_vm11  ;;  %v9819_v34 = vld [vmem:[%s17131_s2 + $0x1f0] sm:$0xf0]  ;;  %v10548_v47 = vld [vmem:[%s17131_s2 + $0x1ec] sm:$0xf] }
 0x9e1   :  { %v6016_v14 = vadd.f32 %v16304_v60, %v6015_v23  ;;  %v9818_v9 = vor.u32 %v10549_v40, %v9817_v56  ;;  %v3924_v31 = vadd.f32 %v17349_v48, %v14678_v6  ;;  %v9826_v18 = vor.u32 %v10550_v1, %v9825_v26  ;;  %v10543_v23 = vld [vmem:[%s17131_s2 + $0x1c4] sm:$0xf]  ;;  %v9769_v40 = vld [vmem:[%s17131_s2 + $0x180] sm:$0xf]  ;;  %v9771_v1 = vld [vmem:[%s17131_s2 + $0x190] sm:$0xf0] }
 0x9e2   :  { %10994 = vtanh.f32 %v16354_v59  ;;  %v6053_v45 = vmul.f32 %v10989_v11, %v6052_v57  ;;  %v6083_v19 = vsel %vm16368_vm14, %v16267_v25, %v6079_v8  ;;  %v6101_v2 = vand.u32 2147483648, %v6074_v21  ;;  %v9801_v8 = vld [vmem:[%s17131_s2 + $0x1c0] sm:$0xf]  ;;  %v10545_v57 = vld [vmem:[%s17131_s2 + $0x1cc] sm:$0xf0] }
 0x9e3   :  { %10996 = vrcp.f32 %v6074_v21  ;;  %v6020_v37 = vsel %vm6019_vm13, %v16304_v60, %v6016_v14  ;;  %v6088_v51 = vsel %vm6085_vm3, %v6087_v33, %v6083_v19  ;;  %v6099_v25 = vand.u32 2147483647, %v6074_v21  ;;  %6741 = vmatpush.bf16.msra.mxu2 %v9826_v18  ;;  %v10539_v19 = vld [vmem:[%s17131_s2 + $0x1a4] sm:$0xf]  ;;  %v17351_v33 = vld [vmem:[#allocation13_spill] sm:$0xff] }
 0x9e4   :  { %v6054_v4 = vadd.f32 %v10989_v11, %v6053_v45  ;;  %v6025_v36 = vsel %vm6022_vm0, %v6024_v29, %v6020_v37  ;;  %vm6095_vm5 = vweird.f32 %v6074_v21  ;;  %6713 = vmatpush.bf16.msra.mxu0 %v9818_v9  ;;  %v9830_v55 = vor.u32 %v10548_v47, %v9827_v3  ;;  %v9811_v37 = vld [vmem:[%s17131_s2 + $0x1d8] sm:$0xf0]  ;;  %v10535_v9 = vld [vmem:[%s17131_s2 + $0x184] sm:$0xf]  ;;  %v9777_v48 = vld [vmem:[%s17131_s2 + $0x188] sm:$0xf] }
 0x9e5   :  { %v6108_v12 = vmul.f32 %v10991_v17, %v6025_v36  ;;  %vm6100_vm7 = vcmp.eq.f32.partialorder %v6099_v25, 8.507059e+37  ;;  %v17350_v17 = vld [vmem:[#allocation9_spill] sm:$0xff]  ;;  %v9806_v50 = vor.u32 %v10543_v23, %v9803_v16  ;;  %v9810_v29 = vor.u32 %v10546_v5, %v9809_v44  ;;  %v10541_v36 = vld [vmem:[%s17131_s2 + $0x1ac] sm:$0xf0]  ;;  %v10538_v18 = vld [vmem:[%s17131_s2 + $0x194] sm:$0xf0] }
 0x9e6   :  { %v6058_v22 = vsel %vm6057_vm1, %v10989_v11, %v6054_v4  ;;  %v10547_v11 = vld [vmem:[%s17131_s2 + $0x1e4] sm:$0xf]  ;;  %v3973_v20 = vadd.f32 %v17350_v17, %v14680_v7  ;;  %6755 = vmatpush.bf16.msra.mxu3 %v9830_v55  ;;  %v9814_v4 = vor.u32 %v10544_v41, %v9811_v37  ;;  %v10540_v25 = vld [vmem:[%s17131_s2 + $0x1ac] sm:$0xf]  ;;  %v9779_v55 = vld [vmem:[%s17131_s2 + $0x198] sm:$0xf0] }
 0x9e7   :  { %v6063_v38 = vsel %vm6060_vm2, %v6062_v28, %v6058_v22  ;;  %v9822_v32 = vor.u32 %v10547_v11, %v9819_v34  ;;  %6742 = vmatpush.bf16.msra.mxu2 %v9810_v29  ;;  %v9785_v28 = vld [vmem:[%s17131_s2 + $0x1a0] sm:$0xf]  ;;  %v4071_v22 = vadd.f32 %v17351_v33, %v14690_v53  ;;  %v10537_v11 = vld [vmem:[%s17131_s2 + $0x18c] sm:$0xf0]  ;;  %v10531_v16 = vld [vmem:[%s17131_s2 + $0x164] sm:$0xf] }
 0x9e8   :  { %v10995_v60 = vpop.eup %10994  ;;  %v6106_v42 = vmul.f32 %v6063_v38, %v16049_v49  ;;  %v6102_v49 = vor.u32 1.1754944e-38, %v6101_v2  ;;  %v9787_v38 = vld [vmem:[%s17131_s2 + $0x1b0] sm:$0xf0]  ;;  %v9770_v26 = vor.u32 %v10537_v11, %v9769_v40  ;;  %v9753_v23 = vld [vmem:[%s17131_s2 + $0x160] sm:$0xf]  ;;  %v17355_v41 = vld [vmem:[#allocation19_spill] sm:$0xff] }
 0x9e9   :  { %v10997_v58 = vpop.eup %10996  ;;  %v6113_v13 = vmul.f32 %v10995_v60, %v6088_v51  ;;  %6727 = vmatpush.bf16.msra.mxu1 %v9822_v32  ;;  %v9793_v60 = vld [vmem:[%s17131_s2 + $0x1a8] sm:$0xf]  ;;  %v17352_v51 = vld [vmem:[#allocation15_spill] sm:$0xff]  ;;  %v9790_v2 = vor.u32 %v10539_v19, %v9787_v38  ;;  %v9774_v32 = vor.u32 %v10535_v9, %v9771_v1  ;;  %v9755_v44 = vld [vmem:[%s17131_s2 + $0x170] sm:$0xf0]  ;;  %v4073_v37 = vadd.f32 %v17355_v41, %v14690_v53 }
 0x9ea   :  { %v16386_v24 = vadd.f32 %v6108_v12, %v6106_v42  ;;  %v6091_v43 = vmul.f32 %v10997_v58, %v6074_v21  ;;  %vm6096_vm4 = vweird.f32 %v10997_v58  ;;  %v9802_v21 = vor.u32 %v10545_v57, %v9801_v8  ;;  %v10542_v42 = vld [vmem:[%s17131_s2 + $0x1b4] sm:$0xf0]  ;;  %6756 = vmatpush.bf16.msra.mxu3 %v9814_v4  ;;  %v17354_v8 = vld [vmem:[#allocation14_spill] sm:$0xff]  ;;  %v10532_v19 = vld [vmem:[%s17131_s2 + $0x16c] sm:$0xf] }
 0x9eb   :  { %9501 = vst [vmem:[%s17133_s4 + $0x40] sm:$0xff] %v6113_v13  ;;  %vm6097_vm6 = vmor %vm6095_vm5, %vm6096_vm4  ;;  %v9786_v12 = vor.u32 %v10541_v36, %v9785_v28  ;;  %v4022_v57 = vadd.f32 %v17354_v8, %v14746_v62  ;;  %v10534_v29 = vld [vmem:[%s17131_s2 + $0x174] sm:$0xf0]  ;;  %v9763_v33 = vld [vmem:[%s17131_s2 + $0x178] sm:$0xf0] }
 0x9ec   :  { %10998 = vtanh.f32 %v16386_v24  ;;  %v6092_v46 = vsub.f32 1.0, %v6091_v43  ;;  %6714 = vmatpush.bf16.msra.mxu0 %v9802_v21  ;;  %v10533_v21 = vld [vmem:[%s17131_s2 + $0x16c] sm:$0xf0]  ;;  %v9723_v41 = vld [vmem:[%s17131_s2 + $0x130] sm:$0xf0] }
 0x9ed   :  { %6728 = vmatpush.bf16.msra.mxu1 %v9806_v50  ;;  %v9761_v50 = vld [vmem:[%s17131_s2 + $0x168] sm:$0xf]  ;;  %v9754_v36 = vor.u32 %v10533_v21, %v9753_v23 }
 0x9ee   :  { %v6093_v63 = vmul.f32 %v10997_v58, %v6092_v46  ;;  %v9762_v38 = vor.u32 %v10534_v29, %v9761_v50  ;;  %v10523_v29 = vld [vmem:[%s17131_s2 + $0x124] sm:$0xf] }
 0x9f0   :  { %v6094_v15 = vadd.f32 %v10997_v58, %v6093_v63  ;;  %v9794_v63 = vor.u32 %v10542_v42, %v9793_v60  ;;  %6715 = vmatpush.bf16.msra.mxu0 %v9786_v12  ;;  %v9758_v12 = vor.u32 %v10531_v16, %v9755_v44  ;;  %v9766_v60 = vor.u32 %v10532_v19, %v9763_v33  ;;  %v9737_v42 = vld [vmem:[%s17131_s2 + $0x140] sm:$0xf]  ;;  %v10525_v16 = vld [vmem:[%s17131_s2 + $0x12c] sm:$0xf0]  ;;  %v9729_v19 = vld [vmem:[%s17131_s2 + $0x128] sm:$0xf] }
 0x9f1   :  { %6729 = vmatpush.bf16.msra.mxu1 %v9790_v2 }
 0x9f2   :  { %v10999_v39 = vpop.eup %10998  ;;  %v6098_v27 = vsel %vm6097_vm6, %v10997_v58, %v6094_v15  ;;  %v3926_v58 = vadd.f32 %v17352_v51, %v14678_v6  ;;  %v9795_v15 = vld [vmem:[%s17131_s2 + $0x1b8] sm:$0xf0]  ;;  %6743 = vmatpush.bf16.msra.mxu2 %v9794_v63  ;;  %v10529_v51 = vld [vmem:[%s17131_s2 + $0x14c] sm:$0xf0] }
 0x9f3   :  { %v6103_v30 = vsel %vm6100_vm7, %v6102_v49, %v6098_v27 }
 0x9f4   :  { %v6114_v61 = vmul.f32 %v10999_v39, %v6103_v30  ;;  %v9798_v30 = vor.u32 %v10540_v25, %v9795_v15  ;;  %6716 = vmatpush.bf16.msra.mxu0 %v9770_v26  ;;  %v9738_v15 = vor.u32 %v10529_v51, %v9737_v42  ;;  %v9731_v42 = vld [vmem:[%s17131_s2 + $0x138] sm:$0xf0]  ;;  %v9705_v51 = vld [vmem:[%s17131_s2 + $0x100] sm:$0xf] }
 0x9f5   :  { %6730 = vmatpush.bf16.msra.mxu1 %v9774_v32 }
 0x9f6   :  { %9502 = vst [vmem:[%s17133_s4 + $0x48] sm:$0xff] %v6114_v61  ;;  %v6126_v52 = vpack.c.bf16 %v6114_v61, %v6113_v13  ;;  %v17353_v13 = vld [vmem:[#allocation16_spill] sm:$0xff]  ;;  %6757 = vmatpush.bf16.msra.mxu3 %v9798_v30 }
 0x9f7   :  { %v3975_v43 = vadd.f32 %v17353_v13, %v14680_v7 }
 0x9f8   :  { %6327 = vmatmul.bf16.vlgmr.msrb.gmra.mxu0 %v6126_v52  ;;  %6341 = vmatmul.bf16.vlgmr.msrb.gmra.mxu1 %v6126_v52 }
 0x9f9   :  { %6355 = vmatmul.bf16.vlgmr.msrb.gmra.mxu2 %v6126_v52  ;;  %6369 = vmatmul.bf16.vlgmr.msrb.gmra.mxu3 %v6126_v52 }
 0x9fa   :  { %6717 = vmatpush.bf16.msra.mxu0 %v9754_v36  ;;  %6731 = vmatpush.bf16.msra.mxu1 %v9758_v12 }
 0x9fe   :  { %6718 = vmatpush.bf16.msra.mxu0 %v9738_v15 }
 0xa75   :  { %v6328_v0 = vpop.f32.mrf.mxu0  ;;  %v6342_v10 = vpop.f32.mrf.mxu1 }
 0xa76   :  { %v6375_v54 = vadd.f32 %v6328_v0, %v3924_v31  ;;  %v6376_v35 = vadd.f32 %v6342_v10, %v3973_v20  ;;  %v9778_v0 = vor.u32 %v10538_v18, %v9777_v48  ;;  %v10536_v10 = vld [vmem:[%s17131_s2 + $0x18c] sm:$0xf]  ;;  %v9745_v18 = vld [vmem:[%s17131_s2 + $0x148] sm:$0xf] }
 0xa78   :  { %v9663_v45 = vmul.f32 -1.442695, %v6375_v54  ;;  %v9665_v14 = vmul.f32 -1.442695, %v6376_v35  ;;  %v9782_v35 = vor.u32 %v10536_v10, %v9779_v55  ;;  %6744 = vmatpush.bf16.msra.mxu2 %v9778_v0  ;;  %v10528_v10 = vld [vmem:[%s17131_s2 + $0x14c] sm:$0xf] }
 0xa79   :  { %v9747_v55 = vld [vmem:[%s17131_s2 + $0x158] sm:$0xf0] }
 0xa7a   :  { %11000 = vpow2.f32 %v9663_v45  ;;  %6758 = vmatpush.bf16.msra.mxu3 %v9782_v35  ;;  %v9721_v35 = vld [vmem:[%s17131_s2 + $0x120] sm:$0xf]  ;;  %v9750_v12 = vor.u32 %v10528_v10, %v9747_v55 }
 0xa7b   :  { %11002 = vpow2.f32 %v9665_v14 }
 0xa7c   :  { %v6370_v46 = vpop.f32.mrf.mxu3  ;;  %v6356_v61 = vpop.f32.mrf.mxu2  ;;  %6745 = vmatpush.bf16.msra.mxu2 %v9762_v38  ;;  %v9722_v38 = vor.u32 %v10525_v16, %v9721_v35 }
 0xa7d   :  { %v6378_v49 = vadd.f32 %v6370_v46, %v4071_v22  ;;  %v6330_v39 = vpop.f32.mrf.mxu0  ;;  %v6344_v27 = vpop.f32.mrf.mxu1  ;;  %v6377_v5 = vadd.f32 %v6356_v61, %v4022_v57 }
 0xa7e   :  { %v6379_v52 = vadd.f32 %v6330_v39, %v3926_v58  ;;  %v6380_v56 = vadd.f32 %v6344_v27, %v3975_v43  ;;  %v10527_v58 = vld [vmem:[%s17131_s2 + $0x144] sm:$0xf]  ;;  %v17356_v43 = vld [vmem:[#allocation18_spill] sm:$0xff]  ;;  %6759 = vmatpush.bf16.msra.mxu3 %v9766_v60  ;;  %v10524_v60 = vld [vmem:[%s17131_s2 + $0x12c] sm:$0xf]  ;;  %6719 = vmatpush.bf16.msra.mxu0 %v9722_v38 }
 0xa7f   :  { %v9667_v34 = vmul.f32 -1.442695, %v6378_v49  ;;  %v4024_v46 = vadd.f32 %v17356_v43, %v14746_v62  ;;  %v9739_v49 = vld [vmem:[%s17131_s2 + $0x150] sm:$0xf0]  ;;  %v9734_v32 = vor.u32 %v10524_v60, %v9731_v42 }
 0xa80   :  { %v11001_v31 = vpop.eup %11000  ;;  %v9664_v17 = vmul.f32 -1.442695, %v6379_v52  ;;  %v9666_v20 = vmul.f32 -1.442695, %v6380_v56  ;;  %v9742_v61 = vor.u32 %v10527_v58, %v9739_v49 }
 0xa81   :  { %v11003_v47 = vpop.eup %11002  ;;  %v16495_v3 = vadd.f32 1.0, %v11001_v31  ;;  %11004 = vpow2.f32 %v9667_v34 }
 0xa82   :  { %v16503_v54 = vadd.f32 1.0, %v11003_v47  ;;  %11006 = vpow2.f32 %v9664_v17  ;;  %6732 = vmatpush.bf16.msra.mxu1 %v9742_v61  ;;  %v10530_v47 = vld [vmem:[%s17131_s2 + $0x154] sm:$0xf0]  ;;  %6760 = vmatpush.bf16.msra.mxu3 %v9750_v12  ;;  %v9707_v61 = vld [vmem:[%s17131_s2 + $0x110] sm:$0xf0] }
 0xa83   :  { %11008 = vrcp.f32 %v16495_v3  ;;  %v6400_v45 = vand.u32 2147483647, %v16495_v3  ;;  %v6402_v28 = vand.u32 2147483648, %v16495_v3  ;;  %vm6396_vm9 = vweird.f32 %v16495_v3 }
 0xa84   :  { %11010 = vrcp.f32 %v16503_v54  ;;  %v6372_v14 = vpop.f32.mrf.mxu3  ;;  %v6440_v4 = vand.u32 2147483648, %v16503_v54  ;;  %v6358_v63 = vpop.f32.mrf.mxu2  ;;  %v6438_v27 = vand.u32 2147483647, %v16503_v54  ;;  %vm6434_vm12 = vweird.f32 %v16503_v54 }
 0xa85   :  { %11012 = vpow2.f32 %v9666_v20  ;;  %v6382_v25 = vadd.f32 %v6372_v14, %v4073_v37  ;;  %vm16563_vm8 = vcmp.eq.f32.partialorder %v6400_v45, 8.507059e+37  ;;  %v6403_v26 = vor.u32 1.1754944e-38, %v6402_v28 }
 0xa86   :  { %11014 = vtanh.f32 %v6377_v5  ;;  %v6441_v34 = vor.u32 1.1754944e-38, %v6440_v4  ;;  %v6381_v1 = vadd.f32 %v6358_v63, %v4024_v46  ;;  %vm16575_vm11 = vcmp.eq.f32.partialorder %v6438_v27, 8.507059e+37  ;;  %v10521_v63 = vld [vmem:[%s17131_s2 + $0x10c] sm:$0xf0]  ;;  %6761 = vmatpush.bf16.msra.mxu3 %v9734_v32 }
 0xa87   :  { %v11005_v22 = vpop.eup %11004  ;;  %v9668_v17 = vmul.f32 -1.442695, %v6382_v25  ;;  %v9746_v50 = vor.u32 %v10530_v47, %v9745_v18  ;;  %v10519_v25 = vld [vmem:[%s17131_s2 + $0x104] sm:$0xf]  ;;  %v9726_v27 = vor.u32 %v10523_v29, %v9723_v41  ;;  %v10576_v29 = vld [vmem:[%s17131_s2 + $0x1cc] sm:$0xf] }
 0xa88   :  { %v11007_v13 = vpop.eup %11006  ;;  %v16549_v2 = vadd.f32 1.0, %v11005_v22  ;;  %v9710_v35 = vor.u32 %v10519_v25, %v9707_v61  ;;  %v10581_v25 = vld [vmem:[%s17131_s2 + $0x1ec] sm:$0xf0]  ;;  %v10582_v61 = vld [vmem:[%s17131_s2 + $0x1f4] sm:$0xf0] }
 0xa89   :  { %v16554_v39 = vpop.eup %11008  ;;  %v16557_v30 = vadd.f32 1.0, %v11007_v13  ;;  %6746 = vmatpush.bf16.msra.mxu2 %v9746_v50  ;;  %6733 = vmatpush.bf16.msra.mxu1 %v9726_v27  ;;  %v9993_v27 = vld [vmem:[%s17131_s2 + $0x1e8] sm:$0xf] }
 0xa8a   :  { %v16559_v52 = vpop.eup %11010  ;;  %v6392_v56 = vmul.f32 %v16554_v39, %v16495_v3  ;;  %11016 = vrcp.f32 %v16549_v2  ;;  %vm6397_vm10 = vweird.f32 %v16554_v39  ;;  %v6480_v23 = vand.u32 2147483648, %v16549_v2 }
 0xa8b   :  { %v11013_v11 = vpop.eup %11012  ;;  %v6430_v9 = vmul.f32 %v16559_v52, %v16503_v54  ;;  %11018 = vrcp.f32 %v16557_v30  ;;  %vm6435_vm13 = vweird.f32 %v16559_v52  ;;  %v6415_v21 = vand.u32 2147483647, %v16557_v30  ;;  %vm16611_vm14 = vmor %vm6396_vm9, %vm6397_vm10  ;;  %v10526_v54 = vld [vmem:[%s17131_s2 + $0x134] sm:$0xf0] }
 0xa8c   :  { %v6393_v48 = vsub.f32 1.0, %v6392_v56  ;;  %v16571_v31 = vadd.f32 1.0, %v11013_v11  ;;  %v11015_v8 = vpop.eup %11014  ;;  %vm16626_vm15 = vmor %vm6434_vm12, %vm6435_vm13  ;;  %v6417_v28 = vand.u32 2147483648, %v16557_v30  ;;  %vm6411_vm0 = vweird.f32 %v16557_v30  ;;  %v10522_v56 = vld [vmem:[%s17131_s2 + $0x114] sm:$0xf0] }
 0xa8d   :  { %v6431_v20 = vsub.f32 1.0, %v6430_v9  ;;  %vm6474_vm4 = vweird.f32 %v16549_v2  ;;  %v6478_v45 = vand.u32 2147483647, %v16549_v2  ;;  %6734 = vmatpush.bf16.msra.mxu1 %v9710_v35  ;;  %v9971_v35 = vld [vmem:[%s17131_s2 + $0x1d0] sm:$0xf0] }
 0xa8e   :  { %v6394_v0 = vmul.f32 %v16554_v39, %v6393_v48  ;;  %11020 = vrcp.f32 %v16571_v31  ;;  %v6455_v14 = vand.u32 2147483648, %v16571_v31  ;;  %v6453_v36 = vand.u32 2147483647, %v16571_v31  ;;  %v9715_v48 = vld [vmem:[%s17131_s2 + $0x118] sm:$0xf0] }
 0xa8f   :  { %v6432_v57 = vmul.f32 %v16559_v52, %v6431_v20  ;;  %11022 = vtanh.f32 %v6381_v1  ;;  %v10520_v1 = vld [vmem:[%s17131_s2 + $0x10c] sm:$0xf]  ;;  %v9730_v20 = vor.u32 %v10526_v54, %v9729_v19  ;;  %v6418_v50 = vor.u32 1.1754944e-38, %v6417_v28 }
 0xa90   :  { %v16604_v44 = vpop.eup %11016  ;;  %v6395_v5 = vadd.f32 %v16554_v39, %v6394_v0  ;;  %11024 = vpow2.f32 %v9668_v17  ;;  %vm6449_vm7 = vweird.f32 %v16571_v31  ;;  %v6481_v19 = vor.u32 1.1754944e-38, %v6480_v23 }
 0xa91   :  { %v6433_v37 = vadd.f32 %v16559_v52, %v6432_v57  ;;  %v6470_v4 = vmul.f32 %v16604_v44, %v16549_v2  ;;  %v16641_v33 = vpop.eup %11018  ;;  %vm6475_vm1 = vweird.f32 %v16604_v44  ;;  %6747 = vmatpush.bf16.msra.mxu2 %v9730_v20  ;;  %v9718_v57 = vor.u32 %v10520_v1, %v9715_v48  ;;  %v9995_v1 = vld [vmem:[%s17131_s2 + $0x1f8] sm:$0xf0] }
 0xa92   :  { %v6399_v22 = vsel %vm16611_vm14, %v16554_v39, %v6395_v5  ;;  %v6407_v46 = vmul.f32 %v16641_v33, %v16557_v30  ;;  %vm6412_vm2 = vweird.f32 %v16641_v33  ;;  %vm16705_vm6 = vmor %vm6474_vm4, %vm6475_vm1  ;;  %vm6454_vm10 = vcmp.eq.f32.partialorder %v6453_v36, 8.507059e+37 }
 0xa93   :  { %v6404_v58 = vsel %vm16563_vm8, %v6403_v26, %v6399_v22  ;;  %v6437_v13 = vsel %vm16626_vm15, %v16559_v52, %v6433_v37  ;;  %v6471_v43 = vsub.f32 1.0, %v6470_v4  ;;  %v9713_v52 = vld [vmem:[%s17131_s2 + $0x108] sm:$0xf]  ;;  %vm6413_vm5 = vmor %vm6411_vm0, %vm6412_vm2  ;;  %vm6416_vm8 = vcmp.eq.f32.partialorder %v6415_v21, 8.507059e+37  ;;  %6762 = vmatpush.bf16.msra.mxu3 %v9718_v57  ;;  %v10578_v57 = vld [vmem:[%s17131_s2 + $0x1d4] sm:$0xf0] }
 0xa94   :  { %v11021_v15 = vpop.eup %11020  ;;  %v6442_v49 = vsel %vm16575_vm11, %v6441_v34, %v6437_v13  ;;  %v6501_v39 = vmul.f32 %v11015_v8, %v6404_v58  ;;  %v6408_v34 = vsub.f32 1.0, %v6407_v46  ;;  %v9714_v8 = vor.u32 %v10522_v56, %v9713_v52  ;;  %v17367_v52 = vld [vmem:[#allocation20_spill] sm:$0xff] }
 0xa95   :  { %v11023_v40 = vpop.eup %11022  ;;  %v6499_v11 = vmul.f32 %v6442_v49, %v16354_v59  ;;  %v6472_v9 = vmul.f32 %v16604_v44, %v6471_v43  ;;  %v6445_v26 = vmul.f32 %v11021_v15, %v16571_v31  ;;  %v9706_v59 = vor.u32 %v10521_v63, %v9705_v51  ;;  %v9985_v63 = vld [vmem:[%s17131_s2 + $0x1e0] sm:$0xf] }
 0xa96   :  { %v11025_v17 = vpop.eup %11024  ;;  %v6409_v10 = vmul.f32 %v16641_v33, %v6408_v34  ;;  %vm6450_vm3 = vweird.f32 %v11021_v15  ;;  %v6456_v37 = vor.u32 1.1754944e-38, %v6455_v14  ;;  %6748 = vmatpush.bf16.msra.mxu2 %v9714_v8  ;;  %vm6479_vm11 = vcmp.eq.f32.partialorder %v6478_v45, 8.507059e+37  ;;  %v9977_v8 = vld [vmem:[%s17131_s2 + $0x1c8] sm:$0xf] }
 0xa97   :  { %v16691_v18 = vadd.f32 %v6501_v39, %v6499_v11  ;;  %v6473_v47 = vadd.f32 %v16604_v44, %v6472_v9  ;;  %v6446_v0 = vsub.f32 1.0, %v6445_v26  ;;  %v6468_v55 = vadd.f32 1.0, %v11025_v17  ;;  %6720 = vmatpush.bf16.msra.mxu0 %v9706_v59  ;;  %vm6451_vm9 = vmor %vm6449_vm7, %vm6450_vm3  ;;  %v9987_v39 = vld [vmem:[%s17131_s2 + $0x1f0] sm:$0xf0]  ;;  %v10580_v26 = vld [vmem:[%s17131_s2 + $0x1ec] sm:$0xf] }
 0xa98   :  { %v6410_v5 = vadd.f32 %v16641_v33, %v6409_v10  ;;  %v9986_v49 = vor.u32 %v10581_v25, %v9985_v63  ;;  %v3929_v56 = vadd.f32 %v17367_v52, %v14678_v6  ;;  %v9994_v34 = vor.u32 %v10582_v61, %v9993_v27  ;;  %v10575_v10 = vld [vmem:[%s17131_s2 + $0x1c4] sm:$0xf]  ;;  %v9937_v25 = vld [vmem:[%s17131_s2 + $0x180] sm:$0xf]  ;;  %v9939_v61 = vld [vmem:[%s17131_s2 + $0x190] sm:$0xf0] }
 0xa99   :  { %11026 = vtanh.f32 %v16691_v18  ;;  %v6447_v16 = vmul.f32 %v11021_v15, %v6446_v0  ;;  %v6477_v28 = vsel %vm16705_vm6, %v16604_v44, %v6473_v47  ;;  %v6495_v31 = vand.u32 2147483648, %v6468_v55  ;;  %v9969_v47 = vld [vmem:[%s17131_s2 + $0x1c0] sm:$0xf]  ;;  %v10577_v0 = vld [vmem:[%s17131_s2 + $0x1cc] sm:$0xf0] }
 0xa9a   :  { %11028 = vrcp.f32 %v6468_v55  ;;  %v6414_v41 = vsel %vm6413_vm5, %v16641_v33, %v6410_v5  ;;  %v6482_v22 = vsel %vm6479_vm11, %v6481_v19, %v6477_v28  ;;  %v6493_v44 = vand.u32 2147483647, %v6468_v55  ;;  %7135 = vmatpush.bf16.msrb.mxu2 %v9994_v34  ;;  %v10571_v28 = vld [vmem:[%s17131_s2 + $0x1a4] sm:$0xf]  ;;  %v17369_v19 = vld [vmem:[#allocation23_spill] sm:$0xff] }
 0xa9b   :  { %v6448_v3 = vadd.f32 %v11021_v15, %v6447_v16  ;;  %v6419_v4 = vsel %vm6416_vm8, %v6418_v50, %v6414_v41  ;;  %vm6489_vm13 = vweird.f32 %v6468_v55  ;;  %7107 = vmatpush.bf16.msrb.mxu0 %v9986_v49  ;;  %v9998_v20 = vor.u32 %v10580_v26, %v9995_v1  ;;  %v9979_v41 = vld [vmem:[%s17131_s2 + $0x1d8] sm:$0xf0]  ;;  %v10567_v49 = vld [vmem:[%s17131_s2 + $0x184] sm:$0xf]  ;;  %v9945_v52 = vld [vmem:[%s17131_s2 + $0x188] sm:$0xf] }
 0xa9c   :  { %v6502_v30 = vmul.f32 %v11023_v40, %v6419_v4  ;;  %vm6494_vm15 = vcmp.eq.f32.partialorder %v6493_v44, 8.507059e+37  ;;  %v17368_v40 = vld [vmem:[#allocation17_spill] sm:$0xff]  ;;  %v9974_v45 = vor.u32 %v10575_v10, %v9971_v35  ;;  %v9978_v50 = vor.u32 %v10578_v57, %v9977_v8  ;;  %v10573_v4 = vld [vmem:[%s17131_s2 + $0x1ac] sm:$0xf0]  ;;  %v10570_v34 = vld [vmem:[%s17131_s2 + $0x194] sm:$0xf0] }
 0xa9d   :  { %v6452_v54 = vsel %vm6451_vm9, %v11021_v15, %v6448_v3  ;;  %v10579_v15 = vld [vmem:[%s17131_s2 + $0x1e4] sm:$0xf]  ;;  %v3978_v11 = vadd.f32 %v17368_v40, %v14680_v7  ;;  %7149 = vmatpush.bf16.msrb.mxu3 %v9998_v20  ;;  %v9982_v3 = vor.u32 %v10576_v29, %v9979_v41  ;;  %v10572_v44 = vld [vmem:[%s17131_s2 + $0x1ac] sm:$0xf]  ;;  %v9947_v20 = vld [vmem:[%s17131_s2 + $0x198] sm:$0xf0] }
 0xa9e   :  { %v6457_v21 = vsel %vm6454_vm10, %v6456_v37, %v6452_v54  ;;  %v9990_v9 = vor.u32 %v10579_v15, %v9987_v39  ;;  %7136 = vmatpush.bf16.msrb.mxu2 %v9978_v50  ;;  %v9953_v37 = vld [vmem:[%s17131_s2 + $0x1a0] sm:$0xf]  ;;  %v4076_v54 = vadd.f32 %v17369_v19, %v14690_v53  ;;  %v10569_v15 = vld [vmem:[%s17131_s2 + $0x18c] sm:$0xf0]  ;;  %v10563_v35 = vld [vmem:[%s17131_s2 + $0x164] sm:$0xf] }
 0xa9f   :  { %v11027_v33 = vpop.eup %11026  ;;  %v6500_v14 = vmul.f32 %v6457_v21, %v16386_v24  ;;  %v6496_v24 = vor.u32 1.1754944e-38, %v6495_v31  ;;  %v9955_v21 = vld [vmem:[%s17131_s2 + $0x1b0] sm:$0xf0]  ;;  %v9938_v27 = vor.u32 %v10569_v15, %v9937_v25  ;;  %v9921_v10 = vld [vmem:[%s17131_s2 + $0x160] sm:$0xf] }
 0xaa0   :  { %v11029_v12 = vpop.eup %11028  ;;  %v6507_v38 = vmul.f32 %v11027_v33, %v6482_v22  ;;  %7121 = vmatpush.bf16.msrb.mxu1 %v9990_v9  ;;  %v9961_v33 = vld [vmem:[%s17131_s2 + $0x1a8] sm:$0xf]  ;;  %v17370_v22 = vld [vmem:[#allocation22_spill] sm:$0xff]  ;;  %v9958_v31 = vor.u32 %v10571_v28, %v9955_v21  ;;  %v9942_v9 = vor.u32 %v10567_v49, %v9939_v61  ;;  %v10566_v50 = vld [vmem:[%s17131_s2 + $0x174] sm:$0xf0] }
 0xaa1   :  { %v16723_v60 = vadd.f32 %v6502_v30, %v6500_v14  ;;  %v6485_v42 = vmul.f32 %v11029_v12, %v6468_v55  ;;  %vm6490_vm12 = vweird.f32 %v11029_v12  ;;  %v9970_v55 = vor.u32 %v10577_v0, %v9969_v47  ;;  %v10574_v14 = vld [vmem:[%s17131_s2 + $0x1b4] sm:$0xf0]  ;;  %7150 = vmatpush.bf16.msrb.mxu3 %v9982_v3  ;;  %v17372_v47 = vld [vmem:[#allocation21_spill] sm:$0xff]  ;;  %v9923_v8 = vld [vmem:[%s17131_s2 + $0x170] sm:$0xf0] }
 0xaa2   :  { %9669 = vst [vmem:[%s17133_s4 + $0x50] sm:$0xff] %v6507_v38  ;;  %vm6491_vm14 = vmor %vm6489_vm13, %vm6490_vm12  ;;  %v9954_v30 = vor.u32 %v10573_v4, %v9953_v37  ;;  %v4027_v0 = vadd.f32 %v17372_v47, %v14746_v62  ;;  %v17373_v29 = vld [vmem:[#allocation26_spill] sm:$0xff]  ;;  %v10564_v28 = vld [vmem:[%s17131_s2 + $0x16c] sm:$0xf] }
 0xaa3   :  { %11030 = vtanh.f32 %v16723_v60  ;;  %v6486_v2 = vsub.f32 1.0, %v6485_v42  ;;  %7108 = vmatpush.bf16.msrb.mxu0 %v9970_v55  ;;  %v10565_v55 = vld [vmem:[%s17131_s2 + $0x16c] sm:$0xf0]  ;;  %v4078_v41 = vadd.f32 %v17373_v29, %v14690_v53  ;;  %v9931_v19 = vld [vmem:[%s17131_s2 + $0x178] sm:$0xf0] }
 0xaa4   :  { %7122 = vmatpush.bf16.msrb.mxu1 %v9974_v45  ;;  %v9929_v45 = vld [vmem:[%s17131_s2 + $0x168] sm:$0xf]  ;;  %v9922_v4 = vor.u32 %v10565_v55, %v9921_v10  ;;  %v9891_v29 = vld [vmem:[%s17131_s2 + $0x130] sm:$0xf0] }
 0xaa5   :  { %v6487_v23 = vmul.f32 %v11029_v12, %v6486_v2  ;;  %v9930_v21 = vor.u32 %v10566_v50, %v9929_v45  ;;  %v10555_v50 = vld [vmem:[%s17131_s2 + $0x124] sm:$0xf] }
 0xaa7   :  { %v6488_v36 = vadd.f32 %v11029_v12, %v6487_v23  ;;  %v9962_v23 = vor.u32 %v10574_v14, %v9961_v33  ;;  %7109 = vmatpush.bf16.msrb.mxu0 %v9954_v30  ;;  %v9926_v30 = vor.u32 %v10563_v35, %v9923_v8  ;;  %v9934_v33 = vor.u32 %v10564_v28, %v9931_v19  ;;  %v9905_v14 = vld [vmem:[%s17131_s2 + $0x140] sm:$0xf]  ;;  %v10557_v35 = vld [vmem:[%s17131_s2 + $0x12c] sm:$0xf0]  ;;  %v9897_v28 = vld [vmem:[%s17131_s2 + $0x128] sm:$0xf] }
 0xaa8   :  { %7123 = vmatpush.bf16.msrb.mxu1 %v9958_v31 }
 0xaa9   :  { %v11031_v51 = vpop.eup %11030  ;;  %v6492_v58 = vsel %vm6491_vm14, %v11029_v12, %v6488_v36  ;;  %v3931_v12 = vadd.f32 %v17370_v22, %v14678_v6  ;;  %v9963_v36 = vld [vmem:[%s17131_s2 + $0x1b8] sm:$0xf0]  ;;  %7137 = vmatpush.bf16.msrb.mxu2 %v9962_v23  ;;  %v10561_v22 = vld [vmem:[%s17131_s2 + $0x14c] sm:$0xf0] }
 0xaaa   :  { %v6497_v13 = vsel %vm6494_vm15, %v6496_v24, %v6492_v58 }
 0xaab   :  { %v6508_v43 = vmul.f32 %v11031_v51, %v6497_v13  ;;  %v9966_v13 = vor.u32 %v10572_v44, %v9963_v36  ;;  %7110 = vmatpush.bf16.msrb.mxu0 %v9938_v27  ;;  %v9906_v36 = vor.u32 %v10561_v22, %v9905_v14  ;;  %v9899_v14 = vld [vmem:[%s17131_s2 + $0x138] sm:$0xf0]  ;;  %v9873_v22 = vld [vmem:[%s17131_s2 + $0x100] sm:$0xf] }
 0xaac   :  { %7124 = vmatpush.bf16.msrb.mxu1 %v9942_v9 }
 0xaad   :  { %9670 = vst [vmem:[%s17133_s4 + $0x58] sm:$0xff] %v6508_v43  ;;  %v6520_v46 = vpack.c.bf16 %v6508_v43, %v6507_v38  ;;  %v17371_v38 = vld [vmem:[#allocation24_spill] sm:$0xff]  ;;  %7151 = vmatpush.bf16.msrb.mxu3 %v9966_v13 }
 0xaae   :  { %v3980_v42 = vadd.f32 %v17371_v38, %v14680_v7 }
 0xaaf   :  { %6721 = vmatmul.bf16.vlgmr.msra.gmra.mxu0 %v6520_v46  ;;  %6735 = vmatmul.bf16.vlgmr.msra.gmra.mxu1 %v6520_v46 }
 0xab0   :  { %6749 = vmatmul.bf16.vlgmr.msra.gmra.mxu2 %v6520_v46  ;;  %6763 = vmatmul.bf16.vlgmr.msra.gmra.mxu3 %v6520_v46 }
 0xab1   :  { %7111 = vmatpush.bf16.msrb.mxu0 %v9922_v4  ;;  %7125 = vmatpush.bf16.msrb.mxu1 %v9926_v30 }
 0xab5   :  { %7112 = vmatpush.bf16.msrb.mxu0 %v9906_v36 }
 0xb2c   :  { %v6722_v48 = vpop.f32.mrf.mxu0  ;;  %v6736_v17 = vpop.f32.mrf.mxu1 }
 0xb2d   :  { %v6769_v32 = vadd.f32 %v6722_v48, %v3929_v56  ;;  %v6770_v59 = vadd.f32 %v6736_v17, %v3978_v11  ;;  %v9946_v48 = vor.u32 %v10570_v34, %v9945_v52  ;;  %v10568_v17 = vld [vmem:[%s17131_s2 + $0x18c] sm:$0xf]  ;;  %v9913_v34 = vld [vmem:[%s17131_s2 + $0x148] sm:$0xf] }
 0xb2f   :  { %v9831_v16 = vmul.f32 -1.442695, %v6769_v32  ;;  %v9833_v5 = vmul.f32 -1.442695, %v6770_v59  ;;  %v9950_v59 = vor.u32 %v10568_v17, %v9947_v20  ;;  %7138 = vmatpush.bf16.msrb.mxu2 %v9946_v48  ;;  %v10560_v17 = vld [vmem:[%s17131_s2 + $0x14c] sm:$0xf] }
 0xb30   :  { %v9915_v20 = vld [vmem:[%s17131_s2 + $0x158] sm:$0xf0] }
 0xb31   :  { %11032 = vpow2.f32 %v9831_v16  ;;  %7152 = vmatpush.bf16.msrb.mxu3 %v9950_v59  ;;  %v9889_v59 = vld [vmem:[%s17131_s2 + $0x120] sm:$0xf]  ;;  %v9918_v30 = vor.u32 %v10560_v17, %v9915_v20 }
 0xb32   :  { %11034 = vpow2.f32 %v9833_v5 }
 0xb33   :  { %v6764_v2 = vpop.f32.mrf.mxu3  ;;  %v6750_v43 = vpop.f32.mrf.mxu2  ;;  %7139 = vmatpush.bf16.msrb.mxu2 %v9930_v21  ;;  %v9890_v21 = vor.u32 %v10557_v35, %v9889_v59 }
 0xb34   :  { %v6772_v24 = vadd.f32 %v6764_v2, %v4076_v54  ;;  %v6724_v51 = vpop.f32.mrf.mxu0  ;;  %v6738_v58 = vpop.f32.mrf.mxu1  ;;  %v6771_v57 = vadd.f32 %v6750_v43, %v4027_v0 }
 0xb35   :  { %v6773_v46 = vadd.f32 %v6724_v51, %v3931_v12  ;;  %v6774_v63 = vadd.f32 %v6738_v58, %v3980_v42  ;;  %v10559_v12 = vld [vmem:[%s17131_s2 + $0x144] sm:$0xf]  ;;  %v17374_v42 = vld [vmem:[#allocation25_spill] sm:$0xff]  ;;  %7153 = vmatpush.bf16.msrb.mxu3 %v9934_v33  ;;  %7113 = vmatpush.bf16.msrb.mxu0 %v9890_v21 }
 0xb36   :  { %v9835_v39 = vmul.f32 -1.442695, %v6772_v24  ;;  %v4029_v2 = vadd.f32 %v17374_v42, %v14746_v62  ;;  %v9907_v24 = vld [vmem:[%s17131_s2 + $0x150] sm:$0xf0]  ;;  %v10556_v33 = vld [vmem:[%s17131_s2 + $0x12c] sm:$0xf] }
 0xb37   :  { %v11033_v56 = vpop.eup %11032  ;;  %v9832_v40 = vmul.f32 -1.442695, %v6773_v46  ;;  %v9834_v11 = vmul.f32 -1.442695, %v6774_v63  ;;  %v9910_v43 = vor.u32 %v10559_v12, %v9907_v24  ;;  %v9902_v9 = vor.u32 %v10556_v33, %v9899_v14 }
 0xb38   :  { %v11035_v26 = vpop.eup %11034  ;;  %v16832_v1 = vadd.f32 1.0, %v11033_v56  ;;  %11036 = vpow2.f32 %v9835_v39 }
 0xb39   :  { %v16840_v32 = vadd.f32 1.0, %v11035_v26  ;;  %11038 = vpow2.f32 %v9832_v40  ;;  %7126 = vmatpush.bf16.msrb.mxu1 %v9910_v43  ;;  %v10562_v26 = vld [vmem:[%s17131_s2 + $0x154] sm:$0xf0]  ;;  %7154 = vmatpush.bf16.msrb.mxu3 %v9918_v30  ;;  %v9875_v43 = vld [vmem:[%s17131_s2 + $0x110] sm:$0xf0] }
 0xb3a   :  { %11040 = vrcp.f32 %v16832_v1  ;;  %v6794_v16 = vand.u32 2147483647, %v16832_v1  ;;  %v6796_v37 = vand.u32 2147483648, %v16832_v1  ;;  %vm6790_vm1 = vweird.f32 %v16832_v1 }
 0xb3b   :  { %11042 = vrcp.f32 %v16840_v32  ;;  %v6766_v5 = vpop.f32.mrf.mxu3  ;;  %v6834_v3 = vand.u32 2147483648, %v16840_v32  ;;  %v6752_v23 = vpop.f32.mrf.mxu2  ;;  %v6832_v58 = vand.u32 2147483647, %v16840_v32  ;;  %vm6828_vm4 = vweird.f32 %v16840_v32 }
 0xb3c   :  { %11044 = vpow2.f32 %v9834_v11  ;;  %v6776_v44 = vadd.f32 %v6766_v5, %v4078_v41  ;;  %vm16900_vm0 = vcmp.eq.f32.partialorder %v6794_v16, 8.507059e+37  ;;  %v6797_v27 = vor.u32 1.1754944e-38, %v6796_v37 }
 0xb3d   :  { %11046 = vtanh.f32 %v6771_v57  ;;  %v6835_v39 = vor.u32 1.1754944e-38, %v6834_v3  ;;  %v6775_v61 = vadd.f32 %v6752_v23, %v4029_v2  ;;  %vm16912_vm3 = vcmp.eq.f32.partialorder %v6832_v58, 8.507059e+37  ;;  %v10553_v23 = vld [vmem:[%s17131_s2 + $0x10c] sm:$0xf0]  ;;  %7155 = vmatpush.bf16.msrb.mxu3 %v9902_v9 }
 0xb3e   :  { %v11037_v54 = vpop.eup %11036  ;;  %v9836_v40 = vmul.f32 -1.442695, %v6776_v44  ;;  %v9914_v45 = vor.u32 %v10562_v26, %v9913_v34  ;;  %v10551_v44 = vld [vmem:[%s17131_s2 + $0x104] sm:$0xf]  ;;  %v9894_v58 = vor.u32 %v10555_v50, %v9891_v29  ;;  %v17391_v50 = vld [vmem:[#allocation34_spill] sm:$0xff] }
 0xb3f   :  { %v11039_v38 = vpop.eup %11038  ;;  %v16886_v31 = vadd.f32 1.0, %v11037_v54  ;;  %v9878_v59 = vor.u32 %v10551_v44, %v9875_v43 }
 0xb40   :  { %v16891_v51 = vpop.eup %11040  ;;  %v16894_v13 = vadd.f32 1.0, %v11039_v38  ;;  %7140 = vmatpush.bf16.msrb.mxu2 %v9914_v45  ;;  %7127 = vmatpush.bf16.msrb.mxu1 %v9894_v58 }
 0xb41   :  { %v16896_v46 = vpop.eup %11042  ;;  %v6786_v63 = vmul.f32 %v16891_v51, %v16832_v1  ;;  %11048 = vrcp.f32 %v16886_v31  ;;  %vm6791_vm2 = vweird.f32 %v16891_v51  ;;  %v6874_v10 = vand.u32 2147483648, %v16886_v31 }
 0xb42   :  { %v11045_v15 = vpop.eup %11044  ;;  %v6824_v49 = vmul.f32 %v16896_v46, %v16840_v32  ;;  %11050 = vrcp.f32 %v16894_v13  ;;  %vm6829_vm5 = vweird.f32 %v16896_v46  ;;  %v6809_v55 = vand.u32 2147483647, %v16894_v13  ;;  %vm16948_vm6 = vmor %vm6790_vm1, %vm6791_vm2  ;;  %v10558_v32 = vld [vmem:[%s17131_s2 + $0x134] sm:$0xf0] }
 0xb43   :  { %v6787_v52 = vsub.f32 1.0, %v6786_v63  ;;  %v16908_v56 = vadd.f32 1.0, %v11045_v15  ;;  %v11047_v47 = vpop.eup %11046  ;;  %vm16963_vm7 = vmor %vm6828_vm4, %vm6829_vm5  ;;  %v6811_v37 = vand.u32 2147483648, %v16894_v13  ;;  %vm6805_vm8 = vweird.f32 %v16894_v13  ;;  %v10554_v63 = vld [vmem:[%s17131_s2 + $0x114] sm:$0xf0] }
 0xb44   :  { %v6825_v11 = vsub.f32 1.0, %v6824_v49  ;;  %vm6868_vm12 = vweird.f32 %v16886_v31  ;;  %v6872_v16 = vand.u32 2147483647, %v16886_v31  ;;  %7128 = vmatpush.bf16.msrb.mxu1 %v9878_v59 }
 0xb45   :  { %v6788_v48 = vmul.f32 %v16891_v51, %v6787_v52  ;;  %11052 = vrcp.f32 %v16908_v56  ;;  %v6849_v5 = vand.u32 2147483648, %v16908_v56  ;;  %v6847_v4 = vand.u32 2147483647, %v16908_v56  ;;  %v9883_v52 = vld [vmem:[%s17131_s2 + $0x118] sm:$0xf0] }
 0xb46   :  { %v6826_v0 = vmul.f32 %v16896_v46, %v6825_v11  ;;  %11054 = vtanh.f32 %v6775_v61  ;;  %v10552_v61 = vld [vmem:[%s17131_s2 + $0x10c] sm:$0xf]  ;;  %v9898_v11 = vor.u32 %v10558_v32, %v9897_v28  ;;  %v6812_v45 = vor.u32 1.1754944e-38, %v6811_v37 }
 0xb47   :  { %v16941_v8 = vpop.eup %11048  ;;  %v6789_v57 = vadd.f32 %v16891_v51, %v6788_v48  ;;  %11056 = vpow2.f32 %v9836_v40  ;;  %vm6843_vm15 = vweird.f32 %v16908_v56  ;;  %v6875_v28 = vor.u32 1.1754944e-38, %v6874_v10 }
 0xb48   :  { %v6827_v41 = vadd.f32 %v16896_v46, %v6826_v0  ;;  %v6864_v3 = vmul.f32 %v16941_v8, %v16886_v31  ;;  %v16978_v19 = vpop.eup %11050  ;;  %vm6869_vm9 = vweird.f32 %v16941_v8  ;;  %7141 = vmatpush.bf16.msrb.mxu2 %v9898_v11  ;;  %v9886_v0 = vor.u32 %v10552_v61, %v9883_v52  ;;  %v17389_v61 = vld [vmem:[#allocation32_spill] sm:$0xff] }
 0xb49   :  { %v6793_v54 = vsel %vm16948_vm6, %v16891_v51, %v6789_v57  ;;  %v6801_v2 = vmul.f32 %v16978_v19, %v16894_v13  ;;  %vm6806_vm10 = vweird.f32 %v16978_v19  ;;  %vm17042_vm14 = vmor %vm6868_vm12, %vm6869_vm9  ;;  %vm6848_vm2 = vcmp.eq.f32.partialorder %v6847_v4, 8.507059e+37 }
 0xb4a   :  { %v6798_v12 = vsel %vm16900_vm0, %v6797_v27, %v6793_v54  ;;  %v6831_v38 = vsel %vm16963_vm7, %v16896_v46, %v6827_v41  ;;  %v6865_v42 = vsub.f32 1.0, %v6864_v3  ;;  %v9881_v46 = vld [vmem:[%s17131_s2 + $0x108] sm:$0xf]  ;;  %vm6807_vm13 = vmor %vm6805_vm8, %vm6806_vm10  ;;  %vm6810_vm0 = vcmp.eq.f32.partialorder %v6809_v55, 8.507059e+37  ;;  %7156 = vmatpush.bf16.msrb.mxu3 %v9886_v0 }
 0xb4b   :  { %v11053_v36 = vpop.eup %11052  ;;  %v6836_v24 = vsel %vm16912_vm3, %v6835_v39, %v6831_v38  ;;  %v6895_v51 = vmul.f32 %v11047_v47, %v6798_v12  ;;  %v6802_v39 = vsub.f32 1.0, %v6801_v2  ;;  %v9882_v47 = vor.u32 %v10554_v63, %v9881_v46 }
 0xb4c   :  { %v11055_v25 = vpop.eup %11054  ;;  %v6893_v15 = vmul.f32 %v6836_v24, %v16691_v18  ;;  %v6866_v49 = vmul.f32 %v16941_v8, %v6865_v42  ;;  %v6839_v27 = vmul.f32 %v11053_v36, %v16908_v56  ;;  %v9874_v18 = vor.u32 %v10553_v23, %v9873_v22  ;;  %v17385_v23 = vld [vmem:[#allocation27_spill] sm:$0xff] }
 0xb4d   :  { %v11057_v40 = vpop.eup %11056  ;;  %v6803_v17 = vmul.f32 %v16978_v19, %v6802_v39  ;;  %vm6844_vm11 = vweird.f32 %v11053_v36  ;;  %v6850_v41 = vor.u32 1.1754944e-38, %v6849_v5  ;;  %7142 = vmatpush.bf16.msrb.mxu2 %v9882_v47  ;;  %vm6873_vm3 = vcmp.eq.f32.partialorder %v6872_v16, 8.507059e+37  ;;  %v17388_v39 = vld [vmem:[#allocation31_spill] sm:$0xff] }
 0xb4e   :  { %v17028_v34 = vadd.f32 %v6895_v51, %v6893_v15  ;;  %v6867_v26 = vadd.f32 %v16941_v8, %v6866_v49  ;;  %v6840_v48 = vsub.f32 1.0, %v6839_v27  ;;  %v6862_v20 = vadd.f32 1.0, %v11057_v40  ;;  %7114 = vmatpush.bf16.msrb.mxu0 %v9874_v18  ;;  %vm6845_vm1 = vmor %vm6843_vm15, %vm6844_vm11  ;;  %v17387_v15 = vld [vmem:[#allocation30_spill] sm:$0xff] }
 0xb4f   :  { %v6804_v57 = vadd.f32 %v16978_v19, %v6803_v17  ;;  %v3934_v44 = vadd.f32 %v17385_v23, %v14678_v6  ;;  %v4081_v49 = vadd.f32 %v17387_v15, %v14690_v53  ;;  %v3936_v27 = vadd.f32 %v17388_v39, %v14678_v6 }
 0xb50   :  { %11058 = vtanh.f32 %v17028_v34  ;;  %v6841_v35 = vmul.f32 %v11053_v36, %v6840_v48  ;;  %v6871_v37 = vsel %vm17042_vm14, %v16941_v8, %v6867_v26  ;;  %v6889_v56 = vand.u32 2147483648, %v6862_v20 }
 0xb51   :  { %11060 = vrcp.f32 %v6862_v20  ;;  %v6808_v29 = vsel %vm6807_vm13, %v16978_v19, %v6804_v57  ;;  %v6876_v54 = vsel %vm6873_vm3, %v6875_v28, %v6871_v37  ;;  %v6887_v8 = vand.u32 2147483647, %v6862_v20 }
 0xb52   :  { %v6842_v1 = vadd.f32 %v11053_v36, %v6841_v35  ;;  %v6813_v3 = vsel %vm6810_vm0, %v6812_v45, %v6808_v29  ;;  %vm6883_vm5 = vweird.f32 %v6862_v20  ;;  %v3985_v52 = vadd.f32 %v17389_v61, %v14680_v7 }
 0xb53   :  { %v6896_v13 = vmul.f32 %v11055_v25, %v6813_v3  ;;  %vm6888_vm7 = vcmp.eq.f32.partialorder %v6887_v8, 8.507059e+37  ;;  %v4083_v29 = vadd.f32 %v17391_v50, %v14690_v53 }
 0xb54   :  { %v6846_v32 = vsel %vm6845_vm1, %v11053_v36, %v6842_v1  ;;  %v17386_v36 = vld [vmem:[#allocation28_spill] sm:$0xff] }
 0xb55   :  { %v6851_v55 = vsel %vm6848_vm2, %v6850_v41, %v6846_v32  ;;  %v3983_v24 = vadd.f32 %v17386_v36, %v14680_v7  ;;  %v17390_v7 = vld [vmem:[#allocation29_spill] sm:$0xff] }
 0xb56   :  { %v11059_v19 = vpop.eup %11058  ;;  %v6894_v5 = vmul.f32 %v6851_v55, %v16723_v60  ;;  %v6890_v60 = vor.u32 1.1754944e-38, %v6889_v56  ;;  %v4032_v16 = vadd.f32 %v17390_v7, %v14746_v62 }
 0xb57   :  { %v11061_v30 = vpop.eup %11060  ;;  %v6901_v21 = vmul.f32 %v11059_v19, %v6876_v54  ;;  %v17392_v54 = vld [vmem:[#allocation33_spill] sm:$0xff] }
 0xb58   :  { %v17060_v33 = vadd.f32 %v6896_v13, %v6894_v5  ;;  %v6879_v14 = vmul.f32 %v11061_v30, %v6862_v20  ;;  %vm6884_vm4 = vweird.f32 %v11061_v30 }
 0xb59   :  { %9837 = vst [vmem:[%s17133_s4 + $0x60] sm:$0xff] %v6901_v21  ;;  %vm6885_vm6 = vmor %vm6883_vm5, %vm6884_vm4 }
 0xb5a   :  { %11062 = vtanh.f32 %v17060_v33  ;;  %v6880_v31 = vsub.f32 1.0, %v6879_v14 }
 0xb5c   :  { %v6881_v10 = vmul.f32 %v11061_v30, %v6880_v31 }
 0xb5e   :  { %v6882_v4 = vadd.f32 %v11061_v30, %v6881_v10 }
 0xb60   :  { %v11063_v22 = vpop.eup %11062  ;;  %v6886_v12 = vsel %vm6885_vm6, %v11061_v30, %v6882_v4  ;;  %v4034_v30 = vadd.f32 %v17392_v54, %v14746_v62 }
 0xb61   :  { %v6891_v38 = vsel %vm6888_vm7, %v6890_v60, %v6886_v12 }
 0xb62   :  { %v6902_v42 = vmul.f32 %v11063_v22, %v6891_v38 }
 0xb64   :  { %9838 = vst [vmem:[%s17133_s4 + $0x68] sm:$0xff] %v6902_v42  ;;  %v6914_v2 = vpack.c.bf16 %v6902_v42, %v6901_v21 }
 0xb66   :  { %7115 = vmatmul.bf16.vlgmr.msrb.gmra.mxu0 %v6914_v2  ;;  %7129 = vmatmul.bf16.vlgmr.msrb.gmra.mxu1 %v6914_v2 }
 0xb67   :  { %7143 = vmatmul.bf16.vlgmr.msrb.gmra.mxu2 %v6914_v2  ;;  %7157 = vmatmul.bf16.vlgmr.msrb.gmra.mxu3 %v6914_v2 }
 0xbe3   :  { %v7116_v51 = vpop.f32.mrf.mxu0  ;;  %v7130_v58 = vpop.f32.mrf.mxu1 }
 0xbe4   :  { %v7163_v43 = vadd.f32 %v7116_v51, %v3934_v44  ;;  %v7164_v46 = vadd.f32 %v7130_v58, %v3983_v24 }
 0xbe6   :  { %v9999_v63 = vmul.f32 -1.442695, %v7163_v43  ;;  %v10001_v25 = vmul.f32 -1.442695, %v7164_v46 }
 0xbe8   :  { %11064 = vpow2.f32 %v9999_v63 }
 0xbe9   :  { %11066 = vpow2.f32 %v10001_v25 }
 0xbea   :  { %v7158_v40 = vpop.f32.mrf.mxu3  ;;  %v7144_v6 = vpop.f32.mrf.mxu2 }
 0xbeb   :  { %v7166_v11 = vadd.f32 %v7158_v40, %v4081_v49  ;;  %v7118_v9 = vpop.f32.mrf.mxu0  ;;  %v7132_v18 = vpop.f32.mrf.mxu1  ;;  %v7165_v41 = vadd.f32 %v7144_v6, %v4032_v16 }
 0xbec   :  { %v7167_v26 = vadd.f32 %v7118_v9, %v3936_v27  ;;  %v7168_v48 = vadd.f32 %v7132_v18, %v3985_v52 }
 0xbed   :  { %v10003_v17 = vmul.f32 -1.442695, %v7166_v11 }
 0xbee   :  { %v11065_v20 = vpop.eup %11064  ;;  %v10000_v59 = vmul.f32 -1.442695, %v7167_v26  ;;  %v10002_v35 = vmul.f32 -1.442695, %v7168_v48 }
 0xbef   :  { %v11067_v47 = vpop.eup %11066  ;;  %v7177_v0 = vadd.f32 1.0, %v11065_v20  ;;  %11068 = vpow2.f32 %v10003_v17 }
 0xbf0   :  { %v7215_v57 = vadd.f32 1.0, %v11067_v47  ;;  %11070 = vpow2.f32 %v10000_v59 }
 0xbf1   :  { %11072 = vrcp.f32 %v7177_v0  ;;  %v7188_v8 = vand.u32 2147483647, %v7177_v0  ;;  %v7190_v4 = vand.u32 2147483648, %v7177_v0  ;;  %vm7184_vm10 = vweird.f32 %v7177_v0 }
 0xbf2   :  { %11074 = vrcp.f32 %v7215_v57  ;;  %v7160_v45 = vpop.f32.mrf.mxu3  ;;  %v7228_v10 = vand.u32 2147483648, %v7215_v57  ;;  %v7146_v60 = vpop.f32.mrf.mxu2  ;;  %v7226_v12 = vand.u32 2147483647, %v7215_v57  ;;  %vm7222_vm11 = vweird.f32 %v7215_v57 }
 0xbf3   :  { %11076 = vpow2.f32 %v10002_v35  ;;  %v7170_v28 = vadd.f32 %v7160_v45, %v4083_v29  ;;  %v7169_v2 = vadd.f32 %v7146_v60, %v4034_v30  ;;  %v7191_v44 = vor.u32 1.1754944e-38, %v7190_v4 }
 0xbf4   :  { %v7229_v58 = vor.u32 1.1754944e-38, %v7228_v10  ;;  %vm7189_vm14 = vcmp.eq.f32.partialorder %v7188_v8, 8.507059e+37  ;;  %vm7227_vm15 = vcmp.eq.f32.partialorder %v7226_v12, 8.507059e+37 }
 0xbf5   :  { %v11069_v1 = vpop.eup %11068  ;;  %v10004_v31 = vmul.f32 -1.442695, %v7170_v28 }
 0xbf6   :  { %v11071_v3 = vpop.eup %11070  ;;  %v17083_v37 = vadd.f32 1.0, %v11069_v1 }
 0xbf7   :  { %v11073_v32 = vpop.eup %11072  ;;  %v17085_v13 = vadd.f32 1.0, %v11071_v3 }
 0xbf8   :  { %v11075_v55 = vpop.eup %11074  ;;  %v7180_v19 = vmul.f32 %v11073_v32, %v7177_v0  ;;  %11078 = vrcp.f32 %v17083_v37  ;;  %vm7185_vm8 = vweird.f32 %v11073_v32  ;;  %v7268_v61 = vand.u32 2147483648, %v17083_v37 }
 0xbf9   :  { %v11077_v5 = vpop.eup %11076  ;;  %v7218_v21 = vmul.f32 %v11075_v55, %v7215_v57  ;;  %11080 = vtanh.f32 %v7165_v41  ;;  %vm7223_vm9 = vweird.f32 %v11075_v55  ;;  %vm7186_vm12 = vmor %vm7184_vm10, %vm7185_vm8  ;;  %vm7199_vm0 = vweird.f32 %v17085_v13 }
 0xbfa   :  { %v7181_v53 = vsub.f32 1.0, %v7180_v19  ;;  %11082 = vrcp.f32 %v17085_v13  ;;  %v17091_v14 = vadd.f32 1.0, %v11077_v5  ;;  %vm7224_vm13 = vmor %vm7222_vm11, %vm7223_vm9  ;;  %v7203_v48 = vand.u32 2147483647, %v17085_v13 }
 0xbfb   :  { %v7219_v56 = vsub.f32 1.0, %v7218_v21  ;;  %v7205_v17 = vand.u32 2147483648, %v17085_v13  ;;  %vm7262_vm4 = vweird.f32 %v17083_v37  ;;  %v7266_v16 = vand.u32 2147483647, %v17083_v37 }
 0xbfc   :  { %v7182_v22 = vmul.f32 %v11073_v32, %v7181_v53  ;;  %11084 = vrcp.f32 %v17091_v14  ;;  %v7243_v26 = vand.u32 2147483648, %v17091_v14  ;;  %v7241_v0 = vand.u32 2147483647, %v17091_v14 }
 0xbfd   :  { %v7220_v38 = vmul.f32 %v11075_v55, %v7219_v56  ;;  %11086 = vpow2.f32 %v10004_v31  ;;  %v7206_v45 = vor.u32 1.1754944e-38, %v7205_v17  ;;  %vm7237_vm7 = vweird.f32 %v17091_v14 }
 0xbfe   :  { %v17094_v62 = vpop.eup %11078  ;;  %v7183_v42 = vadd.f32 %v11073_v32, %v7182_v22  ;;  %11088 = vtanh.f32 %v7169_v2  ;;  %vm7204_vm8 = vcmp.eq.f32.partialorder %v7203_v48, 8.507059e+37  ;;  %v7244_v3 = vor.u32 1.1754944e-38, %v7243_v26 }
 0xbff   :  { %v11081_v23 = vpop.eup %11080  ;;  %v7221_v36 = vadd.f32 %v11075_v55, %v7220_v38  ;;  %v7258_v24 = vmul.f32 %v17094_v62, %v17083_v37  ;;  %vm7263_vm2 = vweird.f32 %v17094_v62  ;;  %v7269_v28 = vor.u32 1.1754944e-38, %v7268_v61 }
 0xc00   :  { %v11083_v51 = vpop.eup %11082  ;;  %v7187_v43 = vsel %vm7186_vm12, %v11073_v32, %v7183_v42  ;;  %vm17114_vm6 = vmor %vm7262_vm4, %vm7263_vm2  ;;  %vm7242_vm10 = vcmp.eq.f32.partialorder %v7241_v0, 8.507059e+37  ;;  %vm7267_vm11 = vcmp.eq.f32.partialorder %v7266_v16, 8.507059e+37 }
 0xc01   :  { %v7192_v46 = vsel %vm7189_vm14, %v7191_v44, %v7187_v43  ;;  %v7225_v63 = vsel %vm7224_vm13, %v11075_v55, %v7221_v36  ;;  %v7259_v25 = vsub.f32 1.0, %v7258_v24  ;;  %v7195_v15 = vmul.f32 %v11083_v51, %v17085_v13 }
 0xc02   :  { %v11085_v49 = vpop.eup %11084  ;;  %v7230_v39 = vsel %vm7227_vm15, %v7229_v58, %v7225_v63  ;;  %v7289_v27 = vmul.f32 %v11081_v23, %v7192_v46  ;;  %vm7200_vm1 = vweird.f32 %v11083_v51 }
 0xc03   :  { %v7287_v52 = vmul.f32 %v7230_v39, %v17028_v34  ;;  %v7260_v40 = vmul.f32 %v17094_v62, %v7259_v25  ;;  %v7196_v11 = vsub.f32 1.0, %v7195_v15  ;;  %v7233_v9 = vmul.f32 %v11085_v49, %v17091_v14  ;;  %v11087_v18 = vpop.eup %11086  ;;  %vm7201_vm5 = vmor %vm7199_vm0, %vm7200_vm1 }
 0xc04   :  { %v7256_v35 = vadd.f32 1.0, %v11087_v18  ;;  %vm7238_vm3 = vweird.f32 %v11085_v49  ;;  %v11089_v7 = vpop.eup %11088 }
 0xc05   :  { %v7291_v20 = vadd.f32 %v7289_v27, %v7287_v52  ;;  %v7234_v59 = vsub.f32 1.0, %v7233_v9  ;;  %v7197_v47 = vmul.f32 %v11083_v51, %v7196_v11  ;;  %v7261_v34 = vadd.f32 %v17094_v62, %v7260_v40  ;;  %vm7239_vm9 = vmor %vm7237_vm7, %vm7238_vm3 }
 0xc06   :  { %v7283_v56 = vand.u32 2147483648, %v7256_v35  ;;  %v7281_v8 = vand.u32 2147483647, %v7256_v35  ;;  %vm7277_vm13 = vweird.f32 %v7256_v35 }
 0xc07   :  { %11090 = vtanh.f32 %v7291_v20  ;;  %v7235_v57 = vmul.f32 %v11085_v49, %v7234_v59  ;;  %v7198_v6 = vadd.f32 %v11083_v51, %v7197_v47  ;;  %v7265_v41 = vsel %vm17114_vm6, %v17094_v62, %v7261_v34 }
 0xc08   :  { %11092 = vrcp.f32 %v7256_v35  ;;  %v7270_v5 = vsel %vm7267_vm11, %v7269_v28, %v7265_v41  ;;  %v7284_v60 = vor.u32 1.1754944e-38, %v7283_v56  ;;  %vm7282_vm15 = vcmp.eq.f32.partialorder %v7281_v8, 8.507059e+37 }
 0xc09   :  { %v7202_v29 = vsel %vm7201_vm5, %v11083_v51, %v7198_v6  ;;  %v7236_v1 = vadd.f32 %v11085_v49, %v7235_v57 }
 0xc0a   :  { %v7207_v37 = vsel %vm7204_vm8, %v7206_v45, %v7202_v29 }
 0xc0b   :  { %v7240_v32 = vsel %vm7239_vm9, %v11085_v49, %v7236_v1  ;;  %v7290_v13 = vmul.f32 %v11089_v7, %v7207_v37 }
 0xc0c   :  { %v7245_v55 = vsel %vm7242_vm10, %v7244_v3, %v7240_v32 }
 0xc0d   :  { %v11091_v19 = vpop.eup %11090  ;;  %v7288_v54 = vmul.f32 %v7245_v55, %v17060_v33 }
 0xc0e   :  { %v11093_v30 = vpop.eup %11092  ;;  %v7295_v21 = vmul.f32 %v11091_v19, %v7270_v5 }
 0xc0f   :  { %v7292_v53 = vadd.f32 %v7290_v13, %v7288_v54  ;;  %v7273_v14 = vmul.f32 %v11093_v30, %v7256_v35  ;;  %vm7278_vm12 = vweird.f32 %v11093_v30 }
 0xc10   :  { %10005 = vst [vmem:[%s17133_s4 + $0x70] sm:$0xff] %v7295_v21  ;;  %vm7279_vm14 = vmor %vm7277_vm13, %vm7278_vm12 }
 0xc11   :  { %11094 = vtanh.f32 %v7292_v53  ;;  %v7274_v31 = vsub.f32 1.0, %v7273_v14 }
 0xc13   :  { %v7275_v10 = vmul.f32 %v11093_v30, %v7274_v31 }
 0xc15   :  { %v7276_v4 = vadd.f32 %v11093_v30, %v7275_v10 }
 0xc17   :  { %v11095_v22 = vpop.eup %11094  ;;  %v7280_v33 = vsel %vm7279_vm14, %v11093_v30, %v7276_v4 }
 0xc18   :  { %v7285_v12 = vsel %vm7282_vm15, %v7284_v60, %v7280_v33 }
 0xc19   :  { %v7296_v38 = vmul.f32 %v11095_v22, %v7285_v12 }
 0xc1b   :  { %10006 = vst [vmem:[%s17133_s4 + $0x78] sm:$0xff] %v7296_v38 }

</bundles_post_ra>
